<compile_context>
chip_gen: v6e
topology: v6e:2x2x1
jax: 0.10.0
libtpu: 0.0.40
codegen_flags: <defaults>
</compile_context>

<pallas_src>
import functools
import math

import numpy as np
import jax
import jax.numpy as jnp
from jax import lax
from jax.experimental import pallas as pl
from jax.experimental.pallas import tpu as pltpu

H = 128          # LSTM hidden size (fixed by the module definition)
N_TOWERS = 2     # twin-Q


def _gates_to_hc(gates, c):
    """PyTorch LSTM gate nonlinearity. Gate order: i, f, g, o."""
    i = jax.nn.sigmoid(gates[:, 0 * H:1 * H])
    f = jax.nn.sigmoid(gates[:, 1 * H:2 * H])
    g = jnp.tanh(gates[:, 2 * H:3 * H])
    o = jax.nn.sigmoid(gates[:, 3 * H:4 * H])
    c_new = f * c + i * g
    h_new = o * jnp.tanh(c_new)
    return h_new, c_new


def critic_kernel(hist_ref, sa_ref,
                  w_ih0_ref, w_hh0_ref, b0_ref,
                  w_l1_ref, b1_ref,
                  wa_ref, ba_ref,
                  w1f_ref, w1sa_ref, bb1_ref,
                  w2_ref, bb2_ref,
                  w3_ref, bb3_ref,
                  q_ref,
                  gi0_scr, x1_scr, u_scr,
                  *, T, B, inv_sqrt_b):
    """One Q-tower per grid step (grid=(2,); weights are tower-indexed blocks)."""
    f32 = jnp.float32

    # ---- Hoisted layer-0 input projection: ONE (T*B, D) @ (D, 4H) matmul ----
    gi0_scr[...] = (jnp.dot(hist_ref[...], w_ih0_ref[...],
                            preferred_element_type=f32) + b0_ref[...])

    h0 = jnp.zeros((B, H), f32)
    c0 = jnp.zeros((B, H), f32)
    h1 = jnp.zeros((B, H), f32)
    c1 = jnp.zeros((B, H), f32)

    # ---- Fully unrolled 2-layer LSTM recurrence (T static & small) ----
    x1_list = []
    for t in range(T):
        # Layer 0: only the hidden-state matmul is on the serial path.
        g0 = (gi0_scr[t * B:(t + 1) * B, :]
              + jnp.dot(h0, w_hh0_ref[...], preferred_element_type=f32))
        h0, c0 = _gates_to_hc(g0, c0)
        # Layer 1: fused K=2H contraction (input + hidden matmuls in one).
        z = jnp.concatenate([h0, h1], axis=1)                 # (B, 2H)
        g1 = (jnp.dot(z, w_l1_ref[...], preferred_element_type=f32)
              + b1_ref[...])
        h1, c1 = _gates_to_hc(g1, c1)
        x1_list.append(h1)
        x1_scr[t * B:(t + 1) * B, :] = h1                     # top-layer output

    # ---- Attention: one batched tanh projection over all T steps ----
    u_scr[...] = jnp.tanh(jnp.dot(x1_scr[...], wa_ref[...],
                                  preferred_element_type=f32) + ba_ref[...])

    # h0 / h1 now hold the FINAL hidden states of layer 0 / layer 1 (the keys).
    att = []
    for t in range(T):
        u_t = u_scr[t * B:(t + 1) * B, :]                     # (B, 2H)
        a_t = (jnp.sum(u_t[:, :H] * h0, axis=1, keepdims=True)
               + jnp.sum(u_t[:, H:] * h1, axis=1, keepdims=True)) * inv_sqrt_b
        att.append(a_t)                                       # (B, 1)

    # Softmax over time on tiny (B,1) vregs (no scratch, no masked stores).
    m = att[0]
    for t in range(1, T):
        m = jnp.maximum(m, att[t])
    es = [jnp.exp(a - m) for a in att]
    denom = es[0]
    for t in range(1, T):
        denom = denom + es[t]
    inv_denom = 1.0 / denom

    feat = jnp.zeros((B, H), f32)
    for t in range(T):
        feat = feat + x1_list[t] * (es[t] * inv_denom)        # (B, H)

    # ---- MLP head (l1 weight split: no concat with state/action needed) ----
    x2 = jnp.maximum(
        jnp.dot(feat, w1f_ref[...], preferred_element_type=f32)
        + jnp.dot(sa_ref[...], w1sa_ref[...], preferred_element_type=f32)
        + bb1_ref[...], 0.0)                                  # (B, 256)
    x3 = jnp.maximum(
        jnp.dot(x2, w2_ref[...], preferred_element_type=f32) + bb2_ref[...],
        0.0)                                                  # (B, 128)
    q_ref[...] = (jnp.dot(x3, w3_ref[...], preferred_element_type=f32)
                  + bb3_ref[...])                             # (B, 1)


def _prep_tower(p):
    """Pre-transpose / pre-fuse one tower's parameters (plain-JAX glue)."""
    return (
        p['w_ih0'].T,                                         # (D, 4H)
        p['w_hh0'].T,                                         # (H, 4H)
        (p['b_ih0'] + p['b_hh0']).reshape(1, -1),             # (1, 4H)
        jnp.concatenate([p['w_ih1'].T, p['w_hh1'].T], axis=0),  # (2H, 4H) fused
        (p['b_ih1'] + p['b_hh1']).reshape(1, -1),             # (1, 4H)
        p['wa'].T,                                            # (H, 2H)
        p['ba'].reshape(1, -1),                               # (1, 2H)
        p['w1'][:, :H].T,                                     # (H, 256)
        p['w1'][:, H:].T,                                     # (D, 256)
        p['b1'].reshape(1, -1),                               # (1, 256)
        p['w2'].T, p['b2'].reshape(1, -1),                    # (256,128),(1,128)
        p['w3'].T, p['b3'].reshape(1, -1),                    # (128,1),(1,1)
    )


def critic_forward(history, state, action, p1, p2):
    """Twin-Q forward. history: (B, T, n_states+n_actions), batch_first."""
    B, T, D = history.shape
    # Time-major, flattened so the hoisted input projection is one big matmul.
    hist_flat = (jnp.transpose(history, (1, 0, 2))
                 .reshape(T * B, D).astype(jnp.float32))
    sa = jnp.concatenate([state, action], axis=1).astype(jnp.float32)

    stacked = [jnp.stack([a1, a2], axis=0).astype(jnp.float32)
               for a1, a2 in zip(_prep_tower(p1), _prep_tower(p2))]

    weight_specs = [pl.BlockSpec((None,) + tuple(a.shape[1:]),
                                 lambda g: (g, 0, 0)) for a in stacked]

    kernel = functools.partial(critic_kernel, T=T, B=B,
                               inv_sqrt_b=1.0 / math.sqrt(B))

    q_all = pl.pallas_call(
        kernel,
        out_shape=jax.ShapeDtypeStruct((N_TOWERS, B, 1), jnp.float32),
        grid=(N_TOWERS,),
        in_specs=[pl.BlockSpec((T * B, D), lambda g: (0, 0)),
                  pl.BlockSpec((B, sa.shape[1]), lambda g: (0, 0))]
                 + weight_specs,
        out_specs=pl.BlockSpec((None, B, 1), lambda g: (g, 0, 0)),
        scratch_shapes=[
            pltpu.VMEM((T * B, 4 * H), jnp.float32),   # hoisted input gates
            pltpu.VMEM((T * B, H), jnp.float32),       # top-layer LSTM outputs
            pltpu.VMEM((T * B, 2 * H), jnp.float32),   # attention projection u
        ],
        compiler_params=pltpu.CompilerParams(
            dimension_semantics=("parallel",)),        # one tower per TC (v7x)
    )(hist_flat, sa, *stacked)

    return q_all[0], q_all[1]


# -------------------- deterministic parameter init --------------------
def init_params(key, n_states, n_actions):
    D = n_states + n_actions
    ks = iter(jax.random.split(key, 20))

    def unif(shape, a):
        return jax.random.uniform(next(ks), shape, jnp.float32, -a, a)

    s = 1.0 / math.sqrt(H)
    sa_in = H + D
    return {
        # 2-layer LSTM (PyTorch weight shapes)
        'w_ih0': unif((4 * H, D), s), 'w_hh0': unif((4 * H, H), s),
        'b_ih0': unif((4 * H,), s), 'b_hh0': unif((4 * H,), s),
        'w_ih1': unif((4 * H, H), s), 'w_hh1': unif((4 * H, H), s),
        'b_ih1': unif((4 * H,), s), 'b_hh1': unif((4 * H,), s),
        # la: uniform(-0.1, 0.1) as in the module
        'wa': unif((256, H), 0.1), 'ba': unif((256,), 0.1),
        # l1, l2, l3 with PyTorch default Linear init scale
        'w1': unif((256, sa_in), 1.0 / math.sqrt(sa_in)),
        'b1': unif((256,), 1.0 / math.sqrt(sa_in)),
        'w2': unif((128, 256), 1.0 / math.sqrt(256)),
        'b2': unif((128,), 1.0 / math.sqrt(256)),
        'w3': unif((1, 128), 1.0 / math.sqrt(128)),
        'b3': unif((1,), 1.0 / math.sqrt(128)),
    }


# -------------------- pure-JAX reference (for validation) --------------------
def _lstm_ref(history, w_ih, w_hh, b_ih, b_hh):
    B = history.shape[0]

    def cell(carry, x_t):
        h, c = carry
        gates = x_t @ w_ih.T + b_ih + h @ w_hh.T + b_hh
        i, f, g, o = jnp.split(gates, 4, axis=1)
        c = jax.nn.sigmoid(f) * c + jax.nn.sigmoid(i) * jnp.tanh(g)
        h = jax.nn.sigmoid(o) * jnp.tanh(c)
        return (h, c), h

    init = (jnp.zeros((B, H), jnp.float32), jnp.zeros((B, H), jnp.float32))
    (h, _), ys = lax.scan(cell, init, jnp.transpose(history, (1, 0, 2)))
    return jnp.transpose(ys, (1, 0, 2)), h


def tower_ref(history, state, action, p):
    x0, h0 = _lstm_ref(history, p['w_ih0'], p['w_hh0'], p['b_ih0'], p['b_hh0'])
    x1, h1 = _lstm_ref(x0, p['w_ih1'], p['w_hh1'], p['b_ih1'], p['b_hh1'])
    u = jnp.tanh(x1 @ p['wa'].T + p['ba'])                     # (B, T, 256)
    d = u.shape[0]
    k = jnp.concatenate([h0, h1], axis=1)[:, :, None]          # (B, 256, 1)
    att = jnp.matmul(u, k) / math.sqrt(d)                      # (B, T, 1)
    score = jax.nn.softmax(att, axis=1)
    feat = jnp.sum(x1 * score, axis=1)                         # (B, 128)
    sa = jnp.concatenate([feat, state, action], axis=1)
    x2 = jax.nn.relu(sa @ p['w1'].T + p['b1'])
    x3 = jax.nn.relu(x2 @ p['w2'].T + p['b2'])
    return x3 @ p['w3'].T + p['b3']


if __name__ == "__main__":
    n_states, n_actions = 8, 4
    B, T = 2, 8

    key = jax.random.PRNGKey(0)
    k_hist, k_state, k_act, k_p1, k_p2 = jax.random.split(key, 5)
    history = jax.random.normal(k_hist, (B, T, n_states + n_actions), jnp.float32)
    state = jax.random.normal(k_state, (B, n_states), jnp.float32)
    action = jax.random.normal(k_act, (B, n_actions), jnp.float32)

    p1 = init_params(k_p1, n_states, n_actions)
    p2 = init_params(k_p2, n_states, n_actions)

    critic = jax.jit(critic_forward)
    q1, q2 = critic(history, state, action, p1, p2)
    jax.block_until_ready((q1, q2))

    r1 = tower_ref(history, state, action, p1)
    r2 = tower_ref(history, state, action, p2)
    np.testing.assert_allclose(np.asarray(q1), np.asarray(r1), rtol=2e-3, atol=2e-3)
    np.testing.assert_allclose(np.asarray(q2), np.asarray(r2), rtol=2e-3, atol=2e-3)

    print("KERNEL_OK")
</pallas_src>

<mosaic_0001>
module attributes {stable_mosaic.version = 11 : i64} {
  func.func @critic_kernel(%arg0: i32, %arg1: memref<16x12xf32, #tpu.memory_space<vmem>>, %arg2: memref<2x12xf32, #tpu.memory_space<vmem>>, %arg3: memref<1x12x512xf32, #tpu.memory_space<vmem>>, %arg4: memref<1x128x512xf32, #tpu.memory_space<vmem>>, %arg5: memref<1x1x512xf32, #tpu.memory_space<vmem>>, %arg6: memref<1x256x512xf32, #tpu.memory_space<vmem>>, %arg7: memref<1x1x512xf32, #tpu.memory_space<vmem>>, %arg8: memref<1x128x256xf32, #tpu.memory_space<vmem>>, %arg9: memref<1x1x256xf32, #tpu.memory_space<vmem>>, %arg10: memref<1x128x256xf32, #tpu.memory_space<vmem>>, %arg11: memref<1x12x256xf32, #tpu.memory_space<vmem>>, %arg12: memref<1x1x256xf32, #tpu.memory_space<vmem>>, %arg13: memref<1x256x128xf32, #tpu.memory_space<vmem>>, %arg14: memref<1x1x128xf32, #tpu.memory_space<vmem>>, %arg15: memref<1x128x1xf32, #tpu.memory_space<vmem>>, %arg16: memref<1x1x1xf32, #tpu.memory_space<vmem>>, %arg17: memref<1x2x1xf32, #tpu.memory_space<vmem>>, %arg18: memref<16x512xf32, #tpu.memory_space<vmem>>, %arg19: memref<16x128xf32, #tpu.memory_space<vmem>>, %arg20: memref<16x256xf32, #tpu.memory_space<vmem>>) attributes {dimension_semantics = [#tpu.dimension_semantics<parallel>], iteration_bounds = array<i64: 2>, scalar_prefetch = 0 : i64, scratch_operands = 3 : i64, tpu.core_type = #tpu.core_type<tc>, window_params = [{pipeline_mode = #tpu.pipeline_mode<synchronous>, transform_indices = @transform_0, window_bounds = array<i64: 16, 12>}, {pipeline_mode = #tpu.pipeline_mode<synchronous>, transform_indices = @transform_1, window_bounds = array<i64: 2, 12>}, {transform_indices = @transform_2, window_bounds = array<i64: 1, 12, 512>}, {transform_indices = @transform_3, window_bounds = array<i64: 1, 128, 512>}, {transform_indices = @transform_4, window_bounds = array<i64: 1, 1, 512>}, {transform_indices = @transform_5, window_bounds = array<i64: 1, 256, 512>}, {transform_indices = @transform_6, window_bounds = array<i64: 1, 1, 512>}, {transform_indices = @transform_7, window_bounds = array<i64: 1, 128, 256>}, {transform_indices = @transform_8, window_bounds = array<i64: 1, 1, 256>}, {transform_indices = @transform_9, window_bounds = array<i64: 1, 128, 256>}, {transform_indices = @transform_10, window_bounds = array<i64: 1, 12, 256>}, {transform_indices = @transform_11, window_bounds = array<i64: 1, 1, 256>}, {transform_indices = @transform_12, window_bounds = array<i64: 1, 256, 128>}, {transform_indices = @transform_13, window_bounds = array<i64: 1, 1, 128>}, {transform_indices = @transform_14, window_bounds = array<i64: 1, 128, 1>}, {transform_indices = @transform_15, window_bounds = array<i64: 1, 1, 1>}, {transform_indices = @transform_16, window_bounds = array<i64: 1, 2, 1>}]} {
    %c0 = arith.constant 0 : index
    %c0_0 = arith.constant 0 : index
    %0 = vector.load %arg1[%c0, %c0_0] : memref<16x12xf32, #tpu.memory_space<vmem>>, vector<16x12xf32>
    %c0_1 = arith.constant 0 : index
    %c0_2 = arith.constant 0 : index
    %c0_3 = arith.constant 0 : index
    %1 = vector.load %arg3[%c0_1, %c0_2, %c0_3] : memref<1x12x512xf32, #tpu.memory_space<vmem>>, vector<1x12x512xf32>
    %2 = vector.shape_cast %1 : vector<1x12x512xf32> to vector<12x512xf32>
    %cst = arith.constant dense<0.000000e+00> : vector<16x512xf32>
    %3 = tpu.matmul %0, %2, %cst {dimension_numbers = #tpu.dot_dimension_numbers<[1], [0], [0], [1], [0, 0, 1, 1], [], []>} : vector<16x12xf32>, vector<12x512xf32>, vector<16x512xf32> -> vector<16x512xf32>
    %c0_4 = arith.constant 0 : index
    %c0_5 = arith.constant 0 : index
    %c0_6 = arith.constant 0 : index
    %4 = vector.load %arg5[%c0_4, %c0_5, %c0_6] : memref<1x1x512xf32, #tpu.memory_space<vmem>>, vector<1x1x512xf32>
    %5 = vector.shape_cast %4 : vector<1x1x512xf32> to vector<1x512xf32>
    %6 = vector.broadcast %5 : vector<1x512xf32> to vector<16x512xf32>
    %7 = arith.addf %3, %6 : vector<16x512xf32>
    %c0_7 = arith.constant 0 : index
    %c0_8 = arith.constant 0 : index
    %8 = vector.load %arg18[%c0_7, %c0_8] : memref<16x512xf32, #tpu.memory_space<vmem>>, vector<16x512xf32>
    tpu.vector_store %arg18[%c0_7, %c0_8], %7 {strides = array<i32>} : memref<16x512xf32, #tpu.memory_space<vmem>>, vector<16x512xf32>,
    %cst_9 = arith.constant 0.000000e+00 : f32
    %9 = vector.broadcast %cst_9 : f32 to vector<2x128xf32>
    %cst_10 = arith.constant 0.000000e+00 : f32
    %10 = vector.broadcast %cst_10 : f32 to vector<2x128xf32>
    %cst_11 = arith.constant 0.000000e+00 : f32
    %11 = vector.broadcast %cst_11 : f32 to vector<2x128xf32>
    %cst_12 = arith.constant 0.000000e+00 : f32
    %12 = vector.broadcast %cst_12 : f32 to vector<2x128xf32>
    %c0_13 = arith.constant 0 : index
    %c0_14 = arith.constant 0 : index
    %13 = vector.load %arg18[%c0_13, %c0_14] : memref<16x512xf32, #tpu.memory_space<vmem>>, vector<2x512xf32>
    %c0_15 = arith.constant 0 : index
    %c0_16 = arith.constant 0 : index
    %c0_17 = arith.constant 0 : index
    %14 = vector.load %arg4[%c0_15, %c0_16, %c0_17] : memref<1x128x512xf32, #tpu.memory_space<vmem>>, vector<1x128x512xf32>
    %15 = vector.shape_cast %14 : vector<1x128x512xf32> to vector<128x512xf32>
    %cst_18 = arith.constant dense<0.000000e+00> : vector<2x512xf32>
    %16 = tpu.matmul %9, %15, %cst_18 {dimension_numbers = #tpu.dot_dimension_numbers<[1], [0], [0], [1], [0, 0, 1, 1], [], []>} : vector<2x128xf32>, vector<128x512xf32>, vector<2x512xf32> -> vector<2x512xf32>
    %17 = arith.addf %13, %16 : vector<2x512xf32>
    %18 = vector.extract_strided_slice %17 {offsets = [0, 0], sizes = [2, 128], strides = [1, 1]} : vector<2x512xf32> to vector<2x128xf32>
    %19 = arith.negf %18 : vector<2x128xf32>
    %20 = math.exp %19 : vector<2x128xf32>
    %cst_19 = arith.constant 1.000000e+00 : f32
    %21 = vector.broadcast %cst_19 : f32 to vector<2x128xf32>
    %22 = arith.addf %21, %20 : vector<2x128xf32>
    %23 = arith.divf %21, %22 : vector<2x128xf32>
    %24 = vector.extract_strided_slice %17 {offsets = [0, 128], sizes = [2, 128], strides = [1, 1]} : vector<2x512xf32> to vector<2x128xf32>
    %25 = arith.negf %24 : vector<2x128xf32>
    %26 = math.exp %25 : vector<2x128xf32>
    %cst_20 = arith.constant 1.000000e+00 : f32
    %27 = vector.broadcast %cst_20 : f32 to vector<2x128xf32>
    %28 = arith.addf %27, %26 : vector<2x128xf32>
    %29 = arith.divf %27, %28 : vector<2x128xf32>
    %30 = vector.extract_strided_slice %17 {offsets = [0, 256], sizes = [2, 128], strides = [1, 1]} : vector<2x512xf32> to vector<2x128xf32>
    %31 = math.tanh %30 : vector<2x128xf32>
    %32 = vector.extract_strided_slice %17 {offsets = [0, 384], sizes = [2, 128], strides = [1, 1]} : vector<2x512xf32> to vector<2x128xf32>
    %33 = arith.negf %32 : vector<2x128xf32>
    %34 = math.exp %33 : vector<2x128xf32>
    %cst_21 = arith.constant 1.000000e+00 : f32
    %35 = vector.broadcast %cst_21 : f32 to vector<2x128xf32>
    %36 = arith.addf %35, %34 : vector<2x128xf32>
    %37 = arith.divf %35, %36 : vector<2x128xf32>
    %38 = arith.mulf %29, %10 : vector<2x128xf32>
    %39 = arith.mulf %23, %31 : vector<2x128xf32>
    %40 = arith.addf %38, %39 : vector<2x128xf32>
    %41 = math.tanh %40 : vector<2x128xf32>
    %42 = arith.mulf %37, %41 : vector<2x128xf32>
    %43 = tpu.concatenate %42, %11 in 1 : vector<2x128xf32>, vector<2x128xf32> -> vector<2x256xf32>
    %c0_22 = arith.constant 0 : index
    %c0_23 = arith.constant 0 : index
    %c0_24 = arith.constant 0 : index
    %44 = vector.load %arg6[%c0_22, %c0_23, %c0_24] : memref<1x256x512xf32, #tpu.memory_space<vmem>>, vector<1x256x512xf32>
    %45 = vector.shape_cast %44 : vector<1x256x512xf32> to vector<256x512xf32>
    %cst_25 = arith.constant dense<0.000000e+00> : vector<2x512xf32>
    %46 = tpu.matmul %43, %45, %cst_25 {dimension_numbers = #tpu.dot_dimension_numbers<[1], [0], [0], [1], [0, 0, 1, 1], [], []>} : vector<2x256xf32>, vector<256x512xf32>, vector<2x512xf32> -> vector<2x512xf32>
    %c0_26 = arith.constant 0 : index
    %c0_27 = arith.constant 0 : index
    %c0_28 = arith.constant 0 : index
    %47 = vector.load %arg7[%c0_26, %c0_27, %c0_28] : memref<1x1x512xf32, #tpu.memory_space<vmem>>, vector<1x1x512xf32>
    %48 = vector.shape_cast %47 : vector<1x1x512xf32> to vector<1x512xf32>
    %49 = vector.broadcast %48 : vector<1x512xf32> to vector<2x512xf32>
    %50 = arith.addf %46, %49 : vector<2x512xf32>
    %51 = vector.extract_strided_slice %50 {offsets = [0, 0], sizes = [2, 128], strides = [1, 1]} : vector<2x512xf32> to vector<2x128xf32>
    %52 = arith.negf %51 : vector<2x128xf32>
    %53 = math.exp %52 : vector<2x128xf32>
    %cst_29 = arith.constant 1.000000e+00 : f32
    %54 = vector.broadcast %cst_29 : f32 to vector<2x128xf32>
    %55 = arith.addf %54, %53 : vector<2x128xf32>
    %56 = arith.divf %54, %55 : vector<2x128xf32>
    %57 = vector.extract_strided_slice %50 {offsets = [0, 128], sizes = [2, 128], strides = [1, 1]} : vector<2x512xf32> to vector<2x128xf32>
    %58 = arith.negf %57 : vector<2x128xf32>
    %59 = math.exp %58 : vector<2x128xf32>
    %cst_30 = arith.constant 1.000000e+00 : f32
    %60 = vector.broadcast %cst_30 : f32 to vector<2x128xf32>
    %61 = arith.addf %60, %59 : vector<2x128xf32>
    %62 = arith.divf %60, %61 : vector<2x128xf32>
    %63 = vector.extract_strided_slice %50 {offsets = [0, 256], sizes = [2, 128], strides = [1, 1]} : vector<2x512xf32> to vector<2x128xf32>
    %64 = math.tanh %63 : vector<2x128xf32>
    %65 = vector.extract_strided_slice %50 {offsets = [0, 384], sizes = [2, 128], strides = [1, 1]} : vector<2x512xf32> to vector<2x128xf32>
    %66 = arith.negf %65 : vector<2x128xf32>
    %67 = math.exp %66 : vector<2x128xf32>
    %cst_31 = arith.constant 1.000000e+00 : f32
    %68 = vector.broadcast %cst_31 : f32 to vector<2x128xf32>
    %69 = arith.addf %68, %67 : vector<2x128xf32>
    %70 = arith.divf %68, %69 : vector<2x128xf32>
    %71 = arith.mulf %62, %12 : vector<2x128xf32>
    %72 = arith.mulf %56, %64 : vector<2x128xf32>
    %73 = arith.addf %71, %72 : vector<2x128xf32>
    %74 = math.tanh %73 : vector<2x128xf32>
    %75 = arith.mulf %70, %74 : vector<2x128xf32>
    %c0_32 = arith.constant 0 : index
    %c0_33 = arith.constant 0 : index
    %76 = vector.load %arg19[%c0_32, %c0_33] : memref<16x128xf32, #tpu.memory_space<vmem>>, vector<2x128xf32>
    tpu.vector_store %arg19[%c0_32, %c0_33], %75 {strides = array<i32>} : memref<16x128xf32, #tpu.memory_space<vmem>>, vector<2x128xf32>,
    %c2 = arith.constant 2 : index
    %c0_34 = arith.constant 0 : index
    %77 = vector.load %arg18[%c2, %c0_34] : memref<16x512xf32, #tpu.memory_space<vmem>>, vector<2x512xf32>
    %c0_35 = arith.constant 0 : index
    %c0_36 = arith.constant 0 : index
    %c0_37 = arith.constant 0 : index
    %78 = vector.load %arg4[%c0_35, %c0_36, %c0_37] : memref<1x128x512xf32, #tpu.memory_space<vmem>>, vector<1x128x512xf32>
    %79 = vector.shape_cast %78 : vector<1x128x512xf32> to vector<128x512xf32>
    %cst_38 = arith.constant dense<0.000000e+00> : vector<2x512xf32>
    %80 = tpu.matmul %42, %79, %cst_38 {dimension_numbers = #tpu.dot_dimension_numbers<[1], [0], [0], [1], [0, 0, 1, 1], [], []>} : vector<2x128xf32>, vector<128x512xf32>, vector<2x512xf32> -> vector<2x512xf32>
    %81 = arith.addf %77, %80 : vector<2x512xf32>
    %82 = vector.extract_strided_slice %81 {offsets = [0, 0], sizes = [2, 128], strides = [1, 1]} : vector<2x512xf32> to vector<2x128xf32>
    %83 = arith.negf %82 : vector<2x128xf32>
    %84 = math.exp %83 : vector<2x128xf32>
    %cst_39 = arith.constant 1.000000e+00 : f32
    %85 = vector.broadcast %cst_39 : f32 to vector<2x128xf32>
    %86 = arith.addf %85, %84 : vector<2x128xf32>
    %87 = arith.divf %85, %86 : vector<2x128xf32>
    %88 = vector.extract_strided_slice %81 {offsets = [0, 128], sizes = [2, 128], strides = [1, 1]} : vector<2x512xf32> to vector<2x128xf32>
    %89 = arith.negf %88 : vector<2x128xf32>
    %90 = math.exp %89 : vector<2x128xf32>
    %cst_40 = arith.constant 1.000000e+00 : f32
    %91 = vector.broadcast %cst_40 : f32 to vector<2x128xf32>
    %92 = arith.addf %91, %90 : vector<2x128xf32>
    %93 = arith.divf %91, %92 : vector<2x128xf32>
    %94 = vector.extract_strided_slice %81 {offsets = [0, 256], sizes = [2, 128], strides = [1, 1]} : vector<2x512xf32> to vector<2x128xf32>
    %95 = math.tanh %94 : vector<2x128xf32>
    %96 = vector.extract_strided_slice %81 {offsets = [0, 384], sizes = [2, 128], strides = [1, 1]} : vector<2x512xf32> to vector<2x128xf32>
    %97 = arith.negf %96 : vector<2x128xf32>
    %98 = math.exp %97 : vector<2x128xf32>
    %cst_41 = arith.constant 1.000000e+00 : f32
    %99 = vector.broadcast %cst_41 : f32 to vector<2x128xf32>
    %100 = arith.addf %99, %98 : vector<2x128xf32>
    %101 = arith.divf %99, %100 : vector<2x128xf32>
    %102 = arith.mulf %93, %40 : vector<2x128xf32>
    %103 = arith.mulf %87, %95 : vector<2x128xf32>
    %104 = arith.addf %102, %103 : vector<2x128xf32>
    %105 = math.tanh %104 : vector<2x128xf32>
    %106 = arith.mulf %101, %105 : vector<2x128xf32>
    %107 = tpu.concatenate %106, %75 in 1 : vector<2x128xf32>, vector<2x128xf32> -> vector<2x256xf32>
    %c0_42 = arith.constant 0 : index
    %c0_43 = arith.constant 0 : index
    %c0_44 = arith.constant 0 : index
    %108 = vector.load %arg6[%c0_42, %c0_43, %c0_44] : memref<1x256x512xf32, #tpu.memory_space<vmem>>, vector<1x256x512xf32>
    %109 = vector.shape_cast %108 : vector<1x256x512xf32> to vector<256x512xf32>
    %cst_45 = arith.constant dense<0.000000e+00> : vector<2x512xf32>
    %110 = tpu.matmul %107, %109, %cst_45 {dimension_numbers = #tpu.dot_dimension_numbers<[1], [0], [0], [1], [0, 0, 1, 1], [], []>} : vector<2x256xf32>, vector<256x512xf32>, vector<2x512xf32> -> vector<2x512xf32>
    %c0_46 = arith.constant 0 : index
    %c0_47 = arith.constant 0 : index
    %c0_48 = arith.constant 0 : index
    %111 = vector.load %arg7[%c0_46, %c0_47, %c0_48] : memref<1x1x512xf32, #tpu.memory_space<vmem>>, vector<1x1x512xf32>
    %112 = vector.shape_cast %111 : vector<1x1x512xf32> to vector<1x512xf32>
    %113 = vector.broadcast %112 : vector<1x512xf32> to vector<2x512xf32>
    %114 = arith.addf %110, %113 : vector<2x512xf32>
    %115 = vector.extract_strided_slice %114 {offsets = [0, 0], sizes = [2, 128], strides = [1, 1]} : vector<2x512xf32> to vector<2x128xf32>
    %116 = arith.negf %115 : vector<2x128xf32>
    %117 = math.exp %116 : vector<2x128xf32>
    %cst_49 = arith.constant 1.000000e+00 : f32
    %118 = vector.broadcast %cst_49 : f32 to vector<2x128xf32>
    %119 = arith.addf %118, %117 : vector<2x128xf32>
    %120 = arith.divf %118, %119 : vector<2x128xf32>
    %121 = vector.extract_strided_slice %114 {offsets = [0, 128], sizes = [2, 128], strides = [1, 1]} : vector<2x512xf32> to vector<2x128xf32>
    %122 = arith.negf %121 : vector<2x128xf32>
    %123 = math.exp %122 : vector<2x128xf32>
    %cst_50 = arith.constant 1.000000e+00 : f32
    %124 = vector.broadcast %cst_50 : f32 to vector<2x128xf32>
    %125 = arith.addf %124, %123 : vector<2x128xf32>
    %126 = arith.divf %124, %125 : vector<2x128xf32>
    %127 = vector.extract_strided_slice %114 {offsets = [0, 256], sizes = [2, 128], strides = [1, 1]} : vector<2x512xf32> to vector<2x128xf32>
    %128 = math.tanh %127 : vector<2x128xf32>
    %129 = vector.extract_strided_slice %114 {offsets = [0, 384], sizes = [2, 128], strides = [1, 1]} : vector<2x512xf32> to vector<2x128xf32>
    %130 = arith.negf %129 : vector<2x128xf32>
    %131 = math.exp %130 : vector<2x128xf32>
    %cst_51 = arith.constant 1.000000e+00 : f32
    %132 = vector.broadcast %cst_51 : f32 to vector<2x128xf32>
    %133 = arith.addf %132, %131 : vector<2x128xf32>
    %134 = arith.divf %132, %133 : vector<2x128xf32>
    %135 = arith.mulf %126, %73 : vector<2x128xf32>
    %136 = arith.mulf %120, %128 : vector<2x128xf32>
    %137 = arith.addf %135, %136 : vector<2x128xf32>
    %138 = math.tanh %137 : vector<2x128xf32>
    %139 = arith.mulf %134, %138 : vector<2x128xf32>
    %c2_52 = arith.constant 2 : index
    %c0_53 = arith.constant 0 : index
    %140 = vector.load %arg19[%c2_52, %c0_53] : memref<16x128xf32, #tpu.memory_space<vmem>>, vector<2x128xf32>
    tpu.vector_store %arg19[%c2_52, %c0_53], %139 {strides = array<i32>} : memref<16x128xf32, #tpu.memory_space<vmem>>, vector<2x128xf32>,
    %c4 = arith.constant 4 : index
    %c0_54 = arith.constant 0 : index
    %141 = vector.load %arg18[%c4, %c0_54] : memref<16x512xf32, #tpu.memory_space<vmem>>, vector<2x512xf32>
    %c0_55 = arith.constant 0 : index
    %c0_56 = arith.constant 0 : index
    %c0_57 = arith.constant 0 : index
    %142 = vector.load %arg4[%c0_55, %c0_56, %c0_57] : memref<1x128x512xf32, #tpu.memory_space<vmem>>, vector<1x128x512xf32>
    %143 = vector.shape_cast %142 : vector<1x128x512xf32> to vector<128x512xf32>
    %cst_58 = arith.constant dense<0.000000e+00> : vector<2x512xf32>
    %144 = tpu.matmul %106, %143, %cst_58 {dimension_numbers = #tpu.dot_dimension_numbers<[1], [0], [0], [1], [0, 0, 1, 1], [], []>} : vector<2x128xf32>, vector<128x512xf32>, vector<2x512xf32> -> vector<2x512xf32>
    %145 = arith.addf %141, %144 : vector<2x512xf32>
    %146 = vector.extract_strided_slice %145 {offsets = [0, 0], sizes = [2, 128], strides = [1, 1]} : vector<2x512xf32> to vector<2x128xf32>
    %147 = arith.negf %146 : vector<2x128xf32>
    %148 = math.exp %147 : vector<2x128xf32>
    %cst_59 = arith.constant 1.000000e+00 : f32
    %149 = vector.broadcast %cst_59 : f32 to vector<2x128xf32>
    %150 = arith.addf %149, %148 : vector<2x128xf32>
    %151 = arith.divf %149, %150 : vector<2x128xf32>
    %152 = vector.extract_strided_slice %145 {offsets = [0, 128], sizes = [2, 128], strides = [1, 1]} : vector<2x512xf32> to vector<2x128xf32>
    %153 = arith.negf %152 : vector<2x128xf32>
    %154 = math.exp %153 : vector<2x128xf32>
    %cst_60 = arith.constant 1.000000e+00 : f32
    %155 = vector.broadcast %cst_60 : f32 to vector<2x128xf32>
    %156 = arith.addf %155, %154 : vector<2x128xf32>
    %157 = arith.divf %155, %156 : vector<2x128xf32>
    %158 = vector.extract_strided_slice %145 {offsets = [0, 256], sizes = [2, 128], strides = [1, 1]} : vector<2x512xf32> to vector<2x128xf32>
    %159 = math.tanh %158 : vector<2x128xf32>
    %160 = vector.extract_strided_slice %145 {offsets = [0, 384], sizes = [2, 128], strides = [1, 1]} : vector<2x512xf32> to vector<2x128xf32>
    %161 = arith.negf %160 : vector<2x128xf32>
    %162 = math.exp %161 : vector<2x128xf32>
    %cst_61 = arith.constant 1.000000e+00 : f32
    %163 = vector.broadcast %cst_61 : f32 to vector<2x128xf32>
    %164 = arith.addf %163, %162 : vector<2x128xf32>
    %165 = arith.divf %163, %164 : vector<2x128xf32>
    %166 = arith.mulf %157, %104 : vector<2x128xf32>
    %167 = arith.mulf %151, %159 : vector<2x128xf32>
    %168 = arith.addf %166, %167 : vector<2x128xf32>
    %169 = math.tanh %168 : vector<2x128xf32>
    %170 = arith.mulf %165, %169 : vector<2x128xf32>
    %171 = tpu.concatenate %170, %139 in 1 : vector<2x128xf32>, vector<2x128xf32> -> vector<2x256xf32>
    %c0_62 = arith.constant 0 : index
    %c0_63 = arith.constant 0 : index
    %c0_64 = arith.constant 0 : index
    %172 = vector.load %arg6[%c0_62, %c0_63, %c0_64] : memref<1x256x512xf32, #tpu.memory_space<vmem>>, vector<1x256x512xf32>
    %173 = vector.shape_cast %172 : vector<1x256x512xf32> to vector<256x512xf32>
    %cst_65 = arith.constant dense<0.000000e+00> : vector<2x512xf32>
    %174 = tpu.matmul %171, %173, %cst_65 {dimension_numbers = #tpu.dot_dimension_numbers<[1], [0], [0], [1], [0, 0, 1, 1], [], []>} : vector<2x256xf32>, vector<256x512xf32>, vector<2x512xf32> -> vector<2x512xf32>
    %c0_66 = arith.constant 0 : index
    %c0_67 = arith.constant 0 : index
    %c0_68 = arith.constant 0 : index
    %175 = vector.load %arg7[%c0_66, %c0_67, %c0_68] : memref<1x1x512xf32, #tpu.memory_space<vmem>>, vector<1x1x512xf32>
    %176 = vector.shape_cast %175 : vector<1x1x512xf32> to vector<1x512xf32>
    %177 = vector.broadcast %176 : vector<1x512xf32> to vector<2x512xf32>
    %178 = arith.addf %174, %177 : vector<2x512xf32>
    %179 = vector.extract_strided_slice %178 {offsets = [0, 0], sizes = [2, 128], strides = [1, 1]} : vector<2x512xf32> to vector<2x128xf32>
    %180 = arith.negf %179 : vector<2x128xf32>
    %181 = math.exp %180 : vector<2x128xf32>
    %cst_69 = arith.constant 1.000000e+00 : f32
    %182 = vector.broadcast %cst_69 : f32 to vector<2x128xf32>
    %183 = arith.addf %182, %181 : vector<2x128xf32>
    %184 = arith.divf %182, %183 : vector<2x128xf32>
    %185 = vector.extract_strided_slice %178 {offsets = [0, 128], sizes = [2, 128], strides = [1, 1]} : vector<2x512xf32> to vector<2x128xf32>
    %186 = arith.negf %185 : vector<2x128xf32>
    %187 = math.exp %186 : vector<2x128xf32>
    %cst_70 = arith.constant 1.000000e+00 : f32
    %188 = vector.broadcast %cst_70 : f32 to vector<2x128xf32>
    %189 = arith.addf %188, %187 : vector<2x128xf32>
    %190 = arith.divf %188, %189 : vector<2x128xf32>
    %191 = vector.extract_strided_slice %178 {offsets = [0, 256], sizes = [2, 128], strides = [1, 1]} : vector<2x512xf32> to vector<2x128xf32>
    %192 = math.tanh %191 : vector<2x128xf32>
    %193 = vector.extract_strided_slice %178 {offsets = [0, 384], sizes = [2, 128], strides = [1, 1]} : vector<2x512xf32> to vector<2x128xf32>
    %194 = arith.negf %193 : vector<2x128xf32>
    %195 = math.exp %194 : vector<2x128xf32>
    %cst_71 = arith.constant 1.000000e+00 : f32
    %196 = vector.broadcast %cst_71 : f32 to vector<2x128xf32>
    %197 = arith.addf %196, %195 : vector<2x128xf32>
    %198 = arith.divf %196, %197 : vector<2x128xf32>
    %199 = arith.mulf %190, %137 : vector<2x128xf32>
    %200 = arith.mulf %184, %192 : vector<2x128xf32>
    %201 = arith.addf %199, %200 : vector<2x128xf32>
    %202 = math.tanh %201 : vector<2x128xf32>
    %203 = arith.mulf %198, %202 : vector<2x128xf32>
    %c4_72 = arith.constant 4 : index
    %c0_73 = arith.constant 0 : index
    %204 = vector.load %arg19[%c4_72, %c0_73] : memref<16x128xf32, #tpu.memory_space<vmem>>, vector<2x128xf32>
    tpu.vector_store %arg19[%c4_72, %c0_73], %203 {strides = array<i32>} : memref<16x128xf32, #tpu.memory_space<vmem>>, vector<2x128xf32>,
    %c6 = arith.constant 6 : index
    %c0_74 = arith.constant 0 : index
    %205 = vector.load %arg18[%c6, %c0_74] : memref<16x512xf32, #tpu.memory_space<vmem>>, vector<2x512xf32>
    %c0_75 = arith.constant 0 : index
    %c0_76 = arith.constant 0 : index
    %c0_77 = arith.constant 0 : index
    %206 = vector.load %arg4[%c0_75, %c0_76, %c0_77] : memref<1x128x512xf32, #tpu.memory_space<vmem>>, vector<1x128x512xf32>
    %207 = vector.shape_cast %206 : vector<1x128x512xf32> to vector<128x512xf32>
    %cst_78 = arith.constant dense<0.000000e+00> : vector<2x512xf32>
    %208 = tpu.matmul %170, %207, %cst_78 {dimension_numbers = #tpu.dot_dimension_numbers<[1], [0], [0], [1], [0, 0, 1, 1], [], []>} : vector<2x128xf32>, vector<128x512xf32>, vector<2x512xf32> -> vector<2x512xf32>
    %209 = arith.addf %205, %208 : vector<2x512xf32>
    %210 = vector.extract_strided_slice %209 {offsets = [0, 0], sizes = [2, 128], strides = [1, 1]} : vector<2x512xf32> to vector<2x128xf32>
    %211 = arith.negf %210 : vector<2x128xf32>
    %212 = math.exp %211 : vector<2x128xf32>
    %cst_79 = arith.constant 1.000000e+00 : f32
    %213 = vector.broadcast %cst_79 : f32 to vector<2x128xf32>
    %214 = arith.addf %213, %212 : vector<2x128xf32>
    %215 = arith.divf %213, %214 : vector<2x128xf32>
    %216 = vector.extract_strided_slice %209 {offsets = [0, 128], sizes = [2, 128], strides = [1, 1]} : vector<2x512xf32> to vector<2x128xf32>
    %217 = arith.negf %216 : vector<2x128xf32>
    %218 = math.exp %217 : vector<2x128xf32>
    %cst_80 = arith.constant 1.000000e+00 : f32
    %219 = vector.broadcast %cst_80 : f32 to vector<2x128xf32>
    %220 = arith.addf %219, %218 : vector<2x128xf32>
    %221 = arith.divf %219, %220 : vector<2x128xf32>
    %222 = vector.extract_strided_slice %209 {offsets = [0, 256], sizes = [2, 128], strides = [1, 1]} : vector<2x512xf32> to vector<2x128xf32>
    %223 = math.tanh %222 : vector<2x128xf32>
    %224 = vector.extract_strided_slice %209 {offsets = [0, 384], sizes = [2, 128], strides = [1, 1]} : vector<2x512xf32> to vector<2x128xf32>
    %225 = arith.negf %224 : vector<2x128xf32>
    %226 = math.exp %225 : vector<2x128xf32>
    %cst_81 = arith.constant 1.000000e+00 : f32
    %227 = vector.broadcast %cst_81 : f32 to vector<2x128xf32>
    %228 = arith.addf %227, %226 : vector<2x128xf32>
    %229 = arith.divf %227, %228 : vector<2x128xf32>
    %230 = arith.mulf %221, %168 : vector<2x128xf32>
    %231 = arith.mulf %215, %223 : vector<2x128xf32>
    %232 = arith.addf %230, %231 : vector<2x128xf32>
    %233 = math.tanh %232 : vector<2x128xf32>
    %234 = arith.mulf %229, %233 : vector<2x128xf32>
    %235 = tpu.concatenate %234, %203 in 1 : vector<2x128xf32>, vector<2x128xf32> -> vector<2x256xf32>
    %c0_82 = arith.constant 0 : index
    %c0_83 = arith.constant 0 : index
    %c0_84 = arith.constant 0 : index
    %236 = vector.load %arg6[%c0_82, %c0_83, %c0_84] : memref<1x256x512xf32, #tpu.memory_space<vmem>>, vector<1x256x512xf32>
    %237 = vector.shape_cast %236 : vector<1x256x512xf32> to vector<256x512xf32>
    %cst_85 = arith.constant dense<0.000000e+00> : vector<2x512xf32>
    %238 = tpu.matmul %235, %237, %cst_85 {dimension_numbers = #tpu.dot_dimension_numbers<[1], [0], [0], [1], [0, 0, 1, 1], [], []>} : vector<2x256xf32>, vector<256x512xf32>, vector<2x512xf32> -> vector<2x512xf32>
    %c0_86 = arith.constant 0 : index
    %c0_87 = arith.constant 0 : index
    %c0_88 = arith.constant 0 : index
    %239 = vector.load %arg7[%c0_86, %c0_87, %c0_88] : memref<1x1x512xf32, #tpu.memory_space<vmem>>, vector<1x1x512xf32>
    %240 = vector.shape_cast %239 : vector<1x1x512xf32> to vector<1x512xf32>
    %241 = vector.broadcast %240 : vector<1x512xf32> to vector<2x512xf32>
    %242 = arith.addf %238, %241 : vector<2x512xf32>
    %243 = vector.extract_strided_slice %242 {offsets = [0, 0], sizes = [2, 128], strides = [1, 1]} : vector<2x512xf32> to vector<2x128xf32>
    %244 = arith.negf %243 : vector<2x128xf32>
    %245 = math.exp %244 : vector<2x128xf32>
    %cst_89 = arith.constant 1.000000e+00 : f32
    %246 = vector.broadcast %cst_89 : f32 to vector<2x128xf32>
    %247 = arith.addf %246, %245 : vector<2x128xf32>
    %248 = arith.divf %246, %247 : vector<2x128xf32>
    %249 = vector.extract_strided_slice %242 {offsets = [0, 128], sizes = [2, 128], strides = [1, 1]} : vector<2x512xf32> to vector<2x128xf32>
    %250 = arith.negf %249 : vector<2x128xf32>
    %251 = math.exp %250 : vector<2x128xf32>
    %cst_90 = arith.constant 1.000000e+00 : f32
    %252 = vector.broadcast %cst_90 : f32 to vector<2x128xf32>
    %253 = arith.addf %252, %251 : vector<2x128xf32>
    %254 = arith.divf %252, %253 : vector<2x128xf32>
    %255 = vector.extract_strided_slice %242 {offsets = [0, 256], sizes = [2, 128], strides = [1, 1]} : vector<2x512xf32> to vector<2x128xf32>
    %256 = math.tanh %255 : vector<2x128xf32>
    %257 = vector.extract_strided_slice %242 {offsets = [0, 384], sizes = [2, 128], strides = [1, 1]} : vector<2x512xf32> to vector<2x128xf32>
    %258 = arith.negf %257 : vector<2x128xf32>
    %259 = math.exp %258 : vector<2x128xf32>
    %cst_91 = arith.constant 1.000000e+00 : f32
    %260 = vector.broadcast %cst_91 : f32 to vector<2x128xf32>
    %261 = arith.addf %260, %259 : vector<2x128xf32>
    %262 = arith.divf %260, %261 : vector<2x128xf32>
    %263 = arith.mulf %254, %201 : vector<2x128xf32>
    %264 = arith.mulf %248, %256 : vector<2x128xf32>
    %265 = arith.addf %263, %264 : vector<2x128xf32>
    %266 = math.tanh %265 : vector<2x128xf32>
    %267 = arith.mulf %262, %266 : vector<2x128xf32>
    %c6_92 = arith.constant 6 : index
    %c0_93 = arith.constant 0 : index
    %268 = vector.load %arg19[%c6_92, %c0_93] : memref<16x128xf32, #tpu.memory_space<vmem>>, vector<2x128xf32>
    tpu.vector_store %arg19[%c6_92, %c0_93], %267 {strides = array<i32>} : memref<16x128xf32, #tpu.memory_space<vmem>>, vector<2x128xf32>,
    %c8 = arith.constant 8 : index
    %c0_94 = arith.constant 0 : index
    %269 = vector.load %arg18[%c8, %c0_94] : memref<16x512xf32, #tpu.memory_space<vmem>>, vector<2x512xf32>
    %c0_95 = arith.constant 0 : index
    %c0_96 = arith.constant 0 : index
    %c0_97 = arith.constant 0 : index
    %270 = vector.load %arg4[%c0_95, %c0_96, %c0_97] : memref<1x128x512xf32, #tpu.memory_space<vmem>>, vector<1x128x512xf32>
    %271 = vector.shape_cast %270 : vector<1x128x512xf32> to vector<128x512xf32>
    %cst_98 = arith.constant dense<0.000000e+00> : vector<2x512xf32>
    %272 = tpu.matmul %234, %271, %cst_98 {dimension_numbers = #tpu.dot_dimension_numbers<[1], [0], [0], [1], [0, 0, 1, 1], [], []>} : vector<2x128xf32>, vector<128x512xf32>, vector<2x512xf32> -> vector<2x512xf32>
    %273 = arith.addf %269, %272 : vector<2x512xf32>
    %274 = vector.extract_strided_slice %273 {offsets = [0, 0], sizes = [2, 128], strides = [1, 1]} : vector<2x512xf32> to vector<2x128xf32>
    %275 = arith.negf %274 : vector<2x128xf32>
    %276 = math.exp %275 : vector<2x128xf32>
    %cst_99 = arith.constant 1.000000e+00 : f32
    %277 = vector.broadcast %cst_99 : f32 to vector<2x128xf32>
    %278 = arith.addf %277, %276 : vector<2x128xf32>
    %279 = arith.divf %277, %278 : vector<2x128xf32>
    %280 = vector.extract_strided_slice %273 {offsets = [0, 128], sizes = [2, 128], strides = [1, 1]} : vector<2x512xf32> to vector<2x128xf32>
    %281 = arith.negf %280 : vector<2x128xf32>
    %282 = math.exp %281 : vector<2x128xf32>
    %cst_100 = arith.constant 1.000000e+00 : f32
    %283 = vector.broadcast %cst_100 : f32 to vector<2x128xf32>
    %284 = arith.addf %283, %282 : vector<2x128xf32>
    %285 = arith.divf %283, %284 : vector<2x128xf32>
    %286 = vector.extract_strided_slice %273 {offsets = [0, 256], sizes = [2, 128], strides = [1, 1]} : vector<2x512xf32> to vector<2x128xf32>
    %287 = math.tanh %286 : vector<2x128xf32>
    %288 = vector.extract_strided_slice %273 {offsets = [0, 384], sizes = [2, 128], strides = [1, 1]} : vector<2x512xf32> to vector<2x128xf32>
    %289 = arith.negf %288 : vector<2x128xf32>
    %290 = math.exp %289 : vector<2x128xf32>
    %cst_101 = arith.constant 1.000000e+00 : f32
    %291 = vector.broadcast %cst_101 : f32 to vector<2x128xf32>
    %292 = arith.addf %291, %290 : vector<2x128xf32>
    %293 = arith.divf %291, %292 : vector<2x128xf32>
    %294 = arith.mulf %285, %232 : vector<2x128xf32>
    %295 = arith.mulf %279, %287 : vector<2x128xf32>
    %296 = arith.addf %294, %295 : vector<2x128xf32>
    %297 = math.tanh %296 : vector<2x128xf32>
    %298 = arith.mulf %293, %297 : vector<2x128xf32>
    %299 = tpu.concatenate %298, %267 in 1 : vector<2x128xf32>, vector<2x128xf32> -> vector<2x256xf32>
    %c0_102 = arith.constant 0 : index
    %c0_103 = arith.constant 0 : index
    %c0_104 = arith.constant 0 : index
    %300 = vector.load %arg6[%c0_102, %c0_103, %c0_104] : memref<1x256x512xf32, #tpu.memory_space<vmem>>, vector<1x256x512xf32>
    %301 = vector.shape_cast %300 : vector<1x256x512xf32> to vector<256x512xf32>
    %cst_105 = arith.constant dense<0.000000e+00> : vector<2x512xf32>
    %302 = tpu.matmul %299, %301, %cst_105 {dimension_numbers = #tpu.dot_dimension_numbers<[1], [0], [0], [1], [0, 0, 1, 1], [], []>} : vector<2x256xf32>, vector<256x512xf32>, vector<2x512xf32> -> vector<2x512xf32>
    %c0_106 = arith.constant 0 : index
    %c0_107 = arith.constant 0 : index
    %c0_108 = arith.constant 0 : index
    %303 = vector.load %arg7[%c0_106, %c0_107, %c0_108] : memref<1x1x512xf32, #tpu.memory_space<vmem>>, vector<1x1x512xf32>
    %304 = vector.shape_cast %303 : vector<1x1x512xf32> to vector<1x512xf32>
    %305 = vector.broadcast %304 : vector<1x512xf32> to vector<2x512xf32>
    %306 = arith.addf %302, %305 : vector<2x512xf32>
    %307 = vector.extract_strided_slice %306 {offsets = [0, 0], sizes = [2, 128], strides = [1, 1]} : vector<2x512xf32> to vector<2x128xf32>
    %308 = arith.negf %307 : vector<2x128xf32>
    %309 = math.exp %308 : vector<2x128xf32>
    %cst_109 = arith.constant 1.000000e+00 : f32
    %310 = vector.broadcast %cst_109 : f32 to vector<2x128xf32>
    %311 = arith.addf %310, %309 : vector<2x128xf32>
    %312 = arith.divf %310, %311 : vector<2x128xf32>
    %313 = vector.extract_strided_slice %306 {offsets = [0, 128], sizes = [2, 128], strides = [1, 1]} : vector<2x512xf32> to vector<2x128xf32>
    %314 = arith.negf %313 : vector<2x128xf32>
    %315 = math.exp %314 : vector<2x128xf32>
    %cst_110 = arith.constant 1.000000e+00 : f32
    %316 = vector.broadcast %cst_110 : f32 to vector<2x128xf32>
    %317 = arith.addf %316, %315 : vector<2x128xf32>
    %318 = arith.divf %316, %317 : vector<2x128xf32>
    %319 = vector.extract_strided_slice %306 {offsets = [0, 256], sizes = [2, 128], strides = [1, 1]} : vector<2x512xf32> to vector<2x128xf32>
    %320 = math.tanh %319 : vector<2x128xf32>
    %321 = vector.extract_strided_slice %306 {offsets = [0, 384], sizes = [2, 128], strides = [1, 1]} : vector<2x512xf32> to vector<2x128xf32>
    %322 = arith.negf %321 : vector<2x128xf32>
    %323 = math.exp %322 : vector<2x128xf32>
    %cst_111 = arith.constant 1.000000e+00 : f32
    %324 = vector.broadcast %cst_111 : f32 to vector<2x128xf32>
    %325 = arith.addf %324, %323 : vector<2x128xf32>
    %326 = arith.divf %324, %325 : vector<2x128xf32>
    %327 = arith.mulf %318, %265 : vector<2x128xf32>
    %328 = arith.mulf %312, %320 : vector<2x128xf32>
    %329 = arith.addf %327, %328 : vector<2x128xf32>
    %330 = math.tanh %329 : vector<2x128xf32>
    %331 = arith.mulf %326, %330 : vector<2x128xf32>
    %c8_112 = arith.constant 8 : index
    %c0_113 = arith.constant 0 : index
    %332 = vector.load %arg19[%c8_112, %c0_113] : memref<16x128xf32, #tpu.memory_space<vmem>>, vector<2x128xf32>
    tpu.vector_store %arg19[%c8_112, %c0_113], %331 {strides = array<i32>} : memref<16x128xf32, #tpu.memory_space<vmem>>, vector<2x128xf32>,
    %c10 = arith.constant 10 : index
    %c0_114 = arith.constant 0 : index
    %333 = vector.load %arg18[%c10, %c0_114] : memref<16x512xf32, #tpu.memory_space<vmem>>, vector<2x512xf32>
    %c0_115 = arith.constant 0 : index
    %c0_116 = arith.constant 0 : index
    %c0_117 = arith.constant 0 : index
    %334 = vector.load %arg4[%c0_115, %c0_116, %c0_117] : memref<1x128x512xf32, #tpu.memory_space<vmem>>, vector<1x128x512xf32>
    %335 = vector.shape_cast %334 : vector<1x128x512xf32> to vector<128x512xf32>
    %cst_118 = arith.constant dense<0.000000e+00> : vector<2x512xf32>
    %336 = tpu.matmul %298, %335, %cst_118 {dimension_numbers = #tpu.dot_dimension_numbers<[1], [0], [0], [1], [0, 0, 1, 1], [], []>} : vector<2x128xf32>, vector<128x512xf32>, vector<2x512xf32> -> vector<2x512xf32>
    %337 = arith.addf %333, %336 : vector<2x512xf32>
    %338 = vector.extract_strided_slice %337 {offsets = [0, 0], sizes = [2, 128], strides = [1, 1]} : vector<2x512xf32> to vector<2x128xf32>
    %339 = arith.negf %338 : vector<2x128xf32>
    %340 = math.exp %339 : vector<2x128xf32>
    %cst_119 = arith.constant 1.000000e+00 : f32
    %341 = vector.broadcast %cst_119 : f32 to vector<2x128xf32>
    %342 = arith.addf %341, %340 : vector<2x128xf32>
    %343 = arith.divf %341, %342 : vector<2x128xf32>
    %344 = vector.extract_strided_slice %337 {offsets = [0, 128], sizes = [2, 128], strides = [1, 1]} : vector<2x512xf32> to vector<2x128xf32>
    %345 = arith.negf %344 : vector<2x128xf32>
    %346 = math.exp %345 : vector<2x128xf32>
    %cst_120 = arith.constant 1.000000e+00 : f32
    %347 = vector.broadcast %cst_120 : f32 to vector<2x128xf32>
    %348 = arith.addf %347, %346 : vector<2x128xf32>
    %349 = arith.divf %347, %348 : vector<2x128xf32>
    %350 = vector.extract_strided_slice %337 {offsets = [0, 256], sizes = [2, 128], strides = [1, 1]} : vector<2x512xf32> to vector<2x128xf32>
    %351 = math.tanh %350 : vector<2x128xf32>
    %352 = vector.extract_strided_slice %337 {offsets = [0, 384], sizes = [2, 128], strides = [1, 1]} : vector<2x512xf32> to vector<2x128xf32>
    %353 = arith.negf %352 : vector<2x128xf32>
    %354 = math.exp %353 : vector<2x128xf32>
    %cst_121 = arith.constant 1.000000e+00 : f32
    %355 = vector.broadcast %cst_121 : f32 to vector<2x128xf32>
    %356 = arith.addf %355, %354 : vector<2x128xf32>
    %357 = arith.divf %355, %356 : vector<2x128xf32>
    %358 = arith.mulf %349, %296 : vector<2x128xf32>
    %359 = arith.mulf %343, %351 : vector<2x128xf32>
    %360 = arith.addf %358, %359 : vector<2x128xf32>
    %361 = math.tanh %360 : vector<2x128xf32>
    %362 = arith.mulf %357, %361 : vector<2x128xf32>
    %363 = tpu.concatenate %362, %331 in 1 : vector<2x128xf32>, vector<2x128xf32> -> vector<2x256xf32>
    %c0_122 = arith.constant 0 : index
    %c0_123 = arith.constant 0 : index
    %c0_124 = arith.constant 0 : index
    %364 = vector.load %arg6[%c0_122, %c0_123, %c0_124] : memref<1x256x512xf32, #tpu.memory_space<vmem>>, vector<1x256x512xf32>
    %365 = vector.shape_cast %364 : vector<1x256x512xf32> to vector<256x512xf32>
    %cst_125 = arith.constant dense<0.000000e+00> : vector<2x512xf32>
    %366 = tpu.matmul %363, %365, %cst_125 {dimension_numbers = #tpu.dot_dimension_numbers<[1], [0], [0], [1], [0, 0, 1, 1], [], []>} : vector<2x256xf32>, vector<256x512xf32>, vector<2x512xf32> -> vector<2x512xf32>
    %c0_126 = arith.constant 0 : index
    %c0_127 = arith.constant 0 : index
    %c0_128 = arith.constant 0 : index
    %367 = vector.load %arg7[%c0_126, %c0_127, %c0_128] : memref<1x1x512xf32, #tpu.memory_space<vmem>>, vector<1x1x512xf32>
    %368 = vector.shape_cast %367 : vector<1x1x512xf32> to vector<1x512xf32>
    %369 = vector.broadcast %368 : vector<1x512xf32> to vector<2x512xf32>
    %370 = arith.addf %366, %369 : vector<2x512xf32>
    %371 = vector.extract_strided_slice %370 {offsets = [0, 0], sizes = [2, 128], strides = [1, 1]} : vector<2x512xf32> to vector<2x128xf32>
    %372 = arith.negf %371 : vector<2x128xf32>
    %373 = math.exp %372 : vector<2x128xf32>
    %cst_129 = arith.constant 1.000000e+00 : f32
    %374 = vector.broadcast %cst_129 : f32 to vector<2x128xf32>
    %375 = arith.addf %374, %373 : vector<2x128xf32>
    %376 = arith.divf %374, %375 : vector<2x128xf32>
    %377 = vector.extract_strided_slice %370 {offsets = [0, 128], sizes = [2, 128], strides = [1, 1]} : vector<2x512xf32> to vector<2x128xf32>
    %378 = arith.negf %377 : vector<2x128xf32>
    %379 = math.exp %378 : vector<2x128xf32>
    %cst_130 = arith.constant 1.000000e+00 : f32
    %380 = vector.broadcast %cst_130 : f32 to vector<2x128xf32>
    %381 = arith.addf %380, %379 : vector<2x128xf32>
    %382 = arith.divf %380, %381 : vector<2x128xf32>
    %383 = vector.extract_strided_slice %370 {offsets = [0, 256], sizes = [2, 128], strides = [1, 1]} : vector<2x512xf32> to vector<2x128xf32>
    %384 = math.tanh %383 : vector<2x128xf32>
    %385 = vector.extract_strided_slice %370 {offsets = [0, 384], sizes = [2, 128], strides = [1, 1]} : vector<2x512xf32> to vector<2x128xf32>
    %386 = arith.negf %385 : vector<2x128xf32>
    %387 = math.exp %386 : vector<2x128xf32>
    %cst_131 = arith.constant 1.000000e+00 : f32
    %388 = vector.broadcast %cst_131 : f32 to vector<2x128xf32>
    %389 = arith.addf %388, %387 : vector<2x128xf32>
    %390 = arith.divf %388, %389 : vector<2x128xf32>
    %391 = arith.mulf %382, %329 : vector<2x128xf32>
    %392 = arith.mulf %376, %384 : vector<2x128xf32>
    %393 = arith.addf %391, %392 : vector<2x128xf32>
    %394 = math.tanh %393 : vector<2x128xf32>
    %395 = arith.mulf %390, %394 : vector<2x128xf32>
    %c10_132 = arith.constant 10 : index
    %c0_133 = arith.constant 0 : index
    %396 = vector.load %arg19[%c10_132, %c0_133] : memref<16x128xf32, #tpu.memory_space<vmem>>, vector<2x128xf32>
    tpu.vector_store %arg19[%c10_132, %c0_133], %395 {strides = array<i32>} : memref<16x128xf32, #tpu.memory_space<vmem>>, vector<2x128xf32>,
    %c12 = arith.constant 12 : index
    %c0_134 = arith.constant 0 : index
    %397 = vector.load %arg18[%c12, %c0_134] : memref<16x512xf32, #tpu.memory_space<vmem>>, vector<2x512xf32>
    %c0_135 = arith.constant 0 : index
    %c0_136 = arith.constant 0 : index
    %c0_137 = arith.constant 0 : index
    %398 = vector.load %arg4[%c0_135, %c0_136, %c0_137] : memref<1x128x512xf32, #tpu.memory_space<vmem>>, vector<1x128x512xf32>
    %399 = vector.shape_cast %398 : vector<1x128x512xf32> to vector<128x512xf32>
    %cst_138 = arith.constant dense<0.000000e+00> : vector<2x512xf32>
    %400 = tpu.matmul %362, %399, %cst_138 {dimension_numbers = #tpu.dot_dimension_numbers<[1], [0], [0], [1], [0, 0, 1, 1], [], []>} : vector<2x128xf32>, vector<128x512xf32>, vector<2x512xf32> -> vector<2x512xf32>
    %401 = arith.addf %397, %400 : vector<2x512xf32>
    %402 = vector.extract_strided_slice %401 {offsets = [0, 0], sizes = [2, 128], strides = [1, 1]} : vector<2x512xf32> to vector<2x128xf32>
    %403 = arith.negf %402 : vector<2x128xf32>
    %404 = math.exp %403 : vector<2x128xf32>
    %cst_139 = arith.constant 1.000000e+00 : f32
    %405 = vector.broadcast %cst_139 : f32 to vector<2x128xf32>
    %406 = arith.addf %405, %404 : vector<2x128xf32>
    %407 = arith.divf %405, %406 : vector<2x128xf32>
    %408 = vector.extract_strided_slice %401 {offsets = [0, 128], sizes = [2, 128], strides = [1, 1]} : vector<2x512xf32> to vector<2x128xf32>
    %409 = arith.negf %408 : vector<2x128xf32>
    %410 = math.exp %409 : vector<2x128xf32>
    %cst_140 = arith.constant 1.000000e+00 : f32
    %411 = vector.broadcast %cst_140 : f32 to vector<2x128xf32>
    %412 = arith.addf %411, %410 : vector<2x128xf32>
    %413 = arith.divf %411, %412 : vector<2x128xf32>
    %414 = vector.extract_strided_slice %401 {offsets = [0, 256], sizes = [2, 128], strides = [1, 1]} : vector<2x512xf32> to vector<2x128xf32>
    %415 = math.tanh %414 : vector<2x128xf32>
    %416 = vector.extract_strided_slice %401 {offsets = [0, 384], sizes = [2, 128], strides = [1, 1]} : vector<2x512xf32> to vector<2x128xf32>
    %417 = arith.negf %416 : vector<2x128xf32>
    %418 = math.exp %417 : vector<2x128xf32>
    %cst_141 = arith.constant 1.000000e+00 : f32
    %419 = vector.broadcast %cst_141 : f32 to vector<2x128xf32>
    %420 = arith.addf %419, %418 : vector<2x128xf32>
    %421 = arith.divf %419, %420 : vector<2x128xf32>
    %422 = arith.mulf %413, %360 : vector<2x128xf32>
    %423 = arith.mulf %407, %415 : vector<2x128xf32>
    %424 = arith.addf %422, %423 : vector<2x128xf32>
    %425 = math.tanh %424 : vector<2x128xf32>
    %426 = arith.mulf %421, %425 : vector<2x128xf32>
    %427 = tpu.concatenate %426, %395 in 1 : vector<2x128xf32>, vector<2x128xf32> -> vector<2x256xf32>
    %c0_142 = arith.constant 0 : index
    %c0_143 = arith.constant 0 : index
    %c0_144 = arith.constant 0 : index
    %428 = vector.load %arg6[%c0_142, %c0_143, %c0_144] : memref<1x256x512xf32, #tpu.memory_space<vmem>>, vector<1x256x512xf32>
    %429 = vector.shape_cast %428 : vector<1x256x512xf32> to vector<256x512xf32>
    %cst_145 = arith.constant dense<0.000000e+00> : vector<2x512xf32>
    %430 = tpu.matmul %427, %429, %cst_145 {dimension_numbers = #tpu.dot_dimension_numbers<[1], [0], [0], [1], [0, 0, 1, 1], [], []>} : vector<2x256xf32>, vector<256x512xf32>, vector<2x512xf32> -> vector<2x512xf32>
    %c0_146 = arith.constant 0 : index
    %c0_147 = arith.constant 0 : index
    %c0_148 = arith.constant 0 : index
    %431 = vector.load %arg7[%c0_146, %c0_147, %c0_148] : memref<1x1x512xf32, #tpu.memory_space<vmem>>, vector<1x1x512xf32>
    %432 = vector.shape_cast %431 : vector<1x1x512xf32> to vector<1x512xf32>
    %433 = vector.broadcast %432 : vector<1x512xf32> to vector<2x512xf32>
    %434 = arith.addf %430, %433 : vector<2x512xf32>
    %435 = vector.extract_strided_slice %434 {offsets = [0, 0], sizes = [2, 128], strides = [1, 1]} : vector<2x512xf32> to vector<2x128xf32>
    %436 = arith.negf %435 : vector<2x128xf32>
    %437 = math.exp %436 : vector<2x128xf32>
    %cst_149 = arith.constant 1.000000e+00 : f32
    %438 = vector.broadcast %cst_149 : f32 to vector<2x128xf32>
    %439 = arith.addf %438, %437 : vector<2x128xf32>
    %440 = arith.divf %438, %439 : vector<2x128xf32>
    %441 = vector.extract_strided_slice %434 {offsets = [0, 128], sizes = [2, 128], strides = [1, 1]} : vector<2x512xf32> to vector<2x128xf32>
    %442 = arith.negf %441 : vector<2x128xf32>
    %443 = math.exp %442 : vector<2x128xf32>
    %cst_150 = arith.constant 1.000000e+00 : f32
    %444 = vector.broadcast %cst_150 : f32 to vector<2x128xf32>
    %445 = arith.addf %444, %443 : vector<2x128xf32>
    %446 = arith.divf %444, %445 : vector<2x128xf32>
    %447 = vector.extract_strided_slice %434 {offsets = [0, 256], sizes = [2, 128], strides = [1, 1]} : vector<2x512xf32> to vector<2x128xf32>
    %448 = math.tanh %447 : vector<2x128xf32>
    %449 = vector.extract_strided_slice %434 {offsets = [0, 384], sizes = [2, 128], strides = [1, 1]} : vector<2x512xf32> to vector<2x128xf32>
    %450 = arith.negf %449 : vector<2x128xf32>
    %451 = math.exp %450 : vector<2x128xf32>
    %cst_151 = arith.constant 1.000000e+00 : f32
    %452 = vector.broadcast %cst_151 : f32 to vector<2x128xf32>
    %453 = arith.addf %452, %451 : vector<2x128xf32>
    %454 = arith.divf %452, %453 : vector<2x128xf32>
    %455 = arith.mulf %446, %393 : vector<2x128xf32>
    %456 = arith.mulf %440, %448 : vector<2x128xf32>
    %457 = arith.addf %455, %456 : vector<2x128xf32>
    %458 = math.tanh %457 : vector<2x128xf32>
    %459 = arith.mulf %454, %458 : vector<2x128xf32>
    %c12_152 = arith.constant 12 : index
    %c0_153 = arith.constant 0 : index
    %460 = vector.load %arg19[%c12_152, %c0_153] : memref<16x128xf32, #tpu.memory_space<vmem>>, vector<2x128xf32>
    tpu.vector_store %arg19[%c12_152, %c0_153], %459 {strides = array<i32>} : memref<16x128xf32, #tpu.memory_space<vmem>>, vector<2x128xf32>,
    %c14 = arith.constant 14 : index
    %c0_154 = arith.constant 0 : index
    %461 = vector.load %arg18[%c14, %c0_154] : memref<16x512xf32, #tpu.memory_space<vmem>>, vector<2x512xf32>
    %c0_155 = arith.constant 0 : index
    %c0_156 = arith.constant 0 : index
    %c0_157 = arith.constant 0 : index
    %462 = vector.load %arg4[%c0_155, %c0_156, %c0_157] : memref<1x128x512xf32, #tpu.memory_space<vmem>>, vector<1x128x512xf32>
    %463 = vector.shape_cast %462 : vector<1x128x512xf32> to vector<128x512xf32>
    %cst_158 = arith.constant dense<0.000000e+00> : vector<2x512xf32>
    %464 = tpu.matmul %426, %463, %cst_158 {dimension_numbers = #tpu.dot_dimension_numbers<[1], [0], [0], [1], [0, 0, 1, 1], [], []>} : vector<2x128xf32>, vector<128x512xf32>, vector<2x512xf32> -> vector<2x512xf32>
    %465 = arith.addf %461, %464 : vector<2x512xf32>
    %466 = vector.extract_strided_slice %465 {offsets = [0, 0], sizes = [2, 128], strides = [1, 1]} : vector<2x512xf32> to vector<2x128xf32>
    %467 = arith.negf %466 : vector<2x128xf32>
    %468 = math.exp %467 : vector<2x128xf32>
    %cst_159 = arith.constant 1.000000e+00 : f32
    %469 = vector.broadcast %cst_159 : f32 to vector<2x128xf32>
    %470 = arith.addf %469, %468 : vector<2x128xf32>
    %471 = arith.divf %469, %470 : vector<2x128xf32>
    %472 = vector.extract_strided_slice %465 {offsets = [0, 128], sizes = [2, 128], strides = [1, 1]} : vector<2x512xf32> to vector<2x128xf32>
    %473 = arith.negf %472 : vector<2x128xf32>
    %474 = math.exp %473 : vector<2x128xf32>
    %cst_160 = arith.constant 1.000000e+00 : f32
    %475 = vector.broadcast %cst_160 : f32 to vector<2x128xf32>
    %476 = arith.addf %475, %474 : vector<2x128xf32>
    %477 = arith.divf %475, %476 : vector<2x128xf32>
    %478 = vector.extract_strided_slice %465 {offsets = [0, 256], sizes = [2, 128], strides = [1, 1]} : vector<2x512xf32> to vector<2x128xf32>
    %479 = math.tanh %478 : vector<2x128xf32>
    %480 = vector.extract_strided_slice %465 {offsets = [0, 384], sizes = [2, 128], strides = [1, 1]} : vector<2x512xf32> to vector<2x128xf32>
    %481 = arith.negf %480 : vector<2x128xf32>
    %482 = math.exp %481 : vector<2x128xf32>
    %cst_161 = arith.constant 1.000000e+00 : f32
    %483 = vector.broadcast %cst_161 : f32 to vector<2x128xf32>
    %484 = arith.addf %483, %482 : vector<2x128xf32>
    %485 = arith.divf %483, %484 : vector<2x128xf32>
    %486 = arith.mulf %477, %424 : vector<2x128xf32>
    %487 = arith.mulf %471, %479 : vector<2x128xf32>
    %488 = arith.addf %486, %487 : vector<2x128xf32>
    %489 = math.tanh %488 : vector<2x128xf32>
    %490 = arith.mulf %485, %489 : vector<2x128xf32>
    %491 = tpu.concatenate %490, %459 in 1 : vector<2x128xf32>, vector<2x128xf32> -> vector<2x256xf32>
    %c0_162 = arith.constant 0 : index
    %c0_163 = arith.constant 0 : index
    %c0_164 = arith.constant 0 : index
    %492 = vector.load %arg6[%c0_162, %c0_163, %c0_164] : memref<1x256x512xf32, #tpu.memory_space<vmem>>, vector<1x256x512xf32>
    %493 = vector.shape_cast %492 : vector<1x256x512xf32> to vector<256x512xf32>
    %cst_165 = arith.constant dense<0.000000e+00> : vector<2x512xf32>
    %494 = tpu.matmul %491, %493, %cst_165 {dimension_numbers = #tpu.dot_dimension_numbers<[1], [0], [0], [1], [0, 0, 1, 1], [], []>} : vector<2x256xf32>, vector<256x512xf32>, vector<2x512xf32> -> vector<2x512xf32>
    %c0_166 = arith.constant 0 : index
    %c0_167 = arith.constant 0 : index
    %c0_168 = arith.constant 0 : index
    %495 = vector.load %arg7[%c0_166, %c0_167, %c0_168] : memref<1x1x512xf32, #tpu.memory_space<vmem>>, vector<1x1x512xf32>
    %496 = vector.shape_cast %495 : vector<1x1x512xf32> to vector<1x512xf32>
    %497 = vector.broadcast %496 : vector<1x512xf32> to vector<2x512xf32>
    %498 = arith.addf %494, %497 : vector<2x512xf32>
    %499 = vector.extract_strided_slice %498 {offsets = [0, 0], sizes = [2, 128], strides = [1, 1]} : vector<2x512xf32> to vector<2x128xf32>
    %500 = arith.negf %499 : vector<2x128xf32>
    %501 = math.exp %500 : vector<2x128xf32>
    %cst_169 = arith.constant 1.000000e+00 : f32
    %502 = vector.broadcast %cst_169 : f32 to vector<2x128xf32>
    %503 = arith.addf %502, %501 : vector<2x128xf32>
    %504 = arith.divf %502, %503 : vector<2x128xf32>
    %505 = vector.extract_strided_slice %498 {offsets = [0, 128], sizes = [2, 128], strides = [1, 1]} : vector<2x512xf32> to vector<2x128xf32>
    %506 = arith.negf %505 : vector<2x128xf32>
    %507 = math.exp %506 : vector<2x128xf32>
    %cst_170 = arith.constant 1.000000e+00 : f32
    %508 = vector.broadcast %cst_170 : f32 to vector<2x128xf32>
    %509 = arith.addf %508, %507 : vector<2x128xf32>
    %510 = arith.divf %508, %509 : vector<2x128xf32>
    %511 = vector.extract_strided_slice %498 {offsets = [0, 256], sizes = [2, 128], strides = [1, 1]} : vector<2x512xf32> to vector<2x128xf32>
    %512 = math.tanh %511 : vector<2x128xf32>
    %513 = vector.extract_strided_slice %498 {offsets = [0, 384], sizes = [2, 128], strides = [1, 1]} : vector<2x512xf32> to vector<2x128xf32>
    %514 = arith.negf %513 : vector<2x128xf32>
    %515 = math.exp %514 : vector<2x128xf32>
    %cst_171 = arith.constant 1.000000e+00 : f32
    %516 = vector.broadcast %cst_171 : f32 to vector<2x128xf32>
    %517 = arith.addf %516, %515 : vector<2x128xf32>
    %518 = arith.divf %516, %517 : vector<2x128xf32>
    %519 = arith.mulf %510, %457 : vector<2x128xf32>
    %520 = arith.mulf %504, %512 : vector<2x128xf32>
    %521 = arith.addf %519, %520 : vector<2x128xf32>
    %522 = math.tanh %521 : vector<2x128xf32>
    %523 = arith.mulf %518, %522 : vector<2x128xf32>
    %c14_172 = arith.constant 14 : index
    %c0_173 = arith.constant 0 : index
    %524 = vector.load %arg19[%c14_172, %c0_173] : memref<16x128xf32, #tpu.memory_space<vmem>>, vector<2x128xf32>
    tpu.vector_store %arg19[%c14_172, %c0_173], %523 {strides = array<i32>} : memref<16x128xf32, #tpu.memory_space<vmem>>, vector<2x128xf32>,
    %c0_174 = arith.constant 0 : index
    %c0_175 = arith.constant 0 : index
    %525 = vector.load %arg19[%c0_174, %c0_175] : memref<16x128xf32, #tpu.memory_space<vmem>>, vector<16x128xf32>
    %c0_176 = arith.constant 0 : index
    %c0_177 = arith.constant 0 : index
    %c0_178 = arith.constant 0 : index
    %526 = vector.load %arg8[%c0_176, %c0_177, %c0_178] : memref<1x128x256xf32, #tpu.memory_space<vmem>>, vector<1x128x256xf32>
    %527 = vector.shape_cast %526 : vector<1x128x256xf32> to vector<128x256xf32>
    %cst_179 = arith.constant dense<0.000000e+00> : vector<16x256xf32>
    %528 = tpu.matmul %525, %527, %cst_179 {dimension_numbers = #tpu.dot_dimension_numbers<[1], [0], [0], [1], [0, 0, 1, 1], [], []>} : vector<16x128xf32>, vector<128x256xf32>, vector<16x256xf32> -> vector<16x256xf32>
    %c0_180 = arith.constant 0 : index
    %c0_181 = arith.constant 0 : index
    %c0_182 = arith.constant 0 : index
    %529 = vector.load %arg9[%c0_180, %c0_181, %c0_182] : memref<1x1x256xf32, #tpu.memory_space<vmem>>, vector<1x1x256xf32>
    %530 = vector.shape_cast %529 : vector<1x1x256xf32> to vector<1x256xf32>
    %531 = vector.broadcast %530 : vector<1x256xf32> to vector<16x256xf32>
    %532 = arith.addf %528, %531 : vector<16x256xf32>
    %533 = math.tanh %532 : vector<16x256xf32>
    %c0_183 = arith.constant 0 : index
    %c0_184 = arith.constant 0 : index
    %534 = vector.load %arg20[%c0_183, %c0_184] : memref<16x256xf32, #tpu.memory_space<vmem>>, vector<16x256xf32>
    tpu.vector_store %arg20[%c0_183, %c0_184], %533 {strides = array<i32>} : memref<16x256xf32, #tpu.memory_space<vmem>>, vector<16x256xf32>,
    %c0_185 = arith.constant 0 : index
    %c0_186 = arith.constant 0 : index
    %535 = vector.load %arg20[%c0_185, %c0_186] : memref<16x256xf32, #tpu.memory_space<vmem>>, vector<2x256xf32>
    %536 = vector.extract_strided_slice %535 {offsets = [0, 0], sizes = [2, 128], strides = [1, 1]} : vector<2x256xf32> to vector<2x128xf32>
    %537 = arith.mulf %536, %490 : vector<2x128xf32>
    %cst_187 = arith.constant dense<0.000000e+00> : vector<2xf32>
    %538 = vector.multi_reduction <add>, %537, %cst_187 [1] : vector<2x128xf32> to vector<2xf32>
    %539 = vector.shape_cast %538 : vector<2xf32> to vector<2x1xf32>
    %540 = vector.extract_strided_slice %535 {offsets = [0, 128], sizes = [2, 128], strides = [1, 1]} : vector<2x256xf32> to vector<2x128xf32>
    %541 = arith.mulf %540, %523 : vector<2x128xf32>
    %cst_188 = arith.constant dense<0.000000e+00> : vector<2xf32>
    %542 = vector.multi_reduction <add>, %541, %cst_188 [1] : vector<2x128xf32> to vector<2xf32>
    %543 = vector.shape_cast %542 : vector<2xf32> to vector<2x1xf32>
    %544 = arith.addf %539, %543 : vector<2x1xf32>
    %cst_189 = arith.constant 0.707106769 : f32
    %545 = vector.broadcast %cst_189 : f32 to vector<2x1xf32>
    %546 = arith.mulf %544, %545 : vector<2x1xf32>
    %c2_190 = arith.constant 2 : index
    %c0_191 = arith.constant 0 : index
    %547 = vector.load %arg20[%c2_190, %c0_191] : memref<16x256xf32, #tpu.memory_space<vmem>>, vector<2x256xf32>
    %548 = vector.extract_strided_slice %547 {offsets = [0, 0], sizes = [2, 128], strides = [1, 1]} : vector<2x256xf32> to vector<2x128xf32>
    %549 = arith.mulf %548, %490 : vector<2x128xf32>
    %cst_192 = arith.constant dense<0.000000e+00> : vector<2xf32>
    %550 = vector.multi_reduction <add>, %549, %cst_192 [1] : vector<2x128xf32> to vector<2xf32>
    %551 = vector.shape_cast %550 : vector<2xf32> to vector<2x1xf32>
    %552 = vector.extract_strided_slice %547 {offsets = [0, 128], sizes = [2, 128], strides = [1, 1]} : vector<2x256xf32> to vector<2x128xf32>
    %553 = arith.mulf %552, %523 : vector<2x128xf32>
    %cst_193 = arith.constant dense<0.000000e+00> : vector<2xf32>
    %554 = vector.multi_reduction <add>, %553, %cst_193 [1] : vector<2x128xf32> to vector<2xf32>
    %555 = vector.shape_cast %554 : vector<2xf32> to vector<2x1xf32>
    %556 = arith.addf %551, %555 : vector<2x1xf32>
    %cst_194 = arith.constant 0.707106769 : f32
    %557 = vector.broadcast %cst_194 : f32 to vector<2x1xf32>
    %558 = arith.mulf %556, %557 : vector<2x1xf32>
    %c4_195 = arith.constant 4 : index
    %c0_196 = arith.constant 0 : index
    %559 = vector.load %arg20[%c4_195, %c0_196] : memref<16x256xf32, #tpu.memory_space<vmem>>, vector<2x256xf32>
    %560 = vector.extract_strided_slice %559 {offsets = [0, 0], sizes = [2, 128], strides = [1, 1]} : vector<2x256xf32> to vector<2x128xf32>
    %561 = arith.mulf %560, %490 : vector<2x128xf32>
    %cst_197 = arith.constant dense<0.000000e+00> : vector<2xf32>
    %562 = vector.multi_reduction <add>, %561, %cst_197 [1] : vector<2x128xf32> to vector<2xf32>
    %563 = vector.shape_cast %562 : vector<2xf32> to vector<2x1xf32>
    %564 = vector.extract_strided_slice %559 {offsets = [0, 128], sizes = [2, 128], strides = [1, 1]} : vector<2x256xf32> to vector<2x128xf32>
    %565 = arith.mulf %564, %523 : vector<2x128xf32>
    %cst_198 = arith.constant dense<0.000000e+00> : vector<2xf32>
    %566 = vector.multi_reduction <add>, %565, %cst_198 [1] : vector<2x128xf32> to vector<2xf32>
    %567 = vector.shape_cast %566 : vector<2xf32> to vector<2x1xf32>
    %568 = arith.addf %563, %567 : vector<2x1xf32>
    %cst_199 = arith.constant 0.707106769 : f32
    %569 = vector.broadcast %cst_199 : f32 to vector<2x1xf32>
    %570 = arith.mulf %568, %569 : vector<2x1xf32>
    %c6_200 = arith.constant 6 : index
    %c0_201 = arith.constant 0 : index
    %571 = vector.load %arg20[%c6_200, %c0_201] : memref<16x256xf32, #tpu.memory_space<vmem>>, vector<2x256xf32>
    %572 = vector.extract_strided_slice %571 {offsets = [0, 0], sizes = [2, 128], strides = [1, 1]} : vector<2x256xf32> to vector<2x128xf32>
    %573 = arith.mulf %572, %490 : vector<2x128xf32>
    %cst_202 = arith.constant dense<0.000000e+00> : vector<2xf32>
    %574 = vector.multi_reduction <add>, %573, %cst_202 [1] : vector<2x128xf32> to vector<2xf32>
    %575 = vector.shape_cast %574 : vector<2xf32> to vector<2x1xf32>
    %576 = vector.extract_strided_slice %571 {offsets = [0, 128], sizes = [2, 128], strides = [1, 1]} : vector<2x256xf32> to vector<2x128xf32>
    %577 = arith.mulf %576, %523 : vector<2x128xf32>
    %cst_203 = arith.constant dense<0.000000e+00> : vector<2xf32>
    %578 = vector.multi_reduction <add>, %577, %cst_203 [1] : vector<2x128xf32> to vector<2xf32>
    %579 = vector.shape_cast %578 : vector<2xf32> to vector<2x1xf32>
    %580 = arith.addf %575, %579 : vector<2x1xf32>
    %cst_204 = arith.constant 0.707106769 : f32
    %581 = vector.broadcast %cst_204 : f32 to vector<2x1xf32>
    %582 = arith.mulf %580, %581 : vector<2x1xf32>
    %c8_205 = arith.constant 8 : index
    %c0_206 = arith.constant 0 : index
    %583 = vector.load %arg20[%c8_205, %c0_206] : memref<16x256xf32, #tpu.memory_space<vmem>>, vector<2x256xf32>
    %584 = vector.extract_strided_slice %583 {offsets = [0, 0], sizes = [2, 128], strides = [1, 1]} : vector<2x256xf32> to vector<2x128xf32>
    %585 = arith.mulf %584, %490 : vector<2x128xf32>
    %cst_207 = arith.constant dense<0.000000e+00> : vector<2xf32>
    %586 = vector.multi_reduction <add>, %585, %cst_207 [1] : vector<2x128xf32> to vector<2xf32>
    %587 = vector.shape_cast %586 : vector<2xf32> to vector<2x1xf32>
    %588 = vector.extract_strided_slice %583 {offsets = [0, 128], sizes = [2, 128], strides = [1, 1]} : vector<2x256xf32> to vector<2x128xf32>
    %589 = arith.mulf %588, %523 : vector<2x128xf32>
    %cst_208 = arith.constant dense<0.000000e+00> : vector<2xf32>
    %590 = vector.multi_reduction <add>, %589, %cst_208 [1] : vector<2x128xf32> to vector<2xf32>
    %591 = vector.shape_cast %590 : vector<2xf32> to vector<2x1xf32>
    %592 = arith.addf %587, %591 : vector<2x1xf32>
    %cst_209 = arith.constant 0.707106769 : f32
    %593 = vector.broadcast %cst_209 : f32 to vector<2x1xf32>
    %594 = arith.mulf %592, %593 : vector<2x1xf32>
    %c10_210 = arith.constant 10 : index
    %c0_211 = arith.constant 0 : index
    %595 = vector.load %arg20[%c10_210, %c0_211] : memref<16x256xf32, #tpu.memory_space<vmem>>, vector<2x256xf32>
    %596 = vector.extract_strided_slice %595 {offsets = [0, 0], sizes = [2, 128], strides = [1, 1]} : vector<2x256xf32> to vector<2x128xf32>
    %597 = arith.mulf %596, %490 : vector<2x128xf32>
    %cst_212 = arith.constant dense<0.000000e+00> : vector<2xf32>
    %598 = vector.multi_reduction <add>, %597, %cst_212 [1] : vector<2x128xf32> to vector<2xf32>
    %599 = vector.shape_cast %598 : vector<2xf32> to vector<2x1xf32>
    %600 = vector.extract_strided_slice %595 {offsets = [0, 128], sizes = [2, 128], strides = [1, 1]} : vector<2x256xf32> to vector<2x128xf32>
    %601 = arith.mulf %600, %523 : vector<2x128xf32>
    %cst_213 = arith.constant dense<0.000000e+00> : vector<2xf32>
    %602 = vector.multi_reduction <add>, %601, %cst_213 [1] : vector<2x128xf32> to vector<2xf32>
    %603 = vector.shape_cast %602 : vector<2xf32> to vector<2x1xf32>
    %604 = arith.addf %599, %603 : vector<2x1xf32>
    %cst_214 = arith.constant 0.707106769 : f32
    %605 = vector.broadcast %cst_214 : f32 to vector<2x1xf32>
    %606 = arith.mulf %604, %605 : vector<2x1xf32>
    %c12_215 = arith.constant 12 : index
    %c0_216 = arith.constant 0 : index
    %607 = vector.load %arg20[%c12_215, %c0_216] : memref<16x256xf32, #tpu.memory_space<vmem>>, vector<2x256xf32>
    %608 = vector.extract_strided_slice %607 {offsets = [0, 0], sizes = [2, 128], strides = [1, 1]} : vector<2x256xf32> to vector<2x128xf32>
    %609 = arith.mulf %608, %490 : vector<2x128xf32>
    %cst_217 = arith.constant dense<0.000000e+00> : vector<2xf32>
    %610 = vector.multi_reduction <add>, %609, %cst_217 [1] : vector<2x128xf32> to vector<2xf32>
    %611 = vector.shape_cast %610 : vector<2xf32> to vector<2x1xf32>
    %612 = vector.extract_strided_slice %607 {offsets = [0, 128], sizes = [2, 128], strides = [1, 1]} : vector<2x256xf32> to vector<2x128xf32>
    %613 = arith.mulf %612, %523 : vector<2x128xf32>
    %cst_218 = arith.constant dense<0.000000e+00> : vector<2xf32>
    %614 = vector.multi_reduction <add>, %613, %cst_218 [1] : vector<2x128xf32> to vector<2xf32>
    %615 = vector.shape_cast %614 : vector<2xf32> to vector<2x1xf32>
    %616 = arith.addf %611, %615 : vector<2x1xf32>
    %cst_219 = arith.constant 0.707106769 : f32
    %617 = vector.broadcast %cst_219 : f32 to vector<2x1xf32>
    %618 = arith.mulf %616, %617 : vector<2x1xf32>
    %c14_220 = arith.constant 14 : index
    %c0_221 = arith.constant 0 : index
    %619 = vector.load %arg20[%c14_220, %c0_221] : memref<16x256xf32, #tpu.memory_space<vmem>>, vector<2x256xf32>
    %620 = vector.extract_strided_slice %619 {offsets = [0, 0], sizes = [2, 128], strides = [1, 1]} : vector<2x256xf32> to vector<2x128xf32>
    %621 = arith.mulf %620, %490 : vector<2x128xf32>
    %cst_222 = arith.constant dense<0.000000e+00> : vector<2xf32>
    %622 = vector.multi_reduction <add>, %621, %cst_222 [1] : vector<2x128xf32> to vector<2xf32>
    %623 = vector.shape_cast %622 : vector<2xf32> to vector<2x1xf32>
    %624 = vector.extract_strided_slice %619 {offsets = [0, 128], sizes = [2, 128], strides = [1, 1]} : vector<2x256xf32> to vector<2x128xf32>
    %625 = arith.mulf %624, %523 : vector<2x128xf32>
    %cst_223 = arith.constant dense<0.000000e+00> : vector<2xf32>
    %626 = vector.multi_reduction <add>, %625, %cst_223 [1] : vector<2x128xf32> to vector<2xf32>
    %627 = vector.shape_cast %626 : vector<2xf32> to vector<2x1xf32>
    %628 = arith.addf %623, %627 : vector<2x1xf32>
    %cst_224 = arith.constant 0.707106769 : f32
    %629 = vector.broadcast %cst_224 : f32 to vector<2x1xf32>
    %630 = arith.mulf %628, %629 : vector<2x1xf32>
    %631 = arith.maximumf %546, %558 : vector<2x1xf32>
    %632 = arith.maximumf %631, %570 : vector<2x1xf32>
    %633 = arith.maximumf %632, %582 : vector<2x1xf32>
    %634 = arith.maximumf %633, %594 : vector<2x1xf32>
    %635 = arith.maximumf %634, %606 : vector<2x1xf32>
    %636 = arith.maximumf %635, %618 : vector<2x1xf32>
    %637 = arith.maximumf %636, %630 : vector<2x1xf32>
    %638 = arith.subf %546, %637 : vector<2x1xf32>
    %639 = math.exp %638 : vector<2x1xf32>
    %640 = arith.subf %558, %637 : vector<2x1xf32>
    %641 = math.exp %640 : vector<2x1xf32>
    %642 = arith.subf %570, %637 : vector<2x1xf32>
    %643 = math.exp %642 : vector<2x1xf32>
    %644 = arith.subf %582, %637 : vector<2x1xf32>
    %645 = math.exp %644 : vector<2x1xf32>
    %646 = arith.subf %594, %637 : vector<2x1xf32>
    %647 = math.exp %646 : vector<2x1xf32>
    %648 = arith.subf %606, %637 : vector<2x1xf32>
    %649 = math.exp %648 : vector<2x1xf32>
    %650 = arith.subf %618, %637 : vector<2x1xf32>
    %651 = math.exp %650 : vector<2x1xf32>
    %652 = arith.subf %630, %637 : vector<2x1xf32>
    %653 = math.exp %652 : vector<2x1xf32>
    %654 = arith.addf %639, %641 : vector<2x1xf32>
    %655 = arith.addf %654, %643 : vector<2x1xf32>
    %656 = arith.addf %655, %645 : vector<2x1xf32>
    %657 = arith.addf %656, %647 : vector<2x1xf32>
    %658 = arith.addf %657, %649 : vector<2x1xf32>
    %659 = arith.addf %658, %651 : vector<2x1xf32>
    %660 = arith.addf %659, %653 : vector<2x1xf32>
    %cst_225 = arith.constant 1.000000e+00 : f32
    %661 = vector.broadcast %cst_225 : f32 to vector<2x1xf32>
    %662 = arith.divf %661, %660 : vector<2x1xf32>
    %cst_226 = arith.constant 0.000000e+00 : f32
    %663 = vector.broadcast %cst_226 : f32 to vector<2x128xf32>
    %664 = arith.mulf %639, %662 : vector<2x1xf32>
    %665 = vector.broadcast %664 : vector<2x1xf32> to vector<2x128xf32>
    %666 = arith.mulf %75, %665 : vector<2x128xf32>
    %667 = arith.addf %663, %666 : vector<2x128xf32>
    %668 = arith.mulf %641, %662 : vector<2x1xf32>
    %669 = vector.broadcast %668 : vector<2x1xf32> to vector<2x128xf32>
    %670 = arith.mulf %139, %669 : vector<2x128xf32>
    %671 = arith.addf %667, %670 : vector<2x128xf32>
    %672 = arith.mulf %643, %662 : vector<2x1xf32>
    %673 = vector.broadcast %672 : vector<2x1xf32> to vector<2x128xf32>
    %674 = arith.mulf %203, %673 : vector<2x128xf32>
    %675 = arith.addf %671, %674 : vector<2x128xf32>
    %676 = arith.mulf %645, %662 : vector<2x1xf32>
    %677 = vector.broadcast %676 : vector<2x1xf32> to vector<2x128xf32>
    %678 = arith.mulf %267, %677 : vector<2x128xf32>
    %679 = arith.addf %675, %678 : vector<2x128xf32>
    %680 = arith.mulf %647, %662 : vector<2x1xf32>
    %681 = vector.broadcast %680 : vector<2x1xf32> to vector<2x128xf32>
    %682 = arith.mulf %331, %681 : vector<2x128xf32>
    %683 = arith.addf %679, %682 : vector<2x128xf32>
    %684 = arith.mulf %649, %662 : vector<2x1xf32>
    %685 = vector.broadcast %684 : vector<2x1xf32> to vector<2x128xf32>
    %686 = arith.mulf %395, %685 : vector<2x128xf32>
    %687 = arith.addf %683, %686 : vector<2x128xf32>
    %688 = arith.mulf %651, %662 : vector<2x1xf32>
    %689 = vector.broadcast %688 : vector<2x1xf32> to vector<2x128xf32>
    %690 = arith.mulf %459, %689 : vector<2x128xf32>
    %691 = arith.addf %687, %690 : vector<2x128xf32>
    %692 = arith.mulf %653, %662 : vector<2x1xf32>
    %693 = vector.broadcast %692 : vector<2x1xf32> to vector<2x128xf32>
    %694 = arith.mulf %523, %693 : vector<2x128xf32>
    %695 = arith.addf %691, %694 : vector<2x128xf32>
    %c0_227 = arith.constant 0 : index
    %c0_228 = arith.constant 0 : index
    %c0_229 = arith.constant 0 : index
    %696 = vector.load %arg10[%c0_227, %c0_228, %c0_229] : memref<1x128x256xf32, #tpu.memory_space<vmem>>, vector<1x128x256xf32>
    %697 = vector.shape_cast %696 : vector<1x128x256xf32> to vector<128x256xf32>
    %cst_230 = arith.constant dense<0.000000e+00> : vector<2x256xf32>
    %698 = tpu.matmul %695, %697, %cst_230 {dimension_numbers = #tpu.dot_dimension_numbers<[1], [0], [0], [1], [0, 0, 1, 1], [], []>} : vector<2x128xf32>, vector<128x256xf32>, vector<2x256xf32> -> vector<2x256xf32>
    %c0_231 = arith.constant 0 : index
    %c0_232 = arith.constant 0 : index
    %699 = vector.load %arg2[%c0_231, %c0_232] : memref<2x12xf32, #tpu.memory_space<vmem>>, vector<2x12xf32>
    %c0_233 = arith.constant 0 : index
    %c0_234 = arith.constant 0 : index
    %c0_235 = arith.constant 0 : index
    %700 = vector.load %arg11[%c0_233, %c0_234, %c0_235] : memref<1x12x256xf32, #tpu.memory_space<vmem>>, vector<1x12x256xf32>
    %701 = vector.shape_cast %700 : vector<1x12x256xf32> to vector<12x256xf32>
    %cst_236 = arith.constant dense<0.000000e+00> : vector<2x256xf32>
    %702 = tpu.matmul %699, %701, %cst_236 {dimension_numbers = #tpu.dot_dimension_numbers<[1], [0], [0], [1], [0, 0, 1, 1], [], []>} : vector<2x12xf32>, vector<12x256xf32>, vector<2x256xf32> -> vector<2x256xf32>
    %703 = arith.addf %698, %702 : vector<2x256xf32>
    %c0_237 = arith.constant 0 : index
    %c0_238 = arith.constant 0 : index
    %c0_239 = arith.constant 0 : index
    %704 = vector.load %arg12[%c0_237, %c0_238, %c0_239] : memref<1x1x256xf32, #tpu.memory_space<vmem>>, vector<1x1x256xf32>
    %705 = vector.shape_cast %704 : vector<1x1x256xf32> to vector<1x256xf32>
    %706 = vector.broadcast %705 : vector<1x256xf32> to vector<2x256xf32>
    %707 = arith.addf %703, %706 : vector<2x256xf32>
    %cst_240 = arith.constant 0.000000e+00 : f32
    %708 = vector.broadcast %cst_240 : f32 to vector<2x256xf32>
    %709 = arith.maximumf %707, %708 : vector<2x256xf32>
    %c0_241 = arith.constant 0 : index
    %c0_242 = arith.constant 0 : index
    %c0_243 = arith.constant 0 : index
    %710 = vector.load %arg13[%c0_241, %c0_242, %c0_243] : memref<1x256x128xf32, #tpu.memory_space<vmem>>, vector<1x256x128xf32>
    %711 = vector.shape_cast %710 : vector<1x256x128xf32> to vector<256x128xf32>
    %cst_244 = arith.constant dense<0.000000e+00> : vector<2x128xf32>
    %712 = tpu.matmul %709, %711, %cst_244 {dimension_numbers = #tpu.dot_dimension_numbers<[1], [0], [0], [1], [0, 0, 1, 1], [], []>} : vector<2x256xf32>, vector<256x128xf32>, vector<2x128xf32> -> vector<2x128xf32>
    %c0_245 = arith.constant 0 : index
    %c0_246 = arith.constant 0 : index
    %c0_247 = arith.constant 0 : index
    %713 = vector.load %arg14[%c0_245, %c0_246, %c0_247] : memref<1x1x128xf32, #tpu.memory_space<vmem>>, vector<1x1x128xf32>
    %714 = vector.shape_cast %713 : vector<1x1x128xf32> to vector<1x128xf32>
    %715 = vector.broadcast %714 : vector<1x128xf32> to vector<2x128xf32>
    %716 = arith.addf %712, %715 : vector<2x128xf32>
    %cst_248 = arith.constant 0.000000e+00 : f32
    %717 = vector.broadcast %cst_248 : f32 to vector<2x128xf32>
    %718 = arith.maximumf %716, %717 : vector<2x128xf32>
    %c0_249 = arith.constant 0 : index
    %c0_250 = arith.constant 0 : index
    %c0_251 = arith.constant 0 : index
    %719 = vector.load %arg15[%c0_249, %c0_250, %c0_251] : memref<1x128x1xf32, #tpu.memory_space<vmem>>, vector<1x128x1xf32>
    %720 = vector.shape_cast %719 : vector<1x128x1xf32> to vector<128x1xf32>
    %cst_252 = arith.constant dense<0.000000e+00> : vector<2x1xf32>
    %721 = tpu.matmul %718, %720, %cst_252 {dimension_numbers = #tpu.dot_dimension_numbers<[1], [0], [0], [1], [0, 0, 1, 1], [], []>} : vector<2x128xf32>, vector<128x1xf32>, vector<2x1xf32> -> vector<2x1xf32>
    %c0_253 = arith.constant 0 : index
    %c0_254 = arith.constant 0 : index
    %c0_255 = arith.constant 0 : index
    %722 = vector.load %arg16[%c0_253, %c0_254, %c0_255] : memref<1x1x1xf32, #tpu.memory_space<vmem>>, vector<1x1x1xf32>
    %723 = vector.shape_cast %722 : vector<1x1x1xf32> to vector<1x1xf32>
    %724 = vector.broadcast %723 : vector<1x1xf32> to vector<2x1xf32>
    %725 = arith.addf %721, %724 : vector<2x1xf32>
    %c0_256 = arith.constant 0 : index
    %c0_257 = arith.constant 0 : index
    %c0_258 = arith.constant 0 : index
    %726 = vector.load %arg17[%c0_256, %c0_257, %c0_258] : memref<1x2x1xf32, #tpu.memory_space<vmem>>, vector<1x2x1xf32>
    %727 = vector.shape_cast %726 : vector<1x2x1xf32> to vector<2x1xf32>
    %728 = vector.shape_cast %725 : vector<2x1xf32> to vector<1x2x1xf32>
    tpu.vector_store %arg17[%c0_256, %c0_257, %c0_258], %728 {strides = array<i32>} : memref<1x2x1xf32, #tpu.memory_space<vmem>>, vector<1x2x1xf32>,
    return
  }
  func.func @transform_0(%arg0: i32) -> (i32, i32) {
    %c0_i32 = arith.constant 0 : i32
    %c0_i32_0 = arith.constant 0 : i32
    %c0_i32_1 = arith.constant 0 : i32
    return %c0_i32, %c0_i32_0 : i32, i32
  }
  func.func @transform_1(%arg0: i32) -> (i32, i32) {
    %c0_i32 = arith.constant 0 : i32
    %c0_i32_0 = arith.constant 0 : i32
    %c0_i32_1 = arith.constant 0 : i32
    return %c0_i32, %c0_i32_0 : i32, i32
  }
  func.func @transform_2(%arg0: i32) -> (i32, i32, i32) {
    %c0_i32 = arith.constant 0 : i32
    %c0_i32_0 = arith.constant 0 : i32
    %c0_i32_1 = arith.constant 0 : i32
    return %arg0, %c0_i32, %c0_i32_0 : i32, i32, i32
  }
  func.func @transform_3(%arg0: i32) -> (i32, i32, i32) {
    %c0_i32 = arith.constant 0 : i32
    %c0_i32_0 = arith.constant 0 : i32
    %c0_i32_1 = arith.constant 0 : i32
    return %arg0, %c0_i32, %c0_i32_0 : i32, i32, i32
  }
  func.func @transform_4(%arg0: i32) -> (i32, i32, i32) {
    %c0_i32 = arith.constant 0 : i32
    %c0_i32_0 = arith.constant 0 : i32
    %c0_i32_1 = arith.constant 0 : i32
    return %arg0, %c0_i32, %c0_i32_0 : i32, i32, i32
  }
  func.func @transform_5(%arg0: i32) -> (i32, i32, i32) {
    %c0_i32 = arith.constant 0 : i32
    %c0_i32_0 = arith.constant 0 : i32
    %c0_i32_1 = arith.constant 0 : i32
    return %arg0, %c0_i32, %c0_i32_0 : i32, i32, i32
  }
  func.func @transform_6(%arg0: i32) -> (i32, i32, i32) {
    %c0_i32 = arith.constant 0 : i32
    %c0_i32_0 = arith.constant 0 : i32
    %c0_i32_1 = arith.constant 0 : i32
    return %arg0, %c0_i32, %c0_i32_0 : i32, i32, i32
  }
  func.func @transform_7(%arg0: i32) -> (i32, i32, i32) {
    %c0_i32 = arith.constant 0 : i32
    %c0_i32_0 = arith.constant 0 : i32
    %c0_i32_1 = arith.constant 0 : i32
    return %arg0, %c0_i32, %c0_i32_0 : i32, i32, i32
  }
  func.func @transform_8(%arg0: i32) -> (i32, i32, i32) {
    %c0_i32 = arith.constant 0 : i32
    %c0_i32_0 = arith.constant 0 : i32
    %c0_i32_1 = arith.constant 0 : i32
    return %arg0, %c0_i32, %c0_i32_0 : i32, i32, i32
  }
  func.func @transform_9(%arg0: i32) -> (i32, i32, i32) {
    %c0_i32 = arith.constant 0 : i32
    %c0_i32_0 = arith.constant 0 : i32
    %c0_i32_1 = arith.constant 0 : i32
    return %arg0, %c0_i32, %c0_i32_0 : i32, i32, i32
  }
  func.func @transform_10(%arg0: i32) -> (i32, i32, i32) {
    %c0_i32 = arith.constant 0 : i32
    %c0_i32_0 = arith.constant 0 : i32
    %c0_i32_1 = arith.constant 0 : i32
    return %arg0, %c0_i32, %c0_i32_0 : i32, i32, i32
  }
  func.func @transform_11(%arg0: i32) -> (i32, i32, i32) {
    %c0_i32 = arith.constant 0 : i32
    %c0_i32_0 = arith.constant 0 : i32
    %c0_i32_1 = arith.constant 0 : i32
    return %arg0, %c0_i32, %c0_i32_0 : i32, i32, i32
  }
  func.func @transform_12(%arg0: i32) -> (i32, i32, i32) {
    %c0_i32 = arith.constant 0 : i32
    %c0_i32_0 = arith.constant 0 : i32
    %c0_i32_1 = arith.constant 0 : i32
    return %arg0, %c0_i32, %c0_i32_0 : i32, i32, i32
  }
  func.func @transform_13(%arg0: i32) -> (i32, i32, i32) {
    %c0_i32 = arith.constant 0 : i32
    %c0_i32_0 = arith.constant 0 : i32
    %c0_i32_1 = arith.constant 0 : i32
    return %arg0, %c0_i32, %c0_i32_0 : i32, i32, i32
  }
  func.func @transform_14(%arg0: i32) -> (i32, i32, i32) {
    %c0_i32 = arith.constant 0 : i32
    %c0_i32_0 = arith.constant 0 : i32
    %c0_i32_1 = arith.constant 0 : i32
    return %arg0, %c0_i32, %c0_i32_0 : i32, i32, i32
  }
  func.func @transform_15(%arg0: i32) -> (i32, i32, i32) {
    %c0_i32 = arith.constant 0 : i32
    %c0_i32_0 = arith.constant 0 : i32
    %c0_i32_1 = arith.constant 0 : i32
    return %arg0, %c0_i32, %c0_i32_0 : i32, i32, i32
  }
  func.func @transform_16(%arg0: i32) -> (i32, i32, i32) {
    %c0_i32 = arith.constant 0 : i32
    %c0_i32_0 = arith.constant 0 : i32
    %c0_i32_1 = arith.constant 0 : i32
    return %arg0, %c0_i32, %c0_i32_0 : i32, i32, i32
  }
}

</mosaic_0001>

<bundles_post_ra>
// kernel: critic_forward.1
= control target key start
LH: loop header
LB: loop body
LE: loop exit
PB: predicated region body
PF: predicated region fallthrough
CT: control target
= control target key end

     0   :  { %s7134_s21 = smov 0   ;;  %s11495_s0 = inlined_call_operand.vmem [shape: f32[16,12], index: 0, kind: input, shape index: {}]   ;;  %s11496_s1 = inlined_call_operand.vmem [shape: f32[2,12], index: 1, kind: input, shape index: {}]   ;;  %s11497_s2 = inlined_call_operand.vmem [shape: f32[2,12,512], index: 2, kind: input, shape index: {}]   ;;  %s11498_s3 = inlined_call_operand.vmem [shape: f32[2,128,512], index: 3, kind: input, shape index: {}]   ;;  %s11499_s4 = inlined_call_operand.vmem [shape: f32[2,1,512], index: 4, kind: input, shape index: {}]   ;;  %s11500_s5 = inlined_call_operand.vmem [shape: f32[2,256,512], index: 5, kind: input, shape index: {}]   ;;  %s11501_s6 = inlined_call_operand.vmem [shape: f32[2,1,512], index: 6, kind: input, shape index: {}]   ;;  %s11502_s7 = inlined_call_operand.vmem [shape: f32[2,128,256], index: 7, kind: input, shape index: {}]   ;;  %s11503_s8 = inlined_call_operand.vmem [shape: f32[2,1,256], index: 8, kind: input, shape index: {}]   ;;  %s11504_s9 = inlined_call_operand.vmem [shape: f32[2,128,256], index: 9, kind: input, shape index: {}]   ;;  %s11505_s10 = inlined_call_operand.vmem [shape: f32[2,12,256], index: 10, kind: input, shape index: {}]   ;;  %s11506_s11 = inlined_call_operand.vmem [shape: f32[2,1,256], index: 11, kind: input, shape index: {}]   ;;  %s11507_s12 = inlined_call_operand.vmem [shape: f32[2,256,128], index: 12, kind: input, shape index: {}]   ;;  %s11508_s13 = inlined_call_operand.vmem [shape: f32[2,1,128], index: 13, kind: input, shape index: {}]   ;;  %s11509_s14 = inlined_call_operand.vmem [shape: f32[2,128,1], index: 14, kind: input, shape index: {}]   ;;  %s11510_s15 = inlined_call_operand.vmem [shape: f32[2,1,1], index: 15, kind: input, shape index: {}]   ;;  %s11511_s16 = inlined_call_operand.vmem [shape: f32[2,2,1], index: 16, kind: output, shape index: {}]  }
   0x1   :  { %12134 = sst [smem:[#allocation162_spill]] %s11495_s0 }
   0x2 LB: > { %s6559_s22 = sadd.s32 4294967295, %s7044_s21   ;;  %p6563_p0 = scmp.ge.s32.totalorder %s7044_s21, 1  ;;  %s7044_s21 = sphi %s7134_s21, %s26_s21  }
   0x3   : > { %p584_p1 = scmp.lt.s32.totalorder %s7044_s21, 3 }
   0x5   : > { %p585_p2 = pnand %p6563_p0, %p584_p1 }
   0x7   : > { %588 = sbr.rel (%p585_p2) target bundleno = 3747 (0xea3), region = 84 }
   0xc   : > { %p690_p3 = scmp.lt.s32.totalorder %s6559_s22, 1  ;;  %v11513_v0 = vmov 0.0   ;;  %vm795_vm0 = vcmask 1043456   ;;  %s12135_s18 = sld [smem:[#allocation162_spill]]  ;;  %vm788_vm1 = vcmask 97280   ;;  %vm5694_vm2 = vcmask 1043458  }
   0xd   : > { %872 = vmatprep.mubr.f32.mxu0 %v11513_v0  ;;  %949 = vmatprep.mubr.f32.mxu1 %v11513_v0  ;;  %vm5679_vm3 = vcmask 1041408   ;;  %vm5712_vm4 = vcmask 1045508   ;;  %vm5727_vm5 = vcmask 1047558   ;;  %vm7048_vm6 = vmmov 0  }
   0xe   : > { %s13355_s22 = smov (!%p690_p3, %s6559_s22), 1  ;;  %vm6354_vm7 = vcmask 1024  }
   0xf   : > { %s6648_s23 = sshll.u32 %s13355_s22, 6  ;;  %s6649_s24 = sshll.u32 %s13355_s22, 9 }
  0x10   : > { %s694_s27 = scalar_lea.vmem %s11497_s2, %s6648_s23  ;;  %s7154_s30 = scalar_lea.vmem %s11498_s3, %s6649_s24 }
  0x11   : > { %v763_v1 = vld [vmem:[%s694_s27 + $0x28] sm:$0xf]  ;;  %v765_v2 = vld [vmem:[%s694_s27 + $0x38] sm:$0xf]  ;;  %v762_v4 = vld [vmem:[%s694_s27 + $0x20] sm:$0xf]  ;;  %s751_s19 = scalar_lea.vmem %s11510_s15, %s13355_s22 }
  0x12   : > { %v756_v3 = vld [vmem:[%s12135_s18] sm:$0xff]  ;;  %6585 = vmatprep.subr.msk.mxu0 %vm795_vm0, %v763_v1  ;;  %6589 = vmatprep.subr.msk.mxu1 %vm795_vm0, %v765_v2  ;;  %v764_v5 = vld [vmem:[%s694_s27 + $0x30] sm:$0xf]  ;;  %v759_v6 = vld [vmem:[%s694_s27 + $0x8] sm:$0xff]  ;;  %s6650_s23 = sshll.u32 %s13355_s22, 10 }
  0x13   : > { %6586 = vmatpush1.msk.msra.mxu0 %vm795_vm0, %v762_v4  ;;  %6590 = vmatpush1.msk.msra.mxu1 %vm795_vm0, %v764_v5  ;;  %v761_v7 = vld [vmem:[%s694_s27 + $0x18] sm:$0xff]  ;;  %v758_v8 = vld [vmem:[%s694_s27] sm:$0xff]  ;;  %v760_v9 = vld [vmem:[%s694_s27 + $0x10] sm:$0xff]  ;;  %s7438_s26 = scalar_lea.vmem %s11500_s5, %s6650_s23  ;;  %s6568_s27 = sshll.u32 %s13355_s22, 2 }
  0x14   : > { %838 = vmatprep.subr.mxu0 %v759_v6  ;;  %915 = vmatprep.subr.mxu1 %v761_v7  ;;  %v7164_v10 = vld [vmem:[%s7154_s30 + $0x1e8] sm:$0xff]  ;;  %v7167_v11 = vld [vmem:[%s7154_s30 + $0x1f8] sm:$0xff]  ;;  %v7170_v12 = vld [vmem:[%s7154_s30 + $0x1e0] sm:$0xff]  ;;  %s703_s0 = scalar_lea.vmem %s11499_s4, %s6568_s27  ;;  %s8186_s20 = scalar_lea.vmem %s11501_s6, %s6568_s27 }
  0x15   : > { %839 = vmatpush1.msra.mxu0 %v758_v8  ;;  %916 = vmatpush1.msra.mxu1 %v760_v9  ;;  %v7173_v13 = vld [vmem:[%s7154_s30 + $0x1f0] sm:$0xff]  ;;  %v7178_v14 = vld [vmem:[%s7154_s30 + $0x1c8] sm:$0xff]  ;;  %v7181_v15 = vld [vmem:[%s7154_s30 + $0x1d8] sm:$0xff] }
  0x16   : > { %6587 = vmatmul.mubr.msk.f32.vlgmr.msra.gmra.mxu0 %vm788_vm1, %v756_v3  ;;  %1038 = vmatprep.subr.mxu0 %v7164_v10  ;;  %v7186_v16 = vld [vmem:[%s7154_s30 + $0x1c0] sm:$0xff]  ;;  %v7189_v17 = vld [vmem:[%s7154_s30 + $0x1d0] sm:$0xff]  ;;  %v7194_v18 = vld [vmem:[%s7154_s30 + $0x1a8] sm:$0xff] }
  0x17   : > { %1109 = vmatprep.subr.mxu1 %v7167_v11  ;;  %6591 = vmatmul.mubr.msk.f32.vlgmr.msra.gmra.mxu1 %vm788_vm1, %v756_v3  ;;  %v7197_v19 = vld [vmem:[%s7154_s30 + $0x1b8] sm:$0xff]  ;;  %v7202_v20 = vld [vmem:[%s7154_s30 + $0x1a0] sm:$0xff]  ;;  %v7205_v21 = vld [vmem:[%s7154_s30 + $0x1b0] sm:$0xff] }
  0x18   : > { %1039 = vmatpush1.msra.mxu0 %v7170_v12  ;;  %1110 = vmatpush1.msra.mxu1 %v7173_v13  ;;  %v7210_v22 = vld [vmem:[%s7154_s30 + $0x188] sm:$0xff]  ;;  %v7213_v23 = vld [vmem:[%s7154_s30 + $0x198] sm:$0xff]  ;;  %v7218_v24 = vld [vmem:[%s7154_s30 + $0x180] sm:$0xff] }
  0x19   : > { %1040 = vmatprep.subr.mxu0 %v7178_v14  ;;  %1111 = vmatprep.subr.mxu1 %v7181_v15  ;;  %v7221_v25 = vld [vmem:[%s7154_s30 + $0x190] sm:$0xff]  ;;  %v7226_v26 = vld [vmem:[%s7154_s30 + $0x168] sm:$0xff]  ;;  %v7229_v27 = vld [vmem:[%s7154_s30 + $0x178] sm:$0xff] }
  0x1a   : > { %1041 = vmatpush1.msra.mxu0 %v7186_v16  ;;  %1112 = vmatpush1.msra.mxu1 %v7189_v17  ;;  %v7234_v28 = vld [vmem:[%s7154_s30 + $0x160] sm:$0xff]  ;;  %v7237_v29 = vld [vmem:[%s7154_s30 + $0x170] sm:$0xff]  ;;  %v7242_v30 = vld [vmem:[%s7154_s30 + $0x148] sm:$0xff] }
  0x1b   : > { %1042 = vmatprep.subr.mxu0 %v7194_v18  ;;  %1113 = vmatprep.subr.mxu1 %v7197_v19  ;;  %v7245_v31 = vld [vmem:[%s7154_s30 + $0x158] sm:$0xff]  ;;  %v7250_v32 = vld [vmem:[%s7154_s30 + $0x140] sm:$0xff]  ;;  %v7253_v33 = vld [vmem:[%s7154_s30 + $0x150] sm:$0xff] }
  0x1c   : > { %1043 = vmatpush1.msra.mxu0 %v7202_v20  ;;  %1114 = vmatpush1.msra.mxu1 %v7205_v21  ;;  %v7258_v34 = vld [vmem:[%s7154_s30 + $0x128] sm:$0xff]  ;;  %v7261_v35 = vld [vmem:[%s7154_s30 + $0x138] sm:$0xff]  ;;  %v7266_v36 = vld [vmem:[%s7154_s30 + $0x120] sm:$0xff] }
  0x1d   : > { %1044 = vmatprep.subr.mxu0 %v7210_v22  ;;  %1115 = vmatprep.subr.mxu1 %v7213_v23  ;;  %v7269_v37 = vld [vmem:[%s7154_s30 + $0x130] sm:$0xff]  ;;  %v7274_v38 = vld [vmem:[%s7154_s30 + $0x108] sm:$0xff]  ;;  %v7277_v39 = vld [vmem:[%s7154_s30 + $0x118] sm:$0xff] }
  0x1e   : > { %1045 = vmatpush1.msra.mxu0 %v7218_v24  ;;  %1116 = vmatpush1.msra.mxu1 %v7221_v25  ;;  %v7282_v40 = vld [vmem:[%s7154_s30 + $0x100] sm:$0xff]  ;;  %v7285_v41 = vld [vmem:[%s7154_s30 + $0x110] sm:$0xff]  ;;  %v7290_v42 = vld [vmem:[%s7154_s30 + $0xe8] sm:$0xff] }
  0x1f   : > { %1046 = vmatprep.subr.mxu0 %v7226_v26  ;;  %1117 = vmatprep.subr.mxu1 %v7229_v27  ;;  %v7293_v43 = vld [vmem:[%s7154_s30 + $0xf8] sm:$0xff]  ;;  %v7298_v44 = vld [vmem:[%s7154_s30 + $0xe0] sm:$0xff]  ;;  %v7301_v45 = vld [vmem:[%s7154_s30 + $0xf0] sm:$0xff] }
  0x20   : > { %1047 = vmatpush1.msra.mxu0 %v7234_v28  ;;  %1118 = vmatpush1.msra.mxu1 %v7237_v29  ;;  %v7306_v46 = vld [vmem:[%s7154_s30 + $0xc8] sm:$0xff]  ;;  %v7309_v47 = vld [vmem:[%s7154_s30 + $0xd8] sm:$0xff]  ;;  %v7314_v48 = vld [vmem:[%s7154_s30 + $0xc0] sm:$0xff] }
  0x21   : > { %1048 = vmatprep.subr.mxu0 %v7242_v30  ;;  %1119 = vmatprep.subr.mxu1 %v7245_v31  ;;  %v7317_v49 = vld [vmem:[%s7154_s30 + $0xd0] sm:$0xff]  ;;  %v7322_v50 = vld [vmem:[%s7154_s30 + $0xa8] sm:$0xff]  ;;  %v7325_v51 = vld [vmem:[%s7154_s30 + $0xb8] sm:$0xff] }
  0x22   : > { %1049 = vmatpush1.msra.mxu0 %v7250_v32  ;;  %1120 = vmatpush1.msra.mxu1 %v7253_v33  ;;  %v7330_v52 = vld [vmem:[%s7154_s30 + $0xa0] sm:$0xff]  ;;  %v7333_v53 = vld [vmem:[%s7154_s30 + $0xb0] sm:$0xff]  ;;  %v7338_v54 = vld [vmem:[%s7154_s30 + $0x88] sm:$0xff] }
  0x23   : > { %1050 = vmatprep.subr.mxu0 %v7258_v34  ;;  %1121 = vmatprep.subr.mxu1 %v7261_v35  ;;  %v7341_v55 = vld [vmem:[%s7154_s30 + $0x98] sm:$0xff]  ;;  %v7346_v56 = vld [vmem:[%s7154_s30 + $0x80] sm:$0xff]  ;;  %v7349_v57 = vld [vmem:[%s7154_s30 + $0x90] sm:$0xff] }
  0x24   : > { %1051 = vmatpush1.msra.mxu0 %v7266_v36  ;;  %1122 = vmatpush1.msra.mxu1 %v7269_v37  ;;  %12136 = vst [vmem:[#allocation5_spill] sm:$0xff] %v7346_v56  ;;  %12137 = vst [vmem:[#allocation6_spill] sm:$0xff] %v7349_v57  ;;  %v7354_v58 = vld [vmem:[%s7154_s30 + $0x68] sm:$0xff]  ;;  %v7357_v59 = vld [vmem:[%s7154_s30 + $0x78] sm:$0xff] }
  0x25   : > { %1052 = vmatprep.subr.mxu0 %v7274_v38  ;;  %1123 = vmatprep.subr.mxu1 %v7277_v39  ;;  %12138 = vst [vmem:[#allocation7_spill] sm:$0xff] %v7354_v58  ;;  %12139 = vst [vmem:[#allocation8_spill] sm:$0xff] %v7357_v59  ;;  %v7362_v60 = vld [vmem:[%s7154_s30 + $0x60] sm:$0xff]  ;;  %v7367_v61 = vld [vmem:[%s7154_s30 + $0x70] sm:$0xff] }
  0x26   : > { %1053 = vmatpush1.msra.mxu0 %v7282_v40  ;;  %1124 = vmatpush1.msra.mxu1 %v7285_v41  ;;  %12140 = vst [vmem:[#allocation9_spill] sm:$0xff] %v7362_v60  ;;  %12141 = vst [vmem:[#allocation10_spill] sm:$0xff] %v7367_v61  ;;  %v757_v62 = vld [vmem:[%s12135_s18 + $0x8] sm:$0xff]  ;;  %v7378_v1 = vld [vmem:[%s7154_s30 + $0x58] sm:$0xff] }
  0x27   : > { %1054 = vmatprep.subr.mxu0 %v7290_v42  ;;  %1125 = vmatprep.subr.mxu1 %v7293_v43  ;;  %v7375_v63 = vld [vmem:[%s7154_s30 + $0x48] sm:$0xff]  ;;  %12143 = vst [vmem:[#allocation12_spill] sm:$0xff] %v7378_v1  ;;  %v7383_v2 = vld [vmem:[%s7154_s30 + $0x40] sm:$0xff]  ;;  %v7388_v3 = vld [vmem:[%s7154_s30 + $0x50] sm:$0xff] }
  0x28   : > { %1055 = vmatpush1.msra.mxu0 %v7298_v44  ;;  %1126 = vmatpush1.msra.mxu1 %v7301_v45  ;;  %12142 = vst [vmem:[#allocation11_spill] sm:$0xff] %v7375_v63  ;;  %12144 = vst [vmem:[#allocation13_spill] sm:$0xff] %v7383_v2  ;;  %v7391_v4 = vld [vmem:[%s7154_s30 + $0x28] sm:$0xff]  ;;  %v7396_v5 = vld [vmem:[%s7154_s30 + $0x38] sm:$0xff] }
  0x29   : > { %1056 = vmatprep.subr.mxu0 %v7306_v46  ;;  %1127 = vmatprep.subr.mxu1 %v7309_v47  ;;  %12145 = vst [vmem:[#allocation14_spill] sm:$0xff] %v7388_v3  ;;  %12146 = vst [vmem:[#allocation15_spill] sm:$0xff] %v7391_v4  ;;  %v7401_v6 = vld [vmem:[%s7154_s30 + $0x20] sm:$0xff]  ;;  %v7404_v7 = vld [vmem:[%s7154_s30 + $0x30] sm:$0xff] }
  0x2a   : > { %1057 = vmatpush1.msra.mxu0 %v7314_v48  ;;  %1128 = vmatpush1.msra.mxu1 %v7317_v49  ;;  %12147 = vst [vmem:[#allocation16_spill] sm:$0xff] %v7396_v5  ;;  %12148 = vst [vmem:[#allocation17_spill] sm:$0xff] %v7401_v6  ;;  %v7409_v8 = vld [vmem:[%s7154_s30 + $0x8] sm:$0xff]  ;;  %v7412_v9 = vld [vmem:[%s7154_s30 + $0x18] sm:$0xff] }
  0x2b   : > { %1058 = vmatprep.subr.mxu0 %v7322_v50  ;;  %1129 = vmatprep.subr.mxu1 %v7325_v51  ;;  %12149 = vst [vmem:[#allocation18_spill] sm:$0xff] %v7404_v7  ;;  %12150 = vst [vmem:[#allocation19_spill] sm:$0xff] %v7409_v8 }
  0x2c   : > { %1059 = vmatpush1.msra.mxu0 %v7330_v52  ;;  %1130 = vmatpush1.msra.mxu1 %v7333_v53  ;;  %12151 = vst [vmem:[#allocation20_spill] sm:$0xff] %v7412_v9 }
  0x2d   : > { %1060 = vmatprep.subr.mxu0 %v7338_v54  ;;  %1131 = vmatprep.subr.mxu1 %v7341_v55 }
  0x2e   : > { %1061 = vmatpush1.msra.mxu0 %v7346_v56  ;;  %1132 = vmatpush1.msra.mxu1 %v7349_v57 }
  0x2f   : > { %1062 = vmatprep.subr.mxu0 %v7354_v58  ;;  %1133 = vmatprep.subr.mxu1 %v7357_v59 }
  0x30   : > { %878 = vmatprep.mubr.f32.mxu0 %v11513_v0  ;;  %1063 = vmatpush1.msra.mxu0 %v7362_v60 }
  0x31   : > { %1134 = vmatpush1.msra.mxu1 %v7367_v61  ;;  %6588 = vmatmul.mubr.msk.f32.gmra.mxu0 %vm788_vm1, %v757_v62 }
  0x32   : > { %1064 = vmatprep.subr.mxu0 %v7375_v63  ;;  %1135 = vmatprep.subr.mxu1 %v7378_v1 }
  0x33   : > { %955 = vmatprep.mubr.f32.mxu1 %v11513_v0  ;;  %1065 = vmatpush1.msra.mxu0 %v7383_v2  ;;  %v7417_v0 = vld [vmem:[%s7154_s30] sm:$0xff]  ;;  %v7422_v2 = vld [vmem:[%s7154_s30 + $0x10] sm:$0xff] }
  0x34   : > { %1136 = vmatpush1.msra.mxu1 %v7388_v3  ;;  %1066 = vmatprep.subr.mxu0 %v7391_v4  ;;  %12152 = vst [vmem:[#allocation21_spill] sm:$0xff] %v7417_v0  ;;  %12153 = vst [vmem:[#allocation22_spill] sm:$0xff] %v7422_v2  ;;  %v12154_v4 = vmov 0.0   ;;  %v7880_v3 = vld [vmem:[%s7438_s26 + $0x290] sm:$0xff] }
  0x35   : > { %6592 = vmatmul.mubr.msk.f32.gmra.mxu1 %vm788_vm1, %v757_v62  ;;  %1137 = vmatprep.subr.mxu1 %v7396_v5  ;;  %v7441_v62 = vld [vmem:[%s7438_s26 + $0x1e8] sm:$0xff]  ;;  %12266 = vst [vmem:[#allocation134_spill] sm:$0xff] %v7880_v3 }
  0x36   : > { %1067 = vmatpush1.msra.mxu0 %v7401_v6  ;;  %1138 = vmatpush1.msra.mxu1 %v7404_v7  ;;  %12155 = vst [vmem:[#allocation23_spill] sm:$0xff] %v7441_v62  ;;  %v7855_v7 = vld [vmem:[%s7438_s26 + $0x2a8] sm:$0xff]  ;;  %v7858_v6 = vld [vmem:[%s7438_s26 + $0x2b8] sm:$0xff] }
  0x37   : > { %1068 = vmatprep.subr.mxu0 %v7409_v8  ;;  %1139 = vmatprep.subr.mxu1 %v7412_v9  ;;  %v7457_v9 = vld [vmem:[%s7438_s26 + $0x1c8] sm:$0xff]  ;;  %v7460_v8 = vld [vmem:[%s7438_s26 + $0x1d8] sm:$0xff]  ;;  %12259 = vst [vmem:[#allocation127_spill] sm:$0xff] %v7855_v7  ;;  %12260 = vst [vmem:[#allocation128_spill] sm:$0xff] %v7858_v6 }
  0x38   : > { %1069 = vmatpush1.msra.mxu0 %v7417_v0  ;;  %1102 = vmatprep.mubr.f32.mxu0 %v12154_v4  ;;  %v7452_v0 = vld [vmem:[%s7438_s26 + $0x1f0] sm:$0xff]  ;;  %12159 = vst [vmem:[#allocation27_spill] sm:$0xff] %v7457_v9  ;;  %12160 = vst [vmem:[#allocation28_spill] sm:$0xff] %v7460_v8  ;;  %v7869_v5 = vld [vmem:[%s7438_s26 + $0x288] sm:$0xff] }
  0x39   : > { %1140 = vmatpush1.msra.mxu1 %v7422_v2  ;;  %1173 = vmatprep.mubr.f32.mxu1 %v12154_v4  ;;  %v7444_v2 = vld [vmem:[%s7438_s26 + $0x1f8] sm:$0xff]  ;;  %12158 = vst [vmem:[#allocation26_spill] sm:$0xff] %v7452_v0  ;;  %12263 = vst [vmem:[#allocation131_spill] sm:$0xff] %v7869_v5 }
  0x3a   : > { %1103 = vmatmul.mubr.f32.vlgmr.msra.gmra.mxu0 %v12154_v4  ;;  %1174 = vmatmul.mubr.f32.vlgmr.msra.gmra.mxu1 %v12154_v4  ;;  %12156 = vst [vmem:[#allocation24_spill] sm:$0xff] %v7444_v2 }
  0x3b   : > { %1422 = vmatprep.mubr.f32.mxu0 %v12154_v4  ;;  %1493 = vmatprep.mubr.f32.mxu1 %v12154_v4  ;;  %v7447_v4 = vld [vmem:[%s7438_s26 + $0x1e0] sm:$0xff] }
  0x3c   : > { %12157 = vst [vmem:[#allocation25_spill] sm:$0xff] %v7447_v4  ;;  %1358 = vmatprep.subr.mxu0 %v7441_v62  ;;  %1429 = vmatprep.subr.mxu1 %v7444_v2  ;;  %v7465_v62 = vld [vmem:[%s7438_s26 + $0x1c0] sm:$0xff]  ;;  %v7468_v2 = vld [vmem:[%s7438_s26 + $0x1d0] sm:$0xff] }
  0x3d   : > { %1359 = vmatpush1.msra.mxu0 %v7447_v4  ;;  %1430 = vmatpush1.msra.mxu1 %v7452_v0  ;;  %12161 = vst [vmem:[#allocation29_spill] sm:$0xff] %v7465_v62  ;;  %12162 = vst [vmem:[#allocation30_spill] sm:$0xff] %v7468_v2  ;;  %v7473_v0 = vld [vmem:[%s7438_s26 + $0x1a8] sm:$0xff]  ;;  %v7476_v4 = vld [vmem:[%s7438_s26 + $0x1b8] sm:$0xff] }
  0x3e   : > { %1360 = vmatprep.subr.mxu0 %v7457_v9  ;;  %1431 = vmatprep.subr.mxu1 %v7460_v8  ;;  %12163 = vst [vmem:[#allocation31_spill] sm:$0xff] %v7473_v0  ;;  %12164 = vst [vmem:[#allocation32_spill] sm:$0xff] %v7476_v4  ;;  %v7481_v8 = vld [vmem:[%s7438_s26 + $0x1a0] sm:$0xff]  ;;  %v7484_v9 = vld [vmem:[%s7438_s26 + $0x1b0] sm:$0xff] }
  0x3f   : > { %1361 = vmatpush1.msra.mxu0 %v7465_v62  ;;  %1432 = vmatpush1.msra.mxu1 %v7468_v2  ;;  %12165 = vst [vmem:[#allocation33_spill] sm:$0xff] %v7481_v8  ;;  %12166 = vst [vmem:[#allocation34_spill] sm:$0xff] %v7484_v9  ;;  %v7489_v2 = vld [vmem:[%s7438_s26 + $0x188] sm:$0xff]  ;;  %v7492_v62 = vld [vmem:[%s7438_s26 + $0x198] sm:$0xff] }
  0x40   : > { %1362 = vmatprep.subr.mxu0 %v7473_v0  ;;  %1433 = vmatprep.subr.mxu1 %v7476_v4  ;;  %12167 = vst [vmem:[#allocation35_spill] sm:$0xff] %v7489_v2  ;;  %12168 = vst [vmem:[#allocation36_spill] sm:$0xff] %v7492_v62  ;;  %v7497_v4 = vld [vmem:[%s7438_s26 + $0x180] sm:$0xff]  ;;  %v7500_v0 = vld [vmem:[%s7438_s26 + $0x190] sm:$0xff] }
  0x41   : > { %1363 = vmatpush1.msra.mxu0 %v7481_v8  ;;  %1434 = vmatpush1.msra.mxu1 %v7484_v9  ;;  %12169 = vst [vmem:[#allocation37_spill] sm:$0xff] %v7497_v4  ;;  %12170 = vst [vmem:[#allocation38_spill] sm:$0xff] %v7500_v0  ;;  %v7505_v9 = vld [vmem:[%s7438_s26 + $0x168] sm:$0xff]  ;;  %v7508_v8 = vld [vmem:[%s7438_s26 + $0x178] sm:$0xff] }
  0x42   : > { %1364 = vmatprep.subr.mxu0 %v7489_v2  ;;  %1435 = vmatprep.subr.mxu1 %v7492_v62  ;;  %12171 = vst [vmem:[#allocation39_spill] sm:$0xff] %v7505_v9  ;;  %12172 = vst [vmem:[#allocation40_spill] sm:$0xff] %v7508_v8  ;;  %v7513_v62 = vld [vmem:[%s7438_s26 + $0x160] sm:$0xff]  ;;  %v7516_v2 = vld [vmem:[%s7438_s26 + $0x170] sm:$0xff] }
  0x43   : > { %1365 = vmatpush1.msra.mxu0 %v7497_v4  ;;  %1436 = vmatpush1.msra.mxu1 %v7500_v0  ;;  %12173 = vst [vmem:[#allocation41_spill] sm:$0xff] %v7513_v62  ;;  %12174 = vst [vmem:[#allocation42_spill] sm:$0xff] %v7516_v2  ;;  %v7521_v0 = vld [vmem:[%s7438_s26 + $0x148] sm:$0xff]  ;;  %v7524_v4 = vld [vmem:[%s7438_s26 + $0x158] sm:$0xff] }
  0x44   : > { %1366 = vmatprep.subr.mxu0 %v7505_v9  ;;  %1437 = vmatprep.subr.mxu1 %v7508_v8  ;;  %12175 = vst [vmem:[#allocation43_spill] sm:$0xff] %v7521_v0  ;;  %12176 = vst [vmem:[#allocation44_spill] sm:$0xff] %v7524_v4  ;;  %v7529_v8 = vld [vmem:[%s7438_s26 + $0x140] sm:$0xff]  ;;  %v7532_v9 = vld [vmem:[%s7438_s26 + $0x150] sm:$0xff] }
  0x45   : > { %1367 = vmatpush1.msra.mxu0 %v7513_v62  ;;  %1438 = vmatpush1.msra.mxu1 %v7516_v2  ;;  %12177 = vst [vmem:[#allocation45_spill] sm:$0xff] %v7529_v8  ;;  %12178 = vst [vmem:[#allocation46_spill] sm:$0xff] %v7532_v9  ;;  %v7537_v2 = vld [vmem:[%s7438_s26 + $0x128] sm:$0xff]  ;;  %v7540_v62 = vld [vmem:[%s7438_s26 + $0x138] sm:$0xff] }
  0x46   : > { %1368 = vmatprep.subr.mxu0 %v7521_v0  ;;  %1439 = vmatprep.subr.mxu1 %v7524_v4  ;;  %12179 = vst [vmem:[#allocation47_spill] sm:$0xff] %v7537_v2  ;;  %12180 = vst [vmem:[#allocation48_spill] sm:$0xff] %v7540_v62  ;;  %v7545_v4 = vld [vmem:[%s7438_s26 + $0x120] sm:$0xff]  ;;  %v7548_v0 = vld [vmem:[%s7438_s26 + $0x130] sm:$0xff] }
  0x47   : > { %1369 = vmatpush1.msra.mxu0 %v7529_v8  ;;  %1440 = vmatpush1.msra.mxu1 %v7532_v9  ;;  %12181 = vst [vmem:[#allocation49_spill] sm:$0xff] %v7545_v4  ;;  %12182 = vst [vmem:[#allocation50_spill] sm:$0xff] %v7548_v0  ;;  %v7553_v9 = vld [vmem:[%s7438_s26 + $0x108] sm:$0xff]  ;;  %v7556_v8 = vld [vmem:[%s7438_s26 + $0x118] sm:$0xff] }
  0x48   : > { %1370 = vmatprep.subr.mxu0 %v7537_v2  ;;  %1441 = vmatprep.subr.mxu1 %v7540_v62  ;;  %12183 = vst [vmem:[#allocation51_spill] sm:$0xff] %v7553_v9  ;;  %12184 = vst [vmem:[#allocation52_spill] sm:$0xff] %v7556_v8  ;;  %v7561_v62 = vld [vmem:[%s7438_s26 + $0x100] sm:$0xff]  ;;  %v7564_v2 = vld [vmem:[%s7438_s26 + $0x110] sm:$0xff] }
  0x49   : > { %1371 = vmatpush1.msra.mxu0 %v7545_v4  ;;  %1442 = vmatpush1.msra.mxu1 %v7548_v0  ;;  %12185 = vst [vmem:[#allocation53_spill] sm:$0xff] %v7561_v62  ;;  %12186 = vst [vmem:[#allocation54_spill] sm:$0xff] %v7564_v2  ;;  %v7569_v0 = vld [vmem:[%s7438_s26 + $0xe8] sm:$0xff]  ;;  %v7572_v4 = vld [vmem:[%s7438_s26 + $0xf8] sm:$0xff] }
  0x4a   : > { %1372 = vmatprep.subr.mxu0 %v7553_v9  ;;  %1443 = vmatprep.subr.mxu1 %v7556_v8  ;;  %12187 = vst [vmem:[#allocation55_spill] sm:$0xff] %v7569_v0  ;;  %12188 = vst [vmem:[#allocation56_spill] sm:$0xff] %v7572_v4  ;;  %v7577_v8 = vld [vmem:[%s7438_s26 + $0xe0] sm:$0xff]  ;;  %v7580_v9 = vld [vmem:[%s7438_s26 + $0xf0] sm:$0xff] }
  0x4b   : > { %1373 = vmatpush1.msra.mxu0 %v7561_v62  ;;  %1444 = vmatpush1.msra.mxu1 %v7564_v2  ;;  %12189 = vst [vmem:[#allocation57_spill] sm:$0xff] %v7577_v8  ;;  %12190 = vst [vmem:[#allocation58_spill] sm:$0xff] %v7580_v9  ;;  %v7585_v2 = vld [vmem:[%s7438_s26 + $0xc8] sm:$0xff]  ;;  %v7588_v62 = vld [vmem:[%s7438_s26 + $0xd8] sm:$0xff] }
  0x4c   : > { %1374 = vmatprep.subr.mxu0 %v7569_v0  ;;  %1445 = vmatprep.subr.mxu1 %v7572_v4  ;;  %12191 = vst [vmem:[#allocation59_spill] sm:$0xff] %v7585_v2  ;;  %12192 = vst [vmem:[#allocation60_spill] sm:$0xff] %v7588_v62  ;;  %v7593_v4 = vld [vmem:[%s7438_s26 + $0xc0] sm:$0xff]  ;;  %v7596_v0 = vld [vmem:[%s7438_s26 + $0xd0] sm:$0xff] }
  0x4d   : > { %1375 = vmatpush1.msra.mxu0 %v7577_v8  ;;  %1446 = vmatpush1.msra.mxu1 %v7580_v9  ;;  %12193 = vst [vmem:[#allocation61_spill] sm:$0xff] %v7593_v4  ;;  %12194 = vst [vmem:[#allocation62_spill] sm:$0xff] %v7596_v0  ;;  %v7601_v9 = vld [vmem:[%s7438_s26 + $0xa8] sm:$0xff]  ;;  %v7604_v8 = vld [vmem:[%s7438_s26 + $0xb8] sm:$0xff] }
  0x4e   : > { %1376 = vmatprep.subr.mxu0 %v7585_v2  ;;  %1447 = vmatprep.subr.mxu1 %v7588_v62  ;;  %12195 = vst [vmem:[#allocation63_spill] sm:$0xff] %v7601_v9  ;;  %12196 = vst [vmem:[#allocation64_spill] sm:$0xff] %v7604_v8  ;;  %v7609_v62 = vld [vmem:[%s7438_s26 + $0xa0] sm:$0xff]  ;;  %v7612_v2 = vld [vmem:[%s7438_s26 + $0xb0] sm:$0xff] }
  0x4f   : > { %1377 = vmatpush1.msra.mxu0 %v7593_v4  ;;  %1448 = vmatpush1.msra.mxu1 %v7596_v0  ;;  %12197 = vst [vmem:[#allocation65_spill] sm:$0xff] %v7609_v62  ;;  %12198 = vst [vmem:[#allocation66_spill] sm:$0xff] %v7612_v2  ;;  %v7617_v0 = vld [vmem:[%s7438_s26 + $0x88] sm:$0xff]  ;;  %v7620_v4 = vld [vmem:[%s7438_s26 + $0x98] sm:$0xff] }
  0x50   : > { %1378 = vmatprep.subr.mxu0 %v7601_v9  ;;  %1449 = vmatprep.subr.mxu1 %v7604_v8  ;;  %12199 = vst [vmem:[#allocation67_spill] sm:$0xff] %v7617_v0  ;;  %12200 = vst [vmem:[#allocation68_spill] sm:$0xff] %v7620_v4  ;;  %v7625_v8 = vld [vmem:[%s7438_s26 + $0x80] sm:$0xff]  ;;  %v7628_v9 = vld [vmem:[%s7438_s26 + $0x90] sm:$0xff] }
  0x51   : > { %1379 = vmatpush1.msra.mxu0 %v7609_v62  ;;  %1450 = vmatpush1.msra.mxu1 %v7612_v2  ;;  %12201 = vst [vmem:[#allocation69_spill] sm:$0xff] %v7625_v8  ;;  %12202 = vst [vmem:[#allocation70_spill] sm:$0xff] %v7628_v9  ;;  %v7633_v2 = vld [vmem:[%s7438_s26 + $0x68] sm:$0xff]  ;;  %v7636_v62 = vld [vmem:[%s7438_s26 + $0x78] sm:$0xff] }
  0x52   : > { %1380 = vmatprep.subr.mxu0 %v7617_v0  ;;  %1451 = vmatprep.subr.mxu1 %v7620_v4  ;;  %12203 = vst [vmem:[#allocation71_spill] sm:$0xff] %v7633_v2  ;;  %12204 = vst [vmem:[#allocation72_spill] sm:$0xff] %v7636_v62  ;;  %v7641_v4 = vld [vmem:[%s7438_s26 + $0x60] sm:$0xff]  ;;  %v7644_v0 = vld [vmem:[%s7438_s26 + $0x70] sm:$0xff] }
  0x53   : > { %1381 = vmatpush1.msra.mxu0 %v7625_v8  ;;  %1452 = vmatpush1.msra.mxu1 %v7628_v9  ;;  %12205 = vst [vmem:[#allocation73_spill] sm:$0xff] %v7641_v4  ;;  %12206 = vst [vmem:[#allocation74_spill] sm:$0xff] %v7644_v0  ;;  %v7649_v9 = vld [vmem:[%s7438_s26 + $0x48] sm:$0xff]  ;;  %v7652_v8 = vld [vmem:[%s7438_s26 + $0x58] sm:$0xff] }
  0x54   : > { %1382 = vmatprep.subr.mxu0 %v7633_v2  ;;  %1453 = vmatprep.subr.mxu1 %v7636_v62  ;;  %12207 = vst [vmem:[#allocation75_spill] sm:$0xff] %v7649_v9  ;;  %12208 = vst [vmem:[#allocation76_spill] sm:$0xff] %v7652_v8  ;;  %v7657_v62 = vld [vmem:[%s7438_s26 + $0x40] sm:$0xff]  ;;  %v7660_v2 = vld [vmem:[%s7438_s26 + $0x50] sm:$0xff] }
  0x55   : > { %1383 = vmatpush1.msra.mxu0 %v7641_v4  ;;  %1454 = vmatpush1.msra.mxu1 %v7644_v0  ;;  %12209 = vst [vmem:[#allocation77_spill] sm:$0xff] %v7657_v62  ;;  %12210 = vst [vmem:[#allocation78_spill] sm:$0xff] %v7660_v2  ;;  %v7665_v0 = vld [vmem:[%s7438_s26 + $0x28] sm:$0xff]  ;;  %v7668_v4 = vld [vmem:[%s7438_s26 + $0x38] sm:$0xff] }
  0x56   : > { %1384 = vmatprep.subr.mxu0 %v7649_v9  ;;  %1455 = vmatprep.subr.mxu1 %v7652_v8  ;;  %12211 = vst [vmem:[#allocation79_spill] sm:$0xff] %v7665_v0  ;;  %12212 = vst [vmem:[#allocation80_spill] sm:$0xff] %v7668_v4  ;;  %v7673_v8 = vld [vmem:[%s7438_s26 + $0x20] sm:$0xff]  ;;  %v7676_v9 = vld [vmem:[%s7438_s26 + $0x30] sm:$0xff] }
  0x57   : > { %1385 = vmatpush1.msra.mxu0 %v7657_v62  ;;  %1456 = vmatpush1.msra.mxu1 %v7660_v2  ;;  %12213 = vst [vmem:[#allocation81_spill] sm:$0xff] %v7673_v8  ;;  %12214 = vst [vmem:[#allocation82_spill] sm:$0xff] %v7676_v9  ;;  %v7681_v2 = vld [vmem:[%s7438_s26 + $0x8] sm:$0xff]  ;;  %v7684_v62 = vld [vmem:[%s7438_s26 + $0x18] sm:$0xff] }
  0x58   : > { %1386 = vmatprep.subr.mxu0 %v7665_v0  ;;  %1457 = vmatprep.subr.mxu1 %v7668_v4  ;;  %12215 = vst [vmem:[#allocation83_spill] sm:$0xff] %v7681_v2  ;;  %12216 = vst [vmem:[#allocation84_spill] sm:$0xff] %v7684_v62  ;;  %v7689_v4 = vld [vmem:[%s7438_s26] sm:$0xff]  ;;  %v7692_v0 = vld [vmem:[%s7438_s26 + $0x10] sm:$0xff] }
  0x59   : > { %1387 = vmatpush1.msra.mxu0 %v7673_v8  ;;  %1458 = vmatpush1.msra.mxu1 %v7676_v9  ;;  %12217 = vst [vmem:[#allocation85_spill] sm:$0xff] %v7689_v4  ;;  %12218 = vst [vmem:[#allocation86_spill] sm:$0xff] %v7692_v0  ;;  %v7697_v9 = vld [vmem:[%s7438_s26 + $0x3e8] sm:$0xff]  ;;  %v7700_v8 = vld [vmem:[%s7438_s26 + $0x3f8] sm:$0xff] }
  0x5a   : > { %1388 = vmatprep.subr.mxu0 %v7681_v2  ;;  %1459 = vmatprep.subr.mxu1 %v7684_v62  ;;  %12219 = vst [vmem:[#allocation87_spill] sm:$0xff] %v7697_v9  ;;  %12220 = vst [vmem:[#allocation88_spill] sm:$0xff] %v7700_v8  ;;  %v7705_v62 = vld [vmem:[%s7438_s26 + $0x3e0] sm:$0xff]  ;;  %v7708_v2 = vld [vmem:[%s7438_s26 + $0x3f0] sm:$0xff] }
  0x5b   : > { %1389 = vmatpush1.msra.mxu0 %v7689_v4  ;;  %1460 = vmatpush1.msra.mxu1 %v7692_v0  ;;  %12221 = vst [vmem:[#allocation89_spill] sm:$0xff] %v7705_v62  ;;  %12222 = vst [vmem:[#allocation90_spill] sm:$0xff] %v7708_v2  ;;  %v7713_v0 = vld [vmem:[%s7438_s26 + $0x3c8] sm:$0xff]  ;;  %v7716_v4 = vld [vmem:[%s7438_s26 + $0x3d8] sm:$0xff] }
  0x5c   : > { %1390 = vmatprep.subr.mxu0 %v7697_v9  ;;  %1461 = vmatprep.subr.mxu1 %v7700_v8  ;;  %12223 = vst [vmem:[#allocation91_spill] sm:$0xff] %v7713_v0  ;;  %12224 = vst [vmem:[#allocation92_spill] sm:$0xff] %v7716_v4  ;;  %v7721_v8 = vld [vmem:[%s7438_s26 + $0x3c0] sm:$0xff]  ;;  %v7724_v9 = vld [vmem:[%s7438_s26 + $0x3d0] sm:$0xff] }
  0x5d   : > { %1391 = vmatpush2.msra.mxu0 %v7705_v62  ;;  %1462 = vmatpush2.msra.mxu1 %v7708_v2  ;;  %12225 = vst [vmem:[#allocation93_spill] sm:$0xff] %v7721_v8  ;;  %12226 = vst [vmem:[#allocation94_spill] sm:$0xff] %v7724_v9  ;;  %v7729_v2 = vld [vmem:[%s7438_s26 + $0x3a8] sm:$0xff]  ;;  %v7732_v62 = vld [vmem:[%s7438_s26 + $0x3b8] sm:$0xff] }
  0x5e   : > { %1392 = vmatprep.subr.mxu0 %v7713_v0  ;;  %1463 = vmatprep.subr.mxu1 %v7716_v4  ;;  %12227 = vst [vmem:[#allocation95_spill] sm:$0xff] %v7729_v2  ;;  %12228 = vst [vmem:[#allocation96_spill] sm:$0xff] %v7732_v62  ;;  %v7737_v4 = vld [vmem:[%s7438_s26 + $0x3a0] sm:$0xff]  ;;  %v7740_v0 = vld [vmem:[%s7438_s26 + $0x3b0] sm:$0xff] }
  0x5f   : > { %1393 = vmatpush2.msra.mxu0 %v7721_v8  ;;  %1464 = vmatpush2.msra.mxu1 %v7724_v9  ;;  %12229 = vst [vmem:[#allocation97_spill] sm:$0xff] %v7737_v4  ;;  %12230 = vst [vmem:[#allocation98_spill] sm:$0xff] %v7740_v0  ;;  %v7745_v9 = vld [vmem:[%s7438_s26 + $0x388] sm:$0xff]  ;;  %v7748_v8 = vld [vmem:[%s7438_s26 + $0x398] sm:$0xff] }
  0x60   : > { %1394 = vmatprep.subr.mxu0 %v7729_v2  ;;  %1465 = vmatprep.subr.mxu1 %v7732_v62  ;;  %12231 = vst [vmem:[#allocation99_spill] sm:$0xff] %v7745_v9  ;;  %12232 = vst [vmem:[#allocation100_spill] sm:$0xff] %v7748_v8  ;;  %v7753_v62 = vld [vmem:[%s7438_s26 + $0x380] sm:$0xff]  ;;  %v7756_v2 = vld [vmem:[%s7438_s26 + $0x390] sm:$0xff] }
  0x61   : > { %1395 = vmatpush2.msra.mxu0 %v7737_v4  ;;  %1466 = vmatpush2.msra.mxu1 %v7740_v0  ;;  %12233 = vst [vmem:[#allocation101_spill] sm:$0xff] %v7753_v62  ;;  %12234 = vst [vmem:[#allocation102_spill] sm:$0xff] %v7756_v2  ;;  %v7761_v0 = vld [vmem:[%s7438_s26 + $0x368] sm:$0xff]  ;;  %v7764_v4 = vld [vmem:[%s7438_s26 + $0x378] sm:$0xff] }
  0x62   : > { %1396 = vmatprep.subr.mxu0 %v7745_v9  ;;  %1467 = vmatprep.subr.mxu1 %v7748_v8  ;;  %12235 = vst [vmem:[#allocation103_spill] sm:$0xff] %v7761_v0  ;;  %12236 = vst [vmem:[#allocation104_spill] sm:$0xff] %v7764_v4  ;;  %v7769_v8 = vld [vmem:[%s7438_s26 + $0x360] sm:$0xff]  ;;  %v7772_v9 = vld [vmem:[%s7438_s26 + $0x370] sm:$0xff] }
  0x63   : > { %1397 = vmatpush2.msra.mxu0 %v7753_v62  ;;  %1468 = vmatpush2.msra.mxu1 %v7756_v2  ;;  %12237 = vst [vmem:[#allocation105_spill] sm:$0xff] %v7769_v8  ;;  %12238 = vst [vmem:[#allocation106_spill] sm:$0xff] %v7772_v9  ;;  %v7777_v2 = vld [vmem:[%s7438_s26 + $0x348] sm:$0xff]  ;;  %v7780_v62 = vld [vmem:[%s7438_s26 + $0x358] sm:$0xff] }
  0x64   : > { %1398 = vmatprep.subr.mxu0 %v7761_v0  ;;  %1469 = vmatprep.subr.mxu1 %v7764_v4  ;;  %12239 = vst [vmem:[#allocation107_spill] sm:$0xff] %v7777_v2  ;;  %12240 = vst [vmem:[#allocation108_spill] sm:$0xff] %v7780_v62  ;;  %v7785_v4 = vld [vmem:[%s7438_s26 + $0x340] sm:$0xff]  ;;  %v7788_v0 = vld [vmem:[%s7438_s26 + $0x350] sm:$0xff] }
  0x65   : > { %1399 = vmatpush2.msra.mxu0 %v7769_v8  ;;  %1470 = vmatpush2.msra.mxu1 %v7772_v9  ;;  %12241 = vst [vmem:[#allocation109_spill] sm:$0xff] %v7785_v4  ;;  %12242 = vst [vmem:[#allocation110_spill] sm:$0xff] %v7788_v0  ;;  %v7793_v9 = vld [vmem:[%s7438_s26 + $0x328] sm:$0xff]  ;;  %v7796_v8 = vld [vmem:[%s7438_s26 + $0x338] sm:$0xff] }
  0x66   : > { %1400 = vmatprep.subr.mxu0 %v7777_v2  ;;  %1471 = vmatprep.subr.mxu1 %v7780_v62  ;;  %12243 = vst [vmem:[#allocation111_spill] sm:$0xff] %v7793_v9  ;;  %12244 = vst [vmem:[#allocation112_spill] sm:$0xff] %v7796_v8  ;;  %v7801_v62 = vld [vmem:[%s7438_s26 + $0x320] sm:$0xff]  ;;  %v7804_v2 = vld [vmem:[%s7438_s26 + $0x330] sm:$0xff] }
  0x67   : > { %1401 = vmatpush2.msra.mxu0 %v7785_v4  ;;  %1472 = vmatpush2.msra.mxu1 %v7788_v0  ;;  %12245 = vst [vmem:[#allocation113_spill] sm:$0xff] %v7801_v62  ;;  %12246 = vst [vmem:[#allocation114_spill] sm:$0xff] %v7804_v2  ;;  %v7809_v0 = vld [vmem:[%s7438_s26 + $0x308] sm:$0xff]  ;;  %v7812_v4 = vld [vmem:[%s7438_s26 + $0x318] sm:$0xff] }
  0x68   : > { %1402 = vmatprep.subr.mxu0 %v7793_v9  ;;  %1473 = vmatprep.subr.mxu1 %v7796_v8  ;;  %12247 = vst [vmem:[#allocation115_spill] sm:$0xff] %v7809_v0  ;;  %12248 = vst [vmem:[#allocation116_spill] sm:$0xff] %v7812_v4  ;;  %v7817_v8 = vld [vmem:[%s7438_s26 + $0x300] sm:$0xff]  ;;  %v7820_v9 = vld [vmem:[%s7438_s26 + $0x310] sm:$0xff] }
  0x69   : > { %1403 = vmatpush2.msra.mxu0 %v7801_v62  ;;  %1474 = vmatpush2.msra.mxu1 %v7804_v2  ;;  %12249 = vst [vmem:[#allocation117_spill] sm:$0xff] %v7817_v8  ;;  %12250 = vst [vmem:[#allocation118_spill] sm:$0xff] %v7820_v9  ;;  %v7825_v2 = vld [vmem:[%s7438_s26 + $0x2e8] sm:$0xff]  ;;  %v7828_v62 = vld [vmem:[%s7438_s26 + $0x2f8] sm:$0xff] }
  0x6a   : > { %1404 = vmatprep.subr.mxu0 %v7809_v0  ;;  %1475 = vmatprep.subr.mxu1 %v7812_v4  ;;  %12251 = vst [vmem:[#allocation119_spill] sm:$0xff] %v7825_v2  ;;  %12252 = vst [vmem:[#allocation120_spill] sm:$0xff] %v7828_v62  ;;  %v7833_v4 = vld [vmem:[%s7438_s26 + $0x2e0] sm:$0xff]  ;;  %v7836_v0 = vld [vmem:[%s7438_s26 + $0x2f0] sm:$0xff] }
  0x6b   : > { %1405 = vmatpush2.msra.mxu0 %v7817_v8  ;;  %1476 = vmatpush2.msra.mxu1 %v7820_v9  ;;  %12253 = vst [vmem:[#allocation121_spill] sm:$0xff] %v7833_v4  ;;  %12254 = vst [vmem:[#allocation122_spill] sm:$0xff] %v7836_v0  ;;  %v7839_v8 = vld [vmem:[%s7438_s26 + $0x2c8] sm:$0xff]  ;;  %v7844_v9 = vld [vmem:[%s7438_s26 + $0x2d8] sm:$0xff] }
  0x6c   : > { %1406 = vmatprep.subr.mxu0 %v7825_v2  ;;  %1477 = vmatprep.subr.mxu1 %v7828_v62  ;;  %12255 = vst [vmem:[#allocation123_spill] sm:$0xff] %v7839_v8  ;;  %12256 = vst [vmem:[#allocation124_spill] sm:$0xff] %v7844_v9  ;;  %v7847_v2 = vld [vmem:[%s7438_s26 + $0x2c0] sm:$0xff]  ;;  %v7850_v62 = vld [vmem:[%s7438_s26 + $0x2d0] sm:$0xff] }
  0x6d   : > { %1407 = vmatpush2.msra.mxu0 %v7833_v4  ;;  %1478 = vmatpush2.msra.mxu1 %v7836_v0  ;;  %12257 = vst [vmem:[#allocation125_spill] sm:$0xff] %v7847_v2  ;;  %12258 = vst [vmem:[#allocation126_spill] sm:$0xff] %v7850_v62  ;;  %v7861_v4 = vld [vmem:[%s7438_s26 + $0x2a0] sm:$0xff]  ;;  %v7866_v0 = vld [vmem:[%s7438_s26 + $0x2b0] sm:$0xff] }
  0x6e   : > { %1408 = vmatprep.subr.mxu0 %v7839_v8  ;;  %1479 = vmatprep.subr.mxu1 %v7844_v9  ;;  %12261 = vst [vmem:[#allocation129_spill] sm:$0xff] %v7861_v4  ;;  %12262 = vst [vmem:[#allocation130_spill] sm:$0xff] %v7866_v0  ;;  %v7872_v8 = vld [vmem:[%s7438_s26 + $0x298] sm:$0xff]  ;;  %v7877_v9 = vld [vmem:[%s7438_s26 + $0x280] sm:$0xff] }
  0x6f   : > { %1409 = vmatpush2.msra.mxu0 %v7847_v2  ;;  %1480 = vmatpush2.msra.mxu1 %v7850_v62  ;;  %12264 = vst [vmem:[#allocation132_spill] sm:$0xff] %v7872_v8  ;;  %12265 = vst [vmem:[#allocation133_spill] sm:$0xff] %v7877_v9  ;;  %v7885_v62 = vld [vmem:[%s7438_s26 + $0x268] sm:$0xff]  ;;  %v7888_v2 = vld [vmem:[%s7438_s26 + $0x278] sm:$0xff] }
  0x70   : > { %1410 = vmatprep.subr.mxu0 %v7855_v7  ;;  %1481 = vmatprep.subr.mxu1 %v7858_v6  ;;  %12267 = vst [vmem:[#allocation135_spill] sm:$0xff] %v7885_v62  ;;  %12268 = vst [vmem:[#allocation136_spill] sm:$0xff] %v7888_v2  ;;  %v7893_v6 = vld [vmem:[%s7438_s26 + $0x260] sm:$0xff]  ;;  %v7896_v7 = vld [vmem:[%s7438_s26 + $0x270] sm:$0xff] }
  0x71   : > { %1411 = vmatpush2.msra.mxu0 %v7861_v4  ;;  %1482 = vmatpush2.msra.mxu1 %v7866_v0  ;;  %12269 = vst [vmem:[#allocation137_spill] sm:$0xff] %v7893_v6  ;;  %12270 = vst [vmem:[#allocation138_spill] sm:$0xff] %v7896_v7  ;;  %v7901_v0 = vld [vmem:[%s7438_s26 + $0x248] sm:$0xff]  ;;  %v7904_v4 = vld [vmem:[%s7438_s26 + $0x258] sm:$0xff] }
  0x72   : > { %1412 = vmatprep.subr.mxu0 %v7869_v5  ;;  %1483 = vmatprep.subr.mxu1 %v7872_v8  ;;  %12271 = vst [vmem:[#allocation139_spill] sm:$0xff] %v7901_v0  ;;  %12272 = vst [vmem:[#allocation140_spill] sm:$0xff] %v7904_v4  ;;  %v7909_v8 = vld [vmem:[%s7438_s26 + $0x240] sm:$0xff]  ;;  %v7912_v5 = vld [vmem:[%s7438_s26 + $0x250] sm:$0xff] }
  0x73   : > { %1413 = vmatpush2.msra.mxu0 %v7877_v9  ;;  %1484 = vmatpush2.msra.mxu1 %v7880_v3  ;;  %12273 = vst [vmem:[#allocation141_spill] sm:$0xff] %v7909_v8  ;;  %12274 = vst [vmem:[#allocation142_spill] sm:$0xff] %v7912_v5  ;;  %v7917_v3 = vld [vmem:[%s7438_s26 + $0x228] sm:$0xff]  ;;  %v7920_v9 = vld [vmem:[%s7438_s26 + $0x238] sm:$0xff] }
  0x74   : > { %1414 = vmatprep.subr.mxu0 %v7885_v62  ;;  %1485 = vmatprep.subr.mxu1 %v7888_v2  ;;  %12275 = vst [vmem:[#allocation143_spill] sm:$0xff] %v7917_v3  ;;  %12276 = vst [vmem:[#allocation144_spill] sm:$0xff] %v7920_v9  ;;  %v7925_v62 = vld [vmem:[%s7438_s26 + $0x220] sm:$0xff]  ;;  %v7928_v2 = vld [vmem:[%s7438_s26 + $0x230] sm:$0xff] }
  0x75   : > { %1415 = vmatpush2.msra.mxu0 %v7893_v6  ;;  %1486 = vmatpush2.msra.mxu1 %v7896_v7  ;;  %12277 = vst [vmem:[#allocation145_spill] sm:$0xff] %v7925_v62  ;;  %12278 = vst [vmem:[#allocation146_spill] sm:$0xff] %v7928_v2  ;;  %v7933_v6 = vld [vmem:[%s7438_s26 + $0x208] sm:$0xff]  ;;  %v7936_v7 = vld [vmem:[%s7438_s26 + $0x218] sm:$0xff] }
  0x76   : > { %1416 = vmatprep.subr.mxu0 %v7901_v0  ;;  %1487 = vmatprep.subr.mxu1 %v7904_v4  ;;  %12279 = vst [vmem:[#allocation147_spill] sm:$0xff] %v7933_v6  ;;  %12280 = vst [vmem:[#allocation148_spill] sm:$0xff] %v7936_v7  ;;  %v7941_v0 = vld [vmem:[%s7438_s26 + $0x200] sm:$0xff]  ;;  %v7944_v4 = vld [vmem:[%s7438_s26 + $0x210] sm:$0xff] }
  0x77   : > { %1417 = vmatpush2.msra.mxu0 %v7909_v8  ;;  %1488 = vmatpush2.msra.mxu1 %v7912_v5  ;;  %12281 = vst [vmem:[#allocation149_spill] sm:$0xff] %v7941_v0  ;;  %12282 = vst [vmem:[#allocation150_spill] sm:$0xff] %v7944_v4 }
  0x78   : > { %1418 = vmatprep.subr.mxu0 %v7917_v3  ;;  %1489 = vmatprep.subr.mxu1 %v7920_v9  ;;  %v768_v9 = vlaneseq }
  0x79   : > { %1419 = vmatpush2.msra.mxu0 %v7925_v62  ;;  %1490 = vmatpush2.msra.mxu1 %v7928_v2 }
  0x7a   : > { %1420 = vmatprep.subr.mxu0 %v7933_v6  ;;  %1491 = vmatprep.subr.mxu1 %v7936_v7  ;;  %v769_v3 = vshrl.u32 %v768_v9, 7  ;;  %v766_v6 = vld [vmem:[%s703_s0] sm:$0xf]  ;;  %s6653_s0 = sshll.u32 %s13355_s22, 5 }
  0x7b   : > { %1421 = vmatpush2.msra.mxu0 %v7941_v0  ;;  %1492 = vmatpush2.msra.mxu1 %v7944_v4 }
  0x7c   : > { %1593 = vmatprep.subr.mxu0 %v7164_v10  ;;  %1664 = vmatprep.subr.mxu1 %v7167_v11  ;;  %v7960_v2 = vsub.s32 0, %v769_v3  ;;  %v7962_v7 = vsub.s32 2, %v769_v3  ;;  %v7964_v0 = vsub.s32 1, %v769_v3  ;;  %v7966_v4 = vsub.s32 3, %v769_v3 }
  0x7e   : > { %12283 = vst [vmem:[#allocation151_spill] sm:$0xff] %v7960_v2  ;;  %12284 = vst [vmem:[#allocation152_spill] sm:$0xff] %v7962_v7  ;;  %v771_v10 = vrot.slane %v766_v6, %v7960_v2  ;;  %v779_v11 = vrot.slane %v766_v6, %v7962_v7  ;;  %v775_v9 = vrot.slane %v766_v6, %v7964_v0 }
  0x7f   : > { %12285 = vst [vmem:[#allocation153_spill] sm:$0xff] %v7964_v0  ;;  %12286 = vst [vmem:[#allocation154_spill] sm:$0xff] %v7966_v4  ;;  %v783_v5 = vrot.slane %v766_v6, %v7966_v4 }
  0xd6   : > { %v874_v62 = vpop.f32.mrf.mxu0 }
  0xd7   : > { %v875_v8 = vadd.f32 %v874_v62, %v771_v10  ;;  %v951_v1 = vpop.f32.mrf.mxu1 }
  0xd8   : > { %v876_v63 = vpop.f32.mrf.mxu0  ;;  %v952_v61 = vadd.f32 %v951_v1, %v779_v11 }
  0xd9   : > { %962 = vst [vmem:[#allocation2 + $0x30] sm:$0xff] %v875_v8  ;;  %v877_v60 = vadd.f32 %v876_v63, %v775_v9  ;;  %v953_v59 = vpop.f32.mrf.mxu1 }
  0xda   : > { %964 = vst [vmem:[#allocation2 + $0x18] sm:$0xff] %v952_v61  ;;  %v954_v58 = vadd.f32 %v953_v59, %v783_v5 }
  0xdb   : > { %963 = vst [vmem:[#allocation2] sm:$0xff] %v877_v60 }
  0xdc   : > { %965 = vst [vmem:[#allocation2 + $0x10] sm:$0xff] %v954_v58 }
  0xe0   : > { %v970_v1 = vld [vmem:[#allocation2 + $0x30] sm:$0x3] }
  0xe2   : > { %v971_v4 = vld [vmem:[#allocation2] sm:$0x3] }
  0xf1   : > { %v880_v3 = vpop.f32.mrf.mxu0 }
  0xf2   : > { %v881_v2 = vadd.f32 %v880_v3, %v771_v10 }
  0xf3   : > { %v882_v57 = vpop.f32.mrf.mxu0 }
  0xf4   : > { %966 = vst [vmem:[#allocation2 + $0x8] sm:$0xff] %v881_v2  ;;  %v883_v7 = vadd.f32 %v882_v57, %v775_v9  ;;  %v973_v57 = vld [vmem:[#allocation2 + $0x10] sm:$0x3] }
  0xf5   : > { %v957_v0 = vpop.f32.mrf.mxu1 }
  0xf6   : > { %967 = vst [vmem:[#allocation2 + $0x20] sm:$0xff] %v883_v7  ;;  %v958_v56 = vadd.f32 %v957_v0, %v779_v11  ;;  %v972_v0 = vld [vmem:[#allocation2 + $0x18] sm:$0x3] }
  0xf7   : > { %v959_v6 = vpop.f32.mrf.mxu1 }
  0xf8   : > { %968 = vst [vmem:[#allocation2 + $0x28] sm:$0xff] %v958_v56  ;;  %v960_v62 = vadd.f32 %v959_v6, %v783_v5 }
  0xfa   : > { %969 = vst [vmem:[#allocation2 + $0x38] sm:$0xff] %v960_v62  ;;  %v1104_v8 = vpop.f32.mrf.mxu0  ;;  %v1175_v58 = vpop.f32.mrf.mxu1 }
  0xfb   : > { %v1180_v63 = vadd.f32 %v1104_v8, %v970_v1  ;;  %v1182_v56 = vadd.f32 %v1175_v58, %v972_v0  ;;  %v12334_v0 = vld [vmem:[#allocation51_spill] sm:$0xff] }
  0xfc   : > { %v1106_v61 = vpop.f32.mrf.mxu0  ;;  %v1177_v2 = vpop.f32.mrf.mxu1 }
  0xfd   : > { %v6593_v59 = vmul.f32 -1.442695, %v1180_v63  ;;  %v1181_v60 = vadd.f32 %v1106_v61, %v971_v4  ;;  %v1183_v9 = vadd.f32 %v1177_v2, %v973_v57  ;;  %v12331_v57 = vld [vmem:[#allocation48_spill] sm:$0xff] }
  0xff   : > { %6756 = vpow2.f32 %v6593_v59  ;;  %v6594_v10 = vmul.f32 -1.442695, %v1181_v60  ;;  %v6595_v7 = vmul.f32 -1.442695, %v1183_v9  ;;  %v12332_v9 = vld [vmem:[#allocation49_spill] sm:$0xff] }
 0x101   : > { %6758 = vpow2.f32 %v6594_v10 }
 0x102   : > { %6760 = vpow2.f32 %v6595_v7  ;;  %v12333_v7 = vld [vmem:[#allocation50_spill] sm:$0xff] }
 0x10c   : > { %v6757_v11 = vpop.eup %6756 }
 0x10d   : > { %v1187_v5 = vadd.f32 1.0, %v6757_v11  ;;  %v12335_v11 = vld [vmem:[#allocation52_spill] sm:$0xff] }
 0x10e   : > { %v6759_v3 = vpop.eup %6758 }
 0x10f   : > { %6762 = vrcp.f32 %v1187_v5  ;;  %v1193_v6 = vadd.f32 1.0, %v6759_v3  ;;  %v6761_v62 = vpop.eup %6760  ;;  %v12337_v5 = vld [vmem:[#allocation54_spill] sm:$0xff]  ;;  %v12338_v3 = vld [vmem:[#allocation55_spill] sm:$0xff] }
 0x110   : > { %6764 = vtanh.f32 %v1182_v56  ;;  %v1200_v63 = vadd.f32 1.0, %v6761_v62  ;;  %v12336_v56 = vld [vmem:[#allocation53_spill] sm:$0xff] }
 0x111   : > { %6766 = vrcp.f32 %v1193_v6  ;;  %v12339_v6 = vld [vmem:[#allocation56_spill] sm:$0xff]  ;;  %v12340_v62 = vld [vmem:[#allocation57_spill] sm:$0xff] }
 0x112   : > { %6768 = vrcp.f32 %v1200_v63  ;;  %v12344_v63 = vld [vmem:[#allocation61_spill] sm:$0xff] }
 0x11c   : > { %v6763_v4 = vpop.eup %6762 }
 0x11d   : > { %v6765_v1 = vpop.eup %6764 }
 0x11e   : > { %v6767_v8 = vpop.eup %6766  ;;  %v1204_v59 = vmul.f32 %v6765_v1, %v6763_v4  ;;  %v12341_v4 = vld [vmem:[#allocation58_spill] sm:$0xff]  ;;  %v12342_v1 = vld [vmem:[#allocation59_spill] sm:$0xff] }
 0x11f   : > { %v1203_v61 = vmul.f32 0.0, %v6767_v8  ;;  %v6769_v58 = vpop.eup %6768  ;;  %v12343_v8 = vld [vmem:[#allocation60_spill] sm:$0xff] }
 0x121   : > { %v7972_v60 = vadd.f32 %v1204_v59, %v1203_v61  ;;  %v12345_v61 = vld [vmem:[#allocation62_spill] sm:$0xff]  ;;  %v12346_v59 = vld [vmem:[#allocation63_spill] sm:$0xff] }
 0x123   : > { %6770 = vtanh.f32 %v7972_v60 }
 0x130   : > { %v6771_v10 = vpop.eup %6770 }
 0x131   : > { %v7975_v2 = vmul.f32 %v6771_v10, %v6769_v58  ;;  %v12347_v58 = vld [vmem:[#allocation64_spill] sm:$0xff]  ;;  %v12348_v10 = vld [vmem:[#allocation65_spill] sm:$0xff] }
 0x133   : > { %1423 = vmatmul.mubr.f32.vlgmr.msra.gmra.mxu0 %v7975_v2  ;;  %1494 = vmatmul.mubr.f32.vlgmr.msra.gmra.mxu1 %v7975_v2 }
 0x134   : > { %1594 = vmatpush1.msra.mxu0 %v7170_v12  ;;  %1665 = vmatpush1.msra.mxu1 %v7173_v13  ;;  %v12287_v12 = vld [vmem:[#allocation5_spill] sm:$0xff]  ;;  %v12288_v13 = vld [vmem:[#allocation6_spill] sm:$0xff] }
 0x135   : > { %1595 = vmatprep.subr.mxu0 %v7178_v14  ;;  %1666 = vmatprep.subr.mxu1 %v7181_v15  ;;  %v12289_v14 = vld [vmem:[#allocation7_spill] sm:$0xff]  ;;  %v12290_v15 = vld [vmem:[#allocation8_spill] sm:$0xff] }
 0x136   : > { %1596 = vmatpush1.msra.mxu0 %v7186_v16  ;;  %1667 = vmatpush1.msra.mxu1 %v7189_v17  ;;  %v12291_v16 = vld [vmem:[#allocation9_spill] sm:$0xff]  ;;  %v12292_v17 = vld [vmem:[#allocation10_spill] sm:$0xff] }
 0x137   : > { %1597 = vmatprep.subr.mxu0 %v7194_v18  ;;  %1668 = vmatprep.subr.mxu1 %v7197_v19  ;;  %v12293_v18 = vld [vmem:[#allocation11_spill] sm:$0xff]  ;;  %v12294_v19 = vld [vmem:[#allocation12_spill] sm:$0xff] }
 0x138   : > { %1598 = vmatpush1.msra.mxu0 %v7202_v20  ;;  %1669 = vmatpush1.msra.mxu1 %v7205_v21  ;;  %v12295_v20 = vld [vmem:[#allocation13_spill] sm:$0xff]  ;;  %v12296_v21 = vld [vmem:[#allocation14_spill] sm:$0xff] }
 0x139   : > { %1599 = vmatprep.subr.mxu0 %v7210_v22  ;;  %1670 = vmatprep.subr.mxu1 %v7213_v23  ;;  %v12297_v22 = vld [vmem:[#allocation15_spill] sm:$0xff]  ;;  %v12298_v23 = vld [vmem:[#allocation16_spill] sm:$0xff] }
 0x13a   : > { %1600 = vmatpush1.msra.mxu0 %v7218_v24  ;;  %1671 = vmatpush1.msra.mxu1 %v7221_v25  ;;  %v12299_v24 = vld [vmem:[#allocation17_spill] sm:$0xff]  ;;  %v12300_v25 = vld [vmem:[#allocation18_spill] sm:$0xff] }
 0x13b   : > { %1601 = vmatprep.subr.mxu0 %v7226_v26  ;;  %1672 = vmatprep.subr.mxu1 %v7229_v27  ;;  %v12301_v26 = vld [vmem:[#allocation19_spill] sm:$0xff]  ;;  %v12302_v27 = vld [vmem:[#allocation20_spill] sm:$0xff] }
 0x13c   : > { %1602 = vmatpush1.msra.mxu0 %v7234_v28  ;;  %1673 = vmatpush1.msra.mxu1 %v7237_v29  ;;  %v12303_v28 = vld [vmem:[#allocation21_spill] sm:$0xff]  ;;  %v12304_v29 = vmov 0.0  }
 0x13d   : > { %1603 = vmatprep.subr.mxu0 %v7242_v30  ;;  %1674 = vmatprep.subr.mxu1 %v7245_v31  ;;  %v12305_v30 = vld [vmem:[#allocation22_spill] sm:$0xff]  ;;  %v12306_v31 = vld [vmem:[#allocation23_spill] sm:$0xff] }
 0x13e   : > { %1604 = vmatpush1.msra.mxu0 %v7250_v32  ;;  %1675 = vmatpush1.msra.mxu1 %v7253_v33  ;;  %v12307_v32 = vld [vmem:[#allocation24_spill] sm:$0xff]  ;;  %v12308_v33 = vld [vmem:[#allocation25_spill] sm:$0xff] }
 0x13f   : > { %1605 = vmatprep.subr.mxu0 %v7258_v34  ;;  %1676 = vmatprep.subr.mxu1 %v7261_v35  ;;  %v12309_v34 = vld [vmem:[#allocation26_spill] sm:$0xff]  ;;  %v12310_v35 = vld [vmem:[#allocation27_spill] sm:$0xff] }
 0x140   : > { %1606 = vmatpush1.msra.mxu0 %v7266_v36  ;;  %1677 = vmatpush1.msra.mxu1 %v7269_v37  ;;  %v12311_v36 = vld [vmem:[#allocation28_spill] sm:$0xff]  ;;  %v12312_v37 = vld [vmem:[#allocation29_spill] sm:$0xff] }
 0x141   : > { %1607 = vmatprep.subr.mxu0 %v7274_v38  ;;  %1678 = vmatprep.subr.mxu1 %v7277_v39  ;;  %v12313_v38 = vld [vmem:[#allocation30_spill] sm:$0xff]  ;;  %v12314_v39 = vld [vmem:[#allocation31_spill] sm:$0xff] }
 0x142   : > { %1608 = vmatpush1.msra.mxu0 %v7282_v40  ;;  %1679 = vmatpush1.msra.mxu1 %v7285_v41  ;;  %v12315_v40 = vld [vmem:[#allocation32_spill] sm:$0xff]  ;;  %v12316_v41 = vld [vmem:[#allocation33_spill] sm:$0xff] }
 0x143   : > { %1609 = vmatprep.subr.mxu0 %v7290_v42  ;;  %1680 = vmatprep.subr.mxu1 %v7293_v43  ;;  %v12317_v42 = vld [vmem:[#allocation34_spill] sm:$0xff]  ;;  %v12318_v43 = vld [vmem:[#allocation35_spill] sm:$0xff] }
 0x144   : > { %1610 = vmatpush1.msra.mxu0 %v7298_v44  ;;  %1681 = vmatpush1.msra.mxu1 %v7301_v45  ;;  %v12319_v44 = vld [vmem:[#allocation36_spill] sm:$0xff]  ;;  %v12320_v45 = vld [vmem:[#allocation37_spill] sm:$0xff] }
 0x145   : > { %1611 = vmatprep.subr.mxu0 %v7306_v46  ;;  %1682 = vmatprep.subr.mxu1 %v7309_v47  ;;  %v12321_v46 = vld [vmem:[#allocation38_spill] sm:$0xff]  ;;  %v12322_v47 = vld [vmem:[#allocation39_spill] sm:$0xff] }
 0x146   : > { %1612 = vmatpush1.msra.mxu0 %v7314_v48  ;;  %1683 = vmatpush1.msra.mxu1 %v7317_v49  ;;  %v12323_v48 = vld [vmem:[#allocation40_spill] sm:$0xff]  ;;  %v12324_v49 = vld [vmem:[#allocation41_spill] sm:$0xff] }
 0x147   : > { %1613 = vmatprep.subr.mxu0 %v7322_v50  ;;  %1684 = vmatprep.subr.mxu1 %v7325_v51  ;;  %v12325_v50 = vld [vmem:[#allocation42_spill] sm:$0xff]  ;;  %v12326_v51 = vld [vmem:[#allocation43_spill] sm:$0xff] }
 0x148   : > { %1614 = vmatpush1.msra.mxu0 %v7330_v52  ;;  %1685 = vmatpush1.msra.mxu1 %v7333_v53  ;;  %v12327_v52 = vld [vmem:[#allocation44_spill] sm:$0xff]  ;;  %v12328_v53 = vld [vmem:[#allocation45_spill] sm:$0xff] }
 0x149   : > { %1615 = vmatprep.subr.mxu0 %v7338_v54  ;;  %1686 = vmatprep.subr.mxu1 %v7341_v55  ;;  %v12329_v54 = vld [vmem:[#allocation46_spill] sm:$0xff]  ;;  %v12330_v55 = vld [vmem:[#allocation47_spill] sm:$0xff] }
 0x14a   : > { %1616 = vmatpush1.msra.mxu0 %v12287_v12  ;;  %1687 = vmatpush1.msra.mxu1 %v12288_v13  ;;  %v12350_v12 = vld [vmem:[#allocation67_spill] sm:$0xff]  ;;  %v12351_v13 = vld [vmem:[#allocation68_spill] sm:$0xff] }
 0x14b   : > { %1617 = vmatprep.subr.mxu0 %v12289_v14  ;;  %1688 = vmatprep.subr.mxu1 %v12290_v15  ;;  %v12352_v14 = vld [vmem:[#allocation69_spill] sm:$0xff]  ;;  %v12353_v15 = vld [vmem:[#allocation70_spill] sm:$0xff] }
 0x14c   : > { %1618 = vmatpush1.msra.mxu0 %v12291_v16  ;;  %1689 = vmatpush1.msra.mxu1 %v12292_v17  ;;  %v12354_v16 = vld [vmem:[#allocation71_spill] sm:$0xff]  ;;  %v12355_v17 = vld [vmem:[#allocation72_spill] sm:$0xff] }
 0x14d   : > { %1619 = vmatprep.subr.mxu0 %v12293_v18  ;;  %1690 = vmatprep.subr.mxu1 %v12294_v19  ;;  %v12356_v18 = vld [vmem:[#allocation73_spill] sm:$0xff]  ;;  %v12357_v19 = vld [vmem:[#allocation74_spill] sm:$0xff] }
 0x14e   : > { %1620 = vmatpush1.msra.mxu0 %v12295_v20  ;;  %1691 = vmatpush1.msra.mxu1 %v12296_v21  ;;  %v12358_v20 = vld [vmem:[#allocation75_spill] sm:$0xff]  ;;  %v12359_v21 = vld [vmem:[#allocation76_spill] sm:$0xff] }
 0x14f   : > { %1621 = vmatprep.subr.mxu0 %v12297_v22  ;;  %1692 = vmatprep.subr.mxu1 %v12298_v23  ;;  %v12360_v22 = vld [vmem:[#allocation77_spill] sm:$0xff]  ;;  %v12361_v23 = vld [vmem:[#allocation78_spill] sm:$0xff] }
 0x150   : > { %1622 = vmatpush1.msra.mxu0 %v12299_v24  ;;  %1693 = vmatpush1.msra.mxu1 %v12300_v25  ;;  %v12362_v24 = vld [vmem:[#allocation79_spill] sm:$0xff]  ;;  %v12363_v25 = vld [vmem:[#allocation80_spill] sm:$0xff] }
 0x151   : > { %1623 = vmatprep.subr.mxu0 %v12301_v26  ;;  %1694 = vmatprep.subr.mxu1 %v12302_v27  ;;  %v12364_v26 = vld [vmem:[#allocation81_spill] sm:$0xff]  ;;  %v12365_v27 = vld [vmem:[#allocation82_spill] sm:$0xff] }
 0x152   : > { %1624 = vmatpush1.msra.mxu0 %v12303_v28  ;;  %1657 = vmatprep.mubr.f32.mxu0 %v12304_v29  ;;  %v12366_v28 = vld [vmem:[#allocation83_spill] sm:$0xff] }
 0x153   : > { %1695 = vmatpush1.msra.mxu1 %v12305_v30  ;;  %1728 = vmatprep.mubr.f32.mxu1 %v12304_v29  ;;  %v12367_v30 = vld [vmem:[#allocation84_spill] sm:$0xff] }
 0x154   : > { %1658 = vmatmul.mubr.f32.vlgmr.msra.gmra.mxu0 %v7975_v2  ;;  %1729 = vmatmul.mubr.f32.vlgmr.msra.gmra.mxu1 %v7975_v2  ;;  %v12349_v2 = vld [vmem:[#allocation66_spill] sm:$0xff] }
 0x155   : > { %1935 = vmatprep.subr.mxu0 %v12306_v31  ;;  %2006 = vmatprep.subr.mxu1 %v12307_v32  ;;  %v12368_v31 = vld [vmem:[#allocation85_spill] sm:$0xff]  ;;  %v12369_v32 = vld [vmem:[#allocation86_spill] sm:$0xff] }
 0x156   : > { %1936 = vmatpush1.msra.mxu0 %v12308_v33  ;;  %2007 = vmatpush1.msra.mxu1 %v12309_v34  ;;  %v12370_v33 = vld [vmem:[#allocation87_spill] sm:$0xff]  ;;  %v12371_v34 = vld [vmem:[#allocation88_spill] sm:$0xff] }
 0x157   : > { %1937 = vmatprep.subr.mxu0 %v12310_v35  ;;  %2008 = vmatprep.subr.mxu1 %v12311_v36  ;;  %v12372_v35 = vld [vmem:[#allocation89_spill] sm:$0xff]  ;;  %v12373_v36 = vld [vmem:[#allocation90_spill] sm:$0xff] }
 0x158   : > { %1938 = vmatpush1.msra.mxu0 %v12312_v37  ;;  %2009 = vmatpush1.msra.mxu1 %v12313_v38  ;;  %v12374_v37 = vld [vmem:[#allocation91_spill] sm:$0xff]  ;;  %v12375_v38 = vld [vmem:[#allocation92_spill] sm:$0xff] }
 0x159   : > { %1939 = vmatprep.subr.mxu0 %v12314_v39  ;;  %2010 = vmatprep.subr.mxu1 %v12315_v40  ;;  %v12376_v39 = vld [vmem:[#allocation93_spill] sm:$0xff]  ;;  %v12377_v40 = vld [vmem:[#allocation94_spill] sm:$0xff] }
 0x15a   : > { %1940 = vmatpush1.msra.mxu0 %v12316_v41  ;;  %2011 = vmatpush1.msra.mxu1 %v12317_v42  ;;  %v12378_v41 = vld [vmem:[#allocation95_spill] sm:$0xff]  ;;  %v12379_v42 = vld [vmem:[#allocation96_spill] sm:$0xff] }
 0x15b   : > { %1941 = vmatprep.subr.mxu0 %v12318_v43  ;;  %2012 = vmatprep.subr.mxu1 %v12319_v44  ;;  %v12380_v43 = vld [vmem:[#allocation97_spill] sm:$0xff]  ;;  %v12381_v44 = vld [vmem:[#allocation98_spill] sm:$0xff] }
 0x15c   : > { %1942 = vmatpush1.msra.mxu0 %v12320_v45  ;;  %2013 = vmatpush1.msra.mxu1 %v12321_v46  ;;  %v12382_v45 = vld [vmem:[#allocation99_spill] sm:$0xff]  ;;  %v12383_v46 = vld [vmem:[#allocation100_spill] sm:$0xff] }
 0x15d   : > { %1943 = vmatprep.subr.mxu0 %v12322_v47  ;;  %2014 = vmatprep.subr.mxu1 %v12323_v48  ;;  %v12384_v47 = vld [vmem:[#allocation101_spill] sm:$0xff]  ;;  %v12385_v48 = vld [vmem:[#allocation102_spill] sm:$0xff] }
 0x15e   : > { %1944 = vmatpush1.msra.mxu0 %v12324_v49  ;;  %2015 = vmatpush1.msra.mxu1 %v12325_v50  ;;  %v12386_v49 = vld [vmem:[#allocation103_spill] sm:$0xff]  ;;  %v12387_v50 = vld [vmem:[#allocation104_spill] sm:$0xff] }
 0x15f   : > { %1945 = vmatprep.subr.mxu0 %v12326_v51  ;;  %2016 = vmatprep.subr.mxu1 %v12327_v52  ;;  %v12388_v51 = vld [vmem:[#allocation105_spill] sm:$0xff]  ;;  %v12389_v52 = vld [vmem:[#allocation106_spill] sm:$0xff] }
 0x160   : > { %1946 = vmatpush1.msra.mxu0 %v12328_v53  ;;  %2017 = vmatpush1.msra.mxu1 %v12329_v54  ;;  %v12390_v53 = vld [vmem:[#allocation107_spill] sm:$0xff]  ;;  %v12391_v54 = vld [vmem:[#allocation108_spill] sm:$0xff] }
 0x161   : > { %1947 = vmatprep.subr.mxu0 %v12330_v55  ;;  %2018 = vmatprep.subr.mxu1 %v12331_v57  ;;  %v12392_v55 = vld [vmem:[#allocation109_spill] sm:$0xff]  ;;  %v12393_v57 = vld [vmem:[#allocation110_spill] sm:$0xff] }
 0x162   : > { %1948 = vmatpush1.msra.mxu0 %v12332_v9  ;;  %2019 = vmatpush1.msra.mxu1 %v12333_v7  ;;  %v12394_v9 = vld [vmem:[#allocation111_spill] sm:$0xff]  ;;  %v12395_v7 = vld [vmem:[#allocation112_spill] sm:$0xff] }
 0x163   : > { %1949 = vmatprep.subr.mxu0 %v12334_v0  ;;  %2020 = vmatprep.subr.mxu1 %v12335_v11  ;;  %v12396_v0 = vld [vmem:[#allocation113_spill] sm:$0xff]  ;;  %v12397_v11 = vld [vmem:[#allocation114_spill] sm:$0xff] }
 0x164   : > { %1950 = vmatpush1.msra.mxu0 %v12336_v56  ;;  %2021 = vmatpush1.msra.mxu1 %v12337_v5  ;;  %v12398_v56 = vld [vmem:[#allocation115_spill] sm:$0xff]  ;;  %v12399_v5 = vld [vmem:[#allocation116_spill] sm:$0xff] }
 0x165   : > { %1951 = vmatprep.subr.mxu0 %v12338_v3  ;;  %2022 = vmatprep.subr.mxu1 %v12339_v6  ;;  %v12400_v3 = vld [vmem:[#allocation117_spill] sm:$0xff]  ;;  %v12401_v6 = vld [vmem:[#allocation118_spill] sm:$0xff] }
 0x166   : > { %1952 = vmatpush1.msra.mxu0 %v12340_v62  ;;  %2023 = vmatpush1.msra.mxu1 %v12341_v4  ;;  %v12402_v62 = vld [vmem:[#allocation119_spill] sm:$0xff]  ;;  %v12403_v4 = vld [vmem:[#allocation120_spill] sm:$0xff] }
 0x167   : > { %1953 = vmatprep.subr.mxu0 %v12342_v1  ;;  %2024 = vmatprep.subr.mxu1 %v12343_v8  ;;  %v12404_v1 = vld [vmem:[#allocation121_spill] sm:$0xff]  ;;  %v12405_v8 = vld [vmem:[#allocation122_spill] sm:$0xff] }
 0x168   : > { %1954 = vmatpush1.msra.mxu0 %v12344_v63  ;;  %2025 = vmatpush1.msra.mxu1 %v12345_v61  ;;  %v12406_v63 = vld [vmem:[#allocation123_spill] sm:$0xff]  ;;  %v12407_v61 = vld [vmem:[#allocation124_spill] sm:$0xff] }
 0x169   : > { %1955 = vmatprep.subr.mxu0 %v12346_v59  ;;  %2026 = vmatprep.subr.mxu1 %v12347_v58  ;;  %v12408_v59 = vld [vmem:[#allocation125_spill] sm:$0xff]  ;;  %v12409_v58 = vld [vmem:[#allocation126_spill] sm:$0xff] }
 0x16a   : > { %1956 = vmatpush1.msra.mxu0 %v12348_v10  ;;  %2027 = vmatpush1.msra.mxu1 %v12349_v2  ;;  %v12410_v10 = vld [vmem:[#allocation127_spill] sm:$0xff]  ;;  %v12411_v2 = vld [vmem:[#allocation128_spill] sm:$0xff] }
 0x16b   : > { %1957 = vmatprep.subr.mxu0 %v12350_v12  ;;  %2028 = vmatprep.subr.mxu1 %v12351_v13  ;;  %v12412_v12 = vld [vmem:[#allocation129_spill] sm:$0xff]  ;;  %v12413_v13 = vld [vmem:[#allocation130_spill] sm:$0xff] }
 0x16c   : > { %1958 = vmatpush1.msra.mxu0 %v12352_v14  ;;  %2029 = vmatpush1.msra.mxu1 %v12353_v15  ;;  %v12414_v14 = vld [vmem:[#allocation131_spill] sm:$0xff]  ;;  %v12415_v15 = vld [vmem:[#allocation132_spill] sm:$0xff] }
 0x16d   : > { %1959 = vmatprep.subr.mxu0 %v12354_v16  ;;  %2030 = vmatprep.subr.mxu1 %v12355_v17  ;;  %v12416_v16 = vld [vmem:[#allocation133_spill] sm:$0xff]  ;;  %v12417_v17 = vld [vmem:[#allocation134_spill] sm:$0xff] }
 0x16e   : > { %1960 = vmatpush1.msra.mxu0 %v12356_v18  ;;  %2031 = vmatpush1.msra.mxu1 %v12357_v19  ;;  %v12418_v18 = vld [vmem:[#allocation135_spill] sm:$0xff]  ;;  %v12419_v19 = vld [vmem:[#allocation136_spill] sm:$0xff] }
 0x16f   : > { %1961 = vmatprep.subr.mxu0 %v12358_v20  ;;  %2032 = vmatprep.subr.mxu1 %v12359_v21  ;;  %v12420_v20 = vld [vmem:[#allocation137_spill] sm:$0xff]  ;;  %v12421_v21 = vld [vmem:[#allocation138_spill] sm:$0xff] }
 0x170   : > { %1962 = vmatpush1.msra.mxu0 %v12360_v22  ;;  %2033 = vmatpush1.msra.mxu1 %v12361_v23  ;;  %v12422_v22 = vld [vmem:[#allocation139_spill] sm:$0xff]  ;;  %v12423_v23 = vld [vmem:[#allocation140_spill] sm:$0xff] }
 0x171   : > { %1963 = vmatprep.subr.mxu0 %v12362_v24  ;;  %2034 = vmatprep.subr.mxu1 %v12363_v25  ;;  %v12424_v24 = vld [vmem:[#allocation141_spill] sm:$0xff]  ;;  %v12425_v25 = vld [vmem:[#allocation142_spill] sm:$0xff] }
 0x172   : > { %1964 = vmatpush1.msra.mxu0 %v12364_v26  ;;  %2035 = vmatpush1.msra.mxu1 %v12365_v27  ;;  %v12426_v26 = vld [vmem:[#allocation143_spill] sm:$0xff]  ;;  %v12427_v27 = vld [vmem:[#allocation144_spill] sm:$0xff] }
 0x173   : > { %1965 = vmatprep.subr.mxu0 %v12366_v28  ;;  %2036 = vmatprep.subr.mxu1 %v12367_v30  ;;  %v12428_v28 = vld [vmem:[#allocation145_spill] sm:$0xff]  ;;  %v12429_v30 = vld [vmem:[#allocation146_spill] sm:$0xff] }
 0x174   : > { %1966 = vmatpush1.msra.mxu0 %v12368_v31  ;;  %2037 = vmatpush1.msra.mxu1 %v12369_v32  ;;  %v12430_v31 = vld [vmem:[#allocation147_spill] sm:$0xff]  ;;  %v12431_v32 = vld [vmem:[#allocation148_spill] sm:$0xff] }
 0x175   : > { %1967 = vmatprep.subr.mxu0 %v12370_v33  ;;  %2038 = vmatprep.subr.mxu1 %v12371_v34  ;;  %v12432_v33 = vld [vmem:[#allocation149_spill] sm:$0xff]  ;;  %v12433_v34 = vld [vmem:[#allocation150_spill] sm:$0xff] }
 0x176   : > { %1968 = vmatpush2.msra.mxu0 %v12372_v35  ;;  %2039 = vmatpush2.msra.mxu1 %v12373_v36  ;;  %v8174_v35 = vld [vmem:[%s7154_s30 + $0x1e8] sm:$0xff]  ;;  %v8177_v36 = vld [vmem:[%s7154_s30 + $0x1f8] sm:$0xff] }
 0x177   : > { %1969 = vmatprep.subr.mxu0 %v12374_v37  ;;  %2040 = vmatprep.subr.mxu1 %v12375_v38  ;;  %v1336_v37 = vld [vmem:[%s8186_s20] sm:$0xf] }
 0x178   : > { %1970 = vmatpush2.msra.mxu0 %v12376_v39  ;;  %2041 = vmatpush2.msra.mxu1 %v12377_v40  ;;  %v12434_v38 = vld [vmem:[#allocation151_spill] sm:$0xff]  ;;  %v12435_v40 = vld [vmem:[#allocation153_spill] sm:$0xff] }
 0x179   : > { %1971 = vmatprep.subr.mxu0 %v12378_v41  ;;  %2042 = vmatprep.subr.mxu1 %v12379_v42  ;;  %v1341_v39 = vrot.slane %v1336_v37, %v12434_v38  ;;  %v1345_v41 = vrot.slane %v1336_v37, %v12435_v40 }
 0x17a   : > { %1972 = vmatpush2.msra.mxu0 %v12380_v43  ;;  %2043 = vmatpush2.msra.mxu1 %v12381_v44 }
 0x17b   : > { %1973 = vmatprep.subr.mxu0 %v12382_v45  ;;  %2044 = vmatprep.subr.mxu1 %v12383_v46 }
 0x17c   : > { %1974 = vmatpush2.msra.mxu0 %v12384_v47  ;;  %2045 = vmatpush2.msra.mxu1 %v12385_v48 }
 0x17d   : > { %1975 = vmatprep.subr.mxu0 %v12386_v49  ;;  %2046 = vmatprep.subr.mxu1 %v12387_v50  ;;  %v12436_v49 = vld [vmem:[#allocation154_spill] sm:$0xff] }
 0x17e   : > { %1976 = vmatpush2.msra.mxu0 %v12388_v51  ;;  %2047 = vmatpush2.msra.mxu1 %v12389_v52  ;;  %v1353_v50 = vrot.slane %v1336_v37, %v12436_v49 }
 0x17f   : > { %1977 = vmatprep.subr.mxu0 %v12390_v53  ;;  %2048 = vmatprep.subr.mxu1 %v12391_v54  ;;  %v12437_v53 = vld [vmem:[#allocation152_spill] sm:$0xff] }
 0x180   : > { %1978 = vmatpush2.msra.mxu0 %v12392_v55  ;;  %2049 = vmatpush2.msra.mxu1 %v12393_v57  ;;  %v1349_v54 = vrot.slane %v1336_v37, %v12437_v53 }
 0x181   : > { %1979 = vmatprep.subr.mxu0 %v12394_v9  ;;  %2050 = vmatprep.subr.mxu1 %v12395_v7 }
 0x182   : > { %1980 = vmatpush2.msra.mxu0 %v12396_v0  ;;  %2051 = vmatpush2.msra.mxu1 %v12397_v11 }
 0x183   : > { %1981 = vmatprep.subr.mxu0 %v12398_v56  ;;  %2052 = vmatprep.subr.mxu1 %v12399_v5 }
 0x184   : > { %1982 = vmatpush2.msra.mxu0 %v12400_v3  ;;  %2053 = vmatpush2.msra.mxu1 %v12401_v6 }
 0x185   : > { %1983 = vmatprep.subr.mxu0 %v12402_v62  ;;  %2054 = vmatprep.subr.mxu1 %v12403_v4 }
 0x186   : > { %1984 = vmatpush2.msra.mxu0 %v12404_v1  ;;  %2055 = vmatpush2.msra.mxu1 %v12405_v8  ;;  %v1525_v1 = vld [vmem:[#allocation2 + $0x30] sm:$0xc] }
 0x187   : > { %1985 = vmatprep.subr.mxu0 %v12406_v63  ;;  %2056 = vmatprep.subr.mxu1 %v12407_v61 }
 0x188   : > { %1986 = vmatpush2.msra.mxu0 %v12408_v59  ;;  %2057 = vmatpush2.msra.mxu1 %v12409_v58 }
 0x189   : > { %1987 = vmatprep.subr.mxu0 %v12410_v10  ;;  %2058 = vmatprep.subr.mxu1 %v12411_v2 }
 0x18a   : > { %1988 = vmatpush2.msra.mxu0 %v12412_v12  ;;  %2059 = vmatpush2.msra.mxu1 %v12413_v13  ;;  %v1526_v12 = vld [vmem:[#allocation2] sm:$0xc] }
 0x18b   : > { %1989 = vmatprep.subr.mxu0 %v12414_v14  ;;  %2060 = vmatprep.subr.mxu1 %v12415_v15 }
 0x18c   : > { %1990 = vmatpush2.msra.mxu0 %v12416_v16  ;;  %2061 = vmatpush2.msra.mxu1 %v12417_v17 }
 0x18d   : > { %1991 = vmatprep.subr.mxu0 %v12418_v18  ;;  %2062 = vmatprep.subr.mxu1 %v12419_v19  ;;  %v1528_v19 = vld [vmem:[#allocation2 + $0x10] sm:$0xc] }
 0x18e   : > { %1992 = vmatpush2.msra.mxu0 %v12420_v20  ;;  %2063 = vmatpush2.msra.mxu1 %v12421_v21 }
 0x18f   : > { %1993 = vmatprep.subr.mxu0 %v12422_v22  ;;  %2064 = vmatprep.subr.mxu1 %v12423_v23 }
 0x190   : > { %1994 = vmatpush2.msra.mxu0 %v12424_v24  ;;  %2065 = vmatpush2.msra.mxu1 %v12425_v25  ;;  %v1527_v24 = vld [vmem:[#allocation2 + $0x18] sm:$0xc] }
 0x191   : > { %1995 = vmatprep.subr.mxu0 %v12426_v26  ;;  %2066 = vmatprep.subr.mxu1 %v12427_v27 }
 0x192   : > { %1996 = vmatpush2.msra.mxu0 %v12428_v28  ;;  %2067 = vmatpush2.msra.mxu1 %v12429_v30 }
 0x193   : > { %1997 = vmatprep.subr.mxu0 %v12430_v31  ;;  %2068 = vmatprep.subr.mxu1 %v12431_v32 }
 0x194   : > { %1998 = vmatpush2.msra.mxu0 %v12432_v33  ;;  %2069 = vmatpush2.msra.mxu1 %v12433_v34 }
 0x195   : > { %2170 = vmatprep.subr.mxu0 %v8174_v35  ;;  %2241 = vmatprep.subr.mxu1 %v8177_v36 }
 0x1f3   : > { %v1424_v42 = vpop.f32.mrf.mxu0  ;;  %v1495_v47 = vpop.f32.mrf.mxu1 }
 0x1f4   : > { %v1425_v43 = vadd.f32 %v1424_v42, %v1341_v39  ;;  %v1496_v9 = vadd.f32 %v1495_v47, %v1349_v54  ;;  %v1771_v42 = vrot.slane %v7972_v60, 6  ;;  %v8207_v60 = vld [vmem:[%s7154_s30 + $0x1e0] sm:$0xff]  ;;  %v8210_v54 = vld [vmem:[%s7154_s30 + $0x1f0] sm:$0xff] }
 0x1f5   : > { %v1426_v44 = vpop.f32.mrf.mxu0  ;;  %v1497_v51 = vpop.f32.mrf.mxu1 }
 0x1f6   : > { %v6596_v45 = vmul.f32 -1.442695, %v1425_v43  ;;  %v1427_v46 = vadd.f32 %v1426_v44, %v1345_v41  ;;  %v1498_v52 = vadd.f32 %v1497_v51, %v1353_v50 }
 0x1f8   : > { %6772 = vpow2.f32 %v6596_v45  ;;  %v6597_v48 = vmul.f32 -1.442695, %v1427_v46  ;;  %v6598_v55 = vmul.f32 -1.442695, %v1498_v52 }
 0x1fa   : > { %6774 = vpow2.f32 %v6597_v48 }
 0x1fb   : > { %6776 = vpow2.f32 %v6598_v55  ;;  %v8213_v55 = vld [vmem:[%s7154_s30 + $0x1c8] sm:$0xff] }
 0x205   : > { %v6773_v57 = vpop.eup %6772 }
 0x206   : > { %v1503_v7 = vadd.f32 1.0, %v6773_v57  ;;  %v8216_v57 = vld [vmem:[%s7154_s30 + $0x1d8] sm:$0xff] }
 0x207   : > { %v6775_v0 = vpop.eup %6774 }
 0x208   : > { %6778 = vrcp.f32 %v1503_v7  ;;  %v1509_v11 = vadd.f32 1.0, %v6775_v0  ;;  %v6777_v56 = vpop.eup %6776  ;;  %v8224_v7 = vld [vmem:[%s7154_s30 + $0x1d0] sm:$0xff]  ;;  %v8229_v0 = vld [vmem:[%s7154_s30 + $0x1a8] sm:$0xff] }
 0x209   : > { %6780 = vtanh.f32 %v1496_v9  ;;  %v1516_v4 = vadd.f32 1.0, %v6777_v56  ;;  %v8221_v9 = vld [vmem:[%s7154_s30 + $0x1c0] sm:$0xff] }
 0x20a   : > { %6782 = vrcp.f32 %v1509_v11  ;;  %v8232_v11 = vld [vmem:[%s7154_s30 + $0x1b8] sm:$0xff]  ;;  %v8237_v56 = vld [vmem:[%s7154_s30 + $0x1a0] sm:$0xff] }
 0x20b   : > { %6784 = vrcp.f32 %v1516_v4  ;;  %v8256_v4 = vld [vmem:[%s7154_s30 + $0x190] sm:$0xff] }
 0x214   : > { %v1659_v5 = vpop.f32.mrf.mxu0  ;;  %v1730_v59 = vpop.f32.mrf.mxu1 }
 0x215   : > { %v6779_v3 = vpop.eup %6778  ;;  %v1739_v6 = vrot.slane %v1659_v5, 6  ;;  %v1741_v21 = vrot.slane %v1730_v59, 6  ;;  %v8240_v5 = vld [vmem:[%s7154_s30 + $0x1b0] sm:$0xff]  ;;  %v8277_v59 = vld [vmem:[%s7154_s30 + $0x148] sm:$0xff] }
 0x216   : > { %v6781_v62 = vpop.eup %6780  ;;  %v1661_v8 = vpop.f32.mrf.mxu0 }
 0x217   : > { %v6783_v63 = vpop.eup %6782  ;;  %v1747_v61 = vadd.f32 %v1739_v6, %v1525_v1  ;;  %v1740_v58 = vrot.slane %v1661_v8, 6  ;;  %v1520_v2 = vmul.f32 %v6781_v62, %v6779_v3  ;;  %v1732_v17 = vpop.f32.mrf.mxu1  ;;  %v1749_v26 = vadd.f32 %v1741_v21, %v1527_v24  ;;  %v8245_v3 = vld [vmem:[%s7154_s30 + $0x188] sm:$0xff]  ;;  %v8248_v6 = vld [vmem:[%s7154_s30 + $0x198] sm:$0xff]  ;;  %v8253_v62 = vld [vmem:[%s7154_s30 + $0x180] sm:$0xff] }
 0x218   : > { %v1519_v10 = vmul.f32 0.0, %v6783_v63  ;;  %v1742_v18 = vrot.slane %v1732_v17, 6  ;;  %v6785_v23 = vpop.eup %6784  ;;  %v8261_v1 = vld [vmem:[%s7154_s30 + $0x168] sm:$0xff]  ;;  %v8264_v8 = vld [vmem:[%s7154_s30 + $0x178] sm:$0xff]  ;;  %v8269_v63 = vld [vmem:[%s7154_s30 + $0x160] sm:$0xff] }
 0x219   : > { %v6599_v13 = vmul.f32 -1.442695, %v1747_v61  ;;  %v1748_v14 = vadd.f32 %v1740_v58, %v1526_v12  ;;  %v8272_v61 = vld [vmem:[%s7154_s30 + $0x170] sm:$0xff]  ;;  %v8280_v58 = vld [vmem:[%s7154_s30 + $0x158] sm:$0xff]  ;;  %v8293_v12 = vld [vmem:[%s7154_s30 + $0x128] sm:$0xff] }
 0x21a   : > { %v8193_v15 = vadd.f32 %v1520_v2, %v1519_v10  ;;  %v1750_v20 = vadd.f32 %v1742_v18, %v1528_v19  ;;  %v8285_v10 = vld [vmem:[%s7154_s30 + $0x140] sm:$0xff]  ;;  %v8288_v2 = vld [vmem:[%s7154_s30 + $0x150] sm:$0xff]  ;;  %v8309_v17 = vld [vmem:[%s7154_s30 + $0x108] sm:$0xff] }
 0x21b   : > { %6786 = vpow2.f32 %v6599_v13  ;;  %v6600_v16 = vmul.f32 -1.442695, %v1748_v14  ;;  %v8296_v13 = vld [vmem:[%s7154_s30 + $0x138] sm:$0xff]  ;;  %v8301_v14 = vld [vmem:[%s7154_s30 + $0x120] sm:$0xff]  ;;  %v8325_v21 = vld [vmem:[%s7154_s30 + $0xe8] sm:$0xff] }
 0x21c   : > { %6788 = vtanh.f32 %v8193_v15  ;;  %v6601_v22 = vmul.f32 -1.442695, %v1750_v20  ;;  %v8312_v18 = vld [vmem:[%s7154_s30 + $0x118] sm:$0xff]  ;;  %v8317_v19 = vld [vmem:[%s7154_s30 + $0x100] sm:$0xff]  ;;  %v8320_v20 = vld [vmem:[%s7154_s30 + $0x110] sm:$0xff] }
 0x21d   : > { %6790 = vpow2.f32 %v6600_v16  ;;  %v8304_v16 = vld [vmem:[%s7154_s30 + $0x130] sm:$0xff] }
 0x21e   : > { %6792 = vpow2.f32 %v6601_v22  ;;  %v8328_v22 = vld [vmem:[%s7154_s30 + $0xf8] sm:$0xff]  ;;  %v8336_v24 = vld [vmem:[%s7154_s30 + $0xf0] sm:$0xff] }
 0x228   : > { %v6787_v25 = vpop.eup %6786 }
 0x229   : > { %v6789_v27 = vpop.eup %6788  ;;  %v1754_v28 = vadd.f32 1.0, %v6787_v25  ;;  %v8341_v25 = vld [vmem:[%s7154_s30 + $0xc8] sm:$0xff] }
 0x22a   : > { %v6791_v30 = vpop.eup %6790  ;;  %v8196_v31 = vmul.f32 %v6789_v27, %v6785_v23  ;;  %v8333_v23 = vld [vmem:[%s7154_s30 + $0xe0] sm:$0xff] }
 0x22b   : > { %6794 = vrcp.f32 %v1754_v28  ;;  %v1760_v32 = vadd.f32 1.0, %v6791_v30  ;;  %v6793_v37 = vpop.eup %6792  ;;  %v8349_v27 = vld [vmem:[%s7154_s30 + $0xc0] sm:$0xff]  ;;  %v8352_v28 = vld [vmem:[%s7154_s30 + $0xd0] sm:$0xff]  ;;  %v8357_v30 = vld [vmem:[%s7154_s30 + $0xa8] sm:$0xff] }
 0x22c   : > { %12438 = vst [vmem:[#allocation5_spill] sm:$0xff] %v8196_v31  ;;  %6796 = vtanh.f32 %v1749_v26  ;;  %1524 = vst [vmem:[#allocation3] sm:$0x3] %v8196_v31  ;;  %v1779_v33 = vrot.slane %v8196_v31, 6  ;;  %v1767_v44 = vadd.f32 1.0, %v6793_v37  ;;  %v8344_v26 = vld [vmem:[%s7154_s30 + $0xd8] sm:$0xff] }
 0x22d   : > { %6798 = vrcp.f32 %v1760_v32  ;;  %v8360_v32 = vld [vmem:[%s7154_s30 + $0xb8] sm:$0xff]  ;;  %v8373_v37 = vld [vmem:[%s7154_s30 + $0x88] sm:$0xff]  ;;  %v8416_v31 = vld [vmem:[%s7154_s30 + $0x50] sm:$0xff] }
 0x22e   : > { %v1932_v34 = vrot.slane %v1779_v33, 2  ;;  %6800 = vrcp.f32 %v1767_v44  ;;  %v8365_v33 = vld [vmem:[%s7154_s30 + $0xa0] sm:$0xff]  ;;  %12440 = vst [vmem:[#allocation7_spill] sm:$0xff] %v8373_v37  ;;  %v8392_v44 = vld [vmem:[%s7154_s30 + $0x78] sm:$0xff]  ;;  %12451 = vst [vmem:[#allocation18_spill] sm:$0xff] %v8416_v31 }
 0x22f   : > { %12445 = vst [vmem:[#allocation12_spill] sm:$0xff] %v8392_v44 }
 0x230   : > { %1999 = vmatprep.mubr.f32.mxu0 %v1932_v34  ;;  %2070 = vmatprep.mubr.f32.mxu1 %v1932_v34  ;;  %v8368_v34 = vld [vmem:[%s7154_s30 + $0xb0] sm:$0xff] }
 0x231   : > { %12439 = vst [vmem:[#allocation6_spill] sm:$0xff] %v8368_v34 }
 0x238   : > { %v6795_v39 = vpop.eup %6794 }
 0x239   : > { %v6797_v41 = vpop.eup %6796 }
 0x23a   : > { %v6799_v43 = vpop.eup %6798  ;;  %v1774_v45 = vmul.f32 %v6797_v41, %v6795_v39  ;;  %v8376_v39 = vld [vmem:[%s7154_s30 + $0x98] sm:$0xff]  ;;  %v8381_v41 = vld [vmem:[%s7154_s30 + $0x80] sm:$0xff] }
 0x23b   : > { %v1773_v46 = vmul.f32 %v6799_v43, %v1771_v42  ;;  %v6801_v48 = vpop.eup %6800  ;;  %12441 = vst [vmem:[#allocation8_spill] sm:$0xff] %v8376_v39  ;;  %12442 = vst [vmem:[#allocation9_spill] sm:$0xff] %v8381_v41  ;;  %v8384_v42 = vld [vmem:[%s7154_s30 + $0x90] sm:$0xff]  ;;  %v8389_v43 = vld [vmem:[%s7154_s30 + $0x68] sm:$0xff] }
 0x23c   : > { %12443 = vst [vmem:[#allocation10_spill] sm:$0xff] %v8384_v42  ;;  %12444 = vst [vmem:[#allocation11_spill] sm:$0xff] %v8389_v43 }
 0x23d   : > { %v8201_v47 = vadd.f32 %v1774_v45, %v1773_v46  ;;  %v8397_v45 = vld [vmem:[%s7154_s30 + $0x60] sm:$0xff]  ;;  %v8400_v46 = vld [vmem:[%s7154_s30 + $0x70] sm:$0xff] }
 0x23e   : > { %12446 = vst [vmem:[#allocation13_spill] sm:$0xff] %v8397_v45  ;;  %12447 = vst [vmem:[#allocation14_spill] sm:$0xff] %v8400_v46 }
 0x23f   : > { %6802 = vtanh.f32 %v8201_v47 }
 0x24c   : > { %v6803_v50 = vpop.eup %6802 }
 0x24d   : > { %v1777_v51 = vmul.f32 %v6803_v50, %v6801_v48  ;;  %v8405_v48 = vld [vmem:[%s7154_s30 + $0x48] sm:$0xff]  ;;  %v8408_v50 = vld [vmem:[%s7154_s30 + $0x58] sm:$0xff] }
 0x24e   : > { %12448 = vst [vmem:[#allocation15_spill] sm:$0xff] %v8405_v48  ;;  %12449 = vst [vmem:[#allocation16_spill] sm:$0xff] %v8408_v50 }
 0x24f   : > { %v8204_v52 = vrot.slane %v1777_v51, 2  ;;  %v8413_v51 = vld [vmem:[%s7154_s30 + $0x40] sm:$0xff] }
 0x250   : > { %12450 = vst [vmem:[#allocation17_spill] sm:$0xff] %v8413_v51 }
 0x251   : > { %2000 = vmatmul.mubr.f32.vlgmr.msra.gmra.mxu0 %v8204_v52  ;;  %2071 = vmatmul.mubr.f32.vlgmr.msra.gmra.mxu1 %v8204_v52 }
 0x252   : > { %2171 = vmatpush1.msra.mxu0 %v8207_v60  ;;  %2242 = vmatpush1.msra.mxu1 %v8210_v54 }
 0x253   : > { %2172 = vmatprep.subr.mxu0 %v8213_v55  ;;  %2243 = vmatprep.subr.mxu1 %v8216_v57 }
 0x254   : > { %2173 = vmatpush1.msra.mxu0 %v8221_v9  ;;  %2244 = vmatpush1.msra.mxu1 %v8224_v7 }
 0x255   : > { %2174 = vmatprep.subr.mxu0 %v8229_v0  ;;  %2245 = vmatprep.subr.mxu1 %v8232_v11 }
 0x256   : > { %2175 = vmatpush1.msra.mxu0 %v8237_v56  ;;  %2246 = vmatpush1.msra.mxu1 %v8240_v5 }
 0x257   : > { %2176 = vmatprep.subr.mxu0 %v8245_v3  ;;  %2247 = vmatprep.subr.mxu1 %v8248_v6 }
 0x258   : > { %2177 = vmatpush1.msra.mxu0 %v8253_v62  ;;  %2248 = vmatpush1.msra.mxu1 %v8256_v4 }
 0x259   : > { %2178 = vmatprep.subr.mxu0 %v8261_v1  ;;  %2249 = vmatprep.subr.mxu1 %v8264_v8 }
 0x25a   : > { %2179 = vmatpush1.msra.mxu0 %v8269_v63  ;;  %2250 = vmatpush1.msra.mxu1 %v8272_v61 }
 0x25b   : > { %2180 = vmatprep.subr.mxu0 %v8277_v59  ;;  %2251 = vmatprep.subr.mxu1 %v8280_v58 }
 0x25c   : > { %2181 = vmatpush1.msra.mxu0 %v8285_v10  ;;  %2252 = vmatpush1.msra.mxu1 %v8288_v2 }
 0x25d   : > { %2182 = vmatprep.subr.mxu0 %v8293_v12  ;;  %2253 = vmatprep.subr.mxu1 %v8296_v13 }
 0x25e   : > { %2183 = vmatpush1.msra.mxu0 %v8301_v14  ;;  %2254 = vmatpush1.msra.mxu1 %v8304_v16 }
 0x25f   : > { %2184 = vmatprep.subr.mxu0 %v8309_v17  ;;  %2255 = vmatprep.subr.mxu1 %v8312_v18 }
 0x260   : > { %2185 = vmatpush1.msra.mxu0 %v8317_v19  ;;  %2256 = vmatpush1.msra.mxu1 %v8320_v20 }
 0x261   : > { %2186 = vmatprep.subr.mxu0 %v8325_v21  ;;  %2257 = vmatprep.subr.mxu1 %v8328_v22 }
 0x262   : > { %2187 = vmatpush1.msra.mxu0 %v8333_v23  ;;  %2258 = vmatpush1.msra.mxu1 %v8336_v24 }
 0x263   : > { %2188 = vmatprep.subr.mxu0 %v8341_v25  ;;  %2259 = vmatprep.subr.mxu1 %v8344_v26 }
 0x264   : > { %2189 = vmatpush1.msra.mxu0 %v8349_v27  ;;  %2260 = vmatpush1.msra.mxu1 %v8352_v28 }
 0x265   : > { %2190 = vmatprep.subr.mxu0 %v8357_v30  ;;  %2261 = vmatprep.subr.mxu1 %v8360_v32 }
 0x266   : > { %2191 = vmatpush1.msra.mxu0 %v8365_v33  ;;  %2262 = vmatpush1.msra.mxu1 %v8368_v34 }
 0x267   : > { %2192 = vmatprep.subr.mxu0 %v8373_v37  ;;  %2263 = vmatprep.subr.mxu1 %v8376_v39 }
 0x268   : > { %2193 = vmatpush1.msra.mxu0 %v8381_v41  ;;  %2264 = vmatpush1.msra.mxu1 %v8384_v42  ;;  %v8421_v42 = vld [vmem:[%s7154_s30 + $0x28] sm:$0xff]  ;;  %v8424_v41 = vld [vmem:[%s7154_s30 + $0x38] sm:$0xff] }
 0x269   : > { %2194 = vmatprep.subr.mxu0 %v8389_v43  ;;  %2265 = vmatprep.subr.mxu1 %v8392_v44  ;;  %12452 = vst [vmem:[#allocation19_spill] sm:$0xff] %v8421_v42  ;;  %12453 = vst [vmem:[#allocation20_spill] sm:$0xff] %v8424_v41  ;;  %v8429_v43 = vld [vmem:[%s7154_s30 + $0x20] sm:$0xff]  ;;  %v8432_v44 = vld [vmem:[%s7154_s30 + $0x30] sm:$0xff] }
 0x26a   : > { %2195 = vmatpush1.msra.mxu0 %v8397_v45  ;;  %2266 = vmatpush1.msra.mxu1 %v8400_v46  ;;  %12454 = vst [vmem:[#allocation21_spill] sm:$0xff] %v8429_v43  ;;  %12455 = vst [vmem:[#allocation22_spill] sm:$0xff] %v8432_v44  ;;  %v8437_v45 = vld [vmem:[%s7154_s30 + $0x8] sm:$0xff]  ;;  %v8440_v46 = vld [vmem:[%s7154_s30 + $0x18] sm:$0xff] }
 0x26b   : > { %2196 = vmatprep.subr.mxu0 %v8405_v48  ;;  %2267 = vmatprep.subr.mxu1 %v8408_v50  ;;  %12456 = vst [vmem:[#allocation23_spill] sm:$0xff] %v8437_v45  ;;  %12457 = vst [vmem:[#allocation24_spill] sm:$0xff] %v8440_v46  ;;  %v8445_v48 = vld [vmem:[%s7154_s30] sm:$0xff] }
 0x26c   : > { %2197 = vmatpush1.msra.mxu0 %v8413_v51  ;;  %2268 = vmatpush1.msra.mxu1 %v8416_v31  ;;  %12458 = vst [vmem:[#allocation25_spill] sm:$0xff] %v8445_v48  ;;  %v8450_v51 = vld [vmem:[%s7154_s30 + $0x10] sm:$0xff] }
 0x26d   : > { %2198 = vmatprep.subr.mxu0 %v8421_v42  ;;  %2269 = vmatprep.subr.mxu1 %v8424_v41  ;;  %12459 = vst [vmem:[#allocation26_spill] sm:$0xff] %v8450_v51  ;;  %v8857_v41 = vld [vmem:[%s7438_s26 + $0x2c8] sm:$0xff]  ;;  %v8868_v42 = vld [vmem:[%s7438_s26 + $0x2d0] sm:$0xff] }
 0x26e   : > { %2199 = vmatpush1.msra.mxu0 %v8429_v43  ;;  %2270 = vmatpush1.msra.mxu1 %v8432_v44  ;;  %v8461_v44 = vld [vmem:[%s7438_s26 + $0x1e8] sm:$0xff]  ;;  %v8846_v43 = vld [vmem:[%s7438_s26 + $0x2f8] sm:$0xff]  ;;  %12560 = vst [vmem:[#allocation127_spill] sm:$0xff] %v8857_v41  ;;  %12563 = vst [vmem:[#allocation130_spill] sm:$0xff] %v8868_v42 }
 0x26f   : > { %2200 = vmatprep.subr.mxu0 %v8437_v45  ;;  %2271 = vmatprep.subr.mxu1 %v8440_v46  ;;  %12460 = vst [vmem:[#allocation27_spill] sm:$0xff] %v8461_v44  ;;  %v8464_v45 = vld [vmem:[%s7438_s26 + $0x1f8] sm:$0xff]  ;;  %v8843_v46 = vld [vmem:[%s7438_s26 + $0x2e8] sm:$0xff]  ;;  %12557 = vst [vmem:[#allocation124_spill] sm:$0xff] %v8846_v43 }
 0x270   : > { %2201 = vmatpush1.msra.mxu0 %v8445_v48  ;;  %2234 = vmatprep.mubr.f32.mxu0 %v12304_v29  ;;  %12461 = vst [vmem:[#allocation28_spill] sm:$0xff] %v8464_v45  ;;  %v8469_v48 = vld [vmem:[%s7438_s26 + $0x1e0] sm:$0xff]  ;;  %12556 = vst [vmem:[#allocation123_spill] sm:$0xff] %v8843_v46 }
 0x271   : > { %2272 = vmatpush1.msra.mxu1 %v8450_v51  ;;  %2305 = vmatprep.mubr.f32.mxu1 %v12304_v29  ;;  %12462 = vst [vmem:[#allocation29_spill] sm:$0xff] %v8469_v48  ;;  %v8472_v51 = vld [vmem:[%s7438_s26 + $0x1f0] sm:$0xff]  ;;  %v8480_v29 = vld [vmem:[%s7438_s26 + $0x1d8] sm:$0xff] }
 0x272   : > { %2235 = vmatmul.mubr.f32.vlgmr.msra.gmra.mxu0 %v8204_v52  ;;  %2306 = vmatmul.mubr.f32.vlgmr.msra.gmra.mxu1 %v8204_v52  ;;  %12463 = vst [vmem:[#allocation30_spill] sm:$0xff] %v8472_v51  ;;  %v8477_v52 = vld [vmem:[%s7438_s26 + $0x1c8] sm:$0xff]  ;;  %12465 = vst [vmem:[#allocation32_spill] sm:$0xff] %v8480_v29 }
 0x273   : > { %2512 = vmatprep.subr.mxu0 %v8461_v44  ;;  %2583 = vmatprep.subr.mxu1 %v8464_v45  ;;  %12464 = vst [vmem:[#allocation31_spill] sm:$0xff] %v8477_v52  ;;  %v8485_v45 = vld [vmem:[%s7438_s26 + $0x1c0] sm:$0xff]  ;;  %v8488_v44 = vld [vmem:[%s7438_s26 + $0x1d0] sm:$0xff] }
 0x274   : > { %2513 = vmatpush1.msra.mxu0 %v8469_v48  ;;  %2584 = vmatpush1.msra.mxu1 %v8472_v51  ;;  %12466 = vst [vmem:[#allocation33_spill] sm:$0xff] %v8485_v45  ;;  %12467 = vst [vmem:[#allocation34_spill] sm:$0xff] %v8488_v44  ;;  %v8493_v51 = vld [vmem:[%s7438_s26 + $0x1a8] sm:$0xff]  ;;  %v8496_v48 = vld [vmem:[%s7438_s26 + $0x1b8] sm:$0xff] }
 0x275   : > { %2514 = vmatprep.subr.mxu0 %v8477_v52  ;;  %2585 = vmatprep.subr.mxu1 %v8480_v29  ;;  %12468 = vst [vmem:[#allocation35_spill] sm:$0xff] %v8493_v51  ;;  %12469 = vst [vmem:[#allocation36_spill] sm:$0xff] %v8496_v48  ;;  %v8501_v29 = vld [vmem:[%s7438_s26 + $0x1a0] sm:$0xff]  ;;  %v8504_v52 = vld [vmem:[%s7438_s26 + $0x1b0] sm:$0xff] }
 0x276   : > { %2515 = vmatpush1.msra.mxu0 %v8485_v45  ;;  %2586 = vmatpush1.msra.mxu1 %v8488_v44  ;;  %12470 = vst [vmem:[#allocation37_spill] sm:$0xff] %v8501_v29  ;;  %12471 = vst [vmem:[#allocation38_spill] sm:$0xff] %v8504_v52  ;;  %v8509_v44 = vld [vmem:[%s7438_s26 + $0x188] sm:$0xff]  ;;  %v8512_v45 = vld [vmem:[%s7438_s26 + $0x198] sm:$0xff] }
 0x277   : > { %2516 = vmatprep.subr.mxu0 %v8493_v51  ;;  %2587 = vmatprep.subr.mxu1 %v8496_v48  ;;  %12472 = vst [vmem:[#allocation39_spill] sm:$0xff] %v8509_v44  ;;  %12473 = vst [vmem:[#allocation40_spill] sm:$0xff] %v8512_v45  ;;  %v8517_v48 = vld [vmem:[%s7438_s26 + $0x180] sm:$0xff]  ;;  %v8520_v51 = vld [vmem:[%s7438_s26 + $0x190] sm:$0xff] }
 0x278   : > { %2517 = vmatpush1.msra.mxu0 %v8501_v29  ;;  %2588 = vmatpush1.msra.mxu1 %v8504_v52  ;;  %12474 = vst [vmem:[#allocation41_spill] sm:$0xff] %v8517_v48  ;;  %12475 = vst [vmem:[#allocation42_spill] sm:$0xff] %v8520_v51  ;;  %v8525_v52 = vld [vmem:[%s7438_s26 + $0x168] sm:$0xff]  ;;  %v8528_v29 = vld [vmem:[%s7438_s26 + $0x178] sm:$0xff] }
 0x279   : > { %2518 = vmatprep.subr.mxu0 %v8509_v44  ;;  %2589 = vmatprep.subr.mxu1 %v8512_v45  ;;  %12476 = vst [vmem:[#allocation43_spill] sm:$0xff] %v8525_v52  ;;  %12477 = vst [vmem:[#allocation44_spill] sm:$0xff] %v8528_v29  ;;  %v8533_v45 = vld [vmem:[%s7438_s26 + $0x160] sm:$0xff]  ;;  %v8536_v44 = vld [vmem:[%s7438_s26 + $0x170] sm:$0xff] }
 0x27a   : > { %2519 = vmatpush1.msra.mxu0 %v8517_v48  ;;  %2590 = vmatpush1.msra.mxu1 %v8520_v51  ;;  %12478 = vst [vmem:[#allocation45_spill] sm:$0xff] %v8533_v45  ;;  %12479 = vst [vmem:[#allocation46_spill] sm:$0xff] %v8536_v44  ;;  %v8541_v51 = vld [vmem:[%s7438_s26 + $0x148] sm:$0xff]  ;;  %v8544_v48 = vld [vmem:[%s7438_s26 + $0x158] sm:$0xff] }
 0x27b   : > { %2520 = vmatprep.subr.mxu0 %v8525_v52  ;;  %2591 = vmatprep.subr.mxu1 %v8528_v29  ;;  %12480 = vst [vmem:[#allocation47_spill] sm:$0xff] %v8541_v51  ;;  %12481 = vst [vmem:[#allocation48_spill] sm:$0xff] %v8544_v48  ;;  %v8549_v29 = vld [vmem:[%s7438_s26 + $0x140] sm:$0xff]  ;;  %v8552_v52 = vld [vmem:[%s7438_s26 + $0x150] sm:$0xff] }
 0x27c   : > { %2521 = vmatpush1.msra.mxu0 %v8533_v45  ;;  %2592 = vmatpush1.msra.mxu1 %v8536_v44  ;;  %12482 = vst [vmem:[#allocation49_spill] sm:$0xff] %v8549_v29  ;;  %12483 = vst [vmem:[#allocation50_spill] sm:$0xff] %v8552_v52  ;;  %v8557_v44 = vld [vmem:[%s7438_s26 + $0x128] sm:$0xff]  ;;  %v8560_v45 = vld [vmem:[%s7438_s26 + $0x138] sm:$0xff] }
 0x27d   : > { %2522 = vmatprep.subr.mxu0 %v8541_v51  ;;  %2593 = vmatprep.subr.mxu1 %v8544_v48  ;;  %12484 = vst [vmem:[#allocation51_spill] sm:$0xff] %v8557_v44  ;;  %12485 = vst [vmem:[#allocation52_spill] sm:$0xff] %v8560_v45  ;;  %v8565_v48 = vld [vmem:[%s7438_s26 + $0x120] sm:$0xff]  ;;  %v8568_v51 = vld [vmem:[%s7438_s26 + $0x130] sm:$0xff] }
 0x27e   : > { %2523 = vmatpush1.msra.mxu0 %v8549_v29  ;;  %2594 = vmatpush1.msra.mxu1 %v8552_v52  ;;  %12486 = vst [vmem:[#allocation53_spill] sm:$0xff] %v8565_v48  ;;  %12487 = vst [vmem:[#allocation54_spill] sm:$0xff] %v8568_v51  ;;  %v8573_v52 = vld [vmem:[%s7438_s26 + $0x108] sm:$0xff]  ;;  %v8576_v29 = vld [vmem:[%s7438_s26 + $0x118] sm:$0xff] }
 0x27f   : > { %2524 = vmatprep.subr.mxu0 %v8557_v44  ;;  %2595 = vmatprep.subr.mxu1 %v8560_v45  ;;  %12488 = vst [vmem:[#allocation55_spill] sm:$0xff] %v8573_v52  ;;  %12489 = vst [vmem:[#allocation56_spill] sm:$0xff] %v8576_v29  ;;  %v8581_v45 = vld [vmem:[%s7438_s26 + $0x100] sm:$0xff]  ;;  %v8584_v44 = vld [vmem:[%s7438_s26 + $0x110] sm:$0xff] }
 0x280   : > { %2525 = vmatpush1.msra.mxu0 %v8565_v48  ;;  %2596 = vmatpush1.msra.mxu1 %v8568_v51  ;;  %12490 = vst [vmem:[#allocation57_spill] sm:$0xff] %v8581_v45  ;;  %12491 = vst [vmem:[#allocation58_spill] sm:$0xff] %v8584_v44  ;;  %v8589_v51 = vld [vmem:[%s7438_s26 + $0xe8] sm:$0xff]  ;;  %v8592_v48 = vld [vmem:[%s7438_s26 + $0xf8] sm:$0xff] }
 0x281   : > { %2526 = vmatprep.subr.mxu0 %v8573_v52  ;;  %2597 = vmatprep.subr.mxu1 %v8576_v29  ;;  %12492 = vst [vmem:[#allocation59_spill] sm:$0xff] %v8589_v51  ;;  %12493 = vst [vmem:[#allocation60_spill] sm:$0xff] %v8592_v48  ;;  %v8597_v29 = vld [vmem:[%s7438_s26 + $0xe0] sm:$0xff]  ;;  %v8600_v52 = vld [vmem:[%s7438_s26 + $0xf0] sm:$0xff] }
 0x282   : > { %2527 = vmatpush1.msra.mxu0 %v8581_v45  ;;  %2598 = vmatpush1.msra.mxu1 %v8584_v44  ;;  %12494 = vst [vmem:[#allocation61_spill] sm:$0xff] %v8597_v29  ;;  %12495 = vst [vmem:[#allocation62_spill] sm:$0xff] %v8600_v52  ;;  %v8605_v44 = vld [vmem:[%s7438_s26 + $0xc8] sm:$0xff]  ;;  %v8608_v45 = vld [vmem:[%s7438_s26 + $0xd8] sm:$0xff] }
 0x283   : > { %2528 = vmatprep.subr.mxu0 %v8589_v51  ;;  %2599 = vmatprep.subr.mxu1 %v8592_v48  ;;  %12496 = vst [vmem:[#allocation63_spill] sm:$0xff] %v8605_v44  ;;  %12497 = vst [vmem:[#allocation64_spill] sm:$0xff] %v8608_v45  ;;  %v8613_v48 = vld [vmem:[%s7438_s26 + $0xc0] sm:$0xff]  ;;  %v8616_v51 = vld [vmem:[%s7438_s26 + $0xd0] sm:$0xff] }
 0x284   : > { %2529 = vmatpush1.msra.mxu0 %v8597_v29  ;;  %2600 = vmatpush1.msra.mxu1 %v8600_v52  ;;  %12498 = vst [vmem:[#allocation65_spill] sm:$0xff] %v8613_v48  ;;  %12499 = vst [vmem:[#allocation66_spill] sm:$0xff] %v8616_v51  ;;  %v8621_v52 = vld [vmem:[%s7438_s26 + $0xa8] sm:$0xff]  ;;  %v8624_v29 = vld [vmem:[%s7438_s26 + $0xb8] sm:$0xff] }
 0x285   : > { %2530 = vmatprep.subr.mxu0 %v8605_v44  ;;  %2601 = vmatprep.subr.mxu1 %v8608_v45  ;;  %12500 = vst [vmem:[#allocation67_spill] sm:$0xff] %v8621_v52  ;;  %12501 = vst [vmem:[#allocation68_spill] sm:$0xff] %v8624_v29  ;;  %v8629_v45 = vld [vmem:[%s7438_s26 + $0xa0] sm:$0xff]  ;;  %v8632_v44 = vld [vmem:[%s7438_s26 + $0xb0] sm:$0xff] }
 0x286   : > { %2531 = vmatpush1.msra.mxu0 %v8613_v48  ;;  %2602 = vmatpush1.msra.mxu1 %v8616_v51  ;;  %12502 = vst [vmem:[#allocation69_spill] sm:$0xff] %v8629_v45  ;;  %12503 = vst [vmem:[#allocation70_spill] sm:$0xff] %v8632_v44  ;;  %v8637_v51 = vld [vmem:[%s7438_s26 + $0x88] sm:$0xff]  ;;  %v8640_v48 = vld [vmem:[%s7438_s26 + $0x98] sm:$0xff] }
 0x287   : > { %2532 = vmatprep.subr.mxu0 %v8621_v52  ;;  %2603 = vmatprep.subr.mxu1 %v8624_v29  ;;  %12504 = vst [vmem:[#allocation71_spill] sm:$0xff] %v8637_v51  ;;  %12505 = vst [vmem:[#allocation72_spill] sm:$0xff] %v8640_v48  ;;  %v8645_v29 = vld [vmem:[%s7438_s26 + $0x80] sm:$0xff]  ;;  %v8648_v52 = vld [vmem:[%s7438_s26 + $0x90] sm:$0xff] }
 0x288   : > { %2533 = vmatpush1.msra.mxu0 %v8629_v45  ;;  %2604 = vmatpush1.msra.mxu1 %v8632_v44  ;;  %12506 = vst [vmem:[#allocation73_spill] sm:$0xff] %v8645_v29  ;;  %12507 = vst [vmem:[#allocation74_spill] sm:$0xff] %v8648_v52  ;;  %v8653_v44 = vld [vmem:[%s7438_s26 + $0x68] sm:$0xff]  ;;  %v8656_v45 = vld [vmem:[%s7438_s26 + $0x78] sm:$0xff] }
 0x289   : > { %2534 = vmatprep.subr.mxu0 %v8637_v51  ;;  %2605 = vmatprep.subr.mxu1 %v8640_v48  ;;  %12508 = vst [vmem:[#allocation75_spill] sm:$0xff] %v8653_v44  ;;  %12509 = vst [vmem:[#allocation76_spill] sm:$0xff] %v8656_v45  ;;  %v8661_v48 = vld [vmem:[%s7438_s26 + $0x60] sm:$0xff]  ;;  %v8664_v51 = vld [vmem:[%s7438_s26 + $0x70] sm:$0xff] }
 0x28a   : > { %2535 = vmatpush1.msra.mxu0 %v8645_v29  ;;  %2606 = vmatpush1.msra.mxu1 %v8648_v52  ;;  %12510 = vst [vmem:[#allocation77_spill] sm:$0xff] %v8661_v48  ;;  %12511 = vst [vmem:[#allocation78_spill] sm:$0xff] %v8664_v51  ;;  %v8669_v52 = vld [vmem:[%s7438_s26 + $0x48] sm:$0xff]  ;;  %v8672_v29 = vld [vmem:[%s7438_s26 + $0x58] sm:$0xff] }
 0x28b   : > { %2536 = vmatprep.subr.mxu0 %v8653_v44  ;;  %2607 = vmatprep.subr.mxu1 %v8656_v45  ;;  %12512 = vst [vmem:[#allocation79_spill] sm:$0xff] %v8669_v52  ;;  %12513 = vst [vmem:[#allocation80_spill] sm:$0xff] %v8672_v29  ;;  %v8677_v45 = vld [vmem:[%s7438_s26 + $0x40] sm:$0xff]  ;;  %v8680_v44 = vld [vmem:[%s7438_s26 + $0x50] sm:$0xff] }
 0x28c   : > { %2537 = vmatpush1.msra.mxu0 %v8661_v48  ;;  %2608 = vmatpush1.msra.mxu1 %v8664_v51  ;;  %12514 = vst [vmem:[#allocation81_spill] sm:$0xff] %v8677_v45  ;;  %12515 = vst [vmem:[#allocation82_spill] sm:$0xff] %v8680_v44  ;;  %v8685_v51 = vld [vmem:[%s7438_s26 + $0x28] sm:$0xff]  ;;  %v8688_v48 = vld [vmem:[%s7438_s26 + $0x38] sm:$0xff] }
 0x28d   : > { %2538 = vmatprep.subr.mxu0 %v8669_v52  ;;  %2609 = vmatprep.subr.mxu1 %v8672_v29  ;;  %12516 = vst [vmem:[#allocation83_spill] sm:$0xff] %v8685_v51  ;;  %12517 = vst [vmem:[#allocation84_spill] sm:$0xff] %v8688_v48  ;;  %v8693_v29 = vld [vmem:[%s7438_s26 + $0x20] sm:$0xff]  ;;  %v8696_v52 = vld [vmem:[%s7438_s26 + $0x30] sm:$0xff] }
 0x28e   : > { %2539 = vmatpush1.msra.mxu0 %v8677_v45  ;;  %2610 = vmatpush1.msra.mxu1 %v8680_v44  ;;  %12518 = vst [vmem:[#allocation85_spill] sm:$0xff] %v8693_v29  ;;  %12519 = vst [vmem:[#allocation86_spill] sm:$0xff] %v8696_v52  ;;  %v8701_v44 = vld [vmem:[%s7438_s26 + $0x8] sm:$0xff]  ;;  %v8704_v45 = vld [vmem:[%s7438_s26 + $0x18] sm:$0xff] }
 0x28f   : > { %2540 = vmatprep.subr.mxu0 %v8685_v51  ;;  %2611 = vmatprep.subr.mxu1 %v8688_v48  ;;  %12520 = vst [vmem:[#allocation87_spill] sm:$0xff] %v8701_v44  ;;  %12521 = vst [vmem:[#allocation88_spill] sm:$0xff] %v8704_v45  ;;  %v8709_v48 = vld [vmem:[%s7438_s26] sm:$0xff]  ;;  %v8712_v51 = vld [vmem:[%s7438_s26 + $0x10] sm:$0xff] }
 0x290   : > { %2541 = vmatpush1.msra.mxu0 %v8693_v29  ;;  %2612 = vmatpush1.msra.mxu1 %v8696_v52  ;;  %12522 = vst [vmem:[#allocation89_spill] sm:$0xff] %v8709_v48  ;;  %12523 = vst [vmem:[#allocation90_spill] sm:$0xff] %v8712_v51  ;;  %v8717_v52 = vld [vmem:[%s7438_s26 + $0x3e8] sm:$0xff]  ;;  %v8720_v29 = vld [vmem:[%s7438_s26 + $0x3f8] sm:$0xff] }
 0x291   : > { %2542 = vmatprep.subr.mxu0 %v8701_v44  ;;  %2613 = vmatprep.subr.mxu1 %v8704_v45  ;;  %12524 = vst [vmem:[#allocation91_spill] sm:$0xff] %v8717_v52  ;;  %12525 = vst [vmem:[#allocation92_spill] sm:$0xff] %v8720_v29  ;;  %v8725_v45 = vld [vmem:[%s7438_s26 + $0x3e0] sm:$0xff]  ;;  %v8728_v44 = vld [vmem:[%s7438_s26 + $0x3f0] sm:$0xff] }
 0x292   : > { %2543 = vmatpush1.msra.mxu0 %v8709_v48  ;;  %2614 = vmatpush1.msra.mxu1 %v8712_v51  ;;  %12526 = vst [vmem:[#allocation93_spill] sm:$0xff] %v8725_v45  ;;  %12527 = vst [vmem:[#allocation94_spill] sm:$0xff] %v8728_v44  ;;  %v8733_v51 = vld [vmem:[%s7438_s26 + $0x3c8] sm:$0xff]  ;;  %v8736_v48 = vld [vmem:[%s7438_s26 + $0x3d8] sm:$0xff] }
 0x293   : > { %2544 = vmatprep.subr.mxu0 %v8717_v52  ;;  %2615 = vmatprep.subr.mxu1 %v8720_v29  ;;  %12528 = vst [vmem:[#allocation95_spill] sm:$0xff] %v8733_v51  ;;  %12529 = vst [vmem:[#allocation96_spill] sm:$0xff] %v8736_v48  ;;  %v8741_v29 = vld [vmem:[%s7438_s26 + $0x3c0] sm:$0xff]  ;;  %v8744_v52 = vld [vmem:[%s7438_s26 + $0x3d0] sm:$0xff] }
 0x294   : > { %2545 = vmatpush2.msra.mxu0 %v8725_v45  ;;  %2616 = vmatpush2.msra.mxu1 %v8728_v44  ;;  %12530 = vst [vmem:[#allocation97_spill] sm:$0xff] %v8741_v29  ;;  %12531 = vst [vmem:[#allocation98_spill] sm:$0xff] %v8744_v52  ;;  %v8749_v44 = vld [vmem:[%s7438_s26 + $0x3a8] sm:$0xff]  ;;  %v8752_v45 = vld [vmem:[%s7438_s26 + $0x3b8] sm:$0xff] }
 0x295   : > { %2546 = vmatprep.subr.mxu0 %v8733_v51  ;;  %2617 = vmatprep.subr.mxu1 %v8736_v48  ;;  %12532 = vst [vmem:[#allocation99_spill] sm:$0xff] %v8749_v44  ;;  %12533 = vst [vmem:[#allocation100_spill] sm:$0xff] %v8752_v45  ;;  %v8757_v48 = vld [vmem:[%s7438_s26 + $0x3a0] sm:$0xff]  ;;  %v8760_v51 = vld [vmem:[%s7438_s26 + $0x3b0] sm:$0xff] }
 0x296   : > { %2547 = vmatpush2.msra.mxu0 %v8741_v29  ;;  %2618 = vmatpush2.msra.mxu1 %v8744_v52  ;;  %12534 = vst [vmem:[#allocation101_spill] sm:$0xff] %v8757_v48  ;;  %12535 = vst [vmem:[#allocation102_spill] sm:$0xff] %v8760_v51  ;;  %v8765_v52 = vld [vmem:[%s7438_s26 + $0x388] sm:$0xff]  ;;  %v8768_v29 = vld [vmem:[%s7438_s26 + $0x398] sm:$0xff] }
 0x297   : > { %2548 = vmatprep.subr.mxu0 %v8749_v44  ;;  %2619 = vmatprep.subr.mxu1 %v8752_v45  ;;  %12536 = vst [vmem:[#allocation103_spill] sm:$0xff] %v8765_v52  ;;  %12537 = vst [vmem:[#allocation104_spill] sm:$0xff] %v8768_v29  ;;  %v8773_v45 = vld [vmem:[%s7438_s26 + $0x380] sm:$0xff]  ;;  %v8776_v44 = vld [vmem:[%s7438_s26 + $0x390] sm:$0xff] }
 0x298   : > { %2549 = vmatpush2.msra.mxu0 %v8757_v48  ;;  %2620 = vmatpush2.msra.mxu1 %v8760_v51  ;;  %12538 = vst [vmem:[#allocation105_spill] sm:$0xff] %v8773_v45  ;;  %12539 = vst [vmem:[#allocation106_spill] sm:$0xff] %v8776_v44  ;;  %v8781_v51 = vld [vmem:[%s7438_s26 + $0x368] sm:$0xff]  ;;  %v8784_v48 = vld [vmem:[%s7438_s26 + $0x378] sm:$0xff] }
 0x299   : > { %2550 = vmatprep.subr.mxu0 %v8765_v52  ;;  %2621 = vmatprep.subr.mxu1 %v8768_v29  ;;  %12540 = vst [vmem:[#allocation107_spill] sm:$0xff] %v8781_v51  ;;  %12541 = vst [vmem:[#allocation108_spill] sm:$0xff] %v8784_v48  ;;  %v8789_v29 = vld [vmem:[%s7438_s26 + $0x360] sm:$0xff]  ;;  %v8792_v52 = vld [vmem:[%s7438_s26 + $0x370] sm:$0xff] }
 0x29a   : > { %2551 = vmatpush2.msra.mxu0 %v8773_v45  ;;  %2622 = vmatpush2.msra.mxu1 %v8776_v44  ;;  %12542 = vst [vmem:[#allocation109_spill] sm:$0xff] %v8789_v29  ;;  %12543 = vst [vmem:[#allocation110_spill] sm:$0xff] %v8792_v52  ;;  %v8797_v44 = vld [vmem:[%s7438_s26 + $0x348] sm:$0xff]  ;;  %v8800_v45 = vld [vmem:[%s7438_s26 + $0x358] sm:$0xff] }
 0x29b   : > { %2552 = vmatprep.subr.mxu0 %v8781_v51  ;;  %2623 = vmatprep.subr.mxu1 %v8784_v48  ;;  %12544 = vst [vmem:[#allocation111_spill] sm:$0xff] %v8797_v44  ;;  %12545 = vst [vmem:[#allocation112_spill] sm:$0xff] %v8800_v45  ;;  %v8805_v48 = vld [vmem:[%s7438_s26 + $0x340] sm:$0xff]  ;;  %v8808_v51 = vld [vmem:[%s7438_s26 + $0x350] sm:$0xff] }
 0x29c   : > { %2553 = vmatpush2.msra.mxu0 %v8789_v29  ;;  %2624 = vmatpush2.msra.mxu1 %v8792_v52  ;;  %12546 = vst [vmem:[#allocation113_spill] sm:$0xff] %v8805_v48  ;;  %12547 = vst [vmem:[#allocation114_spill] sm:$0xff] %v8808_v51  ;;  %v8813_v52 = vld [vmem:[%s7438_s26 + $0x328] sm:$0xff]  ;;  %v8816_v29 = vld [vmem:[%s7438_s26 + $0x338] sm:$0xff] }
 0x29d   : > { %2554 = vmatprep.subr.mxu0 %v8797_v44  ;;  %2625 = vmatprep.subr.mxu1 %v8800_v45  ;;  %12548 = vst [vmem:[#allocation115_spill] sm:$0xff] %v8813_v52  ;;  %12549 = vst [vmem:[#allocation116_spill] sm:$0xff] %v8816_v29  ;;  %v8821_v45 = vld [vmem:[%s7438_s26 + $0x320] sm:$0xff]  ;;  %v8824_v44 = vld [vmem:[%s7438_s26 + $0x330] sm:$0xff] }
 0x29e   : > { %2555 = vmatpush2.msra.mxu0 %v8805_v48  ;;  %2626 = vmatpush2.msra.mxu1 %v8808_v51  ;;  %12550 = vst [vmem:[#allocation117_spill] sm:$0xff] %v8821_v45  ;;  %12551 = vst [vmem:[#allocation118_spill] sm:$0xff] %v8824_v44  ;;  %v8827_v48 = vld [vmem:[%s7438_s26 + $0x308] sm:$0xff]  ;;  %v8832_v51 = vld [vmem:[%s7438_s26 + $0x318] sm:$0xff] }
 0x29f   : > { %2556 = vmatprep.subr.mxu0 %v8813_v52  ;;  %2627 = vmatprep.subr.mxu1 %v8816_v29  ;;  %12552 = vst [vmem:[#allocation119_spill] sm:$0xff] %v8827_v48  ;;  %12553 = vst [vmem:[#allocation120_spill] sm:$0xff] %v8832_v51  ;;  %v8835_v52 = vld [vmem:[%s7438_s26 + $0x300] sm:$0xff]  ;;  %v8838_v29 = vld [vmem:[%s7438_s26 + $0x310] sm:$0xff] }
 0x2a0   : > { %2557 = vmatpush2.msra.mxu0 %v8821_v45  ;;  %2628 = vmatpush2.msra.mxu1 %v8824_v44  ;;  %12554 = vst [vmem:[#allocation121_spill] sm:$0xff] %v8835_v52  ;;  %12555 = vst [vmem:[#allocation122_spill] sm:$0xff] %v8838_v29  ;;  %v8849_v45 = vld [vmem:[%s7438_s26 + $0x2e0] sm:$0xff]  ;;  %v8854_v44 = vld [vmem:[%s7438_s26 + $0x2f0] sm:$0xff] }
 0x2a1   : > { %2558 = vmatprep.subr.mxu0 %v8827_v48  ;;  %2629 = vmatprep.subr.mxu1 %v8832_v51  ;;  %12558 = vst [vmem:[#allocation125_spill] sm:$0xff] %v8849_v45  ;;  %12559 = vst [vmem:[#allocation126_spill] sm:$0xff] %v8854_v44  ;;  %v8860_v48 = vld [vmem:[%s7438_s26 + $0x2d8] sm:$0xff]  ;;  %v8865_v51 = vld [vmem:[%s7438_s26 + $0x2c0] sm:$0xff] }
 0x2a2   : > { %2559 = vmatpush2.msra.mxu0 %v8835_v52  ;;  %2630 = vmatpush2.msra.mxu1 %v8838_v29  ;;  %12561 = vst [vmem:[#allocation128_spill] sm:$0xff] %v8860_v48  ;;  %12562 = vst [vmem:[#allocation129_spill] sm:$0xff] %v8865_v51  ;;  %v8873_v29 = vld [vmem:[%s7438_s26 + $0x2a8] sm:$0xff]  ;;  %v8876_v52 = vld [vmem:[%s7438_s26 + $0x2b8] sm:$0xff] }
 0x2a3   : > { %2560 = vmatprep.subr.mxu0 %v8843_v46  ;;  %2631 = vmatprep.subr.mxu1 %v8846_v43  ;;  %12564 = vst [vmem:[#allocation131_spill] sm:$0xff] %v8873_v29  ;;  %12565 = vst [vmem:[#allocation132_spill] sm:$0xff] %v8876_v52  ;;  %v8881_v43 = vld [vmem:[%s7438_s26 + $0x2a0] sm:$0xff]  ;;  %v8884_v46 = vld [vmem:[%s7438_s26 + $0x2b0] sm:$0xff] }
 0x2a4   : > { %2561 = vmatpush2.msra.mxu0 %v8849_v45  ;;  %2632 = vmatpush2.msra.mxu1 %v8854_v44  ;;  %12566 = vst [vmem:[#allocation133_spill] sm:$0xff] %v8881_v43  ;;  %12567 = vst [vmem:[#allocation134_spill] sm:$0xff] %v8884_v46  ;;  %v8889_v44 = vld [vmem:[%s7438_s26 + $0x288] sm:$0xff]  ;;  %v8892_v45 = vld [vmem:[%s7438_s26 + $0x298] sm:$0xff] }
 0x2a5   : > { %2562 = vmatprep.subr.mxu0 %v8857_v41  ;;  %2633 = vmatprep.subr.mxu1 %v8860_v48  ;;  %12568 = vst [vmem:[#allocation135_spill] sm:$0xff] %v8889_v44  ;;  %12569 = vst [vmem:[#allocation136_spill] sm:$0xff] %v8892_v45  ;;  %v8897_v48 = vld [vmem:[%s7438_s26 + $0x280] sm:$0xff]  ;;  %v8900_v41 = vld [vmem:[%s7438_s26 + $0x290] sm:$0xff] }
 0x2a6   : > { %2563 = vmatpush2.msra.mxu0 %v8865_v51  ;;  %2634 = vmatpush2.msra.mxu1 %v8868_v42  ;;  %12570 = vst [vmem:[#allocation137_spill] sm:$0xff] %v8897_v48  ;;  %12571 = vst [vmem:[#allocation138_spill] sm:$0xff] %v8900_v41  ;;  %v8905_v42 = vld [vmem:[%s7438_s26 + $0x268] sm:$0xff]  ;;  %v8908_v51 = vld [vmem:[%s7438_s26 + $0x278] sm:$0xff] }
 0x2a7   : > { %2564 = vmatprep.subr.mxu0 %v8873_v29  ;;  %2635 = vmatprep.subr.mxu1 %v8876_v52  ;;  %12572 = vst [vmem:[#allocation139_spill] sm:$0xff] %v8905_v42  ;;  %12573 = vst [vmem:[#allocation140_spill] sm:$0xff] %v8908_v51  ;;  %v8913_v52 = vld [vmem:[%s7438_s26 + $0x260] sm:$0xff]  ;;  %v8916_v29 = vld [vmem:[%s7438_s26 + $0x270] sm:$0xff] }
 0x2a8   : > { %2565 = vmatpush2.msra.mxu0 %v8881_v43  ;;  %2636 = vmatpush2.msra.mxu1 %v8884_v46  ;;  %12574 = vst [vmem:[#allocation141_spill] sm:$0xff] %v8913_v52  ;;  %12575 = vst [vmem:[#allocation142_spill] sm:$0xff] %v8916_v29  ;;  %v8921_v46 = vld [vmem:[%s7438_s26 + $0x248] sm:$0xff]  ;;  %v8924_v43 = vld [vmem:[%s7438_s26 + $0x258] sm:$0xff] }
 0x2a9   : > { %2566 = vmatprep.subr.mxu0 %v8889_v44  ;;  %2637 = vmatprep.subr.mxu1 %v8892_v45  ;;  %12576 = vst [vmem:[#allocation143_spill] sm:$0xff] %v8921_v46  ;;  %12577 = vst [vmem:[#allocation144_spill] sm:$0xff] %v8924_v43  ;;  %v8929_v45 = vld [vmem:[%s7438_s26 + $0x240] sm:$0xff]  ;;  %v8932_v44 = vld [vmem:[%s7438_s26 + $0x250] sm:$0xff] }
 0x2aa   : > { %2567 = vmatpush2.msra.mxu0 %v8897_v48  ;;  %2638 = vmatpush2.msra.mxu1 %v8900_v41  ;;  %12578 = vst [vmem:[#allocation145_spill] sm:$0xff] %v8929_v45  ;;  %12579 = vst [vmem:[#allocation146_spill] sm:$0xff] %v8932_v44  ;;  %v8937_v41 = vld [vmem:[%s7438_s26 + $0x228] sm:$0xff]  ;;  %v8940_v48 = vld [vmem:[%s7438_s26 + $0x238] sm:$0xff] }
 0x2ab   : > { %2568 = vmatprep.subr.mxu0 %v8905_v42  ;;  %2639 = vmatprep.subr.mxu1 %v8908_v51  ;;  %12580 = vst [vmem:[#allocation147_spill] sm:$0xff] %v8937_v41  ;;  %12581 = vst [vmem:[#allocation148_spill] sm:$0xff] %v8940_v48  ;;  %v8945_v42 = vld [vmem:[%s7438_s26 + $0x220] sm:$0xff]  ;;  %v8948_v51 = vld [vmem:[%s7438_s26 + $0x230] sm:$0xff] }
 0x2ac   : > { %2569 = vmatpush2.msra.mxu0 %v8913_v52  ;;  %2640 = vmatpush2.msra.mxu1 %v8916_v29  ;;  %12582 = vst [vmem:[#allocation149_spill] sm:$0xff] %v8945_v42  ;;  %12583 = vst [vmem:[#allocation150_spill] sm:$0xff] %v8948_v51  ;;  %v8953_v52 = vld [vmem:[%s7438_s26 + $0x208] sm:$0xff]  ;;  %v8956_v29 = vld [vmem:[%s7438_s26 + $0x218] sm:$0xff] }
 0x2ad   : > { %2570 = vmatprep.subr.mxu0 %v8921_v46  ;;  %2641 = vmatprep.subr.mxu1 %v8924_v43  ;;  %12584 = vst [vmem:[#allocation154_spill] sm:$0xff] %v8953_v52  ;;  %12585 = vst [vmem:[#allocation155_spill] sm:$0xff] %v8956_v29  ;;  %v8961_v46 = vld [vmem:[%s7438_s26 + $0x200] sm:$0xff]  ;;  %v8964_v43 = vld [vmem:[%s7438_s26 + $0x210] sm:$0xff] }
 0x2ae   : > { %2571 = vmatpush2.msra.mxu0 %v8929_v45  ;;  %2642 = vmatpush2.msra.mxu1 %v8932_v44  ;;  %12586 = vst [vmem:[#allocation156_spill] sm:$0xff] %v8961_v46  ;;  %12587 = vst [vmem:[#allocation157_spill] sm:$0xff] %v8964_v43 }
 0x2af   : > { %2572 = vmatprep.subr.mxu0 %v8937_v41  ;;  %2643 = vmatprep.subr.mxu1 %v8940_v48  ;;  %v1908_v48 = vld [vmem:[%s8186_s20] sm:$0xf] }
 0x2b0   : > { %2573 = vmatpush2.msra.mxu0 %v8945_v42  ;;  %2644 = vmatpush2.msra.mxu1 %v8948_v51  ;;  %v1913_v41 = vrot.slane %v1908_v48, %v12434_v38  ;;  %v1917_v44 = vrot.slane %v1908_v48, %v12435_v40 }
 0x2b1   : > { %2574 = vmatprep.subr.mxu0 %v8953_v52  ;;  %2645 = vmatprep.subr.mxu1 %v8956_v29 }
 0x2b2   : > { %2575 = vmatpush2.msra.mxu0 %v8961_v46  ;;  %2646 = vmatpush2.msra.mxu1 %v8964_v43  ;;  %v1925_v43 = vrot.slane %v1908_v48, %v12436_v49 }
 0x2b3   : > { %2747 = vmatprep.subr.mxu0 %v8174_v35  ;;  %2818 = vmatprep.subr.mxu1 %v8177_v36  ;;  %v1921_v36 = vrot.slane %v1908_v48, %v12437_v53 }
 0x311   : > { %v2001_v42 = vpop.f32.mrf.mxu0  ;;  %v2072_v50 = vpop.f32.mrf.mxu1 }
 0x312   : > { %v2002_v45 = vadd.f32 %v2001_v42, %v1913_v41  ;;  %v2073_v38 = vadd.f32 %v2072_v50, %v1921_v36 }
 0x313   : > { %v2003_v51 = vpop.f32.mrf.mxu0  ;;  %v2074_v46 = vpop.f32.mrf.mxu1 }
 0x314   : > { %v6602_v31 = vmul.f32 -1.442695, %v2002_v45  ;;  %v2004_v52 = vadd.f32 %v2003_v51, %v1917_v44  ;;  %v2075_v35 = vadd.f32 %v2074_v46, %v1925_v43 }
 0x316   : > { %6804 = vpow2.f32 %v6602_v31  ;;  %v6603_v29 = vmul.f32 -1.442695, %v2004_v52  ;;  %v6604_v39 = vmul.f32 -1.442695, %v2075_v35  ;;  %v2102_v52 = vld [vmem:[#allocation2 + $0x30] sm:$0x30] }
 0x318   : > { %6806 = vpow2.f32 %v6603_v29 }
 0x319   : > { %6808 = vpow2.f32 %v6604_v39  ;;  %v2103_v39 = vld [vmem:[#allocation2] sm:$0x30] }
 0x323   : > { %v6805_v37 = vpop.eup %6804 }
 0x324   : > { %v2080_v34 = vadd.f32 1.0, %v6805_v37 }
 0x325   : > { %v6807_v40 = vpop.eup %6806 }
 0x326   : > { %6810 = vrcp.f32 %v2080_v34  ;;  %v2086_v41 = vadd.f32 1.0, %v6807_v40  ;;  %v6809_v42 = vpop.eup %6808 }
 0x327   : > { %6812 = vtanh.f32 %v2073_v38  ;;  %v2093_v51 = vadd.f32 1.0, %v6809_v42 }
 0x328   : > { %6814 = vrcp.f32 %v2086_v41 }
 0x329   : > { %6816 = vrcp.f32 %v2093_v51 }
 0x332   : > { %v2236_v31 = vpop.f32.mrf.mxu0  ;;  %v2307_v35 = vpop.f32.mrf.mxu1 }
 0x333   : > { %v6811_v44 = vpop.eup %6810  ;;  %v2316_v29 = vrot.slane %v2236_v31, 4  ;;  %v2105_v31 = vld [vmem:[#allocation2 + $0x10] sm:$0x30] }
 0x334   : > { %v6813_v45 = vpop.eup %6812  ;;  %v2238_v43 = vpop.f32.mrf.mxu0 }
 0x335   : > { %v6815_v46 = vpop.eup %6814  ;;  %v2324_v48 = vadd.f32 %v2316_v29, %v2102_v52  ;;  %v2317_v53 = vrot.slane %v2238_v43, 4  ;;  %v2097_v50 = vmul.f32 %v6813_v45, %v6811_v44  ;;  %v2309_v41 = vpop.f32.mrf.mxu1  ;;  %v2318_v52 = vrot.slane %v2307_v35, 4  ;;  %v2104_v45 = vld [vmem:[#allocation2 + $0x18] sm:$0x30] }
 0x336   : > { %v2096_v37 = vmul.f32 %v6815_v46, %v8193_v15  ;;  %v2319_v42 = vrot.slane %v2309_v41, 4  ;;  %v6817_v44 = vpop.eup %6816  ;;  %v2348_v41 = vrot.slane %v8201_v47, 6  ;;  %v12589_v47 = vld [vmem:[#allocation6_spill] sm:$0xff] }
 0x337   : > { %v6605_v34 = vmul.f32 -1.442695, %v2324_v48  ;;  %v2325_v40 = vadd.f32 %v2317_v53, %v2103_v39  ;;  %v2326_v46 = vadd.f32 %v2318_v52, %v2104_v45 }
 0x338   : > { %v8980_v38 = vadd.f32 %v2097_v50, %v2096_v37  ;;  %v2327_v29 = vadd.f32 %v2319_v42, %v2105_v31 }
 0x339   : > { %6818 = vpow2.f32 %v6605_v34  ;;  %v6606_v36 = vmul.f32 -1.442695, %v2325_v40 }
 0x33a   : > { %6820 = vtanh.f32 %v8980_v38  ;;  %v6607_v43 = vmul.f32 -1.442695, %v2327_v29 }
 0x33b   : > { %6822 = vpow2.f32 %v6606_v36 }
 0x33c   : > { %6824 = vpow2.f32 %v6607_v43 }
 0x346   : > { %v6819_v15 = vpop.eup %6818 }
 0x347   : > { %v6821_v48 = vpop.eup %6820  ;;  %v2331_v53 = vadd.f32 1.0, %v6819_v15 }
 0x348   : > { %v6823_v50 = vpop.eup %6822  ;;  %v8983_v51 = vmul.f32 %v6821_v48, %v6817_v44  ;;  %v12631_v48 = vld [vmem:[#allocation47_spill] sm:$0xff] }
 0x349   : > { %6826 = vrcp.f32 %v2331_v53  ;;  %v2337_v37 = vadd.f32 1.0, %v6823_v50  ;;  %v6825_v34 = vpop.eup %6824  ;;  %v12632_v53 = vld [vmem:[#allocation48_spill] sm:$0xff]  ;;  %v12633_v50 = vld [vmem:[#allocation49_spill] sm:$0xff] }
 0x34a   : > { %12588 = vst [vmem:[#allocation158_spill] sm:$0xff] %v8983_v51  ;;  %6828 = vtanh.f32 %v2326_v46  ;;  %2101 = vst [vmem:[#allocation3 + $0x2] sm:$0x3] %v8983_v51  ;;  %v2356_v39 = vrot.slane %v8983_v51, 4  ;;  %v2344_v31 = vadd.f32 1.0, %v6825_v34  ;;  %v12637_v34 = vld [vmem:[#allocation53_spill] sm:$0xff] }
 0x34b   : > { %6830 = vrcp.f32 %v2337_v37  ;;  %v12634_v37 = vld [vmem:[#allocation50_spill] sm:$0xff]  ;;  %v9426_v51 = vld [vmem:[%s7154_s30 + $0x50] sm:$0xff] }
 0x34c   : > { %v2509_v35 = vrot.slane %v2356_v39, 4  ;;  %6832 = vrcp.f32 %v2344_v31  ;;  %v12635_v39 = vld [vmem:[#allocation51_spill] sm:$0xff]  ;;  %v12642_v31 = vld [vmem:[#allocation58_spill] sm:$0xff] }
 0x34e   : > { %2576 = vmatprep.mubr.f32.mxu0 %v2509_v35  ;;  %2647 = vmatprep.mubr.f32.mxu1 %v2509_v35  ;;  %v12636_v35 = vld [vmem:[#allocation52_spill] sm:$0xff] }
 0x356   : > { %v6827_v40 = vpop.eup %6826 }
 0x357   : > { %v6829_v36 = vpop.eup %6828 }
 0x358   : > { %v6831_v42 = vpop.eup %6830  ;;  %v2351_v29 = vmul.f32 %v6829_v36, %v6827_v40  ;;  %v12638_v40 = vld [vmem:[#allocation54_spill] sm:$0xff]  ;;  %v12639_v36 = vld [vmem:[#allocation55_spill] sm:$0xff] }
 0x359   : > { %v2350_v52 = vmul.f32 %v6831_v42, %v2348_v41  ;;  %v6833_v44 = vpop.eup %6832  ;;  %v12640_v41 = vld [vmem:[#allocation56_spill] sm:$0xff]  ;;  %v12641_v42 = vld [vmem:[#allocation57_spill] sm:$0xff] }
 0x35b   : > { %v8988_v43 = vadd.f32 %v2351_v29, %v2350_v52  ;;  %v12643_v29 = vld [vmem:[#allocation59_spill] sm:$0xff]  ;;  %v12644_v52 = vld [vmem:[#allocation60_spill] sm:$0xff] }
 0x35d   : > { %6834 = vtanh.f32 %v8988_v43 }
 0x36a   : > { %v6835_v45 = vpop.eup %6834 }
 0x36b   : > { %v2354_v15 = vmul.f32 %v6835_v45, %v6833_v44  ;;  %v12645_v44 = vld [vmem:[#allocation61_spill] sm:$0xff]  ;;  %v12646_v45 = vld [vmem:[#allocation62_spill] sm:$0xff] }
 0x36d   : > { %v8991_v46 = vrot.slane %v2354_v15, 4  ;;  %v12647_v15 = vld [vmem:[#allocation63_spill] sm:$0xff] }
 0x36f   : > { %2577 = vmatmul.mubr.f32.vlgmr.msra.gmra.mxu0 %v8991_v46  ;;  %2648 = vmatmul.mubr.f32.vlgmr.msra.gmra.mxu1 %v8991_v46 }
 0x370   : > { %2748 = vmatpush1.msra.mxu0 %v8207_v60  ;;  %2819 = vmatpush1.msra.mxu1 %v8210_v54  ;;  %v12590_v60 = vld [vmem:[#allocation7_spill] sm:$0xff]  ;;  %v12591_v54 = vld [vmem:[#allocation8_spill] sm:$0xff] }
 0x371   : > { %2749 = vmatprep.subr.mxu0 %v8213_v55  ;;  %2820 = vmatprep.subr.mxu1 %v8216_v57  ;;  %v12592_v55 = vld [vmem:[#allocation9_spill] sm:$0xff]  ;;  %v12593_v57 = vld [vmem:[#allocation10_spill] sm:$0xff] }
 0x372   : > { %2750 = vmatpush1.msra.mxu0 %v8221_v9  ;;  %2821 = vmatpush1.msra.mxu1 %v8224_v7  ;;  %v12594_v9 = vld [vmem:[#allocation11_spill] sm:$0xff]  ;;  %v12595_v7 = vld [vmem:[#allocation12_spill] sm:$0xff] }
 0x373   : > { %2751 = vmatprep.subr.mxu0 %v8229_v0  ;;  %2822 = vmatprep.subr.mxu1 %v8232_v11  ;;  %v12596_v0 = vld [vmem:[#allocation13_spill] sm:$0xff]  ;;  %v12597_v11 = vld [vmem:[#allocation14_spill] sm:$0xff] }
 0x374   : > { %2752 = vmatpush1.msra.mxu0 %v8237_v56  ;;  %2823 = vmatpush1.msra.mxu1 %v8240_v5  ;;  %v12598_v56 = vld [vmem:[#allocation15_spill] sm:$0xff]  ;;  %v12599_v5 = vld [vmem:[#allocation16_spill] sm:$0xff] }
 0x375   : > { %2753 = vmatprep.subr.mxu0 %v8245_v3  ;;  %2824 = vmatprep.subr.mxu1 %v8248_v6  ;;  %v12600_v3 = vld [vmem:[#allocation17_spill] sm:$0xff]  ;;  %v12601_v6 = vld [vmem:[#allocation18_spill] sm:$0xff] }
 0x376   : > { %2754 = vmatpush1.msra.mxu0 %v8253_v62  ;;  %2825 = vmatpush1.msra.mxu1 %v8256_v4  ;;  %v12602_v62 = vld [vmem:[#allocation19_spill] sm:$0xff]  ;;  %v12603_v4 = vld [vmem:[#allocation20_spill] sm:$0xff] }
 0x377   : > { %2755 = vmatprep.subr.mxu0 %v8261_v1  ;;  %2826 = vmatprep.subr.mxu1 %v8264_v8  ;;  %v12604_v1 = vld [vmem:[#allocation21_spill] sm:$0xff]  ;;  %v12605_v8 = vld [vmem:[#allocation22_spill] sm:$0xff]  ;;  %12755 = vst [vmem:[#allocation19_spill] sm:$0xff] %v9426_v51 }
 0x378   : > { %2756 = vmatpush1.msra.mxu0 %v8269_v63  ;;  %2827 = vmatpush1.msra.mxu1 %v8272_v61  ;;  %v12606_v63 = vld [vmem:[#allocation23_spill] sm:$0xff]  ;;  %v12607_v61 = vld [vmem:[#allocation24_spill] sm:$0xff] }
 0x379   : > { %2757 = vmatprep.subr.mxu0 %v8277_v59  ;;  %2828 = vmatprep.subr.mxu1 %v8280_v58  ;;  %v12608_v59 = vld [vmem:[#allocation25_spill] sm:$0xff]  ;;  %v12609_v58 = vmov 0.0  }
 0x37a   : > { %2758 = vmatpush1.msra.mxu0 %v8285_v10  ;;  %2829 = vmatpush1.msra.mxu1 %v8288_v2  ;;  %v12610_v10 = vld [vmem:[#allocation26_spill] sm:$0xff]  ;;  %v12611_v2 = vld [vmem:[#allocation27_spill] sm:$0xff] }
 0x37b   : > { %2759 = vmatprep.subr.mxu0 %v8293_v12  ;;  %2830 = vmatprep.subr.mxu1 %v8296_v13  ;;  %v12612_v12 = vld [vmem:[#allocation28_spill] sm:$0xff]  ;;  %v12613_v13 = vld [vmem:[#allocation29_spill] sm:$0xff] }
 0x37c   : > { %2760 = vmatpush1.msra.mxu0 %v8301_v14  ;;  %2831 = vmatpush1.msra.mxu1 %v8304_v16  ;;  %v12614_v14 = vld [vmem:[#allocation30_spill] sm:$0xff]  ;;  %v12615_v16 = vld [vmem:[#allocation31_spill] sm:$0xff] }
 0x37d   : > { %2761 = vmatprep.subr.mxu0 %v8309_v17  ;;  %2832 = vmatprep.subr.mxu1 %v8312_v18  ;;  %v12616_v17 = vld [vmem:[#allocation32_spill] sm:$0xff]  ;;  %v12617_v18 = vld [vmem:[#allocation33_spill] sm:$0xff] }
 0x37e   : > { %2762 = vmatpush1.msra.mxu0 %v8317_v19  ;;  %2833 = vmatpush1.msra.mxu1 %v8320_v20  ;;  %v12618_v19 = vld [vmem:[#allocation34_spill] sm:$0xff]  ;;  %v12619_v20 = vld [vmem:[#allocation35_spill] sm:$0xff] }
 0x37f   : > { %2763 = vmatprep.subr.mxu0 %v8325_v21  ;;  %2834 = vmatprep.subr.mxu1 %v8328_v22  ;;  %v12620_v21 = vld [vmem:[#allocation36_spill] sm:$0xff]  ;;  %v12621_v22 = vld [vmem:[#allocation37_spill] sm:$0xff] }
 0x380   : > { %2764 = vmatpush1.msra.mxu0 %v8333_v23  ;;  %2835 = vmatpush1.msra.mxu1 %v8336_v24  ;;  %v12622_v23 = vld [vmem:[#allocation38_spill] sm:$0xff]  ;;  %v12623_v24 = vld [vmem:[#allocation39_spill] sm:$0xff] }
 0x381   : > { %2765 = vmatprep.subr.mxu0 %v8341_v25  ;;  %2836 = vmatprep.subr.mxu1 %v8344_v26  ;;  %v12624_v25 = vld [vmem:[#allocation40_spill] sm:$0xff]  ;;  %v12625_v26 = vld [vmem:[#allocation41_spill] sm:$0xff] }
 0x382   : > { %2766 = vmatpush1.msra.mxu0 %v8349_v27  ;;  %2837 = vmatpush1.msra.mxu1 %v8352_v28  ;;  %v12626_v27 = vld [vmem:[#allocation42_spill] sm:$0xff]  ;;  %v12627_v28 = vld [vmem:[#allocation43_spill] sm:$0xff] }
 0x383   : > { %2767 = vmatprep.subr.mxu0 %v8357_v30  ;;  %2838 = vmatprep.subr.mxu1 %v8360_v32  ;;  %v12628_v30 = vld [vmem:[#allocation44_spill] sm:$0xff]  ;;  %v12629_v32 = vld [vmem:[#allocation45_spill] sm:$0xff] }
 0x384   : > { %2768 = vmatpush1.msra.mxu0 %v8365_v33  ;;  %2839 = vmatpush1.msra.mxu1 %v12589_v47  ;;  %v12630_v33 = vld [vmem:[#allocation46_spill] sm:$0xff]  ;;  %v12649_v47 = vld [vmem:[#allocation65_spill] sm:$0xff] }
 0x385   : > { %2769 = vmatprep.subr.mxu0 %v12590_v60  ;;  %2840 = vmatprep.subr.mxu1 %v12591_v54  ;;  %v12650_v60 = vld [vmem:[#allocation66_spill] sm:$0xff]  ;;  %v12651_v54 = vld [vmem:[#allocation67_spill] sm:$0xff] }
 0x386   : > { %2770 = vmatpush1.msra.mxu0 %v12592_v55  ;;  %2841 = vmatpush1.msra.mxu1 %v12593_v57  ;;  %v12652_v55 = vld [vmem:[#allocation68_spill] sm:$0xff]  ;;  %v12653_v57 = vld [vmem:[#allocation69_spill] sm:$0xff] }
 0x387   : > { %2771 = vmatprep.subr.mxu0 %v12594_v9  ;;  %2842 = vmatprep.subr.mxu1 %v12595_v7  ;;  %v12654_v9 = vld [vmem:[#allocation70_spill] sm:$0xff]  ;;  %v12655_v7 = vld [vmem:[#allocation71_spill] sm:$0xff] }
 0x388   : > { %2772 = vmatpush1.msra.mxu0 %v12596_v0  ;;  %2843 = vmatpush1.msra.mxu1 %v12597_v11  ;;  %v12656_v0 = vld [vmem:[#allocation72_spill] sm:$0xff]  ;;  %v12657_v11 = vld [vmem:[#allocation73_spill] sm:$0xff] }
 0x389   : > { %2773 = vmatprep.subr.mxu0 %v12598_v56  ;;  %2844 = vmatprep.subr.mxu1 %v12599_v5  ;;  %v12658_v56 = vld [vmem:[#allocation74_spill] sm:$0xff]  ;;  %v12659_v5 = vld [vmem:[#allocation75_spill] sm:$0xff] }
 0x38a   : > { %2774 = vmatpush1.msra.mxu0 %v12600_v3  ;;  %2845 = vmatpush1.msra.mxu1 %v12601_v6  ;;  %v12660_v3 = vld [vmem:[#allocation76_spill] sm:$0xff]  ;;  %v12661_v6 = vld [vmem:[#allocation77_spill] sm:$0xff] }
 0x38b   : > { %2775 = vmatprep.subr.mxu0 %v12602_v62  ;;  %2846 = vmatprep.subr.mxu1 %v12603_v4  ;;  %v12662_v62 = vld [vmem:[#allocation78_spill] sm:$0xff]  ;;  %v12663_v4 = vld [vmem:[#allocation79_spill] sm:$0xff] }
 0x38c   : > { %2776 = vmatpush1.msra.mxu0 %v12604_v1  ;;  %2847 = vmatpush1.msra.mxu1 %v12605_v8  ;;  %v12664_v1 = vld [vmem:[#allocation80_spill] sm:$0xff]  ;;  %v12665_v8 = vld [vmem:[#allocation81_spill] sm:$0xff] }
 0x38d   : > { %2777 = vmatprep.subr.mxu0 %v12606_v63  ;;  %2848 = vmatprep.subr.mxu1 %v12607_v61  ;;  %v12666_v63 = vld [vmem:[#allocation82_spill] sm:$0xff]  ;;  %v12667_v61 = vld [vmem:[#allocation83_spill] sm:$0xff] }
 0x38e   : > { %2778 = vmatpush1.msra.mxu0 %v12608_v59  ;;  %2811 = vmatprep.mubr.f32.mxu0 %v12609_v58  ;;  %v12668_v59 = vld [vmem:[#allocation84_spill] sm:$0xff] }
 0x38f   : > { %2849 = vmatpush1.msra.mxu1 %v12610_v10  ;;  %2882 = vmatprep.mubr.f32.mxu1 %v12609_v58  ;;  %v12669_v10 = vld [vmem:[#allocation85_spill] sm:$0xff] }
 0x390   : > { %2812 = vmatmul.mubr.f32.vlgmr.msra.gmra.mxu0 %v8991_v46  ;;  %2883 = vmatmul.mubr.f32.vlgmr.msra.gmra.mxu1 %v8991_v46  ;;  %v12648_v46 = vld [vmem:[#allocation64_spill] sm:$0xff] }
 0x391   : > { %3089 = vmatprep.subr.mxu0 %v12611_v2  ;;  %3160 = vmatprep.subr.mxu1 %v12612_v12  ;;  %v12670_v2 = vld [vmem:[#allocation86_spill] sm:$0xff]  ;;  %v12671_v12 = vld [vmem:[#allocation87_spill] sm:$0xff] }
 0x392   : > { %3090 = vmatpush1.msra.mxu0 %v12613_v13  ;;  %3161 = vmatpush1.msra.mxu1 %v12614_v14  ;;  %v12672_v13 = vld [vmem:[#allocation88_spill] sm:$0xff]  ;;  %v12673_v14 = vld [vmem:[#allocation89_spill] sm:$0xff] }
 0x393   : > { %3091 = vmatprep.subr.mxu0 %v12615_v16  ;;  %3162 = vmatprep.subr.mxu1 %v12616_v17  ;;  %v12674_v16 = vld [vmem:[#allocation90_spill] sm:$0xff]  ;;  %v12675_v17 = vld [vmem:[#allocation91_spill] sm:$0xff] }
 0x394   : > { %3092 = vmatpush1.msra.mxu0 %v12617_v18  ;;  %3163 = vmatpush1.msra.mxu1 %v12618_v19  ;;  %v12676_v18 = vld [vmem:[#allocation92_spill] sm:$0xff]  ;;  %v12677_v19 = vld [vmem:[#allocation93_spill] sm:$0xff] }
 0x395   : > { %3093 = vmatprep.subr.mxu0 %v12619_v20  ;;  %3164 = vmatprep.subr.mxu1 %v12620_v21  ;;  %v12678_v20 = vld [vmem:[#allocation94_spill] sm:$0xff]  ;;  %v12679_v21 = vld [vmem:[#allocation95_spill] sm:$0xff] }
 0x396   : > { %3094 = vmatpush1.msra.mxu0 %v12621_v22  ;;  %3165 = vmatpush1.msra.mxu1 %v12622_v23  ;;  %v12680_v22 = vld [vmem:[#allocation96_spill] sm:$0xff]  ;;  %v12681_v23 = vld [vmem:[#allocation97_spill] sm:$0xff] }
 0x397   : > { %3095 = vmatprep.subr.mxu0 %v12623_v24  ;;  %3166 = vmatprep.subr.mxu1 %v12624_v25  ;;  %v12682_v24 = vld [vmem:[#allocation98_spill] sm:$0xff]  ;;  %v12683_v25 = vld [vmem:[#allocation99_spill] sm:$0xff] }
 0x398   : > { %3096 = vmatpush1.msra.mxu0 %v12625_v26  ;;  %3167 = vmatpush1.msra.mxu1 %v12626_v27  ;;  %v12684_v26 = vld [vmem:[#allocation100_spill] sm:$0xff]  ;;  %v12685_v27 = vld [vmem:[#allocation101_spill] sm:$0xff] }
 0x399   : > { %3097 = vmatprep.subr.mxu0 %v12627_v28  ;;  %3168 = vmatprep.subr.mxu1 %v12628_v30  ;;  %v12686_v28 = vld [vmem:[#allocation102_spill] sm:$0xff]  ;;  %v12687_v30 = vld [vmem:[#allocation103_spill] sm:$0xff] }
 0x39a   : > { %3098 = vmatpush1.msra.mxu0 %v12629_v32  ;;  %3169 = vmatpush1.msra.mxu1 %v12630_v33  ;;  %v12688_v32 = vld [vmem:[#allocation104_spill] sm:$0xff]  ;;  %v12689_v33 = vld [vmem:[#allocation105_spill] sm:$0xff] }
 0x39b   : > { %3099 = vmatprep.subr.mxu0 %v12631_v48  ;;  %3170 = vmatprep.subr.mxu1 %v12632_v53  ;;  %v12690_v48 = vld [vmem:[#allocation106_spill] sm:$0xff]  ;;  %v12691_v53 = vld [vmem:[#allocation107_spill] sm:$0xff] }
 0x39c   : > { %3100 = vmatpush1.msra.mxu0 %v12633_v50  ;;  %3171 = vmatpush1.msra.mxu1 %v12634_v37  ;;  %v12692_v50 = vld [vmem:[#allocation108_spill] sm:$0xff]  ;;  %v12693_v37 = vld [vmem:[#allocation109_spill] sm:$0xff] }
 0x39d   : > { %3101 = vmatprep.subr.mxu0 %v12635_v39  ;;  %3172 = vmatprep.subr.mxu1 %v12636_v35  ;;  %v12694_v39 = vld [vmem:[#allocation110_spill] sm:$0xff]  ;;  %v12695_v35 = vld [vmem:[#allocation111_spill] sm:$0xff] }
 0x39e   : > { %3102 = vmatpush1.msra.mxu0 %v12637_v34  ;;  %3173 = vmatpush1.msra.mxu1 %v12638_v40  ;;  %v12696_v34 = vld [vmem:[#allocation112_spill] sm:$0xff]  ;;  %v12697_v40 = vld [vmem:[#allocation113_spill] sm:$0xff] }
 0x39f   : > { %3103 = vmatprep.subr.mxu0 %v12639_v36  ;;  %3174 = vmatprep.subr.mxu1 %v12640_v41  ;;  %v12698_v36 = vld [vmem:[#allocation114_spill] sm:$0xff]  ;;  %v12699_v41 = vld [vmem:[#allocation115_spill] sm:$0xff] }
 0x3a0   : > { %3104 = vmatpush1.msra.mxu0 %v12641_v42  ;;  %3175 = vmatpush1.msra.mxu1 %v12642_v31  ;;  %v12700_v42 = vld [vmem:[#allocation116_spill] sm:$0xff]  ;;  %v12701_v31 = vld [vmem:[#allocation117_spill] sm:$0xff] }
 0x3a1   : > { %3105 = vmatprep.subr.mxu0 %v12643_v29  ;;  %3176 = vmatprep.subr.mxu1 %v12644_v52  ;;  %v12702_v29 = vld [vmem:[#allocation118_spill] sm:$0xff]  ;;  %v12703_v52 = vld [vmem:[#allocation119_spill] sm:$0xff] }
 0x3a2   : > { %3106 = vmatpush1.msra.mxu0 %v12645_v44  ;;  %3177 = vmatpush1.msra.mxu1 %v12646_v45  ;;  %v12704_v44 = vld [vmem:[#allocation120_spill] sm:$0xff]  ;;  %v12705_v45 = vld [vmem:[#allocation121_spill] sm:$0xff] }
 0x3a3   : > { %3107 = vmatprep.subr.mxu0 %v12647_v15  ;;  %3178 = vmatprep.subr.mxu1 %v12648_v46  ;;  %v12706_v15 = vld [vmem:[#allocation122_spill] sm:$0xff]  ;;  %v12707_v46 = vld [vmem:[#allocation123_spill] sm:$0xff] }
 0x3a4   : > { %3108 = vmatpush1.msra.mxu0 %v12649_v47  ;;  %3179 = vmatpush1.msra.mxu1 %v12650_v60  ;;  %v12708_v47 = vld [vmem:[#allocation124_spill] sm:$0xff]  ;;  %v12709_v60 = vld [vmem:[#allocation125_spill] sm:$0xff] }
 0x3a5   : > { %3109 = vmatprep.subr.mxu0 %v12651_v54  ;;  %3180 = vmatprep.subr.mxu1 %v12652_v55  ;;  %v12710_v54 = vld [vmem:[#allocation126_spill] sm:$0xff]  ;;  %v12711_v55 = vld [vmem:[#allocation127_spill] sm:$0xff] }
 0x3a6   : > { %3110 = vmatpush1.msra.mxu0 %v12653_v57  ;;  %3181 = vmatpush1.msra.mxu1 %v12654_v9  ;;  %v12712_v57 = vld [vmem:[#allocation128_spill] sm:$0xff]  ;;  %v12713_v9 = vld [vmem:[#allocation129_spill] sm:$0xff] }
 0x3a7   : > { %3111 = vmatprep.subr.mxu0 %v12655_v7  ;;  %3182 = vmatprep.subr.mxu1 %v12656_v0  ;;  %v12714_v7 = vld [vmem:[#allocation130_spill] sm:$0xff]  ;;  %v12715_v0 = vld [vmem:[#allocation131_spill] sm:$0xff] }
 0x3a8   : > { %3112 = vmatpush1.msra.mxu0 %v12657_v11  ;;  %3183 = vmatpush1.msra.mxu1 %v12658_v56  ;;  %v12716_v11 = vld [vmem:[#allocation132_spill] sm:$0xff]  ;;  %v12717_v56 = vld [vmem:[#allocation133_spill] sm:$0xff] }
 0x3a9   : > { %3113 = vmatprep.subr.mxu0 %v12659_v5  ;;  %3184 = vmatprep.subr.mxu1 %v12660_v3  ;;  %v12718_v5 = vld [vmem:[#allocation134_spill] sm:$0xff]  ;;  %v12719_v3 = vld [vmem:[#allocation135_spill] sm:$0xff] }
 0x3aa   : > { %3114 = vmatpush1.msra.mxu0 %v12661_v6  ;;  %3185 = vmatpush1.msra.mxu1 %v12662_v62  ;;  %v12720_v6 = vld [vmem:[#allocation136_spill] sm:$0xff]  ;;  %v12721_v62 = vld [vmem:[#allocation137_spill] sm:$0xff] }
 0x3ab   : > { %3115 = vmatprep.subr.mxu0 %v12663_v4  ;;  %3186 = vmatprep.subr.mxu1 %v12664_v1  ;;  %v12722_v4 = vld [vmem:[#allocation138_spill] sm:$0xff]  ;;  %v12723_v1 = vld [vmem:[#allocation139_spill] sm:$0xff] }
 0x3ac   : > { %3116 = vmatpush1.msra.mxu0 %v12665_v8  ;;  %3187 = vmatpush1.msra.mxu1 %v12666_v63  ;;  %v12724_v8 = vld [vmem:[#allocation140_spill] sm:$0xff]  ;;  %v12725_v63 = vld [vmem:[#allocation141_spill] sm:$0xff] }
 0x3ad   : > { %3117 = vmatprep.subr.mxu0 %v12667_v61  ;;  %3188 = vmatprep.subr.mxu1 %v12668_v59  ;;  %v12726_v61 = vld [vmem:[#allocation142_spill] sm:$0xff]  ;;  %v12727_v59 = vld [vmem:[#allocation143_spill] sm:$0xff] }
 0x3ae   : > { %3118 = vmatpush1.msra.mxu0 %v12669_v10  ;;  %3189 = vmatpush1.msra.mxu1 %v12670_v2  ;;  %v12728_v10 = vld [vmem:[#allocation144_spill] sm:$0xff]  ;;  %v12729_v2 = vld [vmem:[#allocation145_spill] sm:$0xff] }
 0x3af   : > { %3119 = vmatprep.subr.mxu0 %v12671_v12  ;;  %3190 = vmatprep.subr.mxu1 %v12672_v13  ;;  %v12730_v12 = vld [vmem:[#allocation146_spill] sm:$0xff]  ;;  %v12731_v13 = vld [vmem:[#allocation147_spill] sm:$0xff] }
 0x3b0   : > { %3120 = vmatpush1.msra.mxu0 %v12673_v14  ;;  %3191 = vmatpush1.msra.mxu1 %v12674_v16  ;;  %v12732_v14 = vld [vmem:[#allocation148_spill] sm:$0xff]  ;;  %v12733_v16 = vld [vmem:[#allocation149_spill] sm:$0xff] }
 0x3b1   : > { %3121 = vmatprep.subr.mxu0 %v12675_v17  ;;  %3192 = vmatprep.subr.mxu1 %v12676_v18  ;;  %v12734_v17 = vld [vmem:[#allocation150_spill] sm:$0xff] }
 0x3b2   : > { %3122 = vmatpush2.msra.mxu0 %v12677_v19  ;;  %3193 = vmatpush2.msra.mxu1 %v12678_v20  ;;  %v12735_v18 = vld [vmem:[#allocation154_spill] sm:$0xff]  ;;  %v12736_v19 = vld [vmem:[#allocation155_spill] sm:$0xff]  ;;  %v12737_v20 = vld [vmem:[#allocation156_spill] sm:$0xff] }
 0x3b3   : > { %3123 = vmatprep.subr.mxu0 %v12679_v21  ;;  %3194 = vmatprep.subr.mxu1 %v12680_v22  ;;  %v12738_v21 = vld [vmem:[#allocation157_spill] sm:$0xff]  ;;  %v9190_v22 = vld [vmem:[%s7154_s30 + $0x1e8] sm:$0xff] }
 0x3b4   : > { %3124 = vmatpush2.msra.mxu0 %v12681_v23  ;;  %3195 = vmatpush2.msra.mxu1 %v12682_v24  ;;  %v9193_v23 = vld [vmem:[%s7154_s30 + $0x1f8] sm:$0xff]  ;;  %v2485_v24 = vld [vmem:[%s8186_s20] sm:$0xf] }
 0x3b5   : > { %3125 = vmatprep.subr.mxu0 %v12683_v25  ;;  %3196 = vmatprep.subr.mxu1 %v12684_v26  ;;  %v12739_v25 = vld [vmem:[#allocation151_spill] sm:$0xff] }
 0x3b6   : > { %3126 = vmatpush2.msra.mxu0 %v12685_v27  ;;  %3197 = vmatpush2.msra.mxu1 %v12686_v28  ;;  %v2490_v26 = vrot.slane %v2485_v24, %v12739_v25  ;;  %v12740_v27 = vld [vmem:[#allocation153_spill] sm:$0xff] }
 0x3b7   : > { %3127 = vmatprep.subr.mxu0 %v12687_v30  ;;  %3198 = vmatprep.subr.mxu1 %v12688_v32  ;;  %v2494_v28 = vrot.slane %v2485_v24, %v12740_v27 }
 0x3b8   : > { %3128 = vmatpush2.msra.mxu0 %v12689_v33  ;;  %3199 = vmatpush2.msra.mxu1 %v12690_v48 }
 0x3b9   : > { %3129 = vmatprep.subr.mxu0 %v12691_v53  ;;  %3200 = vmatprep.subr.mxu1 %v12692_v50 }
 0x3ba   : > { %3130 = vmatpush2.msra.mxu0 %v12693_v37  ;;  %3201 = vmatpush2.msra.mxu1 %v12694_v39  ;;  %v2502_v39 = vrot.slane %v2485_v24, %v12436_v49 }
 0x3bb   : > { %3131 = vmatprep.subr.mxu0 %v12695_v35  ;;  %3202 = vmatprep.subr.mxu1 %v12696_v34 }
 0x3bc   : > { %3132 = vmatpush2.msra.mxu0 %v12697_v40  ;;  %3203 = vmatpush2.msra.mxu1 %v12698_v36  ;;  %v12741_v40 = vld [vmem:[#allocation152_spill] sm:$0xff] }
 0x3bd   : > { %3133 = vmatprep.subr.mxu0 %v12699_v41  ;;  %3204 = vmatprep.subr.mxu1 %v12700_v42  ;;  %v2498_v36 = vrot.slane %v2485_v24, %v12741_v40 }
 0x3be   : > { %3134 = vmatpush2.msra.mxu0 %v12701_v31  ;;  %3205 = vmatpush2.msra.mxu1 %v12702_v29 }
 0x3bf   : > { %3135 = vmatprep.subr.mxu0 %v12703_v52  ;;  %3206 = vmatprep.subr.mxu1 %v12704_v44 }
 0x3c0   : > { %3136 = vmatpush2.msra.mxu0 %v12705_v45  ;;  %3207 = vmatpush2.msra.mxu1 %v12706_v15 }
 0x3c1   : > { %3137 = vmatprep.subr.mxu0 %v12707_v46  ;;  %3208 = vmatprep.subr.mxu1 %v12708_v47 }
 0x3c2   : > { %3138 = vmatpush2.msra.mxu0 %v12709_v60  ;;  %3209 = vmatpush2.msra.mxu1 %v12710_v54 }
 0x3c3   : > { %3139 = vmatprep.subr.mxu0 %v12711_v55  ;;  %3210 = vmatprep.subr.mxu1 %v12712_v57  ;;  %v2679_v55 = vld [vmem:[#allocation2 + $0x30] sm:$0xc0] }
 0x3c4   : > { %3140 = vmatpush2.msra.mxu0 %v12713_v9  ;;  %3211 = vmatpush2.msra.mxu1 %v12714_v7 }
 0x3c5   : > { %3141 = vmatprep.subr.mxu0 %v12715_v0  ;;  %3212 = vmatprep.subr.mxu1 %v12716_v11 }
 0x3c6   : > { %3142 = vmatpush2.msra.mxu0 %v12717_v56  ;;  %3213 = vmatpush2.msra.mxu1 %v12718_v5 }
 0x3c7   : > { %3143 = vmatprep.subr.mxu0 %v12719_v3  ;;  %3214 = vmatprep.subr.mxu1 %v12720_v6  ;;  %v2680_v3 = vld [vmem:[#allocation2] sm:$0xc0] }
 0x3c8   : > { %3144 = vmatpush2.msra.mxu0 %v12721_v62  ;;  %3215 = vmatpush2.msra.mxu1 %v12722_v4 }
 0x3c9   : > { %3145 = vmatprep.subr.mxu0 %v12723_v1  ;;  %3216 = vmatprep.subr.mxu1 %v12724_v8 }
 0x3ca   : > { %3146 = vmatpush2.msra.mxu0 %v12725_v63  ;;  %3217 = vmatpush2.msra.mxu1 %v12726_v61  ;;  %v2682_v61 = vld [vmem:[#allocation2 + $0x10] sm:$0xc0] }
 0x3cb   : > { %3147 = vmatprep.subr.mxu0 %v12727_v59  ;;  %3218 = vmatprep.subr.mxu1 %v12728_v10 }
 0x3cc   : > { %3148 = vmatpush2.msra.mxu0 %v12729_v2  ;;  %3219 = vmatpush2.msra.mxu1 %v12730_v12 }
 0x3cd   : > { %3149 = vmatprep.subr.mxu0 %v12731_v13  ;;  %3220 = vmatprep.subr.mxu1 %v12732_v14  ;;  %v2681_v13 = vld [vmem:[#allocation2 + $0x18] sm:$0xc0] }
 0x3ce   : > { %3150 = vmatpush2.msra.mxu0 %v12733_v16  ;;  %3221 = vmatpush2.msra.mxu1 %v12734_v17 }
 0x3cf   : > { %3151 = vmatprep.subr.mxu0 %v12735_v18  ;;  %3222 = vmatprep.subr.mxu1 %v12736_v19 }
 0x3d0   : > { %3152 = vmatpush2.msra.mxu0 %v12737_v20  ;;  %3223 = vmatpush2.msra.mxu1 %v12738_v21 }
 0x3d1   : > { %3324 = vmatprep.subr.mxu0 %v9190_v22  ;;  %3395 = vmatprep.subr.mxu1 %v9193_v23 }
 0x42f   : > { %v2578_v30 = vpop.f32.mrf.mxu0  ;;  %v2649_v50 = vpop.f32.mrf.mxu1 }
 0x430   : > { %v2579_v32 = vadd.f32 %v2578_v30, %v2490_v26  ;;  %v2650_v31 = vadd.f32 %v2649_v50, %v2498_v36 }
 0x431   : > { %v2580_v33 = vpop.f32.mrf.mxu0  ;;  %v2651_v35 = vpop.f32.mrf.mxu1 }
 0x432   : > { %v6608_v48 = vmul.f32 -1.442695, %v2579_v32  ;;  %v2581_v53 = vadd.f32 %v2580_v33, %v2494_v28  ;;  %v2652_v34 = vadd.f32 %v2651_v35, %v2502_v39  ;;  %v2925_v32 = vrot.slane %v8988_v43, 6  ;;  %v9217_v43 = vld [vmem:[%s7154_s30 + $0x1e0] sm:$0xff] }
 0x434   : > { %6836 = vpow2.f32 %v6608_v48  ;;  %v6609_v37 = vmul.f32 -1.442695, %v2581_v53  ;;  %v6610_v41 = vmul.f32 -1.442695, %v2652_v34 }
 0x436   : > { %6838 = vpow2.f32 %v6609_v37 }
 0x437   : > { %6840 = vpow2.f32 %v6610_v41  ;;  %v9220_v41 = vld [vmem:[%s7154_s30 + $0x1f0] sm:$0xff] }
 0x441   : > { %v6837_v42 = vpop.eup %6836 }
 0x442   : > { %v2657_v29 = vadd.f32 1.0, %v6837_v42  ;;  %v9223_v42 = vld [vmem:[%s7154_s30 + $0x1c8] sm:$0xff] }
 0x443   : > { %v6839_v52 = vpop.eup %6838 }
 0x444   : > { %6842 = vrcp.f32 %v2657_v29  ;;  %v2663_v44 = vadd.f32 1.0, %v6839_v52  ;;  %v6841_v45 = vpop.eup %6840  ;;  %v9231_v29 = vld [vmem:[%s7154_s30 + $0x1c0] sm:$0xff]  ;;  %v9234_v52 = vld [vmem:[%s7154_s30 + $0x1d0] sm:$0xff] }
 0x445   : > { %6844 = vtanh.f32 %v2650_v31  ;;  %v2670_v54 = vadd.f32 1.0, %v6841_v45  ;;  %v9226_v31 = vld [vmem:[%s7154_s30 + $0x1d8] sm:$0xff] }
 0x446   : > { %6846 = vrcp.f32 %v2663_v44  ;;  %v9239_v44 = vld [vmem:[%s7154_s30 + $0x1a8] sm:$0xff]  ;;  %v9242_v45 = vld [vmem:[%s7154_s30 + $0x1b8] sm:$0xff] }
 0x447   : > { %6848 = vrcp.f32 %v2670_v54  ;;  %v9263_v54 = vld [vmem:[%s7154_s30 + $0x180] sm:$0xff] }
 0x450   : > { %v2813_v15 = vpop.f32.mrf.mxu0  ;;  %v2884_v0 = vpop.f32.mrf.mxu1 }
 0x451   : > { %v6843_v46 = vpop.eup %6842  ;;  %v2893_v47 = vrot.slane %v2813_v15, 2  ;;  %v2895_v10 = vrot.slane %v2884_v0, 2  ;;  %v9247_v15 = vld [vmem:[%s7154_s30 + $0x1a0] sm:$0xff]  ;;  %v9282_v0 = vld [vmem:[%s7154_s30 + $0x170] sm:$0xff] }
 0x452   : > { %v6845_v60 = vpop.eup %6844  ;;  %v2815_v57 = vpop.f32.mrf.mxu0 }
 0x453   : > { %v6847_v9 = vpop.eup %6846  ;;  %v2901_v7 = vadd.f32 %v2893_v47, %v2679_v55  ;;  %v2894_v11 = vrot.slane %v2815_v57, 2  ;;  %v2674_v56 = vmul.f32 %v6845_v60, %v6843_v46  ;;  %v2886_v8 = vpop.f32.mrf.mxu1  ;;  %v2903_v14 = vadd.f32 %v2895_v10, %v2681_v13  ;;  %v9250_v46 = vld [vmem:[%s7154_s30 + $0x1b0] sm:$0xff]  ;;  %v9255_v47 = vld [vmem:[%s7154_s30 + $0x188] sm:$0xff]  ;;  %v9258_v60 = vld [vmem:[%s7154_s30 + $0x198] sm:$0xff] }
 0x454   : > { %v2673_v5 = vmul.f32 %v6847_v9, %v8980_v38  ;;  %v2896_v63 = vrot.slane %v2886_v8, 2  ;;  %v6849_v12 = vpop.eup %6848  ;;  %v9266_v55 = vld [vmem:[%s7154_s30 + $0x190] sm:$0xff]  ;;  %v9271_v57 = vld [vmem:[%s7154_s30 + $0x168] sm:$0xff]  ;;  %v9274_v9 = vld [vmem:[%s7154_s30 + $0x178] sm:$0xff] }
 0x455   : > { %v6611_v6 = vmul.f32 -1.442695, %v2901_v7  ;;  %v2902_v62 = vadd.f32 %v2894_v11, %v2680_v3  ;;  %v9279_v7 = vld [vmem:[%s7154_s30 + $0x160] sm:$0xff]  ;;  %v9287_v11 = vld [vmem:[%s7154_s30 + $0x148] sm:$0xff]  ;;  %v9298_v3 = vld [vmem:[%s7154_s30 + $0x150] sm:$0xff] }
 0x456   : > { %v9203_v4 = vadd.f32 %v2674_v56, %v2673_v5  ;;  %v2904_v59 = vadd.f32 %v2896_v63, %v2682_v61  ;;  %v9290_v56 = vld [vmem:[%s7154_s30 + $0x158] sm:$0xff]  ;;  %v9295_v5 = vld [vmem:[%s7154_s30 + $0x140] sm:$0xff]  ;;  %v9314_v8 = vld [vmem:[%s7154_s30 + $0x130] sm:$0xff] }
 0x457   : > { %6850 = vpow2.f32 %v6611_v6  ;;  %v6612_v1 = vmul.f32 -1.442695, %v2902_v62  ;;  %v9303_v6 = vld [vmem:[%s7154_s30 + $0x128] sm:$0xff]  ;;  %v9306_v62 = vld [vmem:[%s7154_s30 + $0x138] sm:$0xff]  ;;  %v9330_v10 = vld [vmem:[%s7154_s30 + $0x110] sm:$0xff] }
 0x458   : > { %6852 = vtanh.f32 %v9203_v4  ;;  %v6613_v2 = vmul.f32 -1.442695, %v2904_v59  ;;  %v9319_v63 = vld [vmem:[%s7154_s30 + $0x108] sm:$0xff]  ;;  %v9322_v61 = vld [vmem:[%s7154_s30 + $0x118] sm:$0xff]  ;;  %v9327_v59 = vld [vmem:[%s7154_s30 + $0x100] sm:$0xff] }
 0x459   : > { %6854 = vpow2.f32 %v6612_v1  ;;  %v9311_v1 = vld [vmem:[%s7154_s30 + $0x120] sm:$0xff] }
 0x45a   : > { %6856 = vpow2.f32 %v6613_v2  ;;  %v9335_v2 = vld [vmem:[%s7154_s30 + $0xe8] sm:$0xff]  ;;  %v9343_v13 = vld [vmem:[%s7154_s30 + $0xe0] sm:$0xff] }
 0x464   : > { %v6851_v38 = vpop.eup %6850 }
 0x465   : > { %v6853_v16 = vpop.eup %6852  ;;  %v2908_v17 = vadd.f32 1.0, %v6851_v38  ;;  %v9346_v38 = vld [vmem:[%s7154_s30 + $0xf0] sm:$0xff] }
 0x466   : > { %v6855_v18 = vpop.eup %6854  ;;  %v9206_v19 = vmul.f32 %v6853_v16, %v6849_v12  ;;  %v9338_v12 = vld [vmem:[%s7154_s30 + $0xf8] sm:$0xff] }
 0x467   : > { %6858 = vrcp.f32 %v2908_v17  ;;  %v2914_v20 = vadd.f32 1.0, %v6855_v18  ;;  %v6857_v26 = vpop.eup %6856  ;;  %v9354_v16 = vld [vmem:[%s7154_s30 + $0xd8] sm:$0xff]  ;;  %v9359_v17 = vld [vmem:[%s7154_s30 + $0xc0] sm:$0xff]  ;;  %v9362_v18 = vld [vmem:[%s7154_s30 + $0xd0] sm:$0xff] }
 0x468   : > { %12742 = vst [vmem:[#allocation6_spill] sm:$0xff] %v9206_v19  ;;  %6860 = vtanh.f32 %v2903_v14  ;;  %2678 = vst [vmem:[#allocation3 + $0x4] sm:$0x3] %v9206_v19  ;;  %v2933_v21 = vrot.slane %v9206_v19, 2  ;;  %v2921_v48 = vadd.f32 1.0, %v6857_v26  ;;  %v9351_v14 = vld [vmem:[%s7154_s30 + $0xc8] sm:$0xff] }
 0x469   : > { %6862 = vrcp.f32 %v2914_v20  ;;  %v9367_v20 = vld [vmem:[%s7154_s30 + $0xa8] sm:$0xff]  ;;  %v9378_v26 = vld [vmem:[%s7154_s30 + $0xb0] sm:$0xff]  ;;  %v9423_v19 = vld [vmem:[%s7154_s30 + $0x40] sm:$0xff] }
 0x46a   : > { %v3086_v24 = vrot.slane %v2933_v21, 6  ;;  %6864 = vrcp.f32 %v2921_v48  ;;  %v9370_v21 = vld [vmem:[%s7154_s30 + $0xb8] sm:$0xff]  ;;  %12743 = vst [vmem:[#allocation7_spill] sm:$0xff] %v9378_v26  ;;  %v9399_v48 = vld [vmem:[%s7154_s30 + $0x68] sm:$0xff]  ;;  %12754 = vst [vmem:[#allocation18_spill] sm:$0xff] %v9423_v19 }
 0x46b   : > { %12748 = vst [vmem:[#allocation12_spill] sm:$0xff] %v9399_v48 }
 0x46c   : > { %3153 = vmatprep.mubr.f32.mxu0 %v3086_v24  ;;  %3224 = vmatprep.mubr.f32.mxu1 %v3086_v24  ;;  %v9375_v24 = vld [vmem:[%s7154_s30 + $0xa0] sm:$0xff] }
 0x474   : > { %v6859_v28 = vpop.eup %6858 }
 0x475   : > { %v6861_v30 = vpop.eup %6860 }
 0x476   : > { %v6863_v33 = vpop.eup %6862  ;;  %v2928_v53 = vmul.f32 %v6861_v30, %v6859_v28  ;;  %v9383_v28 = vld [vmem:[%s7154_s30 + $0x88] sm:$0xff]  ;;  %v9386_v30 = vld [vmem:[%s7154_s30 + $0x98] sm:$0xff] }
 0x477   : > { %v2927_v50 = vmul.f32 %v6863_v33, %v2925_v32  ;;  %v6865_v39 = vpop.eup %6864  ;;  %12744 = vst [vmem:[#allocation8_spill] sm:$0xff] %v9383_v28  ;;  %12745 = vst [vmem:[#allocation9_spill] sm:$0xff] %v9386_v30  ;;  %v9391_v32 = vld [vmem:[%s7154_s30 + $0x80] sm:$0xff]  ;;  %v9394_v33 = vld [vmem:[%s7154_s30 + $0x90] sm:$0xff] }
 0x478   : > { %12746 = vst [vmem:[#allocation10_spill] sm:$0xff] %v9391_v32  ;;  %12747 = vst [vmem:[#allocation11_spill] sm:$0xff] %v9394_v33 }
 0x479   : > { %v9211_v37 = vadd.f32 %v2928_v53, %v2927_v50  ;;  %v9402_v53 = vld [vmem:[%s7154_s30 + $0x78] sm:$0xff]  ;;  %v9407_v50 = vld [vmem:[%s7154_s30 + $0x60] sm:$0xff] }
 0x47a   : > { %12749 = vst [vmem:[#allocation13_spill] sm:$0xff] %v9402_v53  ;;  %12750 = vst [vmem:[#allocation14_spill] sm:$0xff] %v9407_v50 }
 0x47b   : > { %6866 = vtanh.f32 %v9211_v37 }
 0x488   : > { %v6867_v35 = vpop.eup %6866 }
 0x489   : > { %v2931_v34 = vmul.f32 %v6867_v35, %v6865_v39  ;;  %v9410_v39 = vld [vmem:[%s7154_s30 + $0x70] sm:$0xff]  ;;  %v9415_v35 = vld [vmem:[%s7154_s30 + $0x48] sm:$0xff] }
 0x48a   : > { %12751 = vst [vmem:[#allocation15_spill] sm:$0xff] %v9410_v39  ;;  %12752 = vst [vmem:[#allocation16_spill] sm:$0xff] %v9415_v35 }
 0x48b   : > { %v9214_v36 = vrot.slane %v2931_v34, 6  ;;  %v9418_v34 = vld [vmem:[%s7154_s30 + $0x58] sm:$0xff] }
 0x48c   : > { %12753 = vst [vmem:[#allocation17_spill] sm:$0xff] %v9418_v34 }
 0x48d   : > { %3154 = vmatmul.mubr.f32.vlgmr.msra.gmra.mxu0 %v9214_v36  ;;  %3225 = vmatmul.mubr.f32.vlgmr.msra.gmra.mxu1 %v9214_v36 }
 0x48e   : > { %3325 = vmatpush1.msra.mxu0 %v9217_v43  ;;  %3396 = vmatpush1.msra.mxu1 %v9220_v41 }
 0x48f   : > { %3326 = vmatprep.subr.mxu0 %v9223_v42  ;;  %3397 = vmatprep.subr.mxu1 %v9226_v31 }
 0x490   : > { %3327 = vmatpush1.msra.mxu0 %v9231_v29  ;;  %3398 = vmatpush1.msra.mxu1 %v9234_v52 }
 0x491   : > { %3328 = vmatprep.subr.mxu0 %v9239_v44  ;;  %3399 = vmatprep.subr.mxu1 %v9242_v45 }
 0x492   : > { %3329 = vmatpush1.msra.mxu0 %v9247_v15  ;;  %3400 = vmatpush1.msra.mxu1 %v9250_v46 }
 0x493   : > { %3330 = vmatprep.subr.mxu0 %v9255_v47  ;;  %3401 = vmatprep.subr.mxu1 %v9258_v60 }
 0x494   : > { %3331 = vmatpush1.msra.mxu0 %v9263_v54  ;;  %3402 = vmatpush1.msra.mxu1 %v9266_v55 }
 0x495   : > { %3332 = vmatprep.subr.mxu0 %v9271_v57  ;;  %3403 = vmatprep.subr.mxu1 %v9274_v9 }
 0x496   : > { %3333 = vmatpush1.msra.mxu0 %v9279_v7  ;;  %3404 = vmatpush1.msra.mxu1 %v9282_v0 }
 0x497   : > { %3334 = vmatprep.subr.mxu0 %v9287_v11  ;;  %3405 = vmatprep.subr.mxu1 %v9290_v56 }
 0x498   : > { %3335 = vmatpush1.msra.mxu0 %v9295_v5  ;;  %3406 = vmatpush1.msra.mxu1 %v9298_v3 }
 0x499   : > { %3336 = vmatprep.subr.mxu0 %v9303_v6  ;;  %3407 = vmatprep.subr.mxu1 %v9306_v62 }
 0x49a   : > { %3337 = vmatpush1.msra.mxu0 %v9311_v1  ;;  %3408 = vmatpush1.msra.mxu1 %v9314_v8 }
 0x49b   : > { %3338 = vmatprep.subr.mxu0 %v9319_v63  ;;  %3409 = vmatprep.subr.mxu1 %v9322_v61 }
 0x49c   : > { %3339 = vmatpush1.msra.mxu0 %v9327_v59  ;;  %3410 = vmatpush1.msra.mxu1 %v9330_v10 }
 0x49d   : > { %3340 = vmatprep.subr.mxu0 %v9335_v2  ;;  %3411 = vmatprep.subr.mxu1 %v9338_v12 }
 0x49e   : > { %3341 = vmatpush1.msra.mxu0 %v9343_v13  ;;  %3412 = vmatpush1.msra.mxu1 %v9346_v38 }
 0x49f   : > { %3342 = vmatprep.subr.mxu0 %v9351_v14  ;;  %3413 = vmatprep.subr.mxu1 %v9354_v16 }
 0x4a0   : > { %3343 = vmatpush1.msra.mxu0 %v9359_v17  ;;  %3414 = vmatpush1.msra.mxu1 %v9362_v18 }
 0x4a1   : > { %3344 = vmatprep.subr.mxu0 %v9367_v20  ;;  %3415 = vmatprep.subr.mxu1 %v9370_v21 }
 0x4a2   : > { %3345 = vmatpush1.msra.mxu0 %v9375_v24  ;;  %3416 = vmatpush1.msra.mxu1 %v9378_v26 }
 0x4a3   : > { %3346 = vmatprep.subr.mxu0 %v9383_v28  ;;  %3417 = vmatprep.subr.mxu1 %v9386_v30 }
 0x4a4   : > { %3347 = vmatpush1.msra.mxu0 %v9391_v32  ;;  %3418 = vmatpush1.msra.mxu1 %v9394_v33  ;;  %v9431_v33 = vld [vmem:[%s7154_s30 + $0x28] sm:$0xff]  ;;  %v9434_v32 = vld [vmem:[%s7154_s30 + $0x38] sm:$0xff] }
 0x4a5   : > { %3348 = vmatprep.subr.mxu0 %v9399_v48  ;;  %3419 = vmatprep.subr.mxu1 %v9402_v53  ;;  %12756 = vst [vmem:[#allocation20_spill] sm:$0xff] %v9431_v33  ;;  %12757 = vst [vmem:[#allocation21_spill] sm:$0xff] %v9434_v32  ;;  %v9439_v48 = vld [vmem:[%s7154_s30 + $0x20] sm:$0xff]  ;;  %v9442_v53 = vld [vmem:[%s7154_s30 + $0x30] sm:$0xff] }
 0x4a6   : > { %3349 = vmatpush1.msra.mxu0 %v9407_v50  ;;  %3420 = vmatpush1.msra.mxu1 %v9410_v39  ;;  %12758 = vst [vmem:[#allocation22_spill] sm:$0xff] %v9439_v48  ;;  %12759 = vst [vmem:[#allocation23_spill] sm:$0xff] %v9442_v53  ;;  %v9447_v50 = vld [vmem:[%s7154_s30 + $0x8] sm:$0xff]  ;;  %v9450_v39 = vld [vmem:[%s7154_s30 + $0x18] sm:$0xff] }
 0x4a7   : > { %3350 = vmatprep.subr.mxu0 %v9415_v35  ;;  %3421 = vmatprep.subr.mxu1 %v9418_v34  ;;  %12760 = vst [vmem:[#allocation24_spill] sm:$0xff] %v9447_v50  ;;  %12761 = vst [vmem:[#allocation25_spill] sm:$0xff] %v9450_v39  ;;  %v9455_v35 = vld [vmem:[%s7154_s30] sm:$0xff] }
 0x4a8   : > { %3351 = vmatpush1.msra.mxu0 %v9423_v19  ;;  %3422 = vmatpush1.msra.mxu1 %v9426_v51  ;;  %12762 = vst [vmem:[#allocation26_spill] sm:$0xff] %v9455_v35  ;;  %v9460_v19 = vld [vmem:[%s7154_s30 + $0x10] sm:$0xff] }
 0x4a9   : > { %3352 = vmatprep.subr.mxu0 %v9431_v33  ;;  %3423 = vmatprep.subr.mxu1 %v9434_v32  ;;  %12763 = vst [vmem:[#allocation27_spill] sm:$0xff] %v9460_v19  ;;  %v9883_v32 = vld [vmem:[%s7438_s26 + $0x2a8] sm:$0xff]  ;;  %v9894_v33 = vld [vmem:[%s7438_s26 + $0x2b0] sm:$0xff] }
 0x4aa   : > { %3353 = vmatpush1.msra.mxu0 %v9439_v48  ;;  %3424 = vmatpush1.msra.mxu1 %v9442_v53  ;;  %v9471_v53 = vld [vmem:[%s7438_s26 + $0x1e8] sm:$0xff]  ;;  %v9872_v48 = vld [vmem:[%s7438_s26 + $0x2d8] sm:$0xff]  ;;  %12868 = vst [vmem:[#allocation132_spill] sm:$0xff] %v9883_v32  ;;  %12871 = vst [vmem:[#allocation135_spill] sm:$0xff] %v9894_v33 }
 0x4ab   : > { %3354 = vmatprep.subr.mxu0 %v9447_v50  ;;  %3425 = vmatprep.subr.mxu1 %v9450_v39  ;;  %12764 = vst [vmem:[#allocation28_spill] sm:$0xff] %v9471_v53  ;;  %v9474_v50 = vld [vmem:[%s7438_s26 + $0x1f8] sm:$0xff]  ;;  %v9869_v39 = vld [vmem:[%s7438_s26 + $0x2c8] sm:$0xff]  ;;  %12865 = vst [vmem:[#allocation129_spill] sm:$0xff] %v9872_v48 }
 0x4ac   : > { %3355 = vmatpush1.msra.mxu0 %v9455_v35  ;;  %3388 = vmatprep.mubr.f32.mxu0 %v12609_v58  ;;  %12765 = vst [vmem:[#allocation29_spill] sm:$0xff] %v9474_v50  ;;  %v9479_v35 = vld [vmem:[%s7438_s26 + $0x1e0] sm:$0xff]  ;;  %12864 = vst [vmem:[#allocation128_spill] sm:$0xff] %v9869_v39 }
 0x4ad   : > { %3426 = vmatpush1.msra.mxu1 %v9460_v19  ;;  %3459 = vmatprep.mubr.f32.mxu1 %v12609_v58  ;;  %12766 = vst [vmem:[#allocation30_spill] sm:$0xff] %v9479_v35  ;;  %v9482_v19 = vld [vmem:[%s7438_s26 + $0x1f0] sm:$0xff]  ;;  %v9490_v58 = vld [vmem:[%s7438_s26 + $0x1d8] sm:$0xff] }
 0x4ae   : > { %3389 = vmatmul.mubr.f32.vlgmr.msra.gmra.mxu0 %v9214_v36  ;;  %3460 = vmatmul.mubr.f32.vlgmr.msra.gmra.mxu1 %v9214_v36  ;;  %12767 = vst [vmem:[#allocation31_spill] sm:$0xff] %v9482_v19  ;;  %v9487_v36 = vld [vmem:[%s7438_s26 + $0x1c8] sm:$0xff]  ;;  %12769 = vst [vmem:[#allocation33_spill] sm:$0xff] %v9490_v58 }
 0x4af   : > { %3647 = vmatprep.subr.mxu0 %v9471_v53  ;;  %3718 = vmatprep.subr.mxu1 %v9474_v50  ;;  %12768 = vst [vmem:[#allocation32_spill] sm:$0xff] %v9487_v36  ;;  %v9495_v50 = vld [vmem:[%s7438_s26 + $0x1c0] sm:$0xff]  ;;  %v9498_v53 = vld [vmem:[%s7438_s26 + $0x1d0] sm:$0xff] }
 0x4b0   : > { %3648 = vmatpush1.msra.mxu0 %v9479_v35  ;;  %3719 = vmatpush1.msra.mxu1 %v9482_v19  ;;  %12770 = vst [vmem:[#allocation34_spill] sm:$0xff] %v9495_v50  ;;  %12771 = vst [vmem:[#allocation35_spill] sm:$0xff] %v9498_v53  ;;  %v9503_v19 = vld [vmem:[%s7438_s26 + $0x1a8] sm:$0xff]  ;;  %v9506_v35 = vld [vmem:[%s7438_s26 + $0x1b8] sm:$0xff] }
 0x4b1   : > { %3649 = vmatprep.subr.mxu0 %v9487_v36  ;;  %3720 = vmatprep.subr.mxu1 %v9490_v58  ;;  %12772 = vst [vmem:[#allocation36_spill] sm:$0xff] %v9503_v19  ;;  %12773 = vst [vmem:[#allocation37_spill] sm:$0xff] %v9506_v35  ;;  %v9511_v58 = vld [vmem:[%s7438_s26 + $0x1a0] sm:$0xff]  ;;  %v9514_v36 = vld [vmem:[%s7438_s26 + $0x1b0] sm:$0xff] }
 0x4b2   : > { %3650 = vmatpush1.msra.mxu0 %v9495_v50  ;;  %3721 = vmatpush1.msra.mxu1 %v9498_v53  ;;  %12774 = vst [vmem:[#allocation38_spill] sm:$0xff] %v9511_v58  ;;  %12775 = vst [vmem:[#allocation39_spill] sm:$0xff] %v9514_v36  ;;  %v9519_v53 = vld [vmem:[%s7438_s26 + $0x188] sm:$0xff]  ;;  %v9522_v50 = vld [vmem:[%s7438_s26 + $0x198] sm:$0xff] }
 0x4b3   : > { %3651 = vmatprep.subr.mxu0 %v9503_v19  ;;  %3722 = vmatprep.subr.mxu1 %v9506_v35  ;;  %12776 = vst [vmem:[#allocation40_spill] sm:$0xff] %v9519_v53  ;;  %12777 = vst [vmem:[#allocation41_spill] sm:$0xff] %v9522_v50  ;;  %v9527_v35 = vld [vmem:[%s7438_s26 + $0x180] sm:$0xff]  ;;  %v9530_v19 = vld [vmem:[%s7438_s26 + $0x190] sm:$0xff] }
 0x4b4   : > { %3652 = vmatpush1.msra.mxu0 %v9511_v58  ;;  %3723 = vmatpush1.msra.mxu1 %v9514_v36  ;;  %12778 = vst [vmem:[#allocation42_spill] sm:$0xff] %v9527_v35  ;;  %12779 = vst [vmem:[#allocation43_spill] sm:$0xff] %v9530_v19  ;;  %v9535_v36 = vld [vmem:[%s7438_s26 + $0x168] sm:$0xff]  ;;  %v9538_v58 = vld [vmem:[%s7438_s26 + $0x178] sm:$0xff] }
 0x4b5   : > { %3653 = vmatprep.subr.mxu0 %v9519_v53  ;;  %3724 = vmatprep.subr.mxu1 %v9522_v50  ;;  %12780 = vst [vmem:[#allocation44_spill] sm:$0xff] %v9535_v36  ;;  %12781 = vst [vmem:[#allocation45_spill] sm:$0xff] %v9538_v58  ;;  %v9543_v50 = vld [vmem:[%s7438_s26 + $0x160] sm:$0xff]  ;;  %v9546_v53 = vld [vmem:[%s7438_s26 + $0x170] sm:$0xff] }
 0x4b6   : > { %3654 = vmatpush1.msra.mxu0 %v9527_v35  ;;  %3725 = vmatpush1.msra.mxu1 %v9530_v19  ;;  %12782 = vst [vmem:[#allocation46_spill] sm:$0xff] %v9543_v50  ;;  %12783 = vst [vmem:[#allocation47_spill] sm:$0xff] %v9546_v53  ;;  %v9551_v19 = vld [vmem:[%s7438_s26 + $0x148] sm:$0xff]  ;;  %v9554_v35 = vld [vmem:[%s7438_s26 + $0x158] sm:$0xff] }
 0x4b7   : > { %3655 = vmatprep.subr.mxu0 %v9535_v36  ;;  %3726 = vmatprep.subr.mxu1 %v9538_v58  ;;  %12784 = vst [vmem:[#allocation48_spill] sm:$0xff] %v9551_v19  ;;  %12785 = vst [vmem:[#allocation49_spill] sm:$0xff] %v9554_v35  ;;  %v9559_v58 = vld [vmem:[%s7438_s26 + $0x140] sm:$0xff]  ;;  %v9562_v36 = vld [vmem:[%s7438_s26 + $0x150] sm:$0xff] }
 0x4b8   : > { %3656 = vmatpush1.msra.mxu0 %v9543_v50  ;;  %3727 = vmatpush1.msra.mxu1 %v9546_v53  ;;  %12786 = vst [vmem:[#allocation50_spill] sm:$0xff] %v9559_v58  ;;  %12787 = vst [vmem:[#allocation51_spill] sm:$0xff] %v9562_v36  ;;  %v9567_v53 = vld [vmem:[%s7438_s26 + $0x128] sm:$0xff]  ;;  %v9570_v50 = vld [vmem:[%s7438_s26 + $0x138] sm:$0xff] }
 0x4b9   : > { %3657 = vmatprep.subr.mxu0 %v9551_v19  ;;  %3728 = vmatprep.subr.mxu1 %v9554_v35  ;;  %12788 = vst [vmem:[#allocation52_spill] sm:$0xff] %v9567_v53  ;;  %12789 = vst [vmem:[#allocation53_spill] sm:$0xff] %v9570_v50  ;;  %v9575_v35 = vld [vmem:[%s7438_s26 + $0x120] sm:$0xff]  ;;  %v9578_v19 = vld [vmem:[%s7438_s26 + $0x130] sm:$0xff] }
 0x4ba   : > { %3658 = vmatpush1.msra.mxu0 %v9559_v58  ;;  %3729 = vmatpush1.msra.mxu1 %v9562_v36  ;;  %12790 = vst [vmem:[#allocation54_spill] sm:$0xff] %v9575_v35  ;;  %12791 = vst [vmem:[#allocation55_spill] sm:$0xff] %v9578_v19  ;;  %v9583_v36 = vld [vmem:[%s7438_s26 + $0x108] sm:$0xff]  ;;  %v9586_v58 = vld [vmem:[%s7438_s26 + $0x118] sm:$0xff] }
 0x4bb   : > { %3659 = vmatprep.subr.mxu0 %v9567_v53  ;;  %3730 = vmatprep.subr.mxu1 %v9570_v50  ;;  %12792 = vst [vmem:[#allocation56_spill] sm:$0xff] %v9583_v36  ;;  %12793 = vst [vmem:[#allocation57_spill] sm:$0xff] %v9586_v58  ;;  %v9591_v50 = vld [vmem:[%s7438_s26 + $0x100] sm:$0xff]  ;;  %v9594_v53 = vld [vmem:[%s7438_s26 + $0x110] sm:$0xff] }
 0x4bc   : > { %3660 = vmatpush1.msra.mxu0 %v9575_v35  ;;  %3731 = vmatpush1.msra.mxu1 %v9578_v19  ;;  %12794 = vst [vmem:[#allocation58_spill] sm:$0xff] %v9591_v50  ;;  %12795 = vst [vmem:[#allocation59_spill] sm:$0xff] %v9594_v53  ;;  %v9599_v19 = vld [vmem:[%s7438_s26 + $0xe8] sm:$0xff]  ;;  %v9602_v35 = vld [vmem:[%s7438_s26 + $0xf8] sm:$0xff] }
 0x4bd   : > { %3661 = vmatprep.subr.mxu0 %v9583_v36  ;;  %3732 = vmatprep.subr.mxu1 %v9586_v58  ;;  %12796 = vst [vmem:[#allocation60_spill] sm:$0xff] %v9599_v19  ;;  %12797 = vst [vmem:[#allocation61_spill] sm:$0xff] %v9602_v35  ;;  %v9607_v58 = vld [vmem:[%s7438_s26 + $0xe0] sm:$0xff]  ;;  %v9610_v36 = vld [vmem:[%s7438_s26 + $0xf0] sm:$0xff] }
 0x4be   : > { %3662 = vmatpush1.msra.mxu0 %v9591_v50  ;;  %3733 = vmatpush1.msra.mxu1 %v9594_v53  ;;  %12798 = vst [vmem:[#allocation62_spill] sm:$0xff] %v9607_v58  ;;  %12799 = vst [vmem:[#allocation63_spill] sm:$0xff] %v9610_v36  ;;  %v9615_v53 = vld [vmem:[%s7438_s26 + $0xc8] sm:$0xff]  ;;  %v9618_v50 = vld [vmem:[%s7438_s26 + $0xd8] sm:$0xff] }
 0x4bf   : > { %3663 = vmatprep.subr.mxu0 %v9599_v19  ;;  %3734 = vmatprep.subr.mxu1 %v9602_v35  ;;  %12800 = vst [vmem:[#allocation64_spill] sm:$0xff] %v9615_v53  ;;  %12801 = vst [vmem:[#allocation65_spill] sm:$0xff] %v9618_v50  ;;  %v9623_v35 = vld [vmem:[%s7438_s26 + $0xc0] sm:$0xff]  ;;  %v9626_v19 = vld [vmem:[%s7438_s26 + $0xd0] sm:$0xff] }
 0x4c0   : > { %3664 = vmatpush1.msra.mxu0 %v9607_v58  ;;  %3735 = vmatpush1.msra.mxu1 %v9610_v36  ;;  %12802 = vst [vmem:[#allocation66_spill] sm:$0xff] %v9623_v35  ;;  %12803 = vst [vmem:[#allocation67_spill] sm:$0xff] %v9626_v19  ;;  %v9631_v36 = vld [vmem:[%s7438_s26 + $0xa8] sm:$0xff]  ;;  %v9634_v58 = vld [vmem:[%s7438_s26 + $0xb8] sm:$0xff] }
 0x4c1   : > { %3665 = vmatprep.subr.mxu0 %v9615_v53  ;;  %3736 = vmatprep.subr.mxu1 %v9618_v50  ;;  %12804 = vst [vmem:[#allocation68_spill] sm:$0xff] %v9631_v36  ;;  %12805 = vst [vmem:[#allocation69_spill] sm:$0xff] %v9634_v58  ;;  %v9639_v50 = vld [vmem:[%s7438_s26 + $0xa0] sm:$0xff]  ;;  %v9642_v53 = vld [vmem:[%s7438_s26 + $0xb0] sm:$0xff] }
 0x4c2   : > { %3666 = vmatpush1.msra.mxu0 %v9623_v35  ;;  %3737 = vmatpush1.msra.mxu1 %v9626_v19  ;;  %12806 = vst [vmem:[#allocation70_spill] sm:$0xff] %v9639_v50  ;;  %12807 = vst [vmem:[#allocation71_spill] sm:$0xff] %v9642_v53  ;;  %v9647_v19 = vld [vmem:[%s7438_s26 + $0x88] sm:$0xff]  ;;  %v9650_v35 = vld [vmem:[%s7438_s26 + $0x98] sm:$0xff] }
 0x4c3   : > { %3667 = vmatprep.subr.mxu0 %v9631_v36  ;;  %3738 = vmatprep.subr.mxu1 %v9634_v58  ;;  %12808 = vst [vmem:[#allocation72_spill] sm:$0xff] %v9647_v19  ;;  %12809 = vst [vmem:[#allocation73_spill] sm:$0xff] %v9650_v35  ;;  %v9655_v58 = vld [vmem:[%s7438_s26 + $0x80] sm:$0xff]  ;;  %v9658_v36 = vld [vmem:[%s7438_s26 + $0x90] sm:$0xff] }
 0x4c4   : > { %3668 = vmatpush1.msra.mxu0 %v9639_v50  ;;  %3739 = vmatpush1.msra.mxu1 %v9642_v53  ;;  %12810 = vst [vmem:[#allocation74_spill] sm:$0xff] %v9655_v58  ;;  %12811 = vst [vmem:[#allocation75_spill] sm:$0xff] %v9658_v36  ;;  %v9663_v53 = vld [vmem:[%s7438_s26 + $0x68] sm:$0xff]  ;;  %v9666_v50 = vld [vmem:[%s7438_s26 + $0x78] sm:$0xff] }
 0x4c5   : > { %3669 = vmatprep.subr.mxu0 %v9647_v19  ;;  %3740 = vmatprep.subr.mxu1 %v9650_v35  ;;  %12812 = vst [vmem:[#allocation76_spill] sm:$0xff] %v9663_v53  ;;  %12813 = vst [vmem:[#allocation77_spill] sm:$0xff] %v9666_v50  ;;  %v9671_v35 = vld [vmem:[%s7438_s26 + $0x60] sm:$0xff]  ;;  %v9674_v19 = vld [vmem:[%s7438_s26 + $0x70] sm:$0xff] }
 0x4c6   : > { %3670 = vmatpush1.msra.mxu0 %v9655_v58  ;;  %3741 = vmatpush1.msra.mxu1 %v9658_v36  ;;  %12814 = vst [vmem:[#allocation78_spill] sm:$0xff] %v9671_v35  ;;  %12815 = vst [vmem:[#allocation79_spill] sm:$0xff] %v9674_v19  ;;  %v9679_v36 = vld [vmem:[%s7438_s26 + $0x48] sm:$0xff]  ;;  %v9682_v58 = vld [vmem:[%s7438_s26 + $0x58] sm:$0xff] }
 0x4c7   : > { %3671 = vmatprep.subr.mxu0 %v9663_v53  ;;  %3742 = vmatprep.subr.mxu1 %v9666_v50  ;;  %12816 = vst [vmem:[#allocation80_spill] sm:$0xff] %v9679_v36  ;;  %12817 = vst [vmem:[#allocation81_spill] sm:$0xff] %v9682_v58  ;;  %v9687_v50 = vld [vmem:[%s7438_s26 + $0x40] sm:$0xff]  ;;  %v9690_v53 = vld [vmem:[%s7438_s26 + $0x50] sm:$0xff] }
 0x4c8   : > { %3672 = vmatpush1.msra.mxu0 %v9671_v35  ;;  %3743 = vmatpush1.msra.mxu1 %v9674_v19  ;;  %12818 = vst [vmem:[#allocation82_spill] sm:$0xff] %v9687_v50  ;;  %12819 = vst [vmem:[#allocation83_spill] sm:$0xff] %v9690_v53  ;;  %v9695_v19 = vld [vmem:[%s7438_s26 + $0x28] sm:$0xff]  ;;  %v9698_v35 = vld [vmem:[%s7438_s26 + $0x38] sm:$0xff] }
 0x4c9   : > { %3673 = vmatprep.subr.mxu0 %v9679_v36  ;;  %3744 = vmatprep.subr.mxu1 %v9682_v58  ;;  %12820 = vst [vmem:[#allocation84_spill] sm:$0xff] %v9695_v19  ;;  %12821 = vst [vmem:[#allocation85_spill] sm:$0xff] %v9698_v35  ;;  %v9703_v58 = vld [vmem:[%s7438_s26 + $0x20] sm:$0xff]  ;;  %v9706_v36 = vld [vmem:[%s7438_s26 + $0x30] sm:$0xff] }
 0x4ca   : > { %3674 = vmatpush1.msra.mxu0 %v9687_v50  ;;  %3745 = vmatpush1.msra.mxu1 %v9690_v53  ;;  %12822 = vst [vmem:[#allocation86_spill] sm:$0xff] %v9703_v58  ;;  %12823 = vst [vmem:[#allocation87_spill] sm:$0xff] %v9706_v36  ;;  %v9711_v53 = vld [vmem:[%s7438_s26 + $0x8] sm:$0xff]  ;;  %v9714_v50 = vld [vmem:[%s7438_s26 + $0x18] sm:$0xff] }
 0x4cb   : > { %3675 = vmatprep.subr.mxu0 %v9695_v19  ;;  %3746 = vmatprep.subr.mxu1 %v9698_v35  ;;  %12824 = vst [vmem:[#allocation88_spill] sm:$0xff] %v9711_v53  ;;  %12825 = vst [vmem:[#allocation89_spill] sm:$0xff] %v9714_v50  ;;  %v9719_v35 = vld [vmem:[%s7438_s26] sm:$0xff]  ;;  %v9722_v19 = vld [vmem:[%s7438_s26 + $0x10] sm:$0xff] }
 0x4cc   : > { %3676 = vmatpush1.msra.mxu0 %v9703_v58  ;;  %3747 = vmatpush1.msra.mxu1 %v9706_v36  ;;  %12826 = vst [vmem:[#allocation90_spill] sm:$0xff] %v9719_v35  ;;  %12827 = vst [vmem:[#allocation91_spill] sm:$0xff] %v9722_v19  ;;  %v9727_v36 = vld [vmem:[%s7438_s26 + $0x3e8] sm:$0xff]  ;;  %v9730_v58 = vld [vmem:[%s7438_s26 + $0x3f8] sm:$0xff] }
 0x4cd   : > { %3677 = vmatprep.subr.mxu0 %v9711_v53  ;;  %3748 = vmatprep.subr.mxu1 %v9714_v50  ;;  %12828 = vst [vmem:[#allocation92_spill] sm:$0xff] %v9727_v36  ;;  %12829 = vst [vmem:[#allocation93_spill] sm:$0xff] %v9730_v58  ;;  %v9735_v50 = vld [vmem:[%s7438_s26 + $0x3e0] sm:$0xff]  ;;  %v9738_v53 = vld [vmem:[%s7438_s26 + $0x3f0] sm:$0xff] }
 0x4ce   : > { %3678 = vmatpush1.msra.mxu0 %v9719_v35  ;;  %3749 = vmatpush1.msra.mxu1 %v9722_v19  ;;  %12830 = vst [vmem:[#allocation94_spill] sm:$0xff] %v9735_v50  ;;  %12831 = vst [vmem:[#allocation95_spill] sm:$0xff] %v9738_v53  ;;  %v9743_v19 = vld [vmem:[%s7438_s26 + $0x3c8] sm:$0xff]  ;;  %v9746_v35 = vld [vmem:[%s7438_s26 + $0x3d8] sm:$0xff] }
 0x4cf   : > { %3679 = vmatprep.subr.mxu0 %v9727_v36  ;;  %3750 = vmatprep.subr.mxu1 %v9730_v58  ;;  %12832 = vst [vmem:[#allocation96_spill] sm:$0xff] %v9743_v19  ;;  %12833 = vst [vmem:[#allocation97_spill] sm:$0xff] %v9746_v35  ;;  %v9751_v58 = vld [vmem:[%s7438_s26 + $0x3c0] sm:$0xff]  ;;  %v9754_v36 = vld [vmem:[%s7438_s26 + $0x3d0] sm:$0xff] }
 0x4d0   : > { %3680 = vmatpush2.msra.mxu0 %v9735_v50  ;;  %3751 = vmatpush2.msra.mxu1 %v9738_v53  ;;  %12834 = vst [vmem:[#allocation98_spill] sm:$0xff] %v9751_v58  ;;  %12835 = vst [vmem:[#allocation99_spill] sm:$0xff] %v9754_v36  ;;  %v9759_v53 = vld [vmem:[%s7438_s26 + $0x3a8] sm:$0xff]  ;;  %v9762_v50 = vld [vmem:[%s7438_s26 + $0x3b8] sm:$0xff] }
 0x4d1   : > { %3681 = vmatprep.subr.mxu0 %v9743_v19  ;;  %3752 = vmatprep.subr.mxu1 %v9746_v35  ;;  %12836 = vst [vmem:[#allocation100_spill] sm:$0xff] %v9759_v53  ;;  %12837 = vst [vmem:[#allocation101_spill] sm:$0xff] %v9762_v50  ;;  %v9767_v35 = vld [vmem:[%s7438_s26 + $0x3a0] sm:$0xff]  ;;  %v9770_v19 = vld [vmem:[%s7438_s26 + $0x3b0] sm:$0xff] }
 0x4d2   : > { %3682 = vmatpush2.msra.mxu0 %v9751_v58  ;;  %3753 = vmatpush2.msra.mxu1 %v9754_v36  ;;  %12838 = vst [vmem:[#allocation102_spill] sm:$0xff] %v9767_v35  ;;  %12839 = vst [vmem:[#allocation103_spill] sm:$0xff] %v9770_v19  ;;  %v9775_v36 = vld [vmem:[%s7438_s26 + $0x388] sm:$0xff]  ;;  %v9778_v58 = vld [vmem:[%s7438_s26 + $0x398] sm:$0xff] }
 0x4d3   : > { %3683 = vmatprep.subr.mxu0 %v9759_v53  ;;  %3754 = vmatprep.subr.mxu1 %v9762_v50  ;;  %12840 = vst [vmem:[#allocation104_spill] sm:$0xff] %v9775_v36  ;;  %12841 = vst [vmem:[#allocation105_spill] sm:$0xff] %v9778_v58  ;;  %v9783_v50 = vld [vmem:[%s7438_s26 + $0x380] sm:$0xff]  ;;  %v9786_v53 = vld [vmem:[%s7438_s26 + $0x390] sm:$0xff] }
 0x4d4   : > { %3684 = vmatpush2.msra.mxu0 %v9767_v35  ;;  %3755 = vmatpush2.msra.mxu1 %v9770_v19  ;;  %12842 = vst [vmem:[#allocation106_spill] sm:$0xff] %v9783_v50  ;;  %12843 = vst [vmem:[#allocation107_spill] sm:$0xff] %v9786_v53  ;;  %v9791_v19 = vld [vmem:[%s7438_s26 + $0x368] sm:$0xff]  ;;  %v9794_v35 = vld [vmem:[%s7438_s26 + $0x378] sm:$0xff] }
 0x4d5   : > { %3685 = vmatprep.subr.mxu0 %v9775_v36  ;;  %3756 = vmatprep.subr.mxu1 %v9778_v58  ;;  %12844 = vst [vmem:[#allocation108_spill] sm:$0xff] %v9791_v19  ;;  %12845 = vst [vmem:[#allocation109_spill] sm:$0xff] %v9794_v35  ;;  %v9799_v58 = vld [vmem:[%s7438_s26 + $0x360] sm:$0xff]  ;;  %v9802_v36 = vld [vmem:[%s7438_s26 + $0x370] sm:$0xff] }
 0x4d6   : > { %3686 = vmatpush2.msra.mxu0 %v9783_v50  ;;  %3757 = vmatpush2.msra.mxu1 %v9786_v53  ;;  %12846 = vst [vmem:[#allocation110_spill] sm:$0xff] %v9799_v58  ;;  %12847 = vst [vmem:[#allocation111_spill] sm:$0xff] %v9802_v36  ;;  %v9807_v53 = vld [vmem:[%s7438_s26 + $0x348] sm:$0xff]  ;;  %v9810_v50 = vld [vmem:[%s7438_s26 + $0x358] sm:$0xff] }
 0x4d7   : > { %3687 = vmatprep.subr.mxu0 %v9791_v19  ;;  %3758 = vmatprep.subr.mxu1 %v9794_v35  ;;  %12848 = vst [vmem:[#allocation112_spill] sm:$0xff] %v9807_v53  ;;  %12849 = vst [vmem:[#allocation113_spill] sm:$0xff] %v9810_v50  ;;  %v9815_v35 = vld [vmem:[%s7438_s26 + $0x340] sm:$0xff]  ;;  %v9818_v19 = vld [vmem:[%s7438_s26 + $0x350] sm:$0xff] }
 0x4d8   : > { %3688 = vmatpush2.msra.mxu0 %v9799_v58  ;;  %3759 = vmatpush2.msra.mxu1 %v9802_v36  ;;  %12850 = vst [vmem:[#allocation114_spill] sm:$0xff] %v9815_v35  ;;  %12851 = vst [vmem:[#allocation115_spill] sm:$0xff] %v9818_v19  ;;  %v9823_v36 = vld [vmem:[%s7438_s26 + $0x328] sm:$0xff]  ;;  %v9826_v58 = vld [vmem:[%s7438_s26 + $0x338] sm:$0xff] }
 0x4d9   : > { %3689 = vmatprep.subr.mxu0 %v9807_v53  ;;  %3760 = vmatprep.subr.mxu1 %v9810_v50  ;;  %12852 = vst [vmem:[#allocation116_spill] sm:$0xff] %v9823_v36  ;;  %12853 = vst [vmem:[#allocation117_spill] sm:$0xff] %v9826_v58  ;;  %v9831_v50 = vld [vmem:[%s7438_s26 + $0x320] sm:$0xff]  ;;  %v9834_v53 = vld [vmem:[%s7438_s26 + $0x330] sm:$0xff] }
 0x4da   : > { %3690 = vmatpush2.msra.mxu0 %v9815_v35  ;;  %3761 = vmatpush2.msra.mxu1 %v9818_v19  ;;  %12854 = vst [vmem:[#allocation118_spill] sm:$0xff] %v9831_v50  ;;  %12855 = vst [vmem:[#allocation119_spill] sm:$0xff] %v9834_v53  ;;  %v9839_v19 = vld [vmem:[%s7438_s26 + $0x308] sm:$0xff]  ;;  %v9842_v35 = vld [vmem:[%s7438_s26 + $0x318] sm:$0xff] }
 0x4db   : > { %3691 = vmatprep.subr.mxu0 %v9823_v36  ;;  %3762 = vmatprep.subr.mxu1 %v9826_v58  ;;  %12856 = vst [vmem:[#allocation120_spill] sm:$0xff] %v9839_v19  ;;  %12857 = vst [vmem:[#allocation121_spill] sm:$0xff] %v9842_v35  ;;  %v9847_v58 = vld [vmem:[%s7438_s26 + $0x300] sm:$0xff]  ;;  %v9850_v36 = vld [vmem:[%s7438_s26 + $0x310] sm:$0xff] }
 0x4dc   : > { %3692 = vmatpush2.msra.mxu0 %v9831_v50  ;;  %3763 = vmatpush2.msra.mxu1 %v9834_v53  ;;  %12858 = vst [vmem:[#allocation122_spill] sm:$0xff] %v9847_v58  ;;  %12859 = vst [vmem:[#allocation123_spill] sm:$0xff] %v9850_v36  ;;  %v9853_v50 = vld [vmem:[%s7438_s26 + $0x2e8] sm:$0xff]  ;;  %v9858_v53 = vld [vmem:[%s7438_s26 + $0x2f8] sm:$0xff] }
 0x4dd   : > { %3693 = vmatprep.subr.mxu0 %v9839_v19  ;;  %3764 = vmatprep.subr.mxu1 %v9842_v35  ;;  %12860 = vst [vmem:[#allocation124_spill] sm:$0xff] %v9853_v50  ;;  %12861 = vst [vmem:[#allocation125_spill] sm:$0xff] %v9858_v53  ;;  %v9861_v19 = vld [vmem:[%s7438_s26 + $0x2e0] sm:$0xff]  ;;  %v9864_v35 = vld [vmem:[%s7438_s26 + $0x2f0] sm:$0xff] }
 0x4de   : > { %3694 = vmatpush2.msra.mxu0 %v9847_v58  ;;  %3765 = vmatpush2.msra.mxu1 %v9850_v36  ;;  %12862 = vst [vmem:[#allocation126_spill] sm:$0xff] %v9861_v19  ;;  %12863 = vst [vmem:[#allocation127_spill] sm:$0xff] %v9864_v35  ;;  %v9875_v58 = vld [vmem:[%s7438_s26 + $0x2c0] sm:$0xff]  ;;  %v9880_v36 = vld [vmem:[%s7438_s26 + $0x2d0] sm:$0xff] }
 0x4df   : > { %3695 = vmatprep.subr.mxu0 %v9853_v50  ;;  %3766 = vmatprep.subr.mxu1 %v9858_v53  ;;  %12866 = vst [vmem:[#allocation130_spill] sm:$0xff] %v9875_v58  ;;  %12867 = vst [vmem:[#allocation131_spill] sm:$0xff] %v9880_v36  ;;  %v9886_v50 = vld [vmem:[%s7438_s26 + $0x2b8] sm:$0xff]  ;;  %v9891_v53 = vld [vmem:[%s7438_s26 + $0x2a0] sm:$0xff] }
 0x4e0   : > { %3696 = vmatpush2.msra.mxu0 %v9861_v19  ;;  %3767 = vmatpush2.msra.mxu1 %v9864_v35  ;;  %12869 = vst [vmem:[#allocation133_spill] sm:$0xff] %v9886_v50  ;;  %12870 = vst [vmem:[#allocation134_spill] sm:$0xff] %v9891_v53  ;;  %v9899_v35 = vld [vmem:[%s7438_s26 + $0x288] sm:$0xff]  ;;  %v9902_v19 = vld [vmem:[%s7438_s26 + $0x298] sm:$0xff] }
 0x4e1   : > { %3697 = vmatprep.subr.mxu0 %v9869_v39  ;;  %3768 = vmatprep.subr.mxu1 %v9872_v48  ;;  %12872 = vst [vmem:[#allocation136_spill] sm:$0xff] %v9899_v35  ;;  %12873 = vst [vmem:[#allocation137_spill] sm:$0xff] %v9902_v19  ;;  %v9907_v48 = vld [vmem:[%s7438_s26 + $0x280] sm:$0xff]  ;;  %v9910_v39 = vld [vmem:[%s7438_s26 + $0x290] sm:$0xff] }
 0x4e2   : > { %3698 = vmatpush2.msra.mxu0 %v9875_v58  ;;  %3769 = vmatpush2.msra.mxu1 %v9880_v36  ;;  %12874 = vst [vmem:[#allocation138_spill] sm:$0xff] %v9907_v48  ;;  %12875 = vst [vmem:[#allocation139_spill] sm:$0xff] %v9910_v39  ;;  %v9915_v36 = vld [vmem:[%s7438_s26 + $0x268] sm:$0xff]  ;;  %v9918_v58 = vld [vmem:[%s7438_s26 + $0x278] sm:$0xff] }
 0x4e3   : > { %3699 = vmatprep.subr.mxu0 %v9883_v32  ;;  %3770 = vmatprep.subr.mxu1 %v9886_v50  ;;  %12876 = vst [vmem:[#allocation140_spill] sm:$0xff] %v9915_v36  ;;  %12877 = vst [vmem:[#allocation141_spill] sm:$0xff] %v9918_v58  ;;  %v9923_v50 = vld [vmem:[%s7438_s26 + $0x260] sm:$0xff]  ;;  %v9926_v32 = vld [vmem:[%s7438_s26 + $0x270] sm:$0xff] }
 0x4e4   : > { %3700 = vmatpush2.msra.mxu0 %v9891_v53  ;;  %3771 = vmatpush2.msra.mxu1 %v9894_v33  ;;  %12878 = vst [vmem:[#allocation142_spill] sm:$0xff] %v9923_v50  ;;  %12879 = vst [vmem:[#allocation143_spill] sm:$0xff] %v9926_v32  ;;  %v9931_v33 = vld [vmem:[%s7438_s26 + $0x248] sm:$0xff]  ;;  %v9934_v53 = vld [vmem:[%s7438_s26 + $0x258] sm:$0xff] }
 0x4e5   : > { %3701 = vmatprep.subr.mxu0 %v9899_v35  ;;  %3772 = vmatprep.subr.mxu1 %v9902_v19  ;;  %12880 = vst [vmem:[#allocation144_spill] sm:$0xff] %v9931_v33  ;;  %12881 = vst [vmem:[#allocation145_spill] sm:$0xff] %v9934_v53  ;;  %v9939_v19 = vld [vmem:[%s7438_s26 + $0x240] sm:$0xff]  ;;  %v9942_v35 = vld [vmem:[%s7438_s26 + $0x250] sm:$0xff] }
 0x4e6   : > { %3702 = vmatpush2.msra.mxu0 %v9907_v48  ;;  %3773 = vmatpush2.msra.mxu1 %v9910_v39  ;;  %12882 = vst [vmem:[#allocation146_spill] sm:$0xff] %v9939_v19  ;;  %12883 = vst [vmem:[#allocation147_spill] sm:$0xff] %v9942_v35  ;;  %v9947_v39 = vld [vmem:[%s7438_s26 + $0x228] sm:$0xff]  ;;  %v9950_v48 = vld [vmem:[%s7438_s26 + $0x238] sm:$0xff] }
 0x4e7   : > { %3703 = vmatprep.subr.mxu0 %v9915_v36  ;;  %3774 = vmatprep.subr.mxu1 %v9918_v58  ;;  %12884 = vst [vmem:[#allocation148_spill] sm:$0xff] %v9947_v39  ;;  %12885 = vst [vmem:[#allocation149_spill] sm:$0xff] %v9950_v48  ;;  %v9955_v36 = vld [vmem:[%s7438_s26 + $0x220] sm:$0xff]  ;;  %v9958_v58 = vld [vmem:[%s7438_s26 + $0x230] sm:$0xff] }
 0x4e8   : > { %3704 = vmatpush2.msra.mxu0 %v9923_v50  ;;  %3775 = vmatpush2.msra.mxu1 %v9926_v32  ;;  %12886 = vst [vmem:[#allocation150_spill] sm:$0xff] %v9955_v36  ;;  %12887 = vst [vmem:[#allocation154_spill] sm:$0xff] %v9958_v58  ;;  %v9963_v50 = vld [vmem:[%s7438_s26 + $0x208] sm:$0xff]  ;;  %v9966_v32 = vld [vmem:[%s7438_s26 + $0x218] sm:$0xff] }
 0x4e9   : > { %3705 = vmatprep.subr.mxu0 %v9931_v33  ;;  %3776 = vmatprep.subr.mxu1 %v9934_v53  ;;  %12888 = vst [vmem:[#allocation155_spill] sm:$0xff] %v9963_v50  ;;  %12889 = vst [vmem:[#allocation156_spill] sm:$0xff] %v9966_v32  ;;  %v9971_v33 = vld [vmem:[%s7438_s26 + $0x200] sm:$0xff]  ;;  %v9974_v53 = vld [vmem:[%s7438_s26 + $0x210] sm:$0xff] }
 0x4ea   : > { %3706 = vmatpush2.msra.mxu0 %v9939_v19  ;;  %3777 = vmatpush2.msra.mxu1 %v9942_v35  ;;  %12890 = vst [vmem:[#allocation157_spill] sm:$0xff] %v9971_v33  ;;  %12891 = vst [vmem:[#allocation159_spill] sm:$0xff] %v9974_v53 }
 0x4eb   : > { %3707 = vmatprep.subr.mxu0 %v9947_v39  ;;  %3778 = vmatprep.subr.mxu1 %v9950_v48  ;;  %v3062_v48 = vld [vmem:[%s8186_s20] sm:$0xf] }
 0x4ec   : > { %3708 = vmatpush2.msra.mxu0 %v9955_v36  ;;  %3779 = vmatpush2.msra.mxu1 %v9958_v58  ;;  %v3067_v39 = vrot.slane %v3062_v48, %v12739_v25  ;;  %v3071_v35 = vrot.slane %v3062_v48, %v12740_v27 }
 0x4ed   : > { %3709 = vmatprep.subr.mxu0 %v9963_v50  ;;  %3780 = vmatprep.subr.mxu1 %v9966_v32 }
 0x4ee   : > { %3710 = vmatpush2.msra.mxu0 %v9971_v33  ;;  %3781 = vmatpush2.msra.mxu1 %v9974_v53  ;;  %v3079_v53 = vrot.slane %v3062_v48, %v12436_v49 }
 0x4ef   : > { %3882 = vmatprep.subr.mxu0 %v9190_v22  ;;  %3953 = vmatprep.subr.mxu1 %v9193_v23  ;;  %v3075_v23 = vrot.slane %v3062_v48, %v12741_v40 }
 0x54d   : > { %v3155_v36 = vpop.f32.mrf.mxu0  ;;  %v3226_v32 = vpop.f32.mrf.mxu1 }
 0x54e   : > { %v3156_v19 = vadd.f32 %v3155_v36, %v3067_v39  ;;  %v3227_v25 = vadd.f32 %v3226_v32, %v3075_v23  ;;  %v3257_v36 = vld [vmem:[#allocation2 + $0x20] sm:$0x3]  ;;  %v3259_v23 = vld [vmem:[#allocation2 + $0x38] sm:$0x3] }
 0x54f   : > { %v3157_v58 = vpop.f32.mrf.mxu0  ;;  %v3228_v33 = vpop.f32.mrf.mxu1 }
 0x550   : > { %v6614_v51 = vmul.f32 -1.442695, %v3156_v19  ;;  %v3158_v50 = vadd.f32 %v3157_v58, %v3071_v35  ;;  %v3229_v22 = vadd.f32 %v3228_v33, %v3079_v53  ;;  %v3256_v58 = vld [vmem:[#allocation2 + $0x8] sm:$0x3] }
 0x552   : > { %6868 = vpow2.f32 %v6614_v51  ;;  %v6615_v34 = vmul.f32 -1.442695, %v3158_v50  ;;  %v6616_v30 = vmul.f32 -1.442695, %v3229_v22 }
 0x554   : > { %6870 = vpow2.f32 %v6615_v34 }
 0x555   : > { %6872 = vpow2.f32 %v6616_v30 }
 0x55f   : > { %v6869_v28 = vpop.eup %6868 }
 0x560   : > { %v3234_v26 = vadd.f32 1.0, %v6869_v28 }
 0x561   : > { %v6871_v27 = vpop.eup %6870 }
 0x562   : > { %6874 = vrcp.f32 %v3234_v26  ;;  %v3240_v39 = vadd.f32 1.0, %v6871_v27  ;;  %v6873_v51 = vpop.eup %6872 }
 0x563   : > { %6876 = vtanh.f32 %v3227_v25  ;;  %v3247_v32 = vadd.f32 1.0, %v6873_v51 }
 0x564   : > { %6878 = vrcp.f32 %v3240_v39 }
 0x56e   : > { %v3390_v19 = vpop.f32.mrf.mxu0  ;;  %v3461_v26 = vpop.f32.mrf.mxu1 }
 0x56f   : > { %v6875_v50 = vpop.eup %6874  ;;  %v3466_v35 = vadd.f32 %v3390_v19, %v3256_v58  ;;  %v3258_v19 = vld [vmem:[#allocation2 + $0x28] sm:$0x3] }
 0x570   : > { %v6877_v34 = vpop.eup %6876  ;;  %v3392_v33 = vpop.f32.mrf.mxu0 }
 0x571   : > { %v6879_v53 = vpop.eup %6878  ;;  %v6617_v48 = vmul.f32 -1.442695, %v3466_v35  ;;  %v3467_v22 = vadd.f32 %v3392_v33, %v3257_v36  ;;  %v3251_v40 = vmul.f32 %v6877_v34, %v6875_v50  ;;  %v3463_v30 = vpop.f32.mrf.mxu1  ;;  %v3468_v36 = vadd.f32 %v3461_v26, %v3258_v19 }
 0x572   : > { %v3250_v28 = vmul.f32 %v6879_v53, %v9203_v4  ;;  %v3469_v39 = vadd.f32 %v3463_v30, %v3259_v23 }
 0x573   : > { %6880 = vpow2.f32 %v6617_v48  ;;  %v6618_v27 = vmul.f32 -1.442695, %v3467_v22 }
 0x574   : > { %v9990_v25 = vadd.f32 %v3251_v40, %v3250_v28  ;;  %v6619_v58 = vmul.f32 -1.442695, %v3469_v39  ;;  %v3490_v28 = vrot.slane %v9211_v37, 6  ;;  %v12893_v37 = vld [vmem:[#allocation7_spill] sm:$0xff] }
 0x575   : > { %6882 = vpow2.f32 %v6618_v27 }
 0x576   : > { %6884 = vrcp.f32 %v3247_v32 }
 0x577   : > { %6886 = vtanh.f32 %v9990_v25 }
 0x578   : > { %6888 = vpow2.f32 %v6619_v58 }
 0x580   : > { %v6881_v35 = vpop.eup %6880 }
 0x581   : > { %v3473_v50 = vadd.f32 1.0, %v6881_v35  ;;  %v12935_v35 = vld [vmem:[#allocation48_spill] sm:$0xff] }
 0x582   : > { %v6883_v34 = vpop.eup %6882 }
 0x583   : > { %v6885_v4 = vpop.eup %6884  ;;  %6890 = vrcp.f32 %v3473_v50  ;;  %v3479_v51 = vadd.f32 1.0, %v6883_v34  ;;  %v12937_v50 = vld [vmem:[#allocation50_spill] sm:$0xff]  ;;  %v12938_v34 = vld [vmem:[#allocation51_spill] sm:$0xff] }
 0x584   : > { %v6887_v33 = vpop.eup %6886  ;;  %6892 = vtanh.f32 %v3468_v36  ;;  %v12936_v36 = vld [vmem:[#allocation49_spill] sm:$0xff] }
 0x585   : > { %6894 = vrcp.f32 %v3479_v51  ;;  %v9993_v40 = vmul.f32 %v6887_v33, %v6885_v4  ;;  %v6889_v53 = vpop.eup %6888  ;;  %v12939_v4 = vld [vmem:[#allocation52_spill] sm:$0xff]  ;;  %v12940_v51 = vld [vmem:[#allocation53_spill] sm:$0xff]  ;;  %v12941_v33 = vld [vmem:[#allocation54_spill] sm:$0xff] }
 0x586   : > { %v3486_v26 = vadd.f32 1.0, %v6889_v53  ;;  %v12942_v53 = vld [vmem:[#allocation55_spill] sm:$0xff] }
 0x587   : > { %12892 = vst [vmem:[#allocation160_spill] sm:$0xff] %v9993_v40  ;;  %3255 = vst [vmem:[#allocation3 + $0x6] sm:$0x3] %v9993_v40  ;;  %3711 = vmatprep.mubr.f32.mxu0 %v9993_v40  ;;  %3782 = vmatprep.mubr.f32.mxu1 %v9993_v40  ;;  %v10437_v40 = vld [vmem:[%s7154_s30 + $0x50] sm:$0xff] }
 0x588   : > { %6896 = vrcp.f32 %v3486_v26  ;;  %v12947_v26 = vld [vmem:[#allocation60_spill] sm:$0xff] }
 0x590   : > { %v6891_v48 = vpop.eup %6890 }
 0x591   : > { %v6893_v22 = vpop.eup %6892 }
 0x592   : > { %v6895_v32 = vpop.eup %6894  ;;  %v3493_v27 = vmul.f32 %v6893_v22, %v6891_v48  ;;  %v12943_v48 = vld [vmem:[#allocation56_spill] sm:$0xff]  ;;  %v12944_v22 = vld [vmem:[#allocation57_spill] sm:$0xff] }
 0x593   : > { %v3492_v30 = vmul.f32 %v6895_v32, %v3490_v28  ;;  %v12945_v28 = vld [vmem:[#allocation58_spill] sm:$0xff]  ;;  %v12946_v32 = vld [vmem:[#allocation59_spill] sm:$0xff] }
 0x595   : > { %v9999_v23 = vadd.f32 %v3493_v27, %v3492_v30  ;;  %v6897_v39 = vpop.eup %6896  ;;  %v12948_v27 = vld [vmem:[#allocation61_spill] sm:$0xff]  ;;  %v12949_v30 = vld [vmem:[#allocation62_spill] sm:$0xff] }
 0x597   : > { %6898 = vtanh.f32 %v9999_v23 }
 0x5a4   : > { %v6899_v58 = vpop.eup %6898 }
 0x5a5   : > { %v10002_v19 = vmul.f32 %v6899_v58, %v6897_v39  ;;  %v12950_v39 = vld [vmem:[#allocation63_spill] sm:$0xff]  ;;  %v12951_v58 = vld [vmem:[#allocation64_spill] sm:$0xff] }
 0x5a7   : > { %3712 = vmatmul.mubr.f32.vlgmr.msra.gmra.mxu0 %v10002_v19  ;;  %3783 = vmatmul.mubr.f32.vlgmr.msra.gmra.mxu1 %v10002_v19 }
 0x5a8   : > { %3883 = vmatpush1.msra.mxu0 %v9217_v43  ;;  %3954 = vmatpush1.msra.mxu1 %v9220_v41  ;;  %v12894_v43 = vld [vmem:[#allocation8_spill] sm:$0xff]  ;;  %v12895_v41 = vld [vmem:[#allocation9_spill] sm:$0xff] }
 0x5a9   : > { %3884 = vmatprep.subr.mxu0 %v9223_v42  ;;  %3955 = vmatprep.subr.mxu1 %v9226_v31  ;;  %v12896_v42 = vld [vmem:[#allocation10_spill] sm:$0xff]  ;;  %v12897_v31 = vld [vmem:[#allocation11_spill] sm:$0xff] }
 0x5aa   : > { %3885 = vmatpush1.msra.mxu0 %v9231_v29  ;;  %3956 = vmatpush1.msra.mxu1 %v9234_v52  ;;  %v12898_v29 = vld [vmem:[#allocation12_spill] sm:$0xff]  ;;  %v12899_v52 = vld [vmem:[#allocation13_spill] sm:$0xff] }
 0x5ab   : > { %3886 = vmatprep.subr.mxu0 %v9239_v44  ;;  %3957 = vmatprep.subr.mxu1 %v9242_v45  ;;  %v12900_v44 = vld [vmem:[#allocation14_spill] sm:$0xff]  ;;  %v12901_v45 = vld [vmem:[#allocation15_spill] sm:$0xff] }
 0x5ac   : > { %3887 = vmatpush1.msra.mxu0 %v9247_v15  ;;  %3958 = vmatpush1.msra.mxu1 %v9250_v46  ;;  %v12902_v15 = vld [vmem:[#allocation16_spill] sm:$0xff]  ;;  %v12903_v46 = vld [vmem:[#allocation17_spill] sm:$0xff] }
 0x5ad   : > { %3888 = vmatprep.subr.mxu0 %v9255_v47  ;;  %3959 = vmatprep.subr.mxu1 %v9258_v60  ;;  %v12904_v47 = vld [vmem:[#allocation18_spill] sm:$0xff]  ;;  %v12905_v60 = vld [vmem:[#allocation19_spill] sm:$0xff] }
 0x5ae   : > { %3889 = vmatpush1.msra.mxu0 %v9263_v54  ;;  %3960 = vmatpush1.msra.mxu1 %v9266_v55  ;;  %v12906_v54 = vld [vmem:[#allocation20_spill] sm:$0xff]  ;;  %v12907_v55 = vld [vmem:[#allocation21_spill] sm:$0xff] }
 0x5af   : > { %3890 = vmatprep.subr.mxu0 %v9271_v57  ;;  %3961 = vmatprep.subr.mxu1 %v9274_v9  ;;  %v12908_v57 = vld [vmem:[#allocation22_spill] sm:$0xff]  ;;  %v12909_v9 = vld [vmem:[#allocation23_spill] sm:$0xff]  ;;  %13059 = vst [vmem:[#allocation20_spill] sm:$0xff] %v10437_v40 }
 0x5b0   : > { %3891 = vmatpush1.msra.mxu0 %v9279_v7  ;;  %3962 = vmatpush1.msra.mxu1 %v9282_v0  ;;  %v12910_v7 = vld [vmem:[#allocation24_spill] sm:$0xff]  ;;  %v12911_v0 = vld [vmem:[#allocation25_spill] sm:$0xff] }
 0x5b1   : > { %3892 = vmatprep.subr.mxu0 %v9287_v11  ;;  %3963 = vmatprep.subr.mxu1 %v9290_v56  ;;  %v12912_v11 = vld [vmem:[#allocation26_spill] sm:$0xff]  ;;  %v12913_v56 = vmov 0.0  }
 0x5b2   : > { %3893 = vmatpush1.msra.mxu0 %v9295_v5  ;;  %3964 = vmatpush1.msra.mxu1 %v9298_v3  ;;  %v12914_v5 = vld [vmem:[#allocation27_spill] sm:$0xff]  ;;  %v12915_v3 = vld [vmem:[#allocation28_spill] sm:$0xff] }
 0x5b3   : > { %3894 = vmatprep.subr.mxu0 %v9303_v6  ;;  %3965 = vmatprep.subr.mxu1 %v9306_v62  ;;  %v12916_v6 = vld [vmem:[#allocation29_spill] sm:$0xff]  ;;  %v12917_v62 = vld [vmem:[#allocation30_spill] sm:$0xff] }
 0x5b4   : > { %3895 = vmatpush1.msra.mxu0 %v9311_v1  ;;  %3966 = vmatpush1.msra.mxu1 %v9314_v8  ;;  %v12918_v1 = vld [vmem:[#allocation31_spill] sm:$0xff]  ;;  %v12919_v8 = vld [vmem:[#allocation32_spill] sm:$0xff] }
 0x5b5   : > { %3896 = vmatprep.subr.mxu0 %v9319_v63  ;;  %3967 = vmatprep.subr.mxu1 %v9322_v61  ;;  %v12920_v63 = vld [vmem:[#allocation33_spill] sm:$0xff]  ;;  %v12921_v61 = vld [vmem:[#allocation34_spill] sm:$0xff] }
 0x5b6   : > { %3897 = vmatpush1.msra.mxu0 %v9327_v59  ;;  %3968 = vmatpush1.msra.mxu1 %v9330_v10  ;;  %v12922_v59 = vld [vmem:[#allocation35_spill] sm:$0xff]  ;;  %v12923_v10 = vld [vmem:[#allocation36_spill] sm:$0xff] }
 0x5b7   : > { %3898 = vmatprep.subr.mxu0 %v9335_v2  ;;  %3969 = vmatprep.subr.mxu1 %v9338_v12  ;;  %v12924_v2 = vld [vmem:[#allocation37_spill] sm:$0xff]  ;;  %v12925_v12 = vld [vmem:[#allocation38_spill] sm:$0xff] }
 0x5b8   : > { %3899 = vmatpush1.msra.mxu0 %v9343_v13  ;;  %3970 = vmatpush1.msra.mxu1 %v9346_v38  ;;  %v12926_v13 = vld [vmem:[#allocation39_spill] sm:$0xff]  ;;  %v12927_v38 = vld [vmem:[#allocation40_spill] sm:$0xff] }
 0x5b9   : > { %3900 = vmatprep.subr.mxu0 %v9351_v14  ;;  %3971 = vmatprep.subr.mxu1 %v9354_v16  ;;  %v12928_v14 = vld [vmem:[#allocation41_spill] sm:$0xff]  ;;  %v12929_v16 = vld [vmem:[#allocation42_spill] sm:$0xff] }
 0x5ba   : > { %3901 = vmatpush1.msra.mxu0 %v9359_v17  ;;  %3972 = vmatpush1.msra.mxu1 %v9362_v18  ;;  %v12930_v17 = vld [vmem:[#allocation43_spill] sm:$0xff]  ;;  %v12931_v18 = vld [vmem:[#allocation44_spill] sm:$0xff] }
 0x5bb   : > { %3902 = vmatprep.subr.mxu0 %v9367_v20  ;;  %3973 = vmatprep.subr.mxu1 %v9370_v21  ;;  %v12932_v20 = vld [vmem:[#allocation45_spill] sm:$0xff]  ;;  %v12933_v21 = vld [vmem:[#allocation46_spill] sm:$0xff] }
 0x5bc   : > { %3903 = vmatpush1.msra.mxu0 %v9375_v24  ;;  %3974 = vmatpush1.msra.mxu1 %v12893_v37  ;;  %v12934_v24 = vld [vmem:[#allocation47_spill] sm:$0xff]  ;;  %v12953_v37 = vld [vmem:[#allocation66_spill] sm:$0xff] }
 0x5bd   : > { %3904 = vmatprep.subr.mxu0 %v12894_v43  ;;  %3975 = vmatprep.subr.mxu1 %v12895_v41  ;;  %v12954_v43 = vld [vmem:[#allocation67_spill] sm:$0xff]  ;;  %v12955_v41 = vld [vmem:[#allocation68_spill] sm:$0xff] }
 0x5be   : > { %3905 = vmatpush1.msra.mxu0 %v12896_v42  ;;  %3976 = vmatpush1.msra.mxu1 %v12897_v31  ;;  %v12956_v42 = vld [vmem:[#allocation69_spill] sm:$0xff]  ;;  %v12957_v31 = vld [vmem:[#allocation70_spill] sm:$0xff] }
 0x5bf   : > { %3906 = vmatprep.subr.mxu0 %v12898_v29  ;;  %3977 = vmatprep.subr.mxu1 %v12899_v52  ;;  %v12958_v29 = vld [vmem:[#allocation71_spill] sm:$0xff]  ;;  %v12959_v52 = vld [vmem:[#allocation72_spill] sm:$0xff] }
 0x5c0   : > { %3907 = vmatpush1.msra.mxu0 %v12900_v44  ;;  %3978 = vmatpush1.msra.mxu1 %v12901_v45  ;;  %v12960_v44 = vld [vmem:[#allocation73_spill] sm:$0xff]  ;;  %v12961_v45 = vld [vmem:[#allocation74_spill] sm:$0xff] }
 0x5c1   : > { %3908 = vmatprep.subr.mxu0 %v12902_v15  ;;  %3979 = vmatprep.subr.mxu1 %v12903_v46  ;;  %v12962_v15 = vld [vmem:[#allocation75_spill] sm:$0xff]  ;;  %v12963_v46 = vld [vmem:[#allocation76_spill] sm:$0xff] }
 0x5c2   : > { %3909 = vmatpush1.msra.mxu0 %v12904_v47  ;;  %3980 = vmatpush1.msra.mxu1 %v12905_v60  ;;  %v12964_v47 = vld [vmem:[#allocation77_spill] sm:$0xff]  ;;  %v12965_v60 = vld [vmem:[#allocation78_spill] sm:$0xff] }
 0x5c3   : > { %3910 = vmatprep.subr.mxu0 %v12906_v54  ;;  %3981 = vmatprep.subr.mxu1 %v12907_v55  ;;  %v12966_v54 = vld [vmem:[#allocation79_spill] sm:$0xff]  ;;  %v12967_v55 = vld [vmem:[#allocation80_spill] sm:$0xff] }
 0x5c4   : > { %3911 = vmatpush1.msra.mxu0 %v12908_v57  ;;  %3982 = vmatpush1.msra.mxu1 %v12909_v9  ;;  %v12968_v57 = vld [vmem:[#allocation81_spill] sm:$0xff]  ;;  %v12969_v9 = vld [vmem:[#allocation82_spill] sm:$0xff] }
 0x5c5   : > { %3912 = vmatprep.subr.mxu0 %v12910_v7  ;;  %3983 = vmatprep.subr.mxu1 %v12911_v0  ;;  %v12970_v7 = vld [vmem:[#allocation83_spill] sm:$0xff]  ;;  %v12971_v0 = vld [vmem:[#allocation84_spill] sm:$0xff] }
 0x5c6   : > { %3913 = vmatpush1.msra.mxu0 %v12912_v11  ;;  %3946 = vmatprep.mubr.f32.mxu0 %v12913_v56  ;;  %v12972_v11 = vld [vmem:[#allocation85_spill] sm:$0xff] }
 0x5c7   : > { %3984 = vmatpush1.msra.mxu1 %v12914_v5  ;;  %4017 = vmatprep.mubr.f32.mxu1 %v12913_v56  ;;  %v12973_v5 = vld [vmem:[#allocation86_spill] sm:$0xff] }
 0x5c8   : > { %3947 = vmatmul.mubr.f32.vlgmr.msra.gmra.mxu0 %v10002_v19  ;;  %4018 = vmatmul.mubr.f32.vlgmr.msra.gmra.mxu1 %v10002_v19  ;;  %v12952_v19 = vld [vmem:[#allocation65_spill] sm:$0xff] }
 0x5c9   : > { %4224 = vmatprep.subr.mxu0 %v12915_v3  ;;  %4295 = vmatprep.subr.mxu1 %v12916_v6  ;;  %v12974_v3 = vld [vmem:[#allocation87_spill] sm:$0xff]  ;;  %v12975_v6 = vld [vmem:[#allocation88_spill] sm:$0xff] }
 0x5ca   : > { %4225 = vmatpush1.msra.mxu0 %v12917_v62  ;;  %4296 = vmatpush1.msra.mxu1 %v12918_v1  ;;  %v12976_v62 = vld [vmem:[#allocation89_spill] sm:$0xff]  ;;  %v12977_v1 = vld [vmem:[#allocation90_spill] sm:$0xff] }
 0x5cb   : > { %4226 = vmatprep.subr.mxu0 %v12919_v8  ;;  %4297 = vmatprep.subr.mxu1 %v12920_v63  ;;  %v12978_v8 = vld [vmem:[#allocation91_spill] sm:$0xff]  ;;  %v12979_v63 = vld [vmem:[#allocation92_spill] sm:$0xff] }
 0x5cc   : > { %4227 = vmatpush1.msra.mxu0 %v12921_v61  ;;  %4298 = vmatpush1.msra.mxu1 %v12922_v59  ;;  %v12980_v61 = vld [vmem:[#allocation93_spill] sm:$0xff]  ;;  %v12981_v59 = vld [vmem:[#allocation94_spill] sm:$0xff] }
 0x5cd   : > { %4228 = vmatprep.subr.mxu0 %v12923_v10  ;;  %4299 = vmatprep.subr.mxu1 %v12924_v2  ;;  %v12982_v10 = vld [vmem:[#allocation95_spill] sm:$0xff]  ;;  %v12983_v2 = vld [vmem:[#allocation96_spill] sm:$0xff] }
 0x5ce   : > { %4229 = vmatpush1.msra.mxu0 %v12925_v12  ;;  %4300 = vmatpush1.msra.mxu1 %v12926_v13  ;;  %v12984_v12 = vld [vmem:[#allocation97_spill] sm:$0xff]  ;;  %v12985_v13 = vld [vmem:[#allocation98_spill] sm:$0xff] }
 0x5cf   : > { %4230 = vmatprep.subr.mxu0 %v12927_v38  ;;  %4301 = vmatprep.subr.mxu1 %v12928_v14  ;;  %v12986_v38 = vld [vmem:[#allocation99_spill] sm:$0xff]  ;;  %v12987_v14 = vld [vmem:[#allocation100_spill] sm:$0xff] }
 0x5d0   : > { %4231 = vmatpush1.msra.mxu0 %v12929_v16  ;;  %4302 = vmatpush1.msra.mxu1 %v12930_v17  ;;  %v12988_v16 = vld [vmem:[#allocation101_spill] sm:$0xff]  ;;  %v12989_v17 = vld [vmem:[#allocation102_spill] sm:$0xff] }
 0x5d1   : > { %4232 = vmatprep.subr.mxu0 %v12931_v18  ;;  %4303 = vmatprep.subr.mxu1 %v12932_v20  ;;  %v12990_v18 = vld [vmem:[#allocation103_spill] sm:$0xff]  ;;  %v12991_v20 = vld [vmem:[#allocation104_spill] sm:$0xff] }
 0x5d2   : > { %4233 = vmatpush1.msra.mxu0 %v12933_v21  ;;  %4304 = vmatpush1.msra.mxu1 %v12934_v24  ;;  %v12992_v21 = vld [vmem:[#allocation105_spill] sm:$0xff]  ;;  %v12993_v24 = vld [vmem:[#allocation106_spill] sm:$0xff] }
 0x5d3   : > { %4234 = vmatprep.subr.mxu0 %v12935_v35  ;;  %4305 = vmatprep.subr.mxu1 %v12936_v36  ;;  %v12994_v35 = vld [vmem:[#allocation107_spill] sm:$0xff]  ;;  %v12995_v36 = vld [vmem:[#allocation108_spill] sm:$0xff] }
 0x5d4   : > { %4235 = vmatpush1.msra.mxu0 %v12937_v50  ;;  %4306 = vmatpush1.msra.mxu1 %v12938_v34  ;;  %v12996_v50 = vld [vmem:[#allocation109_spill] sm:$0xff]  ;;  %v12997_v34 = vld [vmem:[#allocation110_spill] sm:$0xff] }
 0x5d5   : > { %4236 = vmatprep.subr.mxu0 %v12939_v4  ;;  %4307 = vmatprep.subr.mxu1 %v12940_v51  ;;  %v12998_v4 = vld [vmem:[#allocation111_spill] sm:$0xff]  ;;  %v12999_v51 = vld [vmem:[#allocation112_spill] sm:$0xff] }
 0x5d6   : > { %4237 = vmatpush1.msra.mxu0 %v12941_v33  ;;  %4308 = vmatpush1.msra.mxu1 %v12942_v53  ;;  %v13000_v33 = vld [vmem:[#allocation113_spill] sm:$0xff]  ;;  %v13001_v53 = vld [vmem:[#allocation114_spill] sm:$0xff] }
 0x5d7   : > { %4238 = vmatprep.subr.mxu0 %v12943_v48  ;;  %4309 = vmatprep.subr.mxu1 %v12944_v22  ;;  %v13002_v48 = vld [vmem:[#allocation115_spill] sm:$0xff]  ;;  %v13003_v22 = vld [vmem:[#allocation116_spill] sm:$0xff] }
 0x5d8   : > { %4239 = vmatpush1.msra.mxu0 %v12945_v28  ;;  %4310 = vmatpush1.msra.mxu1 %v12946_v32  ;;  %v13004_v28 = vld [vmem:[#allocation117_spill] sm:$0xff]  ;;  %v13005_v32 = vld [vmem:[#allocation118_spill] sm:$0xff] }
 0x5d9   : > { %4240 = vmatprep.subr.mxu0 %v12947_v26  ;;  %4311 = vmatprep.subr.mxu1 %v12948_v27  ;;  %v13006_v26 = vld [vmem:[#allocation119_spill] sm:$0xff]  ;;  %v13007_v27 = vld [vmem:[#allocation120_spill] sm:$0xff] }
 0x5da   : > { %4241 = vmatpush1.msra.mxu0 %v12949_v30  ;;  %4312 = vmatpush1.msra.mxu1 %v12950_v39  ;;  %v13008_v30 = vld [vmem:[#allocation121_spill] sm:$0xff]  ;;  %v13009_v39 = vld [vmem:[#allocation122_spill] sm:$0xff] }
 0x5db   : > { %4242 = vmatprep.subr.mxu0 %v12951_v58  ;;  %4313 = vmatprep.subr.mxu1 %v12952_v19  ;;  %v13010_v58 = vld [vmem:[#allocation123_spill] sm:$0xff]  ;;  %v13011_v19 = vld [vmem:[#allocation124_spill] sm:$0xff] }
 0x5dc   : > { %4243 = vmatpush1.msra.mxu0 %v12953_v37  ;;  %4314 = vmatpush1.msra.mxu1 %v12954_v43  ;;  %v13012_v37 = vld [vmem:[#allocation125_spill] sm:$0xff]  ;;  %v13013_v43 = vld [vmem:[#allocation126_spill] sm:$0xff] }
 0x5dd   : > { %4244 = vmatprep.subr.mxu0 %v12955_v41  ;;  %4315 = vmatprep.subr.mxu1 %v12956_v42  ;;  %v13014_v41 = vld [vmem:[#allocation127_spill] sm:$0xff]  ;;  %v13015_v42 = vld [vmem:[#allocation128_spill] sm:$0xff] }
 0x5de   : > { %4245 = vmatpush1.msra.mxu0 %v12957_v31  ;;  %4316 = vmatpush1.msra.mxu1 %v12958_v29  ;;  %v13016_v31 = vld [vmem:[#allocation129_spill] sm:$0xff]  ;;  %v13017_v29 = vld [vmem:[#allocation130_spill] sm:$0xff] }
 0x5df   : > { %4246 = vmatprep.subr.mxu0 %v12959_v52  ;;  %4317 = vmatprep.subr.mxu1 %v12960_v44  ;;  %v13018_v52 = vld [vmem:[#allocation131_spill] sm:$0xff]  ;;  %v13019_v44 = vld [vmem:[#allocation132_spill] sm:$0xff] }
 0x5e0   : > { %4247 = vmatpush1.msra.mxu0 %v12961_v45  ;;  %4318 = vmatpush1.msra.mxu1 %v12962_v15  ;;  %v13020_v45 = vld [vmem:[#allocation133_spill] sm:$0xff]  ;;  %v13021_v15 = vld [vmem:[#allocation134_spill] sm:$0xff] }
 0x5e1   : > { %4248 = vmatprep.subr.mxu0 %v12963_v46  ;;  %4319 = vmatprep.subr.mxu1 %v12964_v47  ;;  %v13022_v46 = vld [vmem:[#allocation135_spill] sm:$0xff]  ;;  %v13023_v47 = vld [vmem:[#allocation136_spill] sm:$0xff] }
 0x5e2   : > { %4249 = vmatpush1.msra.mxu0 %v12965_v60  ;;  %4320 = vmatpush1.msra.mxu1 %v12966_v54  ;;  %v13024_v60 = vld [vmem:[#allocation137_spill] sm:$0xff]  ;;  %v13025_v54 = vld [vmem:[#allocation138_spill] sm:$0xff] }
 0x5e3   : > { %4250 = vmatprep.subr.mxu0 %v12967_v55  ;;  %4321 = vmatprep.subr.mxu1 %v12968_v57  ;;  %v13026_v55 = vld [vmem:[#allocation139_spill] sm:$0xff]  ;;  %v13027_v57 = vld [vmem:[#allocation140_spill] sm:$0xff] }
 0x5e4   : > { %4251 = vmatpush1.msra.mxu0 %v12969_v9  ;;  %4322 = vmatpush1.msra.mxu1 %v12970_v7  ;;  %v13028_v9 = vld [vmem:[#allocation141_spill] sm:$0xff]  ;;  %v13029_v7 = vld [vmem:[#allocation142_spill] sm:$0xff] }
 0x5e5   : > { %4252 = vmatprep.subr.mxu0 %v12971_v0  ;;  %4323 = vmatprep.subr.mxu1 %v12972_v11  ;;  %v13030_v0 = vld [vmem:[#allocation143_spill] sm:$0xff]  ;;  %v13031_v11 = vld [vmem:[#allocation144_spill] sm:$0xff] }
 0x5e6   : > { %4253 = vmatpush1.msra.mxu0 %v12973_v5  ;;  %4324 = vmatpush1.msra.mxu1 %v12974_v3  ;;  %v13032_v5 = vld [vmem:[#allocation145_spill] sm:$0xff]  ;;  %v13033_v3 = vld [vmem:[#allocation146_spill] sm:$0xff] }
 0x5e7   : > { %4254 = vmatprep.subr.mxu0 %v12975_v6  ;;  %4325 = vmatprep.subr.mxu1 %v12976_v62  ;;  %v13034_v6 = vld [vmem:[#allocation147_spill] sm:$0xff]  ;;  %v13035_v62 = vld [vmem:[#allocation148_spill] sm:$0xff] }
 0x5e8   : > { %4255 = vmatpush1.msra.mxu0 %v12977_v1  ;;  %4326 = vmatpush1.msra.mxu1 %v12978_v8  ;;  %v13036_v1 = vld [vmem:[#allocation149_spill] sm:$0xff]  ;;  %v13037_v8 = vld [vmem:[#allocation150_spill] sm:$0xff] }
 0x5e9   : > { %4256 = vmatprep.subr.mxu0 %v12979_v63  ;;  %4327 = vmatprep.subr.mxu1 %v12980_v61  ;;  %v13038_v63 = vld [vmem:[#allocation154_spill] sm:$0xff]  ;;  %v13039_v61 = vld [vmem:[#allocation155_spill] sm:$0xff] }
 0x5ea   : > { %4257 = vmatpush2.msra.mxu0 %v12981_v59  ;;  %4328 = vmatpush2.msra.mxu1 %v12982_v10  ;;  %v13040_v59 = vld [vmem:[#allocation156_spill] sm:$0xff]  ;;  %v13041_v10 = vld [vmem:[#allocation157_spill] sm:$0xff] }
 0x5eb   : > { %4258 = vmatprep.subr.mxu0 %v12983_v2  ;;  %4329 = vmatprep.subr.mxu1 %v12984_v12  ;;  %v13042_v2 = vld [vmem:[#allocation159_spill] sm:$0xff]  ;;  %v10201_v12 = vld [vmem:[%s7154_s30 + $0x1e8] sm:$0xff] }
 0x5ec   : > { %4259 = vmatpush2.msra.mxu0 %v12985_v13  ;;  %4330 = vmatpush2.msra.mxu1 %v12986_v38  ;;  %v10204_v13 = vld [vmem:[%s7154_s30 + $0x1f8] sm:$0xff]  ;;  %v3625_v38 = vld [vmem:[%s8186_s20] sm:$0xf] }
 0x5ed   : > { %4260 = vmatprep.subr.mxu0 %v12987_v14  ;;  %4331 = vmatprep.subr.mxu1 %v12988_v16  ;;  %v13043_v14 = vld [vmem:[#allocation151_spill] sm:$0xff] }
 0x5ee   : > { %4261 = vmatpush2.msra.mxu0 %v12989_v17  ;;  %4332 = vmatpush2.msra.mxu1 %v12990_v18  ;;  %v3630_v16 = vrot.slane %v3625_v38, %v13043_v14  ;;  %v13044_v17 = vld [vmem:[#allocation153_spill] sm:$0xff] }
 0x5ef   : > { %4262 = vmatprep.subr.mxu0 %v12991_v20  ;;  %4333 = vmatprep.subr.mxu1 %v12992_v21  ;;  %v3634_v18 = vrot.slane %v3625_v38, %v13044_v17 }
 0x5f0   : > { %4263 = vmatpush2.msra.mxu0 %v12993_v24  ;;  %4334 = vmatpush2.msra.mxu1 %v12994_v35 }
 0x5f1   : > { %4264 = vmatprep.subr.mxu0 %v12995_v36  ;;  %4335 = vmatprep.subr.mxu1 %v12996_v50 }
 0x5f2   : > { %4265 = vmatpush2.msra.mxu0 %v12997_v34  ;;  %4336 = vmatpush2.msra.mxu1 %v12998_v4  ;;  %v3642_v4 = vrot.slane %v3625_v38, %v12436_v49 }
 0x5f3   : > { %4266 = vmatprep.subr.mxu0 %v12999_v51  ;;  %4337 = vmatprep.subr.mxu1 %v13000_v33 }
 0x5f4   : > { %4267 = vmatpush2.msra.mxu0 %v13001_v53  ;;  %4338 = vmatpush2.msra.mxu1 %v13002_v48  ;;  %v13045_v53 = vld [vmem:[#allocation152_spill] sm:$0xff] }
 0x5f5   : > { %4268 = vmatprep.subr.mxu0 %v13003_v22  ;;  %4339 = vmatprep.subr.mxu1 %v13004_v28  ;;  %v3638_v48 = vrot.slane %v3625_v38, %v13045_v53 }
 0x5f6   : > { %4269 = vmatpush2.msra.mxu0 %v13005_v32  ;;  %4340 = vmatpush2.msra.mxu1 %v13006_v26 }
 0x5f7   : > { %4270 = vmatprep.subr.mxu0 %v13007_v27  ;;  %4341 = vmatprep.subr.mxu1 %v13008_v30 }
 0x5f8   : > { %4271 = vmatpush2.msra.mxu0 %v13009_v39  ;;  %4342 = vmatpush2.msra.mxu1 %v13010_v58 }
 0x5f9   : > { %4272 = vmatprep.subr.mxu0 %v13011_v19  ;;  %4343 = vmatprep.subr.mxu1 %v13012_v37 }
 0x5fa   : > { %4273 = vmatpush2.msra.mxu0 %v13013_v43  ;;  %4344 = vmatpush2.msra.mxu1 %v13014_v41 }
 0x5fb   : > { %4274 = vmatprep.subr.mxu0 %v13015_v42  ;;  %4345 = vmatprep.subr.mxu1 %v13016_v31  ;;  %v3814_v42 = vld [vmem:[#allocation2 + $0x8] sm:$0xc] }
 0x5fc   : > { %4275 = vmatpush2.msra.mxu0 %v13017_v29  ;;  %4346 = vmatpush2.msra.mxu1 %v13018_v52 }
 0x5fd   : > { %4276 = vmatprep.subr.mxu0 %v13019_v44  ;;  %4347 = vmatprep.subr.mxu1 %v13020_v45 }
 0x5fe   : > { %4277 = vmatpush2.msra.mxu0 %v13021_v15  ;;  %4348 = vmatpush2.msra.mxu1 %v13022_v46 }
 0x5ff   : > { %4278 = vmatprep.subr.mxu0 %v13023_v47  ;;  %4349 = vmatprep.subr.mxu1 %v13024_v60  ;;  %v3815_v47 = vld [vmem:[#allocation2 + $0x20] sm:$0xc] }
 0x600   : > { %4279 = vmatpush2.msra.mxu0 %v13025_v54  ;;  %4350 = vmatpush2.msra.mxu1 %v13026_v55 }
 0x601   : > { %4280 = vmatprep.subr.mxu0 %v13027_v57  ;;  %4351 = vmatprep.subr.mxu1 %v13028_v9 }
 0x602   : > { %4281 = vmatpush2.msra.mxu0 %v13029_v7  ;;  %4352 = vmatpush2.msra.mxu1 %v13030_v0  ;;  %v3817_v0 = vld [vmem:[#allocation2 + $0x38] sm:$0xc] }
 0x603   : > { %4282 = vmatprep.subr.mxu0 %v13031_v11  ;;  %4353 = vmatprep.subr.mxu1 %v13032_v5 }
 0x604   : > { %4283 = vmatpush2.msra.mxu0 %v13033_v3  ;;  %4354 = vmatpush2.msra.mxu1 %v13034_v6 }
 0x605   : > { %4284 = vmatprep.subr.mxu0 %v13035_v62  ;;  %4355 = vmatprep.subr.mxu1 %v13036_v1  ;;  %v3816_v62 = vld [vmem:[#allocation2 + $0x28] sm:$0xc] }
 0x606   : > { %4285 = vmatpush2.msra.mxu0 %v13037_v8  ;;  %4356 = vmatpush2.msra.mxu1 %v13038_v63 }
 0x607   : > { %4286 = vmatprep.subr.mxu0 %v13039_v61  ;;  %4357 = vmatprep.subr.mxu1 %v13040_v59 }
 0x608   : > { %4287 = vmatpush2.msra.mxu0 %v13041_v10  ;;  %4358 = vmatpush2.msra.mxu1 %v13042_v2 }
 0x609   : > { %4459 = vmatprep.subr.mxu0 %v10201_v12  ;;  %4530 = vmatprep.subr.mxu1 %v10204_v13 }
 0x667   : > { %v3713_v20 = vpop.f32.mrf.mxu0  ;;  %v3784_v50 = vpop.f32.mrf.mxu1 }
 0x668   : > { %v3714_v21 = vadd.f32 %v3713_v20, %v3630_v16  ;;  %v3785_v32 = vadd.f32 %v3784_v50, %v3638_v48 }
 0x669   : > { %v3715_v24 = vpop.f32.mrf.mxu0  ;;  %v3786_v51 = vpop.f32.mrf.mxu1 }
 0x66a   : > { %v6620_v35 = vmul.f32 -1.442695, %v3714_v21  ;;  %v3716_v36 = vadd.f32 %v3715_v24, %v3634_v18  ;;  %v3787_v33 = vadd.f32 %v3786_v51, %v3642_v4  ;;  %v4060_v21 = vrot.slane %v9999_v23, 6  ;;  %v10228_v23 = vld [vmem:[%s7154_s30 + $0x1e0] sm:$0xff] }
 0x66c   : > { %6900 = vpow2.f32 %v6620_v35  ;;  %v6621_v34 = vmul.f32 -1.442695, %v3716_v36  ;;  %v6622_v22 = vmul.f32 -1.442695, %v3787_v33 }
 0x66e   : > { %6902 = vpow2.f32 %v6621_v34 }
 0x66f   : > { %6904 = vpow2.f32 %v6622_v22  ;;  %v10231_v22 = vld [vmem:[%s7154_s30 + $0x1f0] sm:$0xff] }
 0x679   : > { %v6901_v28 = vpop.eup %6900 }
 0x67a   : > { %v3792_v26 = vadd.f32 1.0, %v6901_v28  ;;  %v10234_v28 = vld [vmem:[%s7154_s30 + $0x1c8] sm:$0xff] }
 0x67b   : > { %v6903_v27 = vpop.eup %6902 }
 0x67c   : > { %6906 = vrcp.f32 %v3792_v26  ;;  %v3798_v30 = vadd.f32 1.0, %v6903_v27  ;;  %v6905_v39 = vpop.eup %6904  ;;  %v10242_v26 = vld [vmem:[%s7154_s30 + $0x1c0] sm:$0xff]  ;;  %v10245_v27 = vld [vmem:[%s7154_s30 + $0x1d0] sm:$0xff] }
 0x67d   : > { %6908 = vtanh.f32 %v3785_v32  ;;  %v3805_v41 = vadd.f32 1.0, %v6905_v39  ;;  %v10237_v32 = vld [vmem:[%s7154_s30 + $0x1d8] sm:$0xff] }
 0x67e   : > { %6910 = vrcp.f32 %v3798_v30  ;;  %v10250_v30 = vld [vmem:[%s7154_s30 + $0x1a8] sm:$0xff]  ;;  %v10253_v39 = vld [vmem:[%s7154_s30 + $0x1b8] sm:$0xff] }
 0x67f   : > { %6912 = vrcp.f32 %v3805_v41  ;;  %v10274_v41 = vld [vmem:[%s7154_s30 + $0x180] sm:$0xff] }
 0x688   : > { %v3948_v58 = vpop.f32.mrf.mxu0  ;;  %v4019_v44 = vpop.f32.mrf.mxu1 }
 0x689   : > { %v6907_v19 = vpop.eup %6906  ;;  %v4028_v37 = vrot.slane %v3948_v58, 6  ;;  %v4030_v5 = vrot.slane %v4019_v44, 6  ;;  %v10258_v58 = vld [vmem:[%s7154_s30 + $0x1a0] sm:$0xff]  ;;  %v10293_v44 = vld [vmem:[%s7154_s30 + $0x170] sm:$0xff] }
 0x68a   : > { %v6909_v43 = vpop.eup %6908  ;;  %v3950_v31 = vpop.f32.mrf.mxu0 }
 0x68b   : > { %v6911_v29 = vpop.eup %6910  ;;  %v4036_v52 = vadd.f32 %v4028_v37, %v3814_v42  ;;  %v4029_v45 = vrot.slane %v3950_v31, 6  ;;  %v3809_v15 = vmul.f32 %v6909_v43, %v6907_v19  ;;  %v4021_v9 = vpop.f32.mrf.mxu1  ;;  %v4038_v1 = vadd.f32 %v4030_v5, %v3816_v62  ;;  %v10261_v19 = vld [vmem:[%s7154_s30 + $0x1b0] sm:$0xff]  ;;  %v10266_v37 = vld [vmem:[%s7154_s30 + $0x188] sm:$0xff]  ;;  %v10269_v43 = vld [vmem:[%s7154_s30 + $0x198] sm:$0xff] }
 0x68c   : > { %v3808_v46 = vmul.f32 %v6911_v29, %v9990_v25  ;;  %v4031_v7 = vrot.slane %v4021_v9, 6  ;;  %v6913_v6 = vpop.eup %6912  ;;  %v10277_v42 = vld [vmem:[%s7154_s30 + $0x190] sm:$0xff]  ;;  %v10282_v31 = vld [vmem:[%s7154_s30 + $0x168] sm:$0xff]  ;;  %v10285_v29 = vld [vmem:[%s7154_s30 + $0x178] sm:$0xff] }
 0x68d   : > { %v6623_v60 = vmul.f32 -1.442695, %v4036_v52  ;;  %v4037_v54 = vadd.f32 %v4029_v45, %v3815_v47  ;;  %v10290_v52 = vld [vmem:[%s7154_s30 + $0x160] sm:$0xff]  ;;  %v10298_v45 = vld [vmem:[%s7154_s30 + $0x148] sm:$0xff]  ;;  %v10309_v47 = vld [vmem:[%s7154_s30 + $0x150] sm:$0xff] }
 0x68e   : > { %v10214_v55 = vadd.f32 %v3809_v15, %v3808_v46  ;;  %v4039_v11 = vadd.f32 %v4031_v7, %v3817_v0  ;;  %v10301_v15 = vld [vmem:[%s7154_s30 + $0x158] sm:$0xff]  ;;  %v10306_v46 = vld [vmem:[%s7154_s30 + $0x140] sm:$0xff]  ;;  %v10325_v9 = vld [vmem:[%s7154_s30 + $0x130] sm:$0xff] }
 0x68f   : > { %6914 = vpow2.f32 %v6623_v60  ;;  %v6624_v57 = vmul.f32 -1.442695, %v4037_v54  ;;  %v10314_v60 = vld [vmem:[%s7154_s30 + $0x128] sm:$0xff]  ;;  %v10317_v54 = vld [vmem:[%s7154_s30 + $0x138] sm:$0xff]  ;;  %v10341_v5 = vld [vmem:[%s7154_s30 + $0x110] sm:$0xff] }
 0x690   : > { %6916 = vtanh.f32 %v10214_v55  ;;  %v6625_v3 = vmul.f32 -1.442695, %v4039_v11  ;;  %v10330_v7 = vld [vmem:[%s7154_s30 + $0x108] sm:$0xff]  ;;  %v10333_v0 = vld [vmem:[%s7154_s30 + $0x118] sm:$0xff]  ;;  %v10338_v11 = vld [vmem:[%s7154_s30 + $0x100] sm:$0xff] }
 0x691   : > { %6918 = vpow2.f32 %v6624_v57  ;;  %v10322_v57 = vld [vmem:[%s7154_s30 + $0x120] sm:$0xff] }
 0x692   : > { %6920 = vpow2.f32 %v6625_v3  ;;  %v10346_v3 = vld [vmem:[%s7154_s30 + $0xe8] sm:$0xff]  ;;  %v10354_v62 = vld [vmem:[%s7154_s30 + $0xe0] sm:$0xff] }
 0x69c   : > { %v6915_v25 = vpop.eup %6914 }
 0x69d   : > { %v6917_v8 = vpop.eup %6916  ;;  %v4043_v63 = vadd.f32 1.0, %v6915_v25  ;;  %v10357_v25 = vld [vmem:[%s7154_s30 + $0xf0] sm:$0xff] }
 0x69e   : > { %v6919_v61 = vpop.eup %6918  ;;  %v10217_v59 = vmul.f32 %v6917_v8, %v6913_v6  ;;  %v10349_v6 = vld [vmem:[%s7154_s30 + $0xf8] sm:$0xff] }
 0x69f   : > { %6922 = vrcp.f32 %v4043_v63  ;;  %v4049_v10 = vadd.f32 1.0, %v6919_v61  ;;  %v6921_v16 = vpop.eup %6920  ;;  %v10365_v8 = vld [vmem:[%s7154_s30 + $0xd8] sm:$0xff]  ;;  %v10370_v63 = vld [vmem:[%s7154_s30 + $0xc0] sm:$0xff]  ;;  %v10373_v61 = vld [vmem:[%s7154_s30 + $0xd0] sm:$0xff] }
 0x6a0   : > { %13046 = vst [vmem:[#allocation7_spill] sm:$0xff] %v10217_v59  ;;  %6924 = vtanh.f32 %v4038_v1  ;;  %3813 = vst [vmem:[#allocation3 + $0x8] sm:$0x3] %v10217_v59  ;;  %v4068_v2 = vrot.slane %v10217_v59, 6  ;;  %v4056_v35 = vadd.f32 1.0, %v6921_v16  ;;  %v10362_v1 = vld [vmem:[%s7154_s30 + $0xc8] sm:$0xff] }
 0x6a1   : > { %6926 = vrcp.f32 %v4049_v10  ;;  %v10378_v10 = vld [vmem:[%s7154_s30 + $0xa8] sm:$0xff]  ;;  %v10389_v16 = vld [vmem:[%s7154_s30 + $0xb0] sm:$0xff]  ;;  %v10434_v59 = vld [vmem:[%s7154_s30 + $0x40] sm:$0xff] }
 0x6a2   : > { %v4221_v38 = vrot.slane %v4068_v2, 2  ;;  %6928 = vrcp.f32 %v4056_v35  ;;  %v10381_v2 = vld [vmem:[%s7154_s30 + $0xb8] sm:$0xff]  ;;  %13047 = vst [vmem:[#allocation8_spill] sm:$0xff] %v10389_v16  ;;  %v10410_v35 = vld [vmem:[%s7154_s30 + $0x68] sm:$0xff]  ;;  %13058 = vst [vmem:[#allocation19_spill] sm:$0xff] %v10434_v59 }
 0x6a3   : > { %13052 = vst [vmem:[#allocation13_spill] sm:$0xff] %v10410_v35 }
 0x6a4   : > { %4288 = vmatprep.mubr.f32.mxu0 %v4221_v38  ;;  %4359 = vmatprep.mubr.f32.mxu1 %v4221_v38  ;;  %v10386_v38 = vld [vmem:[%s7154_s30 + $0xa0] sm:$0xff] }
 0x6ac   : > { %v6923_v18 = vpop.eup %6922 }
 0x6ad   : > { %v6925_v20 = vpop.eup %6924 }
 0x6ae   : > { %v6927_v24 = vpop.eup %6926  ;;  %v4063_v36 = vmul.f32 %v6925_v20, %v6923_v18  ;;  %v10394_v18 = vld [vmem:[%s7154_s30 + $0x88] sm:$0xff]  ;;  %v10397_v20 = vld [vmem:[%s7154_s30 + $0x98] sm:$0xff] }
 0x6af   : > { %v4062_v50 = vmul.f32 %v6927_v24, %v4060_v21  ;;  %v6929_v4 = vpop.eup %6928  ;;  %13048 = vst [vmem:[#allocation9_spill] sm:$0xff] %v10394_v18  ;;  %13049 = vst [vmem:[#allocation10_spill] sm:$0xff] %v10397_v20  ;;  %v10402_v21 = vld [vmem:[%s7154_s30 + $0x80] sm:$0xff]  ;;  %v10405_v24 = vld [vmem:[%s7154_s30 + $0x90] sm:$0xff] }
 0x6b0   : > { %13050 = vst [vmem:[#allocation11_spill] sm:$0xff] %v10402_v21  ;;  %13051 = vst [vmem:[#allocation12_spill] sm:$0xff] %v10405_v24 }
 0x6b1   : > { %v10222_v34 = vadd.f32 %v4063_v36, %v4062_v50  ;;  %v10413_v36 = vld [vmem:[%s7154_s30 + $0x78] sm:$0xff]  ;;  %v10418_v50 = vld [vmem:[%s7154_s30 + $0x60] sm:$0xff] }
 0x6b2   : > { %13053 = vst [vmem:[#allocation14_spill] sm:$0xff] %v10413_v36  ;;  %13054 = vst [vmem:[#allocation15_spill] sm:$0xff] %v10418_v50 }
 0x6b3   : > { %6930 = vtanh.f32 %v10222_v34 }
 0x6c0   : > { %v6931_v51 = vpop.eup %6930 }
 0x6c1   : > { %v4066_v33 = vmul.f32 %v6931_v51, %v6929_v4  ;;  %v10421_v4 = vld [vmem:[%s7154_s30 + $0x70] sm:$0xff]  ;;  %v10426_v51 = vld [vmem:[%s7154_s30 + $0x48] sm:$0xff] }
 0x6c2   : > { %13055 = vst [vmem:[#allocation16_spill] sm:$0xff] %v10421_v4  ;;  %13056 = vst [vmem:[#allocation17_spill] sm:$0xff] %v10426_v51 }
 0x6c3   : > { %v10225_v48 = vrot.slane %v4066_v33, 2  ;;  %v10429_v33 = vld [vmem:[%s7154_s30 + $0x58] sm:$0xff] }
 0x6c4   : > { %13057 = vst [vmem:[#allocation18_spill] sm:$0xff] %v10429_v33 }
 0x6c5   : > { %4289 = vmatmul.mubr.f32.vlgmr.msra.gmra.mxu0 %v10225_v48  ;;  %4360 = vmatmul.mubr.f32.vlgmr.msra.gmra.mxu1 %v10225_v48 }
 0x6c6   : > { %4460 = vmatpush1.msra.mxu0 %v10228_v23  ;;  %4531 = vmatpush1.msra.mxu1 %v10231_v22 }
 0x6c7   : > { %4461 = vmatprep.subr.mxu0 %v10234_v28  ;;  %4532 = vmatprep.subr.mxu1 %v10237_v32 }
 0x6c8   : > { %4462 = vmatpush1.msra.mxu0 %v10242_v26  ;;  %4533 = vmatpush1.msra.mxu1 %v10245_v27 }
 0x6c9   : > { %4463 = vmatprep.subr.mxu0 %v10250_v30  ;;  %4534 = vmatprep.subr.mxu1 %v10253_v39 }
 0x6ca   : > { %4464 = vmatpush1.msra.mxu0 %v10258_v58  ;;  %4535 = vmatpush1.msra.mxu1 %v10261_v19 }
 0x6cb   : > { %4465 = vmatprep.subr.mxu0 %v10266_v37  ;;  %4536 = vmatprep.subr.mxu1 %v10269_v43 }
 0x6cc   : > { %4466 = vmatpush1.msra.mxu0 %v10274_v41  ;;  %4537 = vmatpush1.msra.mxu1 %v10277_v42 }
 0x6cd   : > { %4467 = vmatprep.subr.mxu0 %v10282_v31  ;;  %4538 = vmatprep.subr.mxu1 %v10285_v29 }
 0x6ce   : > { %4468 = vmatpush1.msra.mxu0 %v10290_v52  ;;  %4539 = vmatpush1.msra.mxu1 %v10293_v44 }
 0x6cf   : > { %4469 = vmatprep.subr.mxu0 %v10298_v45  ;;  %4540 = vmatprep.subr.mxu1 %v10301_v15 }
 0x6d0   : > { %4470 = vmatpush1.msra.mxu0 %v10306_v46  ;;  %4541 = vmatpush1.msra.mxu1 %v10309_v47 }
 0x6d1   : > { %4471 = vmatprep.subr.mxu0 %v10314_v60  ;;  %4542 = vmatprep.subr.mxu1 %v10317_v54 }
 0x6d2   : > { %4472 = vmatpush1.msra.mxu0 %v10322_v57  ;;  %4543 = vmatpush1.msra.mxu1 %v10325_v9 }
 0x6d3   : > { %4473 = vmatprep.subr.mxu0 %v10330_v7  ;;  %4544 = vmatprep.subr.mxu1 %v10333_v0 }
 0x6d4   : > { %4474 = vmatpush1.msra.mxu0 %v10338_v11  ;;  %4545 = vmatpush1.msra.mxu1 %v10341_v5 }
 0x6d5   : > { %4475 = vmatprep.subr.mxu0 %v10346_v3  ;;  %4546 = vmatprep.subr.mxu1 %v10349_v6 }
 0x6d6   : > { %4476 = vmatpush1.msra.mxu0 %v10354_v62  ;;  %4547 = vmatpush1.msra.mxu1 %v10357_v25 }
 0x6d7   : > { %4477 = vmatprep.subr.mxu0 %v10362_v1  ;;  %4548 = vmatprep.subr.mxu1 %v10365_v8 }
 0x6d8   : > { %4478 = vmatpush1.msra.mxu0 %v10370_v63  ;;  %4549 = vmatpush1.msra.mxu1 %v10373_v61 }
 0x6d9   : > { %4479 = vmatprep.subr.mxu0 %v10378_v10  ;;  %4550 = vmatprep.subr.mxu1 %v10381_v2 }
 0x6da   : > { %4480 = vmatpush1.msra.mxu0 %v10386_v38  ;;  %4551 = vmatpush1.msra.mxu1 %v10389_v16 }
 0x6db   : > { %4481 = vmatprep.subr.mxu0 %v10394_v18  ;;  %4552 = vmatprep.subr.mxu1 %v10397_v20 }
 0x6dc   : > { %4482 = vmatpush1.msra.mxu0 %v10402_v21  ;;  %4553 = vmatpush1.msra.mxu1 %v10405_v24  ;;  %v10442_v24 = vld [vmem:[%s7154_s30 + $0x28] sm:$0xff]  ;;  %v10445_v21 = vld [vmem:[%s7154_s30 + $0x38] sm:$0xff] }
 0x6dd   : > { %4483 = vmatprep.subr.mxu0 %v10410_v35  ;;  %4554 = vmatprep.subr.mxu1 %v10413_v36  ;;  %13060 = vst [vmem:[#allocation21_spill] sm:$0xff] %v10442_v24  ;;  %13061 = vst [vmem:[#allocation22_spill] sm:$0xff] %v10445_v21  ;;  %v10450_v35 = vld [vmem:[%s7154_s30 + $0x20] sm:$0xff]  ;;  %v10453_v36 = vld [vmem:[%s7154_s30 + $0x30] sm:$0xff] }
 0x6de   : > { %4484 = vmatpush1.msra.mxu0 %v10418_v50  ;;  %4555 = vmatpush1.msra.mxu1 %v10421_v4  ;;  %13062 = vst [vmem:[#allocation23_spill] sm:$0xff] %v10450_v35  ;;  %13063 = vst [vmem:[#allocation24_spill] sm:$0xff] %v10453_v36  ;;  %v10458_v50 = vld [vmem:[%s7154_s30 + $0x8] sm:$0xff]  ;;  %v10461_v4 = vld [vmem:[%s7154_s30 + $0x18] sm:$0xff] }
 0x6df   : > { %4485 = vmatprep.subr.mxu0 %v10426_v51  ;;  %4556 = vmatprep.subr.mxu1 %v10429_v33  ;;  %13064 = vst [vmem:[#allocation25_spill] sm:$0xff] %v10458_v50  ;;  %13065 = vst [vmem:[#allocation26_spill] sm:$0xff] %v10461_v4  ;;  %v10466_v51 = vld [vmem:[%s7154_s30] sm:$0xff] }
 0x6e0   : > { %4486 = vmatpush1.msra.mxu0 %v10434_v59  ;;  %4557 = vmatpush1.msra.mxu1 %v10437_v40  ;;  %13066 = vst [vmem:[#allocation27_spill] sm:$0xff] %v10466_v51  ;;  %v10471_v59 = vld [vmem:[%s7154_s30 + $0x10] sm:$0xff]  ;;  %s11211_s30 = sshll.u32 %s13355_s22, 8 }
 0x6e1   : > { %4487 = vmatprep.subr.mxu0 %v10442_v24  ;;  %4558 = vmatprep.subr.mxu1 %v10445_v21  ;;  %13067 = vst [vmem:[#allocation28_spill] sm:$0xff] %v10471_v59  ;;  %v10878_v21 = vld [vmem:[%s7438_s26 + $0x2c8] sm:$0xff]  ;;  %v10889_v24 = vld [vmem:[%s7438_s26 + $0x2d0] sm:$0xff]  ;;  %s11217_s25 = scalar_lea.vmem %s11502_s7, %s11211_s30  ;;  %s11387_s17 = scalar_lea.vmem %s11507_s12, %s11211_s30 }
 0x6e2   : > { %4488 = vmatpush1.msra.mxu0 %v10450_v35  ;;  %4559 = vmatpush1.msra.mxu1 %v10453_v36  ;;  %v10482_v36 = vld [vmem:[%s7438_s26 + $0x1e8] sm:$0xff]  ;;  %v10867_v35 = vld [vmem:[%s7438_s26 + $0x2f8] sm:$0xff]  ;;  %13168 = vst [vmem:[#allocation129_spill] sm:$0xff] %v10878_v21  ;;  %13171 = vst [vmem:[#allocation132_spill] sm:$0xff] %v10889_v24 }
 0x6e3   : > { %4489 = vmatprep.subr.mxu0 %v10458_v50  ;;  %4560 = vmatprep.subr.mxu1 %v10461_v4  ;;  %13068 = vst [vmem:[#allocation29_spill] sm:$0xff] %v10482_v36  ;;  %v10485_v50 = vld [vmem:[%s7438_s26 + $0x1f8] sm:$0xff]  ;;  %v10864_v4 = vld [vmem:[%s7438_s26 + $0x2e8] sm:$0xff]  ;;  %13165 = vst [vmem:[#allocation126_spill] sm:$0xff] %v10867_v35 }
 0x6e4   : > { %4490 = vmatpush1.msra.mxu0 %v10466_v51  ;;  %4523 = vmatprep.mubr.f32.mxu0 %v12913_v56  ;;  %13069 = vst [vmem:[#allocation30_spill] sm:$0xff] %v10485_v50  ;;  %v10490_v51 = vld [vmem:[%s7438_s26 + $0x1e0] sm:$0xff]  ;;  %13164 = vst [vmem:[#allocation125_spill] sm:$0xff] %v10864_v4 }
 0x6e5   : > { %4561 = vmatpush1.msra.mxu1 %v10471_v59  ;;  %4594 = vmatprep.mubr.f32.mxu1 %v12913_v56  ;;  %13070 = vst [vmem:[#allocation31_spill] sm:$0xff] %v10490_v51  ;;  %v10493_v59 = vld [vmem:[%s7438_s26 + $0x1f0] sm:$0xff]  ;;  %v10501_v56 = vld [vmem:[%s7438_s26 + $0x1d8] sm:$0xff] }
 0x6e6   : > { %4524 = vmatmul.mubr.f32.vlgmr.msra.gmra.mxu0 %v10225_v48  ;;  %4595 = vmatmul.mubr.f32.vlgmr.msra.gmra.mxu1 %v10225_v48  ;;  %13071 = vst [vmem:[#allocation32_spill] sm:$0xff] %v10493_v59  ;;  %v10498_v48 = vld [vmem:[%s7438_s26 + $0x1c8] sm:$0xff]  ;;  %13073 = vst [vmem:[#allocation34_spill] sm:$0xff] %v10501_v56 }
 0x6e7   : > { %4801 = vmatprep.subr.mxu0 %v10482_v36  ;;  %4872 = vmatprep.subr.mxu1 %v10485_v50  ;;  %13072 = vst [vmem:[#allocation33_spill] sm:$0xff] %v10498_v48  ;;  %v10506_v50 = vld [vmem:[%s7438_s26 + $0x1c0] sm:$0xff]  ;;  %v10509_v36 = vld [vmem:[%s7438_s26 + $0x1d0] sm:$0xff] }
 0x6e8   : > { %4802 = vmatpush1.msra.mxu0 %v10490_v51  ;;  %4873 = vmatpush1.msra.mxu1 %v10493_v59  ;;  %13074 = vst [vmem:[#allocation35_spill] sm:$0xff] %v10506_v50  ;;  %13075 = vst [vmem:[#allocation36_spill] sm:$0xff] %v10509_v36  ;;  %v10514_v59 = vld [vmem:[%s7438_s26 + $0x1a8] sm:$0xff]  ;;  %v10517_v51 = vld [vmem:[%s7438_s26 + $0x1b8] sm:$0xff] }
 0x6e9   : > { %4803 = vmatprep.subr.mxu0 %v10498_v48  ;;  %4874 = vmatprep.subr.mxu1 %v10501_v56  ;;  %13076 = vst [vmem:[#allocation37_spill] sm:$0xff] %v10514_v59  ;;  %13077 = vst [vmem:[#allocation38_spill] sm:$0xff] %v10517_v51  ;;  %v10522_v56 = vld [vmem:[%s7438_s26 + $0x1a0] sm:$0xff]  ;;  %v10525_v48 = vld [vmem:[%s7438_s26 + $0x1b0] sm:$0xff] }
 0x6ea   : > { %4804 = vmatpush1.msra.mxu0 %v10506_v50  ;;  %4875 = vmatpush1.msra.mxu1 %v10509_v36  ;;  %13078 = vst [vmem:[#allocation39_spill] sm:$0xff] %v10522_v56  ;;  %13079 = vst [vmem:[#allocation40_spill] sm:$0xff] %v10525_v48  ;;  %v10530_v36 = vld [vmem:[%s7438_s26 + $0x188] sm:$0xff]  ;;  %v10533_v50 = vld [vmem:[%s7438_s26 + $0x198] sm:$0xff] }
 0x6eb   : > { %4805 = vmatprep.subr.mxu0 %v10514_v59  ;;  %4876 = vmatprep.subr.mxu1 %v10517_v51  ;;  %13080 = vst [vmem:[#allocation41_spill] sm:$0xff] %v10530_v36  ;;  %13081 = vst [vmem:[#allocation42_spill] sm:$0xff] %v10533_v50  ;;  %v10538_v51 = vld [vmem:[%s7438_s26 + $0x180] sm:$0xff]  ;;  %v10541_v59 = vld [vmem:[%s7438_s26 + $0x190] sm:$0xff] }
 0x6ec   : > { %4806 = vmatpush1.msra.mxu0 %v10522_v56  ;;  %4877 = vmatpush1.msra.mxu1 %v10525_v48  ;;  %13082 = vst [vmem:[#allocation43_spill] sm:$0xff] %v10538_v51  ;;  %13083 = vst [vmem:[#allocation44_spill] sm:$0xff] %v10541_v59  ;;  %v10546_v48 = vld [vmem:[%s7438_s26 + $0x168] sm:$0xff]  ;;  %v10549_v56 = vld [vmem:[%s7438_s26 + $0x178] sm:$0xff] }
 0x6ed   : > { %4807 = vmatprep.subr.mxu0 %v10530_v36  ;;  %4878 = vmatprep.subr.mxu1 %v10533_v50  ;;  %13084 = vst [vmem:[#allocation45_spill] sm:$0xff] %v10546_v48  ;;  %13085 = vst [vmem:[#allocation46_spill] sm:$0xff] %v10549_v56  ;;  %v10554_v50 = vld [vmem:[%s7438_s26 + $0x160] sm:$0xff]  ;;  %v10557_v36 = vld [vmem:[%s7438_s26 + $0x170] sm:$0xff] }
 0x6ee   : > { %4808 = vmatpush1.msra.mxu0 %v10538_v51  ;;  %4879 = vmatpush1.msra.mxu1 %v10541_v59  ;;  %13086 = vst [vmem:[#allocation47_spill] sm:$0xff] %v10554_v50  ;;  %13087 = vst [vmem:[#allocation48_spill] sm:$0xff] %v10557_v36  ;;  %v10562_v59 = vld [vmem:[%s7438_s26 + $0x148] sm:$0xff]  ;;  %v10565_v51 = vld [vmem:[%s7438_s26 + $0x158] sm:$0xff] }
 0x6ef   : > { %4809 = vmatprep.subr.mxu0 %v10546_v48  ;;  %4880 = vmatprep.subr.mxu1 %v10549_v56  ;;  %13088 = vst [vmem:[#allocation49_spill] sm:$0xff] %v10562_v59  ;;  %13089 = vst [vmem:[#allocation50_spill] sm:$0xff] %v10565_v51  ;;  %v10570_v56 = vld [vmem:[%s7438_s26 + $0x140] sm:$0xff]  ;;  %v10573_v48 = vld [vmem:[%s7438_s26 + $0x150] sm:$0xff] }
 0x6f0   : > { %4810 = vmatpush1.msra.mxu0 %v10554_v50  ;;  %4881 = vmatpush1.msra.mxu1 %v10557_v36  ;;  %13090 = vst [vmem:[#allocation51_spill] sm:$0xff] %v10570_v56  ;;  %13091 = vst [vmem:[#allocation52_spill] sm:$0xff] %v10573_v48  ;;  %v10578_v36 = vld [vmem:[%s7438_s26 + $0x128] sm:$0xff]  ;;  %v10581_v50 = vld [vmem:[%s7438_s26 + $0x138] sm:$0xff] }
 0x6f1   : > { %4811 = vmatprep.subr.mxu0 %v10562_v59  ;;  %4882 = vmatprep.subr.mxu1 %v10565_v51  ;;  %13092 = vst [vmem:[#allocation53_spill] sm:$0xff] %v10578_v36  ;;  %13093 = vst [vmem:[#allocation54_spill] sm:$0xff] %v10581_v50  ;;  %v10586_v51 = vld [vmem:[%s7438_s26 + $0x120] sm:$0xff]  ;;  %v10589_v59 = vld [vmem:[%s7438_s26 + $0x130] sm:$0xff] }
 0x6f2   : > { %4812 = vmatpush1.msra.mxu0 %v10570_v56  ;;  %4883 = vmatpush1.msra.mxu1 %v10573_v48  ;;  %13094 = vst [vmem:[#allocation55_spill] sm:$0xff] %v10586_v51  ;;  %13095 = vst [vmem:[#allocation56_spill] sm:$0xff] %v10589_v59  ;;  %v10594_v48 = vld [vmem:[%s7438_s26 + $0x108] sm:$0xff]  ;;  %v10597_v56 = vld [vmem:[%s7438_s26 + $0x118] sm:$0xff] }
 0x6f3   : > { %4813 = vmatprep.subr.mxu0 %v10578_v36  ;;  %4884 = vmatprep.subr.mxu1 %v10581_v50  ;;  %13096 = vst [vmem:[#allocation57_spill] sm:$0xff] %v10594_v48  ;;  %13097 = vst [vmem:[#allocation58_spill] sm:$0xff] %v10597_v56  ;;  %v10602_v50 = vld [vmem:[%s7438_s26 + $0x100] sm:$0xff]  ;;  %v10605_v36 = vld [vmem:[%s7438_s26 + $0x110] sm:$0xff] }
 0x6f4   : > { %4814 = vmatpush1.msra.mxu0 %v10586_v51  ;;  %4885 = vmatpush1.msra.mxu1 %v10589_v59  ;;  %13098 = vst [vmem:[#allocation59_spill] sm:$0xff] %v10602_v50  ;;  %13099 = vst [vmem:[#allocation60_spill] sm:$0xff] %v10605_v36  ;;  %v10610_v59 = vld [vmem:[%s7438_s26 + $0xe8] sm:$0xff]  ;;  %v10613_v51 = vld [vmem:[%s7438_s26 + $0xf8] sm:$0xff] }
 0x6f5   : > { %4815 = vmatprep.subr.mxu0 %v10594_v48  ;;  %4886 = vmatprep.subr.mxu1 %v10597_v56  ;;  %13100 = vst [vmem:[#allocation61_spill] sm:$0xff] %v10610_v59  ;;  %13101 = vst [vmem:[#allocation62_spill] sm:$0xff] %v10613_v51  ;;  %v10618_v56 = vld [vmem:[%s7438_s26 + $0xe0] sm:$0xff]  ;;  %v10621_v48 = vld [vmem:[%s7438_s26 + $0xf0] sm:$0xff] }
 0x6f6   : > { %4816 = vmatpush1.msra.mxu0 %v10602_v50  ;;  %4887 = vmatpush1.msra.mxu1 %v10605_v36  ;;  %13102 = vst [vmem:[#allocation63_spill] sm:$0xff] %v10618_v56  ;;  %13103 = vst [vmem:[#allocation64_spill] sm:$0xff] %v10621_v48  ;;  %v10626_v36 = vld [vmem:[%s7438_s26 + $0xc8] sm:$0xff]  ;;  %v10629_v50 = vld [vmem:[%s7438_s26 + $0xd8] sm:$0xff] }
 0x6f7   : > { %4817 = vmatprep.subr.mxu0 %v10610_v59  ;;  %4888 = vmatprep.subr.mxu1 %v10613_v51  ;;  %13104 = vst [vmem:[#allocation65_spill] sm:$0xff] %v10626_v36  ;;  %13105 = vst [vmem:[#allocation66_spill] sm:$0xff] %v10629_v50  ;;  %v10634_v51 = vld [vmem:[%s7438_s26 + $0xc0] sm:$0xff]  ;;  %v10637_v59 = vld [vmem:[%s7438_s26 + $0xd0] sm:$0xff] }
 0x6f8   : > { %4818 = vmatpush1.msra.mxu0 %v10618_v56  ;;  %4889 = vmatpush1.msra.mxu1 %v10621_v48  ;;  %13106 = vst [vmem:[#allocation67_spill] sm:$0xff] %v10634_v51  ;;  %13107 = vst [vmem:[#allocation68_spill] sm:$0xff] %v10637_v59  ;;  %v10642_v48 = vld [vmem:[%s7438_s26 + $0xa8] sm:$0xff]  ;;  %v10645_v56 = vld [vmem:[%s7438_s26 + $0xb8] sm:$0xff] }
 0x6f9   : > { %4819 = vmatprep.subr.mxu0 %v10626_v36  ;;  %4890 = vmatprep.subr.mxu1 %v10629_v50  ;;  %13108 = vst [vmem:[#allocation69_spill] sm:$0xff] %v10642_v48  ;;  %13109 = vst [vmem:[#allocation70_spill] sm:$0xff] %v10645_v56  ;;  %v10650_v50 = vld [vmem:[%s7438_s26 + $0xa0] sm:$0xff]  ;;  %v10653_v36 = vld [vmem:[%s7438_s26 + $0xb0] sm:$0xff] }
 0x6fa   : > { %4820 = vmatpush1.msra.mxu0 %v10634_v51  ;;  %4891 = vmatpush1.msra.mxu1 %v10637_v59  ;;  %13110 = vst [vmem:[#allocation71_spill] sm:$0xff] %v10650_v50  ;;  %13111 = vst [vmem:[#allocation72_spill] sm:$0xff] %v10653_v36  ;;  %v10658_v59 = vld [vmem:[%s7438_s26 + $0x88] sm:$0xff]  ;;  %v10661_v51 = vld [vmem:[%s7438_s26 + $0x98] sm:$0xff] }
 0x6fb   : > { %4821 = vmatprep.subr.mxu0 %v10642_v48  ;;  %4892 = vmatprep.subr.mxu1 %v10645_v56  ;;  %13112 = vst [vmem:[#allocation73_spill] sm:$0xff] %v10658_v59  ;;  %13113 = vst [vmem:[#allocation74_spill] sm:$0xff] %v10661_v51  ;;  %v10666_v56 = vld [vmem:[%s7438_s26 + $0x80] sm:$0xff]  ;;  %v10669_v48 = vld [vmem:[%s7438_s26 + $0x90] sm:$0xff] }
 0x6fc   : > { %4822 = vmatpush1.msra.mxu0 %v10650_v50  ;;  %4893 = vmatpush1.msra.mxu1 %v10653_v36  ;;  %13114 = vst [vmem:[#allocation75_spill] sm:$0xff] %v10666_v56  ;;  %13115 = vst [vmem:[#allocation76_spill] sm:$0xff] %v10669_v48  ;;  %v10674_v36 = vld [vmem:[%s7438_s26 + $0x68] sm:$0xff]  ;;  %v10677_v50 = vld [vmem:[%s7438_s26 + $0x78] sm:$0xff] }
 0x6fd   : > { %4823 = vmatprep.subr.mxu0 %v10658_v59  ;;  %4894 = vmatprep.subr.mxu1 %v10661_v51  ;;  %13116 = vst [vmem:[#allocation77_spill] sm:$0xff] %v10674_v36  ;;  %13117 = vst [vmem:[#allocation78_spill] sm:$0xff] %v10677_v50  ;;  %v10682_v51 = vld [vmem:[%s7438_s26 + $0x60] sm:$0xff]  ;;  %v10685_v59 = vld [vmem:[%s7438_s26 + $0x70] sm:$0xff] }
 0x6fe   : > { %4824 = vmatpush1.msra.mxu0 %v10666_v56  ;;  %4895 = vmatpush1.msra.mxu1 %v10669_v48  ;;  %13118 = vst [vmem:[#allocation79_spill] sm:$0xff] %v10682_v51  ;;  %13119 = vst [vmem:[#allocation80_spill] sm:$0xff] %v10685_v59  ;;  %v10690_v48 = vld [vmem:[%s7438_s26 + $0x48] sm:$0xff]  ;;  %v10693_v56 = vld [vmem:[%s7438_s26 + $0x58] sm:$0xff] }
 0x6ff   : > { %4825 = vmatprep.subr.mxu0 %v10674_v36  ;;  %4896 = vmatprep.subr.mxu1 %v10677_v50  ;;  %13120 = vst [vmem:[#allocation81_spill] sm:$0xff] %v10690_v48  ;;  %13121 = vst [vmem:[#allocation82_spill] sm:$0xff] %v10693_v56  ;;  %v10698_v50 = vld [vmem:[%s7438_s26 + $0x40] sm:$0xff]  ;;  %v10701_v36 = vld [vmem:[%s7438_s26 + $0x50] sm:$0xff] }
 0x700   : > { %4826 = vmatpush1.msra.mxu0 %v10682_v51  ;;  %4897 = vmatpush1.msra.mxu1 %v10685_v59  ;;  %13122 = vst [vmem:[#allocation83_spill] sm:$0xff] %v10698_v50  ;;  %13123 = vst [vmem:[#allocation84_spill] sm:$0xff] %v10701_v36  ;;  %v10706_v59 = vld [vmem:[%s7438_s26 + $0x28] sm:$0xff]  ;;  %v10709_v51 = vld [vmem:[%s7438_s26 + $0x38] sm:$0xff] }
 0x701   : > { %4827 = vmatprep.subr.mxu0 %v10690_v48  ;;  %4898 = vmatprep.subr.mxu1 %v10693_v56  ;;  %13124 = vst [vmem:[#allocation85_spill] sm:$0xff] %v10706_v59  ;;  %13125 = vst [vmem:[#allocation86_spill] sm:$0xff] %v10709_v51  ;;  %v10714_v56 = vld [vmem:[%s7438_s26 + $0x20] sm:$0xff]  ;;  %v10717_v48 = vld [vmem:[%s7438_s26 + $0x30] sm:$0xff] }
 0x702   : > { %4828 = vmatpush1.msra.mxu0 %v10698_v50  ;;  %4899 = vmatpush1.msra.mxu1 %v10701_v36  ;;  %13126 = vst [vmem:[#allocation87_spill] sm:$0xff] %v10714_v56  ;;  %13127 = vst [vmem:[#allocation88_spill] sm:$0xff] %v10717_v48  ;;  %v10722_v36 = vld [vmem:[%s7438_s26 + $0x8] sm:$0xff]  ;;  %v10725_v50 = vld [vmem:[%s7438_s26 + $0x18] sm:$0xff] }
 0x703   : > { %4829 = vmatprep.subr.mxu0 %v10706_v59  ;;  %4900 = vmatprep.subr.mxu1 %v10709_v51  ;;  %13128 = vst [vmem:[#allocation89_spill] sm:$0xff] %v10722_v36  ;;  %13129 = vst [vmem:[#allocation90_spill] sm:$0xff] %v10725_v50  ;;  %v10730_v51 = vld [vmem:[%s7438_s26] sm:$0xff]  ;;  %v10733_v59 = vld [vmem:[%s7438_s26 + $0x10] sm:$0xff] }
 0x704   : > { %4830 = vmatpush1.msra.mxu0 %v10714_v56  ;;  %4901 = vmatpush1.msra.mxu1 %v10717_v48  ;;  %13130 = vst [vmem:[#allocation91_spill] sm:$0xff] %v10730_v51  ;;  %13131 = vst [vmem:[#allocation92_spill] sm:$0xff] %v10733_v59  ;;  %v10738_v48 = vld [vmem:[%s7438_s26 + $0x3e8] sm:$0xff]  ;;  %v10741_v56 = vld [vmem:[%s7438_s26 + $0x3f8] sm:$0xff] }
 0x705   : > { %4831 = vmatprep.subr.mxu0 %v10722_v36  ;;  %4902 = vmatprep.subr.mxu1 %v10725_v50  ;;  %13132 = vst [vmem:[#allocation93_spill] sm:$0xff] %v10738_v48  ;;  %13133 = vst [vmem:[#allocation94_spill] sm:$0xff] %v10741_v56  ;;  %v10746_v50 = vld [vmem:[%s7438_s26 + $0x3e0] sm:$0xff]  ;;  %v10749_v36 = vld [vmem:[%s7438_s26 + $0x3f0] sm:$0xff] }
 0x706   : > { %4832 = vmatpush1.msra.mxu0 %v10730_v51  ;;  %4903 = vmatpush1.msra.mxu1 %v10733_v59  ;;  %13134 = vst [vmem:[#allocation95_spill] sm:$0xff] %v10746_v50  ;;  %13135 = vst [vmem:[#allocation96_spill] sm:$0xff] %v10749_v36  ;;  %v10754_v59 = vld [vmem:[%s7438_s26 + $0x3c8] sm:$0xff]  ;;  %v10757_v51 = vld [vmem:[%s7438_s26 + $0x3d8] sm:$0xff] }
 0x707   : > { %4833 = vmatprep.subr.mxu0 %v10738_v48  ;;  %4904 = vmatprep.subr.mxu1 %v10741_v56  ;;  %13136 = vst [vmem:[#allocation97_spill] sm:$0xff] %v10754_v59  ;;  %13137 = vst [vmem:[#allocation98_spill] sm:$0xff] %v10757_v51  ;;  %v10762_v56 = vld [vmem:[%s7438_s26 + $0x3c0] sm:$0xff]  ;;  %v10765_v48 = vld [vmem:[%s7438_s26 + $0x3d0] sm:$0xff] }
 0x708   : > { %4834 = vmatpush2.msra.mxu0 %v10746_v50  ;;  %4905 = vmatpush2.msra.mxu1 %v10749_v36  ;;  %13138 = vst [vmem:[#allocation99_spill] sm:$0xff] %v10762_v56  ;;  %13139 = vst [vmem:[#allocation100_spill] sm:$0xff] %v10765_v48  ;;  %v10770_v36 = vld [vmem:[%s7438_s26 + $0x3a8] sm:$0xff]  ;;  %v10773_v50 = vld [vmem:[%s7438_s26 + $0x3b8] sm:$0xff] }
 0x709   : > { %4835 = vmatprep.subr.mxu0 %v10754_v59  ;;  %4906 = vmatprep.subr.mxu1 %v10757_v51  ;;  %13140 = vst [vmem:[#allocation101_spill] sm:$0xff] %v10770_v36  ;;  %13141 = vst [vmem:[#allocation102_spill] sm:$0xff] %v10773_v50  ;;  %v10778_v51 = vld [vmem:[%s7438_s26 + $0x3a0] sm:$0xff]  ;;  %v10781_v59 = vld [vmem:[%s7438_s26 + $0x3b0] sm:$0xff] }
 0x70a   : > { %4836 = vmatpush2.msra.mxu0 %v10762_v56  ;;  %4907 = vmatpush2.msra.mxu1 %v10765_v48  ;;  %13142 = vst [vmem:[#allocation103_spill] sm:$0xff] %v10778_v51  ;;  %13143 = vst [vmem:[#allocation104_spill] sm:$0xff] %v10781_v59  ;;  %v10786_v48 = vld [vmem:[%s7438_s26 + $0x388] sm:$0xff]  ;;  %v10789_v56 = vld [vmem:[%s7438_s26 + $0x398] sm:$0xff] }
 0x70b   : > { %4837 = vmatprep.subr.mxu0 %v10770_v36  ;;  %4908 = vmatprep.subr.mxu1 %v10773_v50  ;;  %13144 = vst [vmem:[#allocation105_spill] sm:$0xff] %v10786_v48  ;;  %13145 = vst [vmem:[#allocation106_spill] sm:$0xff] %v10789_v56  ;;  %v10794_v50 = vld [vmem:[%s7438_s26 + $0x380] sm:$0xff]  ;;  %v10797_v36 = vld [vmem:[%s7438_s26 + $0x390] sm:$0xff] }
 0x70c   : > { %4838 = vmatpush2.msra.mxu0 %v10778_v51  ;;  %4909 = vmatpush2.msra.mxu1 %v10781_v59  ;;  %13146 = vst [vmem:[#allocation107_spill] sm:$0xff] %v10794_v50  ;;  %13147 = vst [vmem:[#allocation108_spill] sm:$0xff] %v10797_v36  ;;  %v10802_v59 = vld [vmem:[%s7438_s26 + $0x368] sm:$0xff]  ;;  %v10805_v51 = vld [vmem:[%s7438_s26 + $0x378] sm:$0xff] }
 0x70d   : > { %4839 = vmatprep.subr.mxu0 %v10786_v48  ;;  %4910 = vmatprep.subr.mxu1 %v10789_v56  ;;  %13148 = vst [vmem:[#allocation109_spill] sm:$0xff] %v10802_v59  ;;  %13149 = vst [vmem:[#allocation110_spill] sm:$0xff] %v10805_v51  ;;  %v10810_v56 = vld [vmem:[%s7438_s26 + $0x360] sm:$0xff]  ;;  %v10813_v48 = vld [vmem:[%s7438_s26 + $0x370] sm:$0xff] }
 0x70e   : > { %4840 = vmatpush2.msra.mxu0 %v10794_v50  ;;  %4911 = vmatpush2.msra.mxu1 %v10797_v36  ;;  %13150 = vst [vmem:[#allocation111_spill] sm:$0xff] %v10810_v56  ;;  %13151 = vst [vmem:[#allocation112_spill] sm:$0xff] %v10813_v48  ;;  %v10818_v36 = vld [vmem:[%s7438_s26 + $0x348] sm:$0xff]  ;;  %v10821_v50 = vld [vmem:[%s7438_s26 + $0x358] sm:$0xff] }
 0x70f   : > { %4841 = vmatprep.subr.mxu0 %v10802_v59  ;;  %4912 = vmatprep.subr.mxu1 %v10805_v51  ;;  %13152 = vst [vmem:[#allocation113_spill] sm:$0xff] %v10818_v36  ;;  %13153 = vst [vmem:[#allocation114_spill] sm:$0xff] %v10821_v50  ;;  %v10826_v51 = vld [vmem:[%s7438_s26 + $0x340] sm:$0xff]  ;;  %v10829_v59 = vld [vmem:[%s7438_s26 + $0x350] sm:$0xff] }
 0x710   : > { %4842 = vmatpush2.msra.mxu0 %v10810_v56  ;;  %4913 = vmatpush2.msra.mxu1 %v10813_v48  ;;  %13154 = vst [vmem:[#allocation115_spill] sm:$0xff] %v10826_v51  ;;  %13155 = vst [vmem:[#allocation116_spill] sm:$0xff] %v10829_v59  ;;  %v10834_v48 = vld [vmem:[%s7438_s26 + $0x328] sm:$0xff]  ;;  %v10837_v56 = vld [vmem:[%s7438_s26 + $0x338] sm:$0xff] }
 0x711   : > { %4843 = vmatprep.subr.mxu0 %v10818_v36  ;;  %4914 = vmatprep.subr.mxu1 %v10821_v50  ;;  %13156 = vst [vmem:[#allocation117_spill] sm:$0xff] %v10834_v48  ;;  %13157 = vst [vmem:[#allocation118_spill] sm:$0xff] %v10837_v56  ;;  %v10842_v50 = vld [vmem:[%s7438_s26 + $0x320] sm:$0xff]  ;;  %v10845_v36 = vld [vmem:[%s7438_s26 + $0x330] sm:$0xff] }
 0x712   : > { %4844 = vmatpush2.msra.mxu0 %v10826_v51  ;;  %4915 = vmatpush2.msra.mxu1 %v10829_v59  ;;  %13158 = vst [vmem:[#allocation119_spill] sm:$0xff] %v10842_v50  ;;  %13159 = vst [vmem:[#allocation120_spill] sm:$0xff] %v10845_v36  ;;  %v10848_v51 = vld [vmem:[%s7438_s26 + $0x308] sm:$0xff]  ;;  %v10853_v59 = vld [vmem:[%s7438_s26 + $0x318] sm:$0xff] }
 0x713   : > { %4845 = vmatprep.subr.mxu0 %v10834_v48  ;;  %4916 = vmatprep.subr.mxu1 %v10837_v56  ;;  %13160 = vst [vmem:[#allocation121_spill] sm:$0xff] %v10848_v51  ;;  %13161 = vst [vmem:[#allocation122_spill] sm:$0xff] %v10853_v59  ;;  %v10856_v48 = vld [vmem:[%s7438_s26 + $0x300] sm:$0xff]  ;;  %v10859_v56 = vld [vmem:[%s7438_s26 + $0x310] sm:$0xff] }
 0x714   : > { %4846 = vmatpush2.msra.mxu0 %v10842_v50  ;;  %4917 = vmatpush2.msra.mxu1 %v10845_v36  ;;  %13162 = vst [vmem:[#allocation123_spill] sm:$0xff] %v10856_v48  ;;  %13163 = vst [vmem:[#allocation124_spill] sm:$0xff] %v10859_v56  ;;  %v10870_v50 = vld [vmem:[%s7438_s26 + $0x2e0] sm:$0xff]  ;;  %v10875_v36 = vld [vmem:[%s7438_s26 + $0x2f0] sm:$0xff] }
 0x715   : > { %4847 = vmatprep.subr.mxu0 %v10848_v51  ;;  %4918 = vmatprep.subr.mxu1 %v10853_v59  ;;  %13166 = vst [vmem:[#allocation127_spill] sm:$0xff] %v10870_v50  ;;  %13167 = vst [vmem:[#allocation128_spill] sm:$0xff] %v10875_v36  ;;  %v10881_v51 = vld [vmem:[%s7438_s26 + $0x2d8] sm:$0xff]  ;;  %v10886_v59 = vld [vmem:[%s7438_s26 + $0x2c0] sm:$0xff] }
 0x716   : > { %4848 = vmatpush2.msra.mxu0 %v10856_v48  ;;  %4919 = vmatpush2.msra.mxu1 %v10859_v56  ;;  %13169 = vst [vmem:[#allocation130_spill] sm:$0xff] %v10881_v51  ;;  %13170 = vst [vmem:[#allocation131_spill] sm:$0xff] %v10886_v59  ;;  %v10894_v56 = vld [vmem:[%s7438_s26 + $0x2a8] sm:$0xff]  ;;  %v10897_v48 = vld [vmem:[%s7438_s26 + $0x2b8] sm:$0xff] }
 0x717   : > { %4849 = vmatprep.subr.mxu0 %v10864_v4  ;;  %4920 = vmatprep.subr.mxu1 %v10867_v35  ;;  %13172 = vst [vmem:[#allocation133_spill] sm:$0xff] %v10894_v56  ;;  %13173 = vst [vmem:[#allocation134_spill] sm:$0xff] %v10897_v48  ;;  %v10902_v35 = vld [vmem:[%s7438_s26 + $0x2a0] sm:$0xff]  ;;  %v10905_v4 = vld [vmem:[%s7438_s26 + $0x2b0] sm:$0xff] }
 0x718   : > { %4850 = vmatpush2.msra.mxu0 %v10870_v50  ;;  %4921 = vmatpush2.msra.mxu1 %v10875_v36  ;;  %13174 = vst [vmem:[#allocation135_spill] sm:$0xff] %v10902_v35  ;;  %13175 = vst [vmem:[#allocation136_spill] sm:$0xff] %v10905_v4  ;;  %v10910_v36 = vld [vmem:[%s7438_s26 + $0x288] sm:$0xff]  ;;  %v10913_v50 = vld [vmem:[%s7438_s26 + $0x298] sm:$0xff] }
 0x719   : > { %4851 = vmatprep.subr.mxu0 %v10878_v21  ;;  %4922 = vmatprep.subr.mxu1 %v10881_v51  ;;  %13176 = vst [vmem:[#allocation137_spill] sm:$0xff] %v10910_v36  ;;  %13177 = vst [vmem:[#allocation138_spill] sm:$0xff] %v10913_v50  ;;  %v10918_v51 = vld [vmem:[%s7438_s26 + $0x280] sm:$0xff]  ;;  %v10921_v21 = vld [vmem:[%s7438_s26 + $0x290] sm:$0xff] }
 0x71a   : > { %4852 = vmatpush2.msra.mxu0 %v10886_v59  ;;  %4923 = vmatpush2.msra.mxu1 %v10889_v24  ;;  %13178 = vst [vmem:[#allocation139_spill] sm:$0xff] %v10918_v51  ;;  %13179 = vst [vmem:[#allocation140_spill] sm:$0xff] %v10921_v21  ;;  %v10926_v24 = vld [vmem:[%s7438_s26 + $0x268] sm:$0xff]  ;;  %v10929_v59 = vld [vmem:[%s7438_s26 + $0x278] sm:$0xff] }
 0x71b   : > { %4853 = vmatprep.subr.mxu0 %v10894_v56  ;;  %4924 = vmatprep.subr.mxu1 %v10897_v48  ;;  %13180 = vst [vmem:[#allocation141_spill] sm:$0xff] %v10926_v24  ;;  %13181 = vst [vmem:[#allocation142_spill] sm:$0xff] %v10929_v59  ;;  %v10934_v48 = vld [vmem:[%s7438_s26 + $0x260] sm:$0xff]  ;;  %v10937_v56 = vld [vmem:[%s7438_s26 + $0x270] sm:$0xff] }
 0x71c   : > { %4854 = vmatpush2.msra.mxu0 %v10902_v35  ;;  %4925 = vmatpush2.msra.mxu1 %v10905_v4  ;;  %13182 = vst [vmem:[#allocation143_spill] sm:$0xff] %v10934_v48  ;;  %13183 = vst [vmem:[#allocation144_spill] sm:$0xff] %v10937_v56  ;;  %v10942_v4 = vld [vmem:[%s7438_s26 + $0x248] sm:$0xff]  ;;  %v10945_v35 = vld [vmem:[%s7438_s26 + $0x258] sm:$0xff] }
 0x71d   : > { %4855 = vmatprep.subr.mxu0 %v10910_v36  ;;  %4926 = vmatprep.subr.mxu1 %v10913_v50  ;;  %13184 = vst [vmem:[#allocation145_spill] sm:$0xff] %v10942_v4  ;;  %13185 = vst [vmem:[#allocation146_spill] sm:$0xff] %v10945_v35  ;;  %v10950_v50 = vld [vmem:[%s7438_s26 + $0x240] sm:$0xff]  ;;  %v10953_v36 = vld [vmem:[%s7438_s26 + $0x250] sm:$0xff] }
 0x71e   : > { %4856 = vmatpush2.msra.mxu0 %v10918_v51  ;;  %4927 = vmatpush2.msra.mxu1 %v10921_v21  ;;  %13186 = vst [vmem:[#allocation147_spill] sm:$0xff] %v10950_v50  ;;  %13187 = vst [vmem:[#allocation148_spill] sm:$0xff] %v10953_v36  ;;  %v10958_v21 = vld [vmem:[%s7438_s26 + $0x228] sm:$0xff]  ;;  %v10961_v51 = vld [vmem:[%s7438_s26 + $0x238] sm:$0xff] }
 0x71f   : > { %4857 = vmatprep.subr.mxu0 %v10926_v24  ;;  %4928 = vmatprep.subr.mxu1 %v10929_v59  ;;  %13188 = vst [vmem:[#allocation149_spill] sm:$0xff] %v10958_v21  ;;  %13189 = vst [vmem:[#allocation150_spill] sm:$0xff] %v10961_v51  ;;  %v10966_v24 = vld [vmem:[%s7438_s26 + $0x220] sm:$0xff]  ;;  %v10969_v59 = vld [vmem:[%s7438_s26 + $0x230] sm:$0xff] }
 0x720   : > { %4858 = vmatpush2.msra.mxu0 %v10934_v48  ;;  %4929 = vmatpush2.msra.mxu1 %v10937_v56  ;;  %13190 = vst [vmem:[#allocation154_spill] sm:$0xff] %v10966_v24  ;;  %13191 = vst [vmem:[#allocation155_spill] sm:$0xff] %v10969_v59  ;;  %v10974_v48 = vld [vmem:[%s7438_s26 + $0x208] sm:$0xff]  ;;  %v10977_v56 = vld [vmem:[%s7438_s26 + $0x218] sm:$0xff] }
 0x721   : > { %4859 = vmatprep.subr.mxu0 %v10942_v4  ;;  %4930 = vmatprep.subr.mxu1 %v10945_v35  ;;  %13192 = vst [vmem:[#allocation156_spill] sm:$0xff] %v10974_v48  ;;  %13193 = vst [vmem:[#allocation157_spill] sm:$0xff] %v10977_v56  ;;  %v10982_v4 = vld [vmem:[%s7438_s26 + $0x200] sm:$0xff]  ;;  %v10985_v35 = vld [vmem:[%s7438_s26 + $0x210] sm:$0xff]  ;;  %s11281_s26 = sshll.u32 %s13355_s22, 1 }
 0x722   : > { %4860 = vmatpush2.msra.mxu0 %v10950_v50  ;;  %4931 = vmatpush2.msra.mxu1 %v10953_v36  ;;  %13194 = vst [vmem:[#allocation159_spill] sm:$0xff] %v10982_v4  ;;  %13195 = vst [vmem:[#allocation161_spill] sm:$0xff] %v10985_v35  ;;  %s721_s29 = scalar_lea.vmem %s11503_s8, %s11281_s26  ;;  %s735_s27 = scalar_lea.vmem %s11506_s11, %s11281_s26 }
 0x723   : > { %4861 = vmatprep.subr.mxu0 %v10958_v21  ;;  %4932 = vmatprep.subr.mxu1 %v10961_v51  ;;  %v4197_v51 = vld [vmem:[%s8186_s20] sm:$0xf]  ;;  %s755_s24 = scalar_lea.vmem %s11511_s16, %s11281_s26 }
 0x724   : > { %4862 = vmatpush2.msra.mxu0 %v10966_v24  ;;  %4933 = vmatpush2.msra.mxu1 %v10969_v59  ;;  %v4202_v21 = vrot.slane %v4197_v51, %v13043_v14  ;;  %v4206_v36 = vrot.slane %v4197_v51, %v13044_v17 }
 0x725   : > { %4863 = vmatprep.subr.mxu0 %v10974_v48  ;;  %4934 = vmatprep.subr.mxu1 %v10977_v56 }
 0x726   : > { %4864 = vmatpush2.msra.mxu0 %v10982_v4  ;;  %4935 = vmatpush2.msra.mxu1 %v10985_v35  ;;  %v4214_v35 = vrot.slane %v4197_v51, %v12436_v49 }
 0x727   : > { %5036 = vmatprep.subr.mxu0 %v10201_v12  ;;  %5107 = vmatprep.subr.mxu1 %v10204_v13  ;;  %v4210_v13 = vrot.slane %v4197_v51, %v13045_v53 }
 0x785   : > { %v4290_v24 = vpop.f32.mrf.mxu0  ;;  %v4361_v33 = vpop.f32.mrf.mxu1 }
 0x786   : > { %v4291_v50 = vadd.f32 %v4290_v24, %v4202_v21  ;;  %v4362_v14 = vadd.f32 %v4361_v33, %v4210_v13 }
 0x787   : > { %v4292_v59 = vpop.f32.mrf.mxu0  ;;  %v4363_v4 = vpop.f32.mrf.mxu1 }
 0x788   : > { %v6626_v40 = vmul.f32 -1.442695, %v4291_v50  ;;  %v4293_v48 = vadd.f32 %v4292_v59, %v4206_v36  ;;  %v4364_v12 = vadd.f32 %v4363_v4, %v4214_v35 }
 0x78a   : > { %6932 = vpow2.f32 %v6626_v40  ;;  %v6627_v56 = vmul.f32 -1.442695, %v4293_v48  ;;  %v6628_v20 = vmul.f32 -1.442695, %v4364_v12  ;;  %v4391_v48 = vld [vmem:[#allocation2 + $0x8] sm:$0x30] }
 0x78c   : > { %6934 = vpow2.f32 %v6627_v56 }
 0x78d   : > { %6936 = vpow2.f32 %v6628_v20  ;;  %v4392_v20 = vld [vmem:[#allocation2 + $0x20] sm:$0x30] }
 0x797   : > { %v6933_v18 = vpop.eup %6932 }
 0x798   : > { %v4369_v16 = vadd.f32 1.0, %v6933_v18 }
 0x799   : > { %v6935_v17 = vpop.eup %6934 }
 0x79a   : > { %6938 = vrcp.f32 %v4369_v16  ;;  %v4375_v21 = vadd.f32 1.0, %v6935_v17  ;;  %v6937_v59 = vpop.eup %6936 }
 0x79b   : > { %6940 = vtanh.f32 %v4362_v14  ;;  %v4382_v50 = vadd.f32 1.0, %v6937_v59 }
 0x79c   : > { %6942 = vrcp.f32 %v4375_v21 }
 0x79d   : > { %6944 = vrcp.f32 %v4382_v50 }
 0x7a6   : > { %v4525_v40 = vpop.f32.mrf.mxu0  ;;  %v4596_v12 = vpop.f32.mrf.mxu1 }
 0x7a7   : > { %v6939_v24 = vpop.eup %6938  ;;  %v4605_v56 = vrot.slane %v4525_v40, 4  ;;  %v4394_v40 = vld [vmem:[#allocation2 + $0x38] sm:$0x30] }
 0x7a8   : > { %v6941_v36 = vpop.eup %6940  ;;  %v4527_v35 = vpop.f32.mrf.mxu0 }
 0x7a9   : > { %v6943_v4 = vpop.eup %6942  ;;  %v4613_v51 = vadd.f32 %v4605_v56, %v4391_v48  ;;  %v4606_v53 = vrot.slane %v4527_v35, 4  ;;  %v4386_v33 = vmul.f32 %v6941_v36, %v6939_v24  ;;  %v4598_v21 = vpop.f32.mrf.mxu1  ;;  %v4607_v48 = vrot.slane %v4596_v12, 4  ;;  %v4393_v36 = vld [vmem:[#allocation2 + $0x28] sm:$0x30] }
 0x7aa   : > { %v4385_v18 = vmul.f32 %v6943_v4, %v10214_v55  ;;  %v4608_v59 = vrot.slane %v4598_v21, 4  ;;  %v6945_v24 = vpop.eup %6944  ;;  %v4637_v21 = vrot.slane %v10222_v34, 6  ;;  %v13196_v34 = vld [vmem:[#allocation8_spill] sm:$0xff] }
 0x7ab   : > { %v6629_v16 = vmul.f32 -1.442695, %v4613_v51  ;;  %v4614_v17 = vadd.f32 %v4606_v53, %v4392_v20  ;;  %v4615_v4 = vadd.f32 %v4607_v48, %v4393_v36 }
 0x7ac   : > { %v11001_v14 = vadd.f32 %v4386_v33, %v4385_v18  ;;  %v4616_v56 = vadd.f32 %v4608_v59, %v4394_v40 }
 0x7ad   : > { %6946 = vpow2.f32 %v6629_v16  ;;  %v6630_v13 = vmul.f32 -1.442695, %v4614_v17 }
 0x7ae   : > { %6948 = vtanh.f32 %v11001_v14  ;;  %v6631_v35 = vmul.f32 -1.442695, %v4616_v56 }
 0x7af   : > { %6950 = vpow2.f32 %v6630_v13 }
 0x7b0   : > { %6952 = vpow2.f32 %v6631_v35 }
 0x7ba   : > { %v6947_v55 = vpop.eup %6946 }
 0x7bb   : > { %v6949_v51 = vpop.eup %6948  ;;  %v4620_v53 = vadd.f32 1.0, %v6947_v55 }
 0x7bc   : > { %v6951_v33 = vpop.eup %6950  ;;  %v11004_v50 = vmul.f32 %v6949_v51, %v6945_v24  ;;  %v13238_v51 = vld [vmem:[#allocation49_spill] sm:$0xff] }
 0x7bd   : > { %6954 = vrcp.f32 %v4620_v53  ;;  %v4626_v18 = vadd.f32 1.0, %v6951_v33  ;;  %v6953_v16 = vpop.eup %6952  ;;  %v13239_v53 = vld [vmem:[#allocation50_spill] sm:$0xff]  ;;  %v13240_v33 = vld [vmem:[#allocation51_spill] sm:$0xff] }
 0x7be   : > { %6956 = vtanh.f32 %v4615_v4  ;;  %4390 = vst [vmem:[#allocation3 + $0xa] sm:$0x3] %v11004_v50  ;;  %v4645_v20 = vrot.slane %v11004_v50, 4  ;;  %v4633_v40 = vadd.f32 1.0, %v6953_v16  ;;  %v13244_v16 = vld [vmem:[#allocation55_spill] sm:$0xff] }
 0x7bf   : > { %6958 = vrcp.f32 %v4626_v18  ;;  %v13241_v18 = vld [vmem:[#allocation52_spill] sm:$0xff] }
 0x7c0   : > { %v4798_v12 = vrot.slane %v4645_v20, 4  ;;  %6960 = vrcp.f32 %v4633_v40  ;;  %v13242_v20 = vld [vmem:[#allocation53_spill] sm:$0xff]  ;;  %v13249_v40 = vld [vmem:[#allocation60_spill] sm:$0xff] }
 0x7c2   : > { %4865 = vmatprep.mubr.f32.mxu0 %v4798_v12  ;;  %4936 = vmatprep.mubr.f32.mxu1 %v4798_v12  ;;  %v13243_v12 = vld [vmem:[#allocation54_spill] sm:$0xff] }
 0x7ca   : > { %v6955_v17 = vpop.eup %6954 }
 0x7cb   : > { %v6957_v13 = vpop.eup %6956 }
 0x7cc   : > { %v6959_v59 = vpop.eup %6958  ;;  %v4640_v56 = vmul.f32 %v6957_v13, %v6955_v17  ;;  %v13245_v17 = vld [vmem:[#allocation56_spill] sm:$0xff]  ;;  %v13246_v13 = vld [vmem:[#allocation57_spill] sm:$0xff] }
 0x7cd   : > { %v4639_v48 = vmul.f32 %v6959_v59, %v4637_v21  ;;  %v6961_v24 = vpop.eup %6960  ;;  %v13247_v21 = vld [vmem:[#allocation58_spill] sm:$0xff]  ;;  %v13248_v59 = vld [vmem:[#allocation59_spill] sm:$0xff] }
 0x7cf   : > { %v11009_v35 = vadd.f32 %v4640_v56, %v4639_v48  ;;  %v13250_v56 = vld [vmem:[#allocation61_spill] sm:$0xff]  ;;  %v13251_v48 = vld [vmem:[#allocation62_spill] sm:$0xff] }
 0x7d1   : > { %6962 = vtanh.f32 %v11009_v35 }
 0x7de   : > { %v6963_v36 = vpop.eup %6962 }
 0x7df   : > { %v4643_v55 = vmul.f32 %v6963_v36, %v6961_v24  ;;  %v13252_v24 = vld [vmem:[#allocation63_spill] sm:$0xff]  ;;  %v13253_v36 = vld [vmem:[#allocation64_spill] sm:$0xff] }
 0x7e1   : > { %v11012_v4 = vrot.slane %v4643_v55, 4  ;;  %v13254_v55 = vld [vmem:[#allocation65_spill] sm:$0xff] }
 0x7e3   : > { %4866 = vmatmul.mubr.f32.vlgmr.msra.gmra.mxu0 %v11012_v4  ;;  %4937 = vmatmul.mubr.f32.vlgmr.msra.gmra.mxu1 %v11012_v4 }
 0x7e4   : > { %5037 = vmatpush1.msra.mxu0 %v10228_v23  ;;  %5108 = vmatpush1.msra.mxu1 %v10231_v22  ;;  %v13197_v23 = vld [vmem:[#allocation9_spill] sm:$0xff]  ;;  %v13198_v22 = vld [vmem:[#allocation10_spill] sm:$0xff] }
 0x7e5   : > { %5038 = vmatprep.subr.mxu0 %v10234_v28  ;;  %5109 = vmatprep.subr.mxu1 %v10237_v32  ;;  %v13199_v28 = vld [vmem:[#allocation11_spill] sm:$0xff]  ;;  %v13200_v32 = vld [vmem:[#allocation12_spill] sm:$0xff] }
 0x7e6   : > { %5039 = vmatpush1.msra.mxu0 %v10242_v26  ;;  %5110 = vmatpush1.msra.mxu1 %v10245_v27  ;;  %v13201_v26 = vld [vmem:[#allocation13_spill] sm:$0xff]  ;;  %v13202_v27 = vld [vmem:[#allocation14_spill] sm:$0xff] }
 0x7e7   : > { %5040 = vmatprep.subr.mxu0 %v10250_v30  ;;  %5111 = vmatprep.subr.mxu1 %v10253_v39  ;;  %v13203_v30 = vld [vmem:[#allocation15_spill] sm:$0xff]  ;;  %v13204_v39 = vld [vmem:[#allocation16_spill] sm:$0xff] }
 0x7e8   : > { %5041 = vmatpush1.msra.mxu0 %v10258_v58  ;;  %5112 = vmatpush1.msra.mxu1 %v10261_v19  ;;  %v13205_v58 = vld [vmem:[#allocation17_spill] sm:$0xff]  ;;  %v13206_v19 = vld [vmem:[#allocation18_spill] sm:$0xff] }
 0x7e9   : > { %5042 = vmatprep.subr.mxu0 %v10266_v37  ;;  %5113 = vmatprep.subr.mxu1 %v10269_v43  ;;  %v13207_v37 = vld [vmem:[#allocation19_spill] sm:$0xff]  ;;  %v13208_v43 = vld [vmem:[#allocation20_spill] sm:$0xff] }
 0x7ea   : > { %5043 = vmatpush1.msra.mxu0 %v10274_v41  ;;  %5114 = vmatpush1.msra.mxu1 %v10277_v42  ;;  %v13209_v41 = vld [vmem:[#allocation21_spill] sm:$0xff]  ;;  %v13210_v42 = vld [vmem:[#allocation22_spill] sm:$0xff] }
 0x7eb   : > { %5044 = vmatprep.subr.mxu0 %v10282_v31  ;;  %5115 = vmatprep.subr.mxu1 %v10285_v29  ;;  %v13211_v31 = vld [vmem:[#allocation23_spill] sm:$0xff]  ;;  %v13212_v29 = vld [vmem:[#allocation24_spill] sm:$0xff] }
 0x7ec   : > { %5045 = vmatpush1.msra.mxu0 %v10290_v52  ;;  %5116 = vmatpush1.msra.mxu1 %v10293_v44  ;;  %v13213_v52 = vld [vmem:[#allocation25_spill] sm:$0xff]  ;;  %v13214_v44 = vld [vmem:[#allocation26_spill] sm:$0xff] }
 0x7ed   : > { %5046 = vmatprep.subr.mxu0 %v10298_v45  ;;  %5117 = vmatprep.subr.mxu1 %v10301_v15  ;;  %v13215_v45 = vld [vmem:[#allocation27_spill] sm:$0xff]  ;;  %v13216_v15 = vmov 0.0  }
 0x7ee   : > { %5047 = vmatpush1.msra.mxu0 %v10306_v46  ;;  %5118 = vmatpush1.msra.mxu1 %v10309_v47  ;;  %v13217_v46 = vld [vmem:[#allocation28_spill] sm:$0xff]  ;;  %v13218_v47 = vld [vmem:[#allocation29_spill] sm:$0xff] }
 0x7ef   : > { %5048 = vmatprep.subr.mxu0 %v10314_v60  ;;  %5119 = vmatprep.subr.mxu1 %v10317_v54  ;;  %v13219_v60 = vld [vmem:[#allocation30_spill] sm:$0xff]  ;;  %v13220_v54 = vld [vmem:[#allocation31_spill] sm:$0xff] }
 0x7f0   : > { %5049 = vmatpush1.msra.mxu0 %v10322_v57  ;;  %5120 = vmatpush1.msra.mxu1 %v10325_v9  ;;  %v13221_v57 = vld [vmem:[#allocation32_spill] sm:$0xff]  ;;  %v13222_v9 = vld [vmem:[#allocation33_spill] sm:$0xff] }
 0x7f1   : > { %5050 = vmatprep.subr.mxu0 %v10330_v7  ;;  %5121 = vmatprep.subr.mxu1 %v10333_v0  ;;  %v13223_v7 = vld [vmem:[#allocation34_spill] sm:$0xff]  ;;  %v13224_v0 = vld [vmem:[#allocation35_spill] sm:$0xff] }
 0x7f2   : > { %5051 = vmatpush1.msra.mxu0 %v10338_v11  ;;  %5122 = vmatpush1.msra.mxu1 %v10341_v5  ;;  %v13225_v11 = vld [vmem:[#allocation36_spill] sm:$0xff]  ;;  %v13226_v5 = vld [vmem:[#allocation37_spill] sm:$0xff] }
 0x7f3   : > { %5052 = vmatprep.subr.mxu0 %v10346_v3  ;;  %5123 = vmatprep.subr.mxu1 %v10349_v6  ;;  %v13227_v3 = vld [vmem:[#allocation38_spill] sm:$0xff]  ;;  %v13228_v6 = vld [vmem:[#allocation39_spill] sm:$0xff] }
 0x7f4   : > { %5053 = vmatpush1.msra.mxu0 %v10354_v62  ;;  %5124 = vmatpush1.msra.mxu1 %v10357_v25  ;;  %v13229_v62 = vld [vmem:[#allocation40_spill] sm:$0xff]  ;;  %v13230_v25 = vld [vmem:[#allocation41_spill] sm:$0xff] }
 0x7f5   : > { %5054 = vmatprep.subr.mxu0 %v10362_v1  ;;  %5125 = vmatprep.subr.mxu1 %v10365_v8  ;;  %v13231_v1 = vld [vmem:[#allocation42_spill] sm:$0xff]  ;;  %v13232_v8 = vld [vmem:[#allocation43_spill] sm:$0xff] }
 0x7f6   : > { %5055 = vmatpush1.msra.mxu0 %v10370_v63  ;;  %5126 = vmatpush1.msra.mxu1 %v10373_v61  ;;  %v13233_v63 = vld [vmem:[#allocation44_spill] sm:$0xff]  ;;  %v13234_v61 = vld [vmem:[#allocation45_spill] sm:$0xff] }
 0x7f7   : > { %5056 = vmatprep.subr.mxu0 %v10378_v10  ;;  %5127 = vmatprep.subr.mxu1 %v10381_v2  ;;  %v13235_v10 = vld [vmem:[#allocation46_spill] sm:$0xff]  ;;  %v13236_v2 = vld [vmem:[#allocation47_spill] sm:$0xff] }
 0x7f8   : > { %5057 = vmatpush1.msra.mxu0 %v10386_v38  ;;  %5128 = vmatpush1.msra.mxu1 %v13196_v34  ;;  %v13237_v38 = vld [vmem:[#allocation48_spill] sm:$0xff]  ;;  %v13256_v34 = vld [vmem:[#allocation67_spill] sm:$0xff] }
 0x7f9   : > { %5058 = vmatprep.subr.mxu0 %v13197_v23  ;;  %5129 = vmatprep.subr.mxu1 %v13198_v22  ;;  %v13257_v23 = vld [vmem:[#allocation68_spill] sm:$0xff]  ;;  %v13258_v22 = vld [vmem:[#allocation69_spill] sm:$0xff] }
 0x7fa   : > { %5059 = vmatpush1.msra.mxu0 %v13199_v28  ;;  %5130 = vmatpush1.msra.mxu1 %v13200_v32  ;;  %v13259_v28 = vld [vmem:[#allocation70_spill] sm:$0xff]  ;;  %v13260_v32 = vld [vmem:[#allocation71_spill] sm:$0xff] }
 0x7fb   : > { %5060 = vmatprep.subr.mxu0 %v13201_v26  ;;  %5131 = vmatprep.subr.mxu1 %v13202_v27  ;;  %v13261_v26 = vld [vmem:[#allocation72_spill] sm:$0xff]  ;;  %v13262_v27 = vld [vmem:[#allocation73_spill] sm:$0xff] }
 0x7fc   : > { %5061 = vmatpush1.msra.mxu0 %v13203_v30  ;;  %5132 = vmatpush1.msra.mxu1 %v13204_v39  ;;  %v13263_v30 = vld [vmem:[#allocation74_spill] sm:$0xff]  ;;  %v13264_v39 = vld [vmem:[#allocation75_spill] sm:$0xff] }
 0x7fd   : > { %5062 = vmatprep.subr.mxu0 %v13205_v58  ;;  %5133 = vmatprep.subr.mxu1 %v13206_v19  ;;  %v13265_v58 = vld [vmem:[#allocation76_spill] sm:$0xff]  ;;  %v13266_v19 = vld [vmem:[#allocation77_spill] sm:$0xff] }
 0x7fe   : > { %5063 = vmatpush1.msra.mxu0 %v13207_v37  ;;  %5134 = vmatpush1.msra.mxu1 %v13208_v43  ;;  %v13267_v37 = vld [vmem:[#allocation78_spill] sm:$0xff]  ;;  %v13268_v43 = vld [vmem:[#allocation79_spill] sm:$0xff] }
 0x7ff   : > { %5064 = vmatprep.subr.mxu0 %v13209_v41  ;;  %5135 = vmatprep.subr.mxu1 %v13210_v42  ;;  %v13269_v41 = vld [vmem:[#allocation80_spill] sm:$0xff]  ;;  %v13270_v42 = vld [vmem:[#allocation81_spill] sm:$0xff] }
 0x800   : > { %5065 = vmatpush1.msra.mxu0 %v13211_v31  ;;  %5136 = vmatpush1.msra.mxu1 %v13212_v29  ;;  %v13271_v31 = vld [vmem:[#allocation82_spill] sm:$0xff]  ;;  %v13272_v29 = vld [vmem:[#allocation83_spill] sm:$0xff] }
 0x801   : > { %5066 = vmatprep.subr.mxu0 %v13213_v52  ;;  %5137 = vmatprep.subr.mxu1 %v13214_v44  ;;  %v13273_v52 = vld [vmem:[#allocation84_spill] sm:$0xff]  ;;  %v13274_v44 = vld [vmem:[#allocation85_spill] sm:$0xff] }
 0x802   : > { %5067 = vmatpush1.msra.mxu0 %v13215_v45  ;;  %5100 = vmatprep.mubr.f32.mxu0 %v13216_v15  ;;  %v13275_v45 = vld [vmem:[#allocation86_spill] sm:$0xff] }
 0x803   : > { %5138 = vmatpush1.msra.mxu1 %v13217_v46  ;;  %5171 = vmatprep.mubr.f32.mxu1 %v13216_v15  ;;  %v13276_v46 = vld [vmem:[#allocation87_spill] sm:$0xff] }
 0x804   : > { %5101 = vmatmul.mubr.f32.vlgmr.msra.gmra.mxu0 %v11012_v4  ;;  %5172 = vmatmul.mubr.f32.vlgmr.msra.gmra.mxu1 %v11012_v4  ;;  %v13255_v4 = vld [vmem:[#allocation66_spill] sm:$0xff] }
 0x805   : > { %5378 = vmatprep.subr.mxu0 %v13218_v47  ;;  %5449 = vmatprep.subr.mxu1 %v13219_v60  ;;  %v13277_v47 = vld [vmem:[#allocation88_spill] sm:$0xff]  ;;  %v13278_v60 = vld [vmem:[#allocation89_spill] sm:$0xff] }
 0x806   : > { %5379 = vmatpush1.msra.mxu0 %v13220_v54  ;;  %5450 = vmatpush1.msra.mxu1 %v13221_v57  ;;  %v13279_v54 = vld [vmem:[#allocation90_spill] sm:$0xff]  ;;  %v13280_v57 = vld [vmem:[#allocation91_spill] sm:$0xff] }
 0x807   : > { %5380 = vmatprep.subr.mxu0 %v13222_v9  ;;  %5451 = vmatprep.subr.mxu1 %v13223_v7  ;;  %v13281_v9 = vld [vmem:[#allocation92_spill] sm:$0xff]  ;;  %v13282_v7 = vld [vmem:[#allocation93_spill] sm:$0xff] }
 0x808   : > { %5381 = vmatpush1.msra.mxu0 %v13224_v0  ;;  %5452 = vmatpush1.msra.mxu1 %v13225_v11  ;;  %v13283_v0 = vld [vmem:[#allocation94_spill] sm:$0xff]  ;;  %v13284_v11 = vld [vmem:[#allocation95_spill] sm:$0xff] }
 0x809   : > { %5382 = vmatprep.subr.mxu0 %v13226_v5  ;;  %5453 = vmatprep.subr.mxu1 %v13227_v3  ;;  %v13285_v5 = vld [vmem:[#allocation96_spill] sm:$0xff]  ;;  %v13286_v3 = vld [vmem:[#allocation97_spill] sm:$0xff] }
 0x80a   : > { %5383 = vmatpush1.msra.mxu0 %v13228_v6  ;;  %5454 = vmatpush1.msra.mxu1 %v13229_v62  ;;  %v13287_v6 = vld [vmem:[#allocation98_spill] sm:$0xff]  ;;  %v13288_v62 = vld [vmem:[#allocation99_spill] sm:$0xff] }
 0x80b   : > { %5384 = vmatprep.subr.mxu0 %v13230_v25  ;;  %5455 = vmatprep.subr.mxu1 %v13231_v1  ;;  %v13289_v25 = vld [vmem:[#allocation100_spill] sm:$0xff]  ;;  %v13290_v1 = vld [vmem:[#allocation101_spill] sm:$0xff] }
 0x80c   : > { %5385 = vmatpush1.msra.mxu0 %v13232_v8  ;;  %5456 = vmatpush1.msra.mxu1 %v13233_v63  ;;  %v13291_v8 = vld [vmem:[#allocation102_spill] sm:$0xff]  ;;  %v13292_v63 = vld [vmem:[#allocation103_spill] sm:$0xff] }
 0x80d   : > { %5386 = vmatprep.subr.mxu0 %v13234_v61  ;;  %5457 = vmatprep.subr.mxu1 %v13235_v10  ;;  %v13293_v61 = vld [vmem:[#allocation104_spill] sm:$0xff]  ;;  %v13294_v10 = vld [vmem:[#allocation105_spill] sm:$0xff] }
 0x80e   : > { %5387 = vmatpush1.msra.mxu0 %v13236_v2  ;;  %5458 = vmatpush1.msra.mxu1 %v13237_v38  ;;  %v13295_v2 = vld [vmem:[#allocation106_spill] sm:$0xff]  ;;  %v13296_v38 = vld [vmem:[#allocation107_spill] sm:$0xff] }
 0x80f   : > { %5388 = vmatprep.subr.mxu0 %v13238_v51  ;;  %5459 = vmatprep.subr.mxu1 %v13239_v53  ;;  %v13297_v51 = vld [vmem:[#allocation108_spill] sm:$0xff]  ;;  %v13298_v53 = vld [vmem:[#allocation109_spill] sm:$0xff] }
 0x810   : > { %5389 = vmatpush1.msra.mxu0 %v13240_v33  ;;  %5460 = vmatpush1.msra.mxu1 %v13241_v18  ;;  %v13299_v33 = vld [vmem:[#allocation110_spill] sm:$0xff]  ;;  %v13300_v18 = vld [vmem:[#allocation111_spill] sm:$0xff] }
 0x811   : > { %5390 = vmatprep.subr.mxu0 %v13242_v20  ;;  %5461 = vmatprep.subr.mxu1 %v13243_v12  ;;  %v13301_v20 = vld [vmem:[#allocation112_spill] sm:$0xff]  ;;  %v13302_v12 = vld [vmem:[#allocation113_spill] sm:$0xff] }
 0x812   : > { %5391 = vmatpush1.msra.mxu0 %v13244_v16  ;;  %5462 = vmatpush1.msra.mxu1 %v13245_v17  ;;  %v13303_v16 = vld [vmem:[#allocation114_spill] sm:$0xff]  ;;  %v13304_v17 = vld [vmem:[#allocation115_spill] sm:$0xff] }
 0x813   : > { %5392 = vmatprep.subr.mxu0 %v13246_v13  ;;  %5463 = vmatprep.subr.mxu1 %v13247_v21  ;;  %v13305_v13 = vld [vmem:[#allocation116_spill] sm:$0xff]  ;;  %v13306_v21 = vld [vmem:[#allocation117_spill] sm:$0xff] }
 0x814   : > { %5393 = vmatpush1.msra.mxu0 %v13248_v59  ;;  %5464 = vmatpush1.msra.mxu1 %v13249_v40  ;;  %v13307_v59 = vld [vmem:[#allocation118_spill] sm:$0xff]  ;;  %v13308_v40 = vld [vmem:[#allocation119_spill] sm:$0xff] }
 0x815   : > { %5394 = vmatprep.subr.mxu0 %v13250_v56  ;;  %5465 = vmatprep.subr.mxu1 %v13251_v48  ;;  %v13309_v56 = vld [vmem:[#allocation120_spill] sm:$0xff]  ;;  %v13310_v48 = vld [vmem:[#allocation121_spill] sm:$0xff] }
 0x816   : > { %5395 = vmatpush1.msra.mxu0 %v13252_v24  ;;  %5466 = vmatpush1.msra.mxu1 %v13253_v36  ;;  %v13311_v24 = vld [vmem:[#allocation122_spill] sm:$0xff]  ;;  %v13312_v36 = vld [vmem:[#allocation123_spill] sm:$0xff] }
 0x817   : > { %5396 = vmatprep.subr.mxu0 %v13254_v55  ;;  %5467 = vmatprep.subr.mxu1 %v13255_v4  ;;  %v13313_v55 = vld [vmem:[#allocation124_spill] sm:$0xff]  ;;  %v13314_v4 = vld [vmem:[#allocation125_spill] sm:$0xff] }
 0x818   : > { %5397 = vmatpush1.msra.mxu0 %v13256_v34  ;;  %5468 = vmatpush1.msra.mxu1 %v13257_v23  ;;  %v13315_v34 = vld [vmem:[#allocation126_spill] sm:$0xff]  ;;  %v13316_v23 = vld [vmem:[#allocation127_spill] sm:$0xff] }
 0x819   : > { %5398 = vmatprep.subr.mxu0 %v13258_v22  ;;  %5469 = vmatprep.subr.mxu1 %v13259_v28  ;;  %v13317_v22 = vld [vmem:[#allocation128_spill] sm:$0xff]  ;;  %v13318_v28 = vld [vmem:[#allocation129_spill] sm:$0xff] }
 0x81a   : > { %5399 = vmatpush1.msra.mxu0 %v13260_v32  ;;  %5470 = vmatpush1.msra.mxu1 %v13261_v26  ;;  %v13319_v32 = vld [vmem:[#allocation130_spill] sm:$0xff]  ;;  %v13320_v26 = vld [vmem:[#allocation131_spill] sm:$0xff] }
 0x81b   : > { %5400 = vmatprep.subr.mxu0 %v13262_v27  ;;  %5471 = vmatprep.subr.mxu1 %v13263_v30  ;;  %v13321_v27 = vld [vmem:[#allocation132_spill] sm:$0xff]  ;;  %v13322_v30 = vld [vmem:[#allocation133_spill] sm:$0xff] }
 0x81c   : > { %5401 = vmatpush1.msra.mxu0 %v13264_v39  ;;  %5472 = vmatpush1.msra.mxu1 %v13265_v58  ;;  %v13323_v39 = vld [vmem:[#allocation134_spill] sm:$0xff]  ;;  %v13324_v58 = vld [vmem:[#allocation135_spill] sm:$0xff] }
 0x81d   : > { %5402 = vmatprep.subr.mxu0 %v13266_v19  ;;  %5473 = vmatprep.subr.mxu1 %v13267_v37  ;;  %v13325_v19 = vld [vmem:[#allocation136_spill] sm:$0xff]  ;;  %v13326_v37 = vld [vmem:[#allocation137_spill] sm:$0xff] }
 0x81e   : > { %5403 = vmatpush1.msra.mxu0 %v13268_v43  ;;  %5474 = vmatpush1.msra.mxu1 %v13269_v41  ;;  %v13327_v43 = vld [vmem:[#allocation138_spill] sm:$0xff]  ;;  %v13328_v41 = vld [vmem:[#allocation139_spill] sm:$0xff] }
 0x81f   : > { %5404 = vmatprep.subr.mxu0 %v13270_v42  ;;  %5475 = vmatprep.subr.mxu1 %v13271_v31  ;;  %v13329_v42 = vld [vmem:[#allocation140_spill] sm:$0xff]  ;;  %v13330_v31 = vld [vmem:[#allocation141_spill] sm:$0xff] }
 0x820   : > { %5405 = vmatpush1.msra.mxu0 %v13272_v29  ;;  %5476 = vmatpush1.msra.mxu1 %v13273_v52  ;;  %v13331_v29 = vld [vmem:[#allocation142_spill] sm:$0xff]  ;;  %v13332_v52 = vld [vmem:[#allocation143_spill] sm:$0xff] }
 0x821   : > { %5406 = vmatprep.subr.mxu0 %v13274_v44  ;;  %5477 = vmatprep.subr.mxu1 %v13275_v45  ;;  %v13333_v44 = vld [vmem:[#allocation144_spill] sm:$0xff]  ;;  %v13334_v45 = vld [vmem:[#allocation145_spill] sm:$0xff] }
 0x822   : > { %5407 = vmatpush1.msra.mxu0 %v13276_v46  ;;  %5478 = vmatpush1.msra.mxu1 %v13277_v47  ;;  %v13335_v46 = vld [vmem:[#allocation146_spill] sm:$0xff]  ;;  %v13336_v47 = vld [vmem:[#allocation147_spill] sm:$0xff] }
 0x823   : > { %5408 = vmatprep.subr.mxu0 %v13278_v60  ;;  %5479 = vmatprep.subr.mxu1 %v13279_v54  ;;  %v13337_v60 = vld [vmem:[#allocation148_spill] sm:$0xff]  ;;  %v13338_v54 = vld [vmem:[#allocation149_spill] sm:$0xff] }
 0x824   : > { %5409 = vmatpush1.msra.mxu0 %v13280_v57  ;;  %5480 = vmatpush1.msra.mxu1 %v13281_v9  ;;  %v13339_v57 = vld [vmem:[#allocation150_spill] sm:$0xff] }
 0x825   : > { %5410 = vmatprep.subr.mxu0 %v13282_v7  ;;  %5481 = vmatprep.subr.mxu1 %v13283_v0  ;;  %v13340_v9 = vld [vmem:[#allocation154_spill] sm:$0xff]  ;;  %v13341_v7 = vld [vmem:[#allocation155_spill] sm:$0xff]  ;;  %v13342_v0 = vld [vmem:[#allocation156_spill] sm:$0xff] }
 0x826   : > { %5411 = vmatpush2.msra.mxu0 %v13284_v11  ;;  %5482 = vmatpush2.msra.mxu1 %v13285_v5  ;;  %v13343_v11 = vld [vmem:[#allocation157_spill] sm:$0xff]  ;;  %v13344_v5 = vld [vmem:[#allocation159_spill] sm:$0xff] }
 0x827   : > { %5412 = vmatprep.subr.mxu0 %v13286_v3  ;;  %5483 = vmatprep.subr.mxu1 %v13287_v6  ;;  %v13345_v3 = vld [vmem:[#allocation161_spill] sm:$0xff]  ;;  %v5578_v6 = vld [vmem:[%s11217_s25 + $0xf8] sm:$0xff] }
 0x828   : > { %5413 = vmatpush2.msra.mxu0 %v13288_v62  ;;  %5484 = vmatpush2.msra.mxu1 %v13289_v25  ;;  %v4774_v62 = vld [vmem:[%s8186_s20] sm:$0xf] }
 0x829   : > { %5414 = vmatprep.subr.mxu0 %v13290_v1  ;;  %5485 = vmatprep.subr.mxu1 %v13291_v8  ;;  %v13346_v25 = vld [vmem:[#allocation151_spill] sm:$0xff]  ;;  %v13347_v8 = vld [vmem:[#allocation153_spill] sm:$0xff] }
 0x82a   : > { %5415 = vmatpush2.msra.mxu0 %v13292_v63  ;;  %5486 = vmatpush2.msra.mxu1 %v13293_v61  ;;  %v4779_v1 = vrot.slane %v4774_v62, %v13346_v25  ;;  %v4783_v63 = vrot.slane %v4774_v62, %v13347_v8 }
 0x82b   : > { %5416 = vmatprep.subr.mxu0 %v13294_v10  ;;  %5487 = vmatprep.subr.mxu1 %v13295_v2 }
 0x82c   : > { %5417 = vmatpush2.msra.mxu0 %v13296_v38  ;;  %5488 = vmatpush2.msra.mxu1 %v13297_v51 }
 0x82d   : > { %5418 = vmatprep.subr.mxu0 %v13298_v53  ;;  %5489 = vmatprep.subr.mxu1 %v13299_v33 }
 0x82e   : > { %5419 = vmatpush2.msra.mxu0 %v13300_v18  ;;  %5490 = vmatpush2.msra.mxu1 %v13301_v20  ;;  %v4791_v18 = vrot.slane %v4774_v62, %v12436_v49 }
 0x82f   : > { %5420 = vmatprep.subr.mxu0 %v13302_v12  ;;  %5491 = vmatprep.subr.mxu1 %v13303_v16  ;;  %v13348_v16 = vld [vmem:[#allocation152_spill] sm:$0xff] }
 0x830   : > { %5421 = vmatpush2.msra.mxu0 %v13304_v17  ;;  %5492 = vmatpush2.msra.mxu1 %v13305_v13  ;;  %v4787_v17 = vrot.slane %v4774_v62, %v13348_v16 }
 0x831   : > { %5422 = vmatprep.subr.mxu0 %v13306_v21  ;;  %5493 = vmatprep.subr.mxu1 %v13307_v59 }
 0x832   : > { %5423 = vmatpush2.msra.mxu0 %v13308_v40  ;;  %5494 = vmatpush2.msra.mxu1 %v13309_v56 }
 0x833   : > { %5424 = vmatprep.subr.mxu0 %v13310_v48  ;;  %5495 = vmatprep.subr.mxu1 %v13311_v24 }
 0x834   : > { %5425 = vmatpush2.msra.mxu0 %v13312_v36  ;;  %5496 = vmatpush2.msra.mxu1 %v13313_v55 }
 0x835   : > { %5426 = vmatprep.subr.mxu0 %v13314_v4  ;;  %5497 = vmatprep.subr.mxu1 %v13315_v34 }
 0x836   : > { %5427 = vmatpush2.msra.mxu0 %v13316_v23  ;;  %5498 = vmatpush2.msra.mxu1 %v13317_v22  ;;  %v4968_v22 = vld [vmem:[#allocation2 + $0x8] sm:$0xc0] }
 0x837   : > { %5428 = vmatprep.subr.mxu0 %v13318_v28  ;;  %5499 = vmatprep.subr.mxu1 %v13319_v32 }
 0x838   : > { %5429 = vmatpush2.msra.mxu0 %v13320_v26  ;;  %5500 = vmatpush2.msra.mxu1 %v13321_v27 }
 0x839   : > { %5430 = vmatprep.subr.mxu0 %v13322_v30  ;;  %5501 = vmatprep.subr.mxu1 %v13323_v39 }
 0x83a   : > { %5431 = vmatpush2.msra.mxu0 %v13324_v58  ;;  %5502 = vmatpush2.msra.mxu1 %v13325_v19  ;;  %v4969_v19 = vld [vmem:[#allocation2 + $0x20] sm:$0xc0] }
 0x83b   : > { %5432 = vmatprep.subr.mxu0 %v13326_v37  ;;  %5503 = vmatprep.subr.mxu1 %v13327_v43 }
 0x83c   : > { %5433 = vmatpush2.msra.mxu0 %v13328_v41  ;;  %5504 = vmatpush2.msra.mxu1 %v13329_v42 }
 0x83d   : > { %5434 = vmatprep.subr.mxu0 %v13330_v31  ;;  %5505 = vmatprep.subr.mxu1 %v13331_v29 }
 0x83e   : > { %5435 = vmatpush2.msra.mxu0 %v13332_v52  ;;  %5506 = vmatpush2.msra.mxu1 %v13333_v44  ;;  %v4971_v52 = vld [vmem:[#allocation2 + $0x38] sm:$0xc0] }
 0x83f   : > { %5436 = vmatprep.subr.mxu0 %v13334_v45  ;;  %5507 = vmatprep.subr.mxu1 %v13335_v46 }
 0x840   : > { %5437 = vmatpush2.msra.mxu0 %v13336_v47  ;;  %5508 = vmatpush2.msra.mxu1 %v13337_v60  ;;  %v4970_v60 = vld [vmem:[#allocation2 + $0x28] sm:$0xc0] }
 0x841   : > { %5438 = vmatprep.subr.mxu0 %v13338_v54  ;;  %5509 = vmatprep.subr.mxu1 %v13339_v57 }
 0x842   : > { %5439 = vmatpush2.msra.mxu0 %v13340_v9  ;;  %5510 = vmatpush2.msra.mxu1 %v13341_v7 }
 0x843   : > { %5440 = vmatprep.subr.mxu0 %v13342_v0  ;;  %5511 = vmatprep.subr.mxu1 %v13343_v11 }
 0x844   : > { %5441 = vmatpush2.msra.mxu0 %v13344_v5  ;;  %5512 = vmatpush2.msra.mxu1 %v13345_v3 }
 0x845   : > { %5591 = vmatprep.subr.mxu0 %v5578_v6 }
 0x8a3   : > { %v4867_v61 = vpop.f32.mrf.mxu0  ;;  %v4938_v53 = vpop.f32.mrf.mxu1 }
 0x8a4   : > { %v4868_v10 = vadd.f32 %v4867_v61, %v4779_v1  ;;  %v4939_v59 = vadd.f32 %v4938_v53, %v4787_v17  ;;  %v5575_v17 = vld [vmem:[%s11217_s25 + $0xe0] sm:$0xff] }
 0x8a5   : > { %v4869_v2 = vpop.f32.mrf.mxu0  ;;  %v4940_v20 = vpop.f32.mrf.mxu1 }
 0x8a6   : > { %v6632_v38 = vmul.f32 -1.442695, %v4868_v10  ;;  %v4870_v51 = vadd.f32 %v4869_v2, %v4783_v63  ;;  %v4941_v12 = vadd.f32 %v4940_v20, %v4791_v18  ;;  %v5214_v63 = vrot.slane %v11009_v35, 6  ;;  %v5577_v35 = vld [vmem:[%s11217_s25 + $0xf0] sm:$0xff] }
 0x8a8   : > { %6964 = vpow2.f32 %v6632_v38  ;;  %v6633_v33 = vmul.f32 -1.442695, %v4870_v51  ;;  %v6634_v13 = vmul.f32 -1.442695, %v4941_v12  ;;  %v5576_v12 = vld [vmem:[%s11217_s25 + $0xe8] sm:$0xff] }
 0x8aa   : > { %6966 = vpow2.f32 %v6633_v33 }
 0x8ab   : > { %6968 = vpow2.f32 %v6634_v13  ;;  %v5574_v13 = vld [vmem:[%s11217_s25 + $0xd8] sm:$0xff] }
 0x8b5   : > { %v6965_v21 = vpop.eup %6964 }
 0x8b6   : > { %v4946_v40 = vadd.f32 1.0, %v6965_v21  ;;  %v5573_v21 = vld [vmem:[%s11217_s25 + $0xd0] sm:$0xff] }
 0x8b7   : > { %v6967_v56 = vpop.eup %6966 }
 0x8b8   : > { %6970 = vrcp.f32 %v4946_v40  ;;  %v4952_v48 = vadd.f32 1.0, %v6967_v56  ;;  %v6969_v24 = vpop.eup %6968  ;;  %v5571_v40 = vld [vmem:[%s11217_s25 + $0xc0] sm:$0xff]  ;;  %v5570_v56 = vld [vmem:[%s11217_s25 + $0xb8] sm:$0xff] }
 0x8b9   : > { %6972 = vtanh.f32 %v4939_v59  ;;  %v4959_v23 = vadd.f32 1.0, %v6969_v24  ;;  %v5572_v59 = vld [vmem:[%s11217_s25 + $0xc8] sm:$0xff] }
 0x8ba   : > { %6974 = vrcp.f32 %v4952_v48  ;;  %v5569_v48 = vld [vmem:[%s11217_s25 + $0xb0] sm:$0xff]  ;;  %v5568_v24 = vld [vmem:[%s11217_s25 + $0xa8] sm:$0xff] }
 0x8bb   : > { %6976 = vrcp.f32 %v4959_v23  ;;  %v5563_v23 = vld [vmem:[%s11217_s25 + $0x80] sm:$0xff] }
 0x8c4   : > { %v5102_v36 = vpop.f32.mrf.mxu0  ;;  %v5173_v27 = vpop.f32.mrf.mxu1 }
 0x8c5   : > { %v6971_v55 = vpop.eup %6970  ;;  %v5182_v4 = vrot.slane %v5102_v36, 2  ;;  %v5184_v45 = vrot.slane %v5173_v27, 2  ;;  %v5567_v36 = vld [vmem:[%s11217_s25 + $0xa0] sm:$0xff]  ;;  %v5558_v27 = vld [vmem:[%s11217_s25 + $0x58] sm:$0xff] }
 0x8c6   : > { %v6973_v34 = vpop.eup %6972  ;;  %v5104_v28 = vpop.f32.mrf.mxu0 }
 0x8c7   : > { %v6975_v32 = vpop.eup %6974  ;;  %v5190_v26 = vadd.f32 %v5182_v4, %v4968_v22  ;;  %v5183_v30 = vrot.slane %v5104_v28, 2  ;;  %v4963_v39 = vmul.f32 %v6973_v34, %v6971_v55  ;;  %v5175_v31 = vpop.f32.mrf.mxu1  ;;  %v5192_v54 = vadd.f32 %v5184_v45, %v4970_v60  ;;  %v5566_v55 = vld [vmem:[%s11217_s25 + $0x98] sm:$0xff]  ;;  %v5565_v4 = vld [vmem:[%s11217_s25 + $0x90] sm:$0xff]  ;;  %v5564_v34 = vld [vmem:[%s11217_s25 + $0x88] sm:$0xff] }
 0x8c8   : > { %v4962_v58 = vmul.f32 %v6975_v32, %v11001_v14  ;;  %v5185_v29 = vrot.slane %v5175_v31, 2  ;;  %v6977_v47 = vpop.eup %6976  ;;  %v5562_v22 = vld [vmem:[%s11217_s25 + $0x78] sm:$0xff]  ;;  %v5561_v28 = vld [vmem:[%s11217_s25 + $0x70] sm:$0xff]  ;;  %v5560_v32 = vld [vmem:[%s11217_s25 + $0x68] sm:$0xff] }
 0x8c9   : > { %v6635_v37 = vmul.f32 -1.442695, %v5190_v26  ;;  %v5191_v43 = vadd.f32 %v5183_v30, %v4969_v19  ;;  %v5559_v26 = vld [vmem:[%s11217_s25 + $0x60] sm:$0xff]  ;;  %v5557_v30 = vld [vmem:[%s11217_s25 + $0x50] sm:$0xff]  ;;  %v5554_v19 = vld [vmem:[%s11217_s25 + $0x38] sm:$0xff] }
 0x8ca   : > { %v11226_v41 = vadd.f32 %v4963_v39, %v4962_v58  ;;  %v5193_v44 = vadd.f32 %v5185_v29, %v4971_v52  ;;  %v5556_v39 = vld [vmem:[%s11217_s25 + $0x48] sm:$0xff]  ;;  %v5555_v58 = vld [vmem:[%s11217_s25 + $0x40] sm:$0xff]  ;;  %v5550_v31 = vld [vmem:[%s11217_s25 + $0x18] sm:$0xff] }
 0x8cb   : > { %6978 = vpow2.f32 %v6635_v37  ;;  %v6636_v42 = vmul.f32 -1.442695, %v5191_v43  ;;  %v5553_v37 = vld [vmem:[%s11217_s25 + $0x30] sm:$0xff]  ;;  %v5552_v43 = vld [vmem:[%s11217_s25 + $0x28] sm:$0xff]  ;;  %v5545_v45 = vld [vmem:[#allocation3] sm:$0xff] }
 0x8cc   : > { %6980 = vtanh.f32 %v11226_v41  ;;  %v6637_v46 = vmul.f32 -1.442695, %v5193_v44  ;;  %v5549_v29 = vld [vmem:[%s11217_s25 + $0x10] sm:$0xff]  ;;  %v5548_v52 = vld [vmem:[%s11217_s25 + $0x8] sm:$0xff]  ;;  %v5547_v44 = vld [vmem:[%s11217_s25] sm:$0xff] }
 0x8cd   : > { %6982 = vpow2.f32 %v6636_v42  ;;  %v5551_v42 = vld [vmem:[%s11217_s25 + $0x20] sm:$0xff]  ;;  %s731_s25 = scalar_lea.vmem %s11505_s10, %s6653_s0  ;;  %s743_s0 = scalar_lea.vmem %s11508_s13, %s13355_s22 }
 0x8ce   : > { %6984 = vpow2.f32 %v6637_v46  ;;  %v5351_v46 = vld [vmem:[%s8186_s20] sm:$0xf]  ;;  %s11337_s20 = scalar_lea.vmem %s11504_s9, %s11211_s30  ;;  %s6655_s30 = sshll.u32 %s13355_s22, 7 }
 0x8cf   : > { %v5360_v60 = vrot.slane %v5351_v46, %v13347_v8  ;;  %s11440_s23 = scalar_lea.vmem %s11509_s14, %s6655_s30 }
 0x8d8   : > { %v6979_v14 = vpop.eup %6978 }
 0x8d9   : > { %v6981_v57 = vpop.eup %6980  ;;  %v5197_v9 = vadd.f32 1.0, %v6979_v14 }
 0x8da   : > { %v6983_v7 = vpop.eup %6982  ;;  %v11229_v0 = vmul.f32 %v6981_v57, %v6977_v47  ;;  %v5356_v47 = vrot.slane %v5351_v46, %v13346_v25 }
 0x8db   : > { %6986 = vrcp.f32 %v5197_v9  ;;  %v5203_v11 = vadd.f32 1.0, %v6983_v7  ;;  %v6985_v6 = vpop.eup %6984 }
 0x8dc   : > { %6988 = vtanh.f32 %v5192_v54  ;;  %4967 = vst [vmem:[#allocation3 + $0xc] sm:$0x3] %v11229_v0  ;;  %v5222_v5 = vrot.slane %v11229_v0, 2  ;;  %v5210_v10 = vadd.f32 1.0, %v6985_v6 }
 0x8dd   : > { %6990 = vrcp.f32 %v5203_v11 }
 0x8de   : > { %v5375_v3 = vrot.slane %v5222_v5, 6  ;;  %6992 = vrcp.f32 %v5210_v10 }
 0x8e0   : > { %5442 = vmatprep.mubr.f32.mxu0 %v5375_v3  ;;  %5513 = vmatprep.mubr.f32.mxu1 %v5375_v3  ;;  %v5368_v3 = vrot.slane %v5351_v46, %v12436_v49  ;;  %v5579_v49 = vld [vmem:[%s721_s29] sm:$0x3] }
 0x8e8   : > { %v6987_v62 = vpop.eup %6986 }
 0x8e9   : > { %v6989_v1 = vpop.eup %6988 }
 0x8ea   : > { %v6991_v61 = vpop.eup %6990  ;;  %v5217_v2 = vmul.f32 %v6989_v1, %v6987_v62  ;;  %v5364_v1 = vrot.slane %v5351_v46, %v13348_v16  ;;  %v11288_v16 = vrot.slane %v5579_v49, %v13346_v25 }
 0x8eb   : > { %v5216_v38 = vmul.f32 %v6991_v61, %v5214_v63  ;;  %v6993_v53 = vpop.eup %6992 }
 0x8ed   : > { %v5218_v51 = vadd.f32 %v5217_v2, %v5216_v38 }
 0x8ef   : > { %6994 = vtanh.f32 %v5218_v51 }
 0x8fc   : > { %v6995_v33 = vpop.eup %6994 }
 0x8fd   : > { %v11234_v18 = vmul.f32 %v6995_v33, %v6993_v53  ;;  %v11291_v53 = vrot.slane %v5579_v49, %v13347_v8 }
 0x8ff   : > { %v11237_v20 = vrot.slane %v11234_v18, 6 }
 0x901   : > { %5443 = vmatmul.mubr.f32.vlgmr.msra.gmra.mxu0 %v11237_v20  ;;  %5514 = vmatmul.mubr.f32.vlgmr.msra.gmra.mxu1 %v11237_v20 }
 0x902   : > { %5592 = vmatpush1.msra.mxu0 %v5577_v35  ;;  %5655 = vmatprep.mubr.f32.mxu0 %v13216_v15 }
 0x903   : > { %5593 = vmatprep.subr.mxu0 %v5576_v12  ;;  %6057 = vmatprep.mubr.f32.mxu1 %v13216_v15 }
 0x904   : > { %5594 = vmatpush1.msra.mxu0 %v5575_v17 }
 0x905   : > { %5595 = vmatprep.subr.mxu0 %v5574_v13 }
 0x906   : > { %5596 = vmatpush1.msra.mxu0 %v5573_v21 }
 0x907   : > { %5597 = vmatprep.subr.mxu0 %v5572_v59 }
 0x908   : > { %5598 = vmatpush1.msra.mxu0 %v5571_v40 }
 0x909   : > { %5599 = vmatprep.subr.mxu0 %v5570_v56 }
 0x90a   : > { %5600 = vmatpush1.msra.mxu0 %v5569_v48 }
 0x90b   : > { %5601 = vmatprep.subr.mxu0 %v5568_v24 }
 0x90c   : > { %5602 = vmatpush1.msra.mxu0 %v5567_v36 }
 0x90d   : > { %5603 = vmatprep.subr.mxu0 %v5566_v55 }
 0x90e   : > { %5604 = vmatpush1.msra.mxu0 %v5565_v4 }
 0x90f   : > { %5605 = vmatprep.subr.mxu0 %v5564_v34 }
 0x910   : > { %5606 = vmatpush1.msra.mxu0 %v5563_v23 }
 0x911   : > { %5607 = vmatprep.subr.mxu0 %v5562_v22  ;;  %v5691_v22 = vrot.slane %v11234_v18, 4 }
 0x912   : > { %5608 = vmatpush1.msra.mxu0 %v5561_v28 }
 0x913   : > { %5609 = vmatprep.subr.mxu0 %v5560_v32  ;;  %v5709_v32 = vrot.slane %v11234_v18, 2 }
 0x914   : > { %5610 = vmatpush1.msra.mxu0 %v5559_v26 }
 0x915   : > { %5611 = vmatprep.subr.mxu0 %v5558_v27 }
 0x916   : > { %5612 = vmatpush1.msra.mxu0 %v5557_v30 }
 0x917   : > { %5613 = vmatprep.subr.mxu0 %v5556_v39 }
 0x918   : > { %5614 = vmatpush1.msra.mxu0 %v5555_v58 }
 0x919   : > { %5615 = vmatprep.subr.mxu0 %v5554_v19 }
 0x91a   : > { %5616 = vmatpush1.msra.mxu0 %v5553_v37 }
 0x91b   : > { %5617 = vmatprep.subr.mxu0 %v5552_v43 }
 0x91c   : > { %5618 = vmatpush1.msra.mxu0 %v5551_v42 }
 0x91d   : > { %5619 = vmatprep.subr.mxu0 %v5550_v31 }
 0x91e   : > { %5620 = vmatpush1.msra.mxu0 %v5549_v29 }
 0x91f   : > { %5621 = vmatprep.subr.mxu0 %v5548_v52 }
 0x920   : > { %5622 = vmatpush1.msra.mxu0 %v5547_v44 }
 0x921   : > { %5656 = vmatmul.mubr.f32.vlgmr.msra.gmra.mxu0 %v5545_v45 }
 0x922   : > { %5661 = vmatprep.mubr.f32.mxu0 %v13216_v15 }
 0x9c1   : > { %v5444_v14 = vpop.f32.mrf.mxu0  ;;  %v5515_v11 = vpop.f32.mrf.mxu1 }
 0x9c2   : > { %v5445_v54 = vadd.f32 %v5444_v14, %v5356_v47  ;;  %v5516_v10 = vadd.f32 %v5515_v11, %v5364_v1 }
 0x9c3   : > { %v5446_v57 = vpop.f32.mrf.mxu0  ;;  %v5517_v6 = vpop.f32.mrf.mxu1 }
 0x9c4   : > { %v6638_v9 = vmul.f32 -1.442695, %v5445_v54  ;;  %v5447_v7 = vadd.f32 %v5446_v57, %v5360_v60  ;;  %v5518_v62 = vadd.f32 %v5517_v6, %v5368_v3 }
 0x9c6   : > { %6996 = vpow2.f32 %v6638_v9  ;;  %v6639_v5 = vmul.f32 -1.442695, %v5447_v7  ;;  %v6640_v63 = vmul.f32 -1.442695, %v5518_v62 }
 0x9c8   : > { %6998 = vpow2.f32 %v6639_v5 }
 0x9c9   : > { %7000 = vpow2.f32 %v6640_v63 }
 0x9d3   : > { %v6997_v61 = vpop.eup %6996 }
 0x9d4   : > { %v5523_v2 = vadd.f32 1.0, %v6997_v61 }
 0x9d5   : > { %v6999_v38 = vpop.eup %6998 }
 0x9d6   : > { %7002 = vrcp.f32 %v5523_v2  ;;  %v5529_v51 = vadd.f32 1.0, %v6999_v38  ;;  %v7001_v35 = vpop.eup %7000 }
 0x9d7   : > { %7004 = vtanh.f32 %v5516_v10  ;;  %v5536_v56 = vadd.f32 1.0, %v7001_v35 }
 0x9d8   : > { %7006 = vrcp.f32 %v5529_v51 }
 0x9e1   : > { %v5657_v33 = vpop.f32.mrf.mxu0 }
 0x9e2   : > { %v5658_v12 = vadd.f32 %v5657_v33, %v11288_v16 }
 0x9e3   : > { %v7003_v17 = vpop.eup %7002  ;;  %v5659_v13 = vpop.f32.mrf.mxu0 }
 0x9e4   : > { %v7005_v21 = vpop.eup %7004  ;;  %7008 = vtanh.f32 %v5658_v12  ;;  %v5660_v59 = vadd.f32 %v5659_v13, %v11291_v53 }
 0x9e5   : > { %v7007_v40 = vpop.eup %7006  ;;  %v5540_v48 = vmul.f32 %v7005_v21, %v7003_v17 }
 0x9e6   : > { %v5539_v24 = vmul.f32 %v7007_v40, %v11226_v41  ;;  %7010 = vtanh.f32 %v5660_v59 }
 0x9e7   : > { %7012 = vrcp.f32 %v5536_v56 }
 0x9e8   : > { %v5541_v36 = vadd.f32 %v5540_v48, %v5539_v24 }
 0x9ea   : > { %7014 = vtanh.f32 %v5541_v36 }
 0x9f1   : > { %v7009_v55 = vpop.eup %7008 }
 0x9f2   : > { %5672 = vst [vmem:[#allocation4] sm:$0xff] %v7009_v55 }
 0x9f3   : > { %v7011_v4 = vpop.eup %7010 }
 0x9f4   : > { %5673 = vst [vmem:[#allocation4 + $0x18] sm:$0xff] %v7011_v4  ;;  %v7013_v34 = vpop.eup %7012 }
 0x9f7   : > { %v7015_v23 = vpop.eup %7014 }
 0x9f8   : > { %v11297_v28 = vmul.f32 %v7015_v23, %v7013_v34 }
 0x9f9   : > { %v5689_v26 = vld [vmem:[#allocation4] sm:$0xc]  ;;  %v5676_v41 = vld [vmem:[#allocation4] sm:$0x3]  ;;  %v5707_v27 = vld [vmem:[#allocation4] sm:$0x30] }
 0x9fa   : > { %5544 = vst [vmem:[#allocation3 + $0xe] sm:$0x3] %v11297_v28  ;;  %v5693_v30 = vmul.f32 %v5691_v22, %v5689_v26  ;;  %v5678_v39 = vmul.f32 %v5676_v41, %v11237_v20  ;;  %v5711_v58 = vmul.f32 %v5709_v32, %v5707_v27  ;;  %v5724_v31 = vld [vmem:[#allocation4] sm:$0xc0]  ;;  %v5716_v29 = vrot.slane %v11297_v28, 4 }
 0x9fb   : > { %v5677_v19 = vld [vmem:[#allocation4 + $0x18] sm:$0x3]  ;;  %v5708_v52 = vld [vmem:[#allocation4 + $0x18] sm:$0x30]  ;;  %v5726_v45 = vmul.f32 %v5724_v31, %v11234_v18  ;;  %v5699_v60 = vrot.slane %v11297_v28, 6  ;;  %v5731_v14 = vrot.slane %v11297_v28, 2 }
 0x9fc   : > { %v5695_v37 = vsel %vm5694_vm2, %v5693_v30, 0.0  ;;  %v5680_v43 = vsel %vm5679_vm3, %v5678_v39, 0.0  ;;  %v5683_v42 = vmul.f32 %v5677_v19, %v11297_v28  ;;  %v5713_v44 = vsel %vm5712_vm4, %v5711_v58, 0.0  ;;  %v5690_v57 = vld [vmem:[#allocation4 + $0x18] sm:$0xc]  ;;  %v5980_v58 = vld [vmem:[%s731_s25] sm:$0xff] }
 0x9fd   : > { %5696 = vadd.xlane.f32.xlu0 %v5695_v37  ;;  %5681 = vadd.xlane.f32.xlu1 %v5680_v43  ;;  %v5718_v47 = vmul.f32 %v5716_v29, %v5708_v52  ;;  %v5725_v9 = vld [vmem:[#allocation4 + $0x18] sm:$0xc0]  ;;  %v5728_v7 = vsel %vm5727_vm5, %v5726_v45, 0.0  ;;  %v5701_v5 = vmul.f32 %v5699_v60, %v5690_v57  ;;  %v7047_v41 = vmov 0   ;;  %v5983_v27 = vld [vmem:[%s731_s25 + $0x18] sm:$0xf] }
 0x9fe   : > { %v5684_v46 = vsel %vm5679_vm3, %v5683_v42, 0.0  ;;  %v5733_v3 = vmul.f32 %v5731_v14, %v5725_v9  ;;  %6755 = vset.pattern.permute.xlu1 %v7047_v41  ;;  %6754 = vset.pattern.permute.xlu0 %v7047_v41  ;;  %v5982_v30 = vld [vmem:[%s731_s25 + $0x10] sm:$0xf]  ;;  %v5981_v39 = vld [vmem:[%s731_s25 + $0x8] sm:$0xff]  ;;  %v5979_v19 = vld [vmem:[%s11496_s1] sm:$0x3] }
 0x9ff   : > { %v5719_v11 = vsel %vm5712_vm4, %v5718_v47, 0.0  ;;  %v5702_v6 = vsel %vm5694_vm2, %v5701_v5, 0.0  ;;  %6641 = vmatprep.subr.msk.mxu1 %vm795_vm0, %v5983_v27  ;;  %v5978_v37 = vld [vmem:[%s11337_s20 + $0xf8] sm:$0xff]  ;;  %v5977_v43 = vld [vmem:[%s11337_s20 + $0xf0] sm:$0xff] }
 0xa00   : > { %v5734_v62 = vsel %vm5727_vm5, %v5733_v3, 0.0  ;;  %6642 = vmatpush1.msk.msra.mxu1 %vm795_vm0, %v5982_v30 }
 0xa01   : > { %5714 = vadd.xlane.f32.xlu0 %v5713_v44  ;;  %5685 = vadd.xlane.f32.xlu1 %v5684_v46  ;;  %v5546_v54 = vld [vmem:[#allocation3 + $0x8] sm:$0xff] }
 0xa02   : > { %5662 = vmatmul.mubr.f32.gmra.mxu0 %v5546_v54  ;;  %6023 = vmatprep.subr.mxu1 %v5981_v39 }
 0xa03   : > { %6024 = vmatpush1.msra.mxu1 %v5980_v58 }
 0xa04   : > { %6643 = vmatmul.mubr.msk.f32.vlgmr.msra.gmra.mxu1 %vm788_vm1, %v5979_v19  ;;  %6064 = vmatprep.subr.mxu1 %v5978_v37 }
 0xa05   : > { %5729 = vadd.xlane.f32.xlu0 %v5728_v7  ;;  %5720 = vadd.xlane.f32.xlu1 %v5719_v11 }
 0xa06   : > { %6065 = vmatpush1.msra.mxu1 %v5977_v43  ;;  %6128 = vmatprep.mubr.f32.mxu1 %v13216_v15 }
 0xa09   : > { %5703 = vadd.xlane.f32.xlu0 %v5702_v6  ;;  %5735 = vadd.xlane.f32.xlu1 %v5734_v62 }
 0xa86   : > { %v5682_v31 = vpop.xlane.xlu1 %5681 }
 0xa8a   : > { %v5686_v52 = vpop.xlane.xlu1 %5685 }
 0xa8e   : > { %v5721_v45 = vpop.xlane.xlu1 %5720 }
 0xac2   : > { %v5663_v1 = vpop.f32.mrf.mxu0 }
 0xac3   : > { %v5664_v63 = vadd.f32 %v5663_v1, %v11288_v16 }
 0xac4   : > { %v5665_v61 = vpop.f32.mrf.mxu0 }
 0xac5   : > { %7016 = vtanh.f32 %v5664_v63  ;;  %v5666_v10 = vadd.f32 %v5665_v61, %v11291_v53 }
 0xac7   : > { %7018 = vtanh.f32 %v5666_v10 }
 0xad2   : > { %v7017_v2 = vpop.eup %7016 }
 0xad3   : > { %5674 = vst [vmem:[#allocation4 + $0x10] sm:$0xff] %v7017_v2 }
 0xad4   : > { %v7019_v38 = vpop.eup %7018 }
 0xad5   : > { %5675 = vst [vmem:[#allocation4 + $0x8] sm:$0xff] %v7019_v38 }
 0xada   : > { %v5739_v51 = vld [vmem:[#allocation4 + $0x10] sm:$0x3]  ;;  %v5751_v49 = vld [vmem:[#allocation4 + $0x10] sm:$0xc]  ;;  %v5763_v21 = vld [vmem:[#allocation4 + $0x10] sm:$0x30] }
 0xadb   : > { %v5741_v33 = vmul.f32 %v5739_v51, %v11237_v20  ;;  %v5753_v16 = vmul.f32 %v5751_v49, %v5691_v22  ;;  %v5765_v48 = vmul.f32 %v5763_v21, %v5709_v32  ;;  %v5775_v20 = vld [vmem:[#allocation4 + $0x10] sm:$0xc0] }
 0xadc   : > { %v5740_v35 = vld [vmem:[#allocation4 + $0x8] sm:$0x3]  ;;  %v5752_v12 = vld [vmem:[#allocation4 + $0x8] sm:$0xc]  ;;  %v5764_v40 = vld [vmem:[#allocation4 + $0x8] sm:$0x30]  ;;  %v5777_v34 = vmul.f32 %v5775_v20, %v11234_v18  ;;  %v5697_v18 = vpop.xlane.xlu0 %5696 }
 0xadd   : > { %v5742_v17 = vsel %vm5679_vm3, %v5741_v33, 0.0  ;;  %v5745_v13 = vmul.f32 %v5740_v35, %v11297_v28  ;;  %v5757_v59 = vmul.f32 %v5752_v12, %v5699_v60  ;;  %v5754_v56 = vsel %vm5694_vm2, %v5753_v16, 0.0  ;;  %v5776_v55 = vld [vmem:[#allocation4 + $0x8] sm:$0xc0]  ;;  %v5736_v60 = vpop.xlane.xlu1 %5735 }
 0xade   : > { %5743 = vadd.xlane.f32.xlu0 %v5742_v17  ;;  %v5769_v36 = vmul.f32 %v5764_v40, %v5716_v29  ;;  %v5766_v4 = vsel %vm5712_vm4, %v5765_v48, 0.0  ;;  %v5781_v22 = vmul.f32 %v5776_v55, %v5731_v14  ;;  %v5778_v32 = vsel %vm5727_vm5, %v5777_v34, 0.0 }
 0xadf   : > { %v5746_v53 = vsel %vm5679_vm3, %v5745_v13, 0.0  ;;  %v5758_v24 = vsel %vm5694_vm2, %v5757_v59, 0.0  ;;  %v5687_v14 = vadd.f32 %v5686_v52, %v5682_v31 }
 0xae0   : > { %5747 = vadd.xlane.f32.xlu1 %v5746_v53  ;;  %v5770_v23 = vsel %vm5712_vm4, %v5769_v36, 0.0  ;;  %v5782_v26 = vsel %vm5727_vm5, %v5781_v22, 0.0  ;;  %v5715_v42 = vpop.xlane.xlu0 %5714 }
 0xae1   : > { %v5722_v54 = vadd.f32 %v5721_v45, %v5715_v42  ;;  %v5688_v11 = vmul.f32 0.70710677, %v5687_v14 }
 0xae2   : > { %5755 = vadd.xlane.f32.xlu0 %v5754_v56 }
 0xae3   : > { %v5723_v5 = vmul.f32 0.70710677, %v5722_v54 }
 0xae4   : > { %5759 = vadd.xlane.f32.xlu1 %v5758_v24  ;;  %v5730_v29 = vpop.xlane.xlu0 %5729 }
 0xae5   : > { %v5737_v3 = vadd.f32 %v5736_v60, %v5730_v29  ;;  %v5792_v63 = vrot.slane %v5723_v5, 4 }
 0xae6   : > { %5767 = vadd.xlane.f32.xlu0 %v5766_v4 }
 0xae7   : > { %v5738_v61 = vmul.f32 0.70710677, %v5737_v3 }
 0xae8   : > { %5771 = vadd.xlane.f32.xlu1 %v5770_v23  ;;  %v5704_v44 = vpop.xlane.xlu0 %5703 }
 0xae9   : > { %v5705_v46 = vadd.f32 %v5704_v44, %v5697_v18  ;;  %v5796_v35 = vrot.slane %v5738_v61, 6 }
 0xaea   : > { %5779 = vadd.xlane.f32.xlu0 %v5778_v32 }
 0xaeb   : > { %v5706_v47 = vmul.f32 0.70710677, %v5705_v46 }
 0xaec   : > { %5783 = vadd.xlane.f32.xlu1 %v5782_v26 }
 0xaed   : > { %v5788_v9 = vrot.slane %v5706_v47, 2 }
 0xaef   : > { %v5790_v62 = vmax.f32 %v5688_v11, %v5788_v9 }
 0xaf1   : > { %v5794_v51 = vmax.f32 %v5790_v62, %v5792_v63 }
 0xaf3   : > { %v5798_v13 = vmax.f32 %v5794_v51, %v5796_v35 }
 0xb67   : > { %v5744_v57 = vpop.xlane.xlu0 %5743 }
 0xb69   : > { %v5748_v7 = vpop.xlane.xlu1 %5747 }
 0xb6a   : > { %v5749_v10 = vadd.f32 %v5748_v7, %v5744_v57 }
 0xb6b   : > { %v5756_v6 = vpop.xlane.xlu0 %5755 }
 0xb6c   : > { %v5750_v12 = vmul.f32 0.70710677, %v5749_v10 }
 0xb6d   : > { %v5760_v1 = vpop.xlane.xlu1 %5759 }
 0xb6e   : > { %v5761_v2 = vadd.f32 %v5760_v1, %v5756_v6  ;;  %v5799_v40 = vmax.f32 %v5798_v13, %v5750_v12 }
 0xb6f   : > { %v5768_v38 = vpop.xlane.xlu0 %5767 }
 0xb70   : > { %v5762_v49 = vmul.f32 0.70710677, %v5761_v2 }
 0xb71   : > { %v5772_v33 = vpop.xlane.xlu1 %5771 }
 0xb72   : > { %v5773_v17 = vadd.f32 %v5772_v33, %v5768_v38  ;;  %v5801_v16 = vrot.slane %v5762_v49, 2  ;;  %v5975_v33 = vld [vmem:[%s11337_s20 + $0xe0] sm:$0xff] }
 0xb73   : > { %v5780_v53 = vpop.xlane.xlu0 %5779 }
 0xb74   : > { %v5774_v21 = vmul.f32 0.70710677, %v5773_v17  ;;  %v5803_v20 = vmax.f32 %v5799_v40, %v5801_v16  ;;  %v5972_v40 = vld [vmem:[%s11337_s20 + $0xc8] sm:$0xff] }
 0xb75   : > { %v5784_v59 = vpop.xlane.xlu1 %5783 }
 0xb76   : > { %v5805_v56 = vrot.slane %v5774_v21, 4  ;;  %v5785_v48 = vadd.f32 %v5784_v59, %v5780_v53  ;;  %v5974_v53 = vld [vmem:[%s11337_s20 + $0xd8] sm:$0xff]  ;;  %v5973_v59 = vld [vmem:[%s11337_s20 + $0xd0] sm:$0xff] }
 0xb78   : > { %v5786_v24 = vmul.f32 0.70710677, %v5785_v48  ;;  %v5807_v36 = vmax.f32 %v5803_v20, %v5805_v56  ;;  %v5971_v56 = vld [vmem:[%s11337_s20 + $0xc0] sm:$0xff]  ;;  %v5970_v48 = vld [vmem:[%s11337_s20 + $0xb8] sm:$0xff]  ;;  %v5969_v20 = vld [vmem:[%s11337_s20 + $0xb0] sm:$0xff] }
 0xb7a   : > { %v5809_v55 = vrot.slane %v5786_v24, 6 }
 0xb7c   : > { %v5811_v4 = vmax.f32 %v5807_v36, %v5809_v55  ;;  %v5968_v55 = vld [vmem:[%s11337_s20 + $0xa8] sm:$0xff] }
 0xb7e   : > { %v5812_v34 = vsub.f32 %v5688_v11, %v5811_v4  ;;  %v5816_v23 = vrot.slane %v5811_v4, 6  ;;  %v5821_v22 = vrot.slane %v5811_v4, 4  ;;  %v5826_v32 = vrot.slane %v5811_v4, 2 }
 0xb7f   : > { %v5831_v37 = vsub.f32 %v5750_v12, %v5811_v4  ;;  %v5967_v4 = vld [vmem:[%s11337_s20 + $0xa0] sm:$0xff] }
 0xb80   : > { %v5813_v26 = vmul.f32 1.442695, %v5812_v34  ;;  %v5818_v41 = vsub.f32 %v5706_v47, %v5816_v23  ;;  %v5823_v18 = vsub.f32 %v5723_v5, %v5821_v22  ;;  %v5828_v27 = vsub.f32 %v5738_v61, %v5826_v32  ;;  %v5966_v34 = vld [vmem:[%s11337_s20 + $0x98] sm:$0xff] }
 0xb81   : > { %v5834_v19 = vsub.f32 %v5762_v49, %v5816_v23  ;;  %v5837_v43 = vsub.f32 %v5774_v21, %v5821_v22  ;;  %v5840_v31 = vsub.f32 %v5786_v24, %v5826_v32  ;;  %v5832_v29 = vmul.f32 1.442695, %v5831_v37  ;;  %v5976_v49 = vld [vmem:[%s11337_s20 + $0xe8] sm:$0xff]  ;;  %v5965_v23 = vld [vmem:[%s11337_s20 + $0x90] sm:$0xff] }
 0xb82   : > { %v5819_v30 = vmul.f32 1.442695, %v5818_v41  ;;  %v5824_v39 = vmul.f32 1.442695, %v5823_v18  ;;  %v5829_v58 = vmul.f32 1.442695, %v5828_v27  ;;  %7020 = vpow2.f32 %v5813_v26  ;;  %6066 = vmatprep.subr.mxu1 %v5976_v49 }
 0xb83   : > { %v5835_v42 = vmul.f32 1.442695, %v5834_v19  ;;  %v5838_v52 = vmul.f32 1.442695, %v5837_v43  ;;  %v5841_v44 = vmul.f32 1.442695, %v5840_v31  ;;  %6067 = vmatpush1.msra.mxu1 %v5975_v33 }
 0xb84   : > { %7022 = vpow2.f32 %v5819_v30  ;;  %6068 = vmatprep.subr.mxu1 %v5974_v53  ;;  %v5964_v32 = vld [vmem:[%s11337_s20 + $0x88] sm:$0xff]  ;;  %v5963_v26 = vld [vmem:[%s11337_s20 + $0x80] sm:$0xff]  ;;  %v5962_v41 = vld [vmem:[%s11337_s20 + $0x78] sm:$0xff] }
 0xb85   : > { %7024 = vpow2.f32 %v5824_v39  ;;  %6069 = vmatpush1.msra.mxu1 %v5973_v59  ;;  %v5961_v18 = vld [vmem:[%s11337_s20 + $0x70] sm:$0xff]  ;;  %v5960_v30 = vld [vmem:[%s11337_s20 + $0x68] sm:$0xff]  ;;  %v5959_v39 = vld [vmem:[%s11337_s20 + $0x60] sm:$0xff] }
 0xb86   : > { %7026 = vpow2.f32 %v5829_v58  ;;  %6070 = vmatprep.subr.mxu1 %v5972_v40  ;;  %v5958_v58 = vld [vmem:[%s11337_s20 + $0x58] sm:$0xff]  ;;  %v5957_v19 = vld [vmem:[%s11337_s20 + $0x50] sm:$0xff]  ;;  %v5956_v43 = vld [vmem:[%s11337_s20 + $0x48] sm:$0xff] }
 0xb87   : > { %7028 = vpow2.f32 %v5835_v42  ;;  %6071 = vmatpush1.msra.mxu1 %v5971_v56  ;;  %v5955_v42 = vld [vmem:[%s11337_s20 + $0x40] sm:$0xff]  ;;  %v5954_v31 = vld [vmem:[%s11337_s20 + $0x38] sm:$0xff] }
 0xb88   : > { %7030 = vpow2.f32 %v5832_v29  ;;  %6072 = vmatprep.subr.mxu1 %v5970_v48  ;;  %v5953_v29 = vld [vmem:[%s11337_s20 + $0x30] sm:$0xff]  ;;  %v6174_v49 = vld [vmem:[%s11387_s17 + $0xb8] sm:$0xff] }
 0xb89   : > { %7032 = vpow2.f32 %v5838_v52  ;;  %6073 = vmatpush1.msra.mxu1 %v5969_v20  ;;  %v6158_v33 = vld [vmem:[%s11387_s17 + $0x38] sm:$0xff] }
 0xb8a   : > { %7034 = vpow2.f32 %v5841_v44  ;;  %6074 = vmatprep.subr.mxu1 %v5968_v55  ;;  %v5952_v44 = vld [vmem:[%s11337_s20 + $0x28] sm:$0xff]  ;;  %v13349_v56 = vld [vmem:[#allocation158_spill] sm:$0xff] }
 0xb8b   : > { %6075 = vmatpush1.msra.mxu1 %v5967_v4  ;;  %v13351_v55 = vld [vmem:[#allocation6_spill] sm:$0xff] }
 0xb8c   : > { %6076 = vmatprep.subr.mxu1 %v5966_v34 }
 0xb8d   : > { %6077 = vmatpush1.msra.mxu1 %v5965_v23 }
 0xb8e   : > { %6078 = vmatprep.subr.mxu1 %v5964_v32 }
 0xb8f   : > { %v7021_v45 = vpop.eup %7020  ;;  %6079 = vmatpush1.msra.mxu1 %v5963_v26  ;;  %v13352_v26 = vld [vmem:[#allocation160_spill] sm:$0xff] }
 0xb90   : > { %6080 = vmatprep.subr.mxu1 %v5962_v41 }
 0xb91   : > { %v7023_v46 = vpop.eup %7022  ;;  %6081 = vmatpush1.msra.mxu1 %v5961_v18 }
 0xb92   : > { %v7025_v47 = vpop.eup %7024  ;;  %v5844_v60 = vrot.slane %v7023_v46, 2  ;;  %6082 = vmatprep.subr.mxu1 %v5960_v30 }
 0xb93   : > { %v7027_v14 = vpop.eup %7026  ;;  %v5848_v54 = vrot.slane %v7025_v47, 4  ;;  %6083 = vmatpush1.msra.mxu1 %v5959_v39  ;;  %v13353_v39 = vld [vmem:[#allocation7_spill] sm:$0xff] }
 0xb94   : > { %v5846_v57 = vadd.f32 %v7021_v45, %v5844_v60  ;;  %v5852_v9 = vrot.slane %v7027_v14, 6  ;;  %v7029_v11 = vpop.eup %7028  ;;  %6084 = vmatprep.subr.mxu1 %v5958_v58  ;;  %v5948_v60 = vld [vmem:[%s11337_s20 + $0x8] sm:$0xff] }
 0xb95   : > { %v7031_v5 = vpop.eup %7030  ;;  %v5857_v62 = vrot.slane %v7029_v11, 2  ;;  %6085 = vmatpush1.msra.mxu1 %v5957_v19 }
 0xb96   : > { %v5850_v7 = vadd.f32 %v5848_v54, %v5846_v57  ;;  %v11351_v6 = vpop.eup %7032  ;;  %6086 = vmatprep.subr.mxu1 %v5956_v43  ;;  %v6166_v54 = vld [vmem:[%s11387_s17 + $0x78] sm:$0xff]  ;;  %v6181_v57 = vld [vmem:[%s11387_s17 + $0xf0] sm:$0xff] }
 0xb97   : > { %v11353_v63 = vpop.eup %7034  ;;  %v5861_v61 = vrot.slane %v11351_v6, 4  ;;  %6087 = vmatpush1.msra.mxu1 %v5955_v42 }
 0xb98   : > { %v5854_v3 = vadd.f32 %v5852_v9, %v5850_v7  ;;  %v5865_v2 = vrot.slane %v11353_v63, 6  ;;  %6088 = vmatprep.subr.mxu1 %v5954_v31  ;;  %v5947_v9 = vld [vmem:[%s11337_s20] sm:$0xff]  ;;  %v6165_v7 = vld [vmem:[%s11387_s17 + $0x70] sm:$0xff] }
 0xb99   : > { %6089 = vmatpush1.msra.mxu1 %v5953_v29 }
 0xb9a   : > { %v5855_v1 = vadd.f32 %v7031_v5, %v5854_v3  ;;  %6090 = vmatprep.subr.mxu1 %v5952_v44  ;;  %v6179_v3 = vld [vmem:[%s11387_s17 + $0xe0] sm:$0xff] }
 0xb9c   : > { %v5859_v10 = vadd.f32 %v5857_v62, %v5855_v1  ;;  %v6178_v62 = vld [vmem:[%s11387_s17 + $0xd8] sm:$0xff] }
 0xb9d   : > { %v6162_v1 = vld [vmem:[%s11387_s17 + $0x58] sm:$0xff] }
 0xb9e   : > { %v5863_v38 = vadd.f32 %v5861_v61, %v5859_v10  ;;  %v6161_v61 = vld [vmem:[%s11387_s17 + $0x50] sm:$0xff]  ;;  %v6176_v10 = vld [vmem:[%s11387_s17 + $0xc8] sm:$0xff] }
 0xba0   : > { %v5867_v51 = vadd.f32 %v5865_v2, %v5863_v38  ;;  %v6160_v2 = vld [vmem:[%s11387_s17 + $0x48] sm:$0xff]  ;;  %v6175_v38 = vld [vmem:[%s11387_s17 + $0xc0] sm:$0xff] }
 0xba2   : > { %7036 = vrcp.f32 %v5867_v51  ;;  %v6159_v51 = vld [vmem:[%s11387_s17 + $0x40] sm:$0xff] }
 0xbaf   : > { %v7037_v35 = vpop.eup %7036 }
 0xbb0   : > { %v5870_v12 = vmul.f32 %v7037_v35, %v7021_v45  ;;  %v5879_v17 = vrot.slane %v7037_v35, 6  ;;  %v5912_v16 = vmul.f32 %v7037_v35, %v7031_v5  ;;  %v5890_v21 = vrot.slane %v7037_v35, 4  ;;  %v5951_v45 = vld [vmem:[%s11337_s20 + $0x20] sm:$0xff]  ;;  %v6164_v5 = vld [vmem:[%s11387_s17 + $0x68] sm:$0xff] }
 0xbb1   : > { %v5901_v36 = vrot.slane %v7037_v35, 2  ;;  %6091 = vmatpush1.msra.mxu1 %v5951_v45  ;;  %v6173_v35 = vld [vmem:[%s11387_s17 + $0xb0] sm:$0xff] }
 0xbb2   : > { %5873 = vperm.xlu1 %6755, %v5870_v12   ;;  %v5881_v13 = vmul.f32 %v7023_v46, %v5879_v17  ;;  %v5892_v24 = vmul.f32 %v7025_v47, %v5890_v21  ;;  %v5920_v27 = vmul.f32 %v7029_v11, %v5879_v17  ;;  %v5929_v37 = vmul.f32 %v11351_v6, %v5890_v21  ;;  %v5950_v46 = vld [vmem:[%s11337_s20 + $0x18] sm:$0xff]  ;;  %v5949_v47 = vld [vmem:[%s11337_s20 + $0x10] sm:$0xff]  ;;  %v6180_v11 = vld [vmem:[%s11387_s17 + $0xe8] sm:$0xff] }
 0xbb3   : > { %v5903_v22 = vmul.f32 %v7027_v14, %v5901_v36  ;;  %v5938_v52 = vmul.f32 %v11353_v63, %v5901_v36  ;;  %v6182_v14 = vld [vmem:[%s11387_s17 + $0xf8] sm:$0xff]  ;;  %6092 = vmatprep.subr.mxu1 %v5950_v46  ;;  %v6163_v6 = vld [vmem:[%s11387_s17 + $0x60] sm:$0xff]  ;;  %v6177_v63 = vld [vmem:[%s11387_s17 + $0xd0] sm:$0xff] }
 0xbb4   : > { %5884 = vperm.xlu0 %6754, %v5881_v13   ;;  %6656 = vmatprep.subr.mxu0 %v6182_v14  ;;  %v6157_v12 = vld [vmem:[%s11387_s17 + $0x30] sm:$0xff]  ;;  %v6172_v17 = vld [vmem:[%s11387_s17 + $0xa8] sm:$0xff]  ;;  %v6170_v14 = vld [vmem:[%s11387_s17 + $0x98] sm:$0xff] }
 0xbb5   : > { %6093 = vmatpush1.msra.mxu1 %v5949_v47  ;;  %6657 = vmatpush3.msra.mxu0 %v6166_v54  ;;  %v6156_v13 = vld [vmem:[%s11387_s17 + $0x28] sm:$0xff]  ;;  %v6169_v54 = vld [vmem:[%s11387_s17 + $0x90] sm:$0xff] }
 0xbb6   : > { %5915 = vperm.xlu1 %6755, %v5912_v16   ;;  %6094 = vmatprep.subr.mxu1 %v5948_v60  ;;  %v6171_v60 = vld [vmem:[%s11387_s17 + $0xa0] sm:$0xff] }
 0xbb7   : > { %6658 = vmatprep.subr.mxu0 %v6181_v57  ;;  %6095 = vmatpush1.msra.mxu1 %v5947_v9  ;;  %v6153_v57 = vld [vmem:[%s11387_s17 + $0x10] sm:$0xff]  ;;  %v6168_v9 = vld [vmem:[%s11387_s17 + $0x88] sm:$0xff] }
 0xbb8   : > { %6659 = vmatpush3.msra.mxu0 %v6165_v7  ;;  %6708 = vmatprep.subr.mxu1 %v13216_v15  ;;  %v6152_v7 = vld [vmem:[%s11387_s17 + $0x8] sm:$0xff] }
 0xbb9   : > { %6660 = vmatprep.subr.mxu0 %v6180_v11  ;;  %v6151_v11 = vld [vmem:[%s11387_s17] sm:$0xff] }
 0xbba   : > { %5895 = vperm.xlu1 %6755, %v5892_v24   ;;  %6661 = vmatpush3.msra.mxu0 %v6164_v5  ;;  %v13350_v24 = vld [vmem:[#allocation5_spill] sm:$0xff]  ;;  %v6276_v5 = vld [vmem:[%s11440_s23 + $0x78] sm:$0xff] }
 0xbbb   : > { %6662 = vmatprep.subr.mxu0 %v6179_v3  ;;  %v6275_v3 = vld [vmem:[%s11440_s23 + $0x70] sm:$0xff] }
 0xbbc   : > { %6663 = vmatpush3.msra.mxu0 %v6163_v6  ;;  %v6274_v6 = vld [vmem:[%s11440_s23 + $0x68] sm:$0xff] }
 0xbbd   : > { %6664 = vmatprep.subr.mxu0 %v6178_v62  ;;  %v6273_v62 = vld [vmem:[%s11440_s23 + $0x60] sm:$0xff] }
 0xbbe   : > { %5906 = vperm.xlu1 %6755, %v5903_v22   ;;  %6665 = vmatpush3.msra.mxu0 %v6162_v1  ;;  %v6272_v1 = vld [vmem:[%s11440_s23 + $0x58] sm:$0xff] }
 0xbbf   : > { %6666 = vmatprep.subr.mxu0 %v6177_v63  ;;  %v6271_v63 = vld [vmem:[%s11440_s23 + $0x50] sm:$0xff] }
 0xbc0   : > { %6667 = vmatpush3.msra.mxu0 %v6161_v61  ;;  %v6270_v61 = vld [vmem:[%s11440_s23 + $0x48] sm:$0xff] }
 0xbc1   : > { %6668 = vmatprep.subr.mxu0 %v6176_v10  ;;  %v6269_v10 = vld [vmem:[%s11440_s23 + $0x40] sm:$0xff] }
 0xbc2   : > { %5923 = vperm.xlu1 %6755, %v5920_v27   ;;  %6669 = vmatpush3.msra.mxu0 %v6160_v2  ;;  %v6268_v2 = vld [vmem:[%s11440_s23 + $0x38] sm:$0xff] }
 0xbc3   : > { %6670 = vmatprep.subr.mxu0 %v6175_v38  ;;  %v6267_v38 = vld [vmem:[%s11440_s23 + $0x30] sm:$0xff] }
 0xbc4   : > { %6671 = vmatpush3.msra.mxu0 %v6159_v51  ;;  %v6266_v51 = vld [vmem:[%s11440_s23 + $0x28] sm:$0xff] }
 0xbc5   : > { %6672 = vmatprep.subr.mxu0 %v6174_v49  ;;  %v6059_v49 = vpop.f32.mrf.mxu1 }
 0xbc6   : > { %5932 = vperm.xlu1 %6755, %v5929_v37   ;;  %6673 = vmatpush3.msra.mxu0 %v6158_v33  ;;  %v6135_v33 = vld [vmem:[%s735_s27] sm:$0x3] }
 0xbc7   : > { %6674 = vmatprep.subr.mxu0 %v6173_v35  ;;  %v6061_v35 = vpop.f32.mrf.mxu1 }
 0xbc8   : > { %6675 = vmatpush3.msra.mxu0 %v6157_v12 }
 0xbc9   : > { %6676 = vmatprep.subr.mxu0 %v6172_v17  ;;  %v6140_v17 = vrot.slane %v6135_v33, %v13346_v25  ;;  %v6264_v25 = vld [vmem:[%s11440_s23 + $0x18] sm:$0xff] }
 0xbca   : > { %5941 = vperm.xlu1 %6755, %v5938_v52   ;;  %6677 = vmatpush3.msra.mxu0 %v6156_v13 }
 0xbcb   : > { %6678 = vmatprep.subr.mxu0 %v6171_v60 }
 0xc2d   : > { %v5874_v16 = vpop.permute.xlu1 %5873 }
 0xc2e   : > { %v5876_v36 = vmul.f32 %v5874_v16, %v13350_v24  ;;  %v6144_v16 = vrot.slane %v6135_v33, %v13347_v8  ;;  %v6263_v24 = vld [vmem:[%s11440_s23 + $0x10] sm:$0xff]  ;;  %v6262_v8 = vld [vmem:[%s11440_s23 + $0x8] sm:$0xff] }
 0xc2f   : > { %v5885_v21 = vpop.permute.xlu0 %5884 }
 0xc30   : > { %v5886_v59 = vrot.slane %v5885_v21, 2 }
 0xc31   : > { %v5916_v53 = vpop.permute.xlu1 %5915 }
 0xc32   : > { %v5888_v48 = vmul.f32 %v5886_v59, %v13349_v56  ;;  %v5918_v58 = vmul.f32 %v5916_v53, %v13353_v39 }
 0xc34   : > { %v5889_v23 = vadd.f32 %v5888_v48, %v5876_v36  ;;  %v6261_v36 = vld [vmem:[%s11440_s23] sm:$0xff] }
 0xc35   : > { %v5896_v40 = vpop.permute.xlu1 %5895 }
 0xc36   : > { %v5897_v20 = vrot.slane %v5896_v40, 4 }
 0xc38   : > { %v5899_v4 = vmul.f32 %v5897_v20, %v13351_v55  ;;  %v6265_v20 = vld [vmem:[%s11440_s23 + $0x20] sm:$0xff] }
 0xc39   : > { %v5907_v34 = vpop.permute.xlu1 %5906 }
 0xc3a   : > { %v5908_v22 = vrot.slane %v5907_v34, 6  ;;  %v5900_v32 = vadd.f32 %v5899_v4, %v5889_v23  ;;  %v6644_v4 = vld [vmem:[%s743_s0] ss:$0 sm:$0xff] }
 0xc3c   : > { %v5910_v41 = vmul.f32 %v5908_v22, %v13352_v26  ;;  %v6645_v26 = vld [vmem:[%s751_s19] ss:$0 sm:$0xff] }
 0xc3d   : > { %v5924_v18 = vpop.permute.xlu1 %5923 }
 0xc3e   : > { %v5911_v27 = vadd.f32 %v5910_v41, %v5900_v32  ;;  %v5925_v30 = vrot.slane %v5924_v18, 2 }
 0xc40   : > { %v5919_v37 = vadd.f32 %v5918_v58, %v5911_v27  ;;  %v5927_v43 = vmul.f32 %v5925_v30, %v11004_v50  ;;  %v6155_v50 = vld [vmem:[%s11387_s17 + $0x20] sm:$0xff] }
 0xc41   : > { %v5933_v19 = vpop.permute.xlu1 %5932  ;;  %6679 = vmatpush3.msra.mxu0 %v6155_v50 }
 0xc42   : > { %v5934_v42 = vrot.slane %v5933_v19, 4  ;;  %v5928_v52 = vadd.f32 %v5927_v43, %v5919_v37  ;;  %6680 = vmatprep.subr.mxu0 %v6170_v14 }
 0xc44   : > { %v5936_v31 = vmul.f32 %v5934_v42, %v11229_v0  ;;  %v6154_v0 = vld [vmem:[%s11387_s17 + $0x18] sm:$0xff] }
 0xc45   : > { %v5942_v29 = vpop.permute.xlu1 %5941  ;;  %6681 = vmatpush3.msra.mxu0 %v6154_v0 }
 0xc46   : > { %v5943_v44 = vrot.slane %v5942_v29, 6  ;;  %v5937_v45 = vadd.f32 %v5936_v31, %v5928_v52  ;;  %6682 = vmatprep.subr.mxu0 %v6169_v54 }
 0xc47   : > { %6683 = vmatpush3.msra.mxu0 %v6153_v57 }
 0xc48   : > { %v5945_v46 = vmul.f32 %v5943_v44, %v11297_v28  ;;  %v6167_v28 = vld [vmem:[%s11387_s17 + $0x80] sm:$0xff]  ;;  %6684 = vmatprep.subr.mxu0 %v6168_v9 }
 0xc49   : > { %6685 = vmatpush3.msra.mxu0 %v6152_v7 }
 0xc4a   : > { %v5946_v47 = vadd.f32 %v5945_v46, %v5937_v45  ;;  %6686 = vmatprep.subr.mxu0 %v6167_v28 }
 0xc4b   : > { %6687 = vmatpush3.msra.mxu0 %v6151_v11 }
 0xc4c   : > { %6129 = vmatmul.mubr.f32.vlgmr.msra.gmra.mxu1 %v5946_v47 }
 0xc4d   : > { %6709 = vmatpush3.msra.mxu1 %v6276_v5  ;;  %6740 = vmatprep.mubr.msk.f32.mxu1 %vm7048_vm6, %v13216_v15 }
 0xc4e   : > { %6710 = vmatprep.subr.mxu1 %v13216_v15 }
 0xc4f   : > { %6711 = vmatpush3.msra.mxu1 %v6275_v3 }
 0xc50   : > { %6712 = vmatprep.subr.mxu1 %v13216_v15 }
 0xc51   : > { %6713 = vmatpush3.msra.mxu1 %v6274_v6 }
 0xc52   : > { %6714 = vmatprep.subr.mxu1 %v13216_v15 }
 0xc53   : > { %6715 = vmatpush3.msra.mxu1 %v6273_v62 }
 0xc54   : > { %6716 = vmatprep.subr.mxu1 %v13216_v15 }
 0xc55   : > { %6717 = vmatpush3.msra.mxu1 %v6272_v1 }
 0xc56   : > { %6718 = vmatprep.subr.mxu1 %v13216_v15 }
 0xc57   : > { %6719 = vmatpush3.msra.mxu1 %v6271_v63 }
 0xc58   : > { %6720 = vmatprep.subr.mxu1 %v13216_v15 }
 0xc59   : > { %6721 = vmatpush3.msra.mxu1 %v6270_v61 }
 0xc5a   : > { %6722 = vmatprep.subr.mxu1 %v13216_v15 }
 0xc5b   : > { %6723 = vmatpush3.msra.mxu1 %v6269_v10 }
 0xc5c   : > { %6724 = vmatprep.subr.mxu1 %v13216_v15 }
 0xc5d   : > { %6725 = vmatpush3.msra.mxu1 %v6268_v2 }
 0xc5e   : > { %6726 = vmatprep.subr.mxu1 %v13216_v15 }
 0xc5f   : > { %6727 = vmatpush3.msra.mxu1 %v6267_v38 }
 0xc60   : > { %6728 = vmatprep.subr.mxu1 %v13216_v15 }
 0xc61   : > { %6729 = vmatpush3.msra.mxu1 %v6266_v51 }
 0xc62   : > { %6730 = vmatprep.subr.mxu1 %v13216_v15 }
 0xc63   : > { %6731 = vmatpush3.msra.mxu1 %v6265_v20 }
 0xc64   : > { %6732 = vmatprep.subr.mxu1 %v13216_v15 }
 0xc65   : > { %6733 = vmatpush3.msra.mxu1 %v6264_v25 }
 0xc66   : > { %6734 = vmatprep.subr.mxu1 %v13216_v15 }
 0xc67   : > { %6735 = vmatpush3.msra.mxu1 %v6263_v24 }
 0xc68   : > { %6736 = vmatprep.subr.mxu1 %v13216_v15 }
 0xc69   : > { %6737 = vmatpush3.msra.mxu1 %v6262_v8 }
 0xc6a   : > { %6738 = vmatprep.subr.mxu1 %v13216_v15 }
 0xc6b   : > { %6739 = vmatpush3.msra.mxu1 %v6261_v36 }
 0xd0c   : > { %v6130_v12 = vpop.f32.mrf.mxu1 }
 0xd0d   : > { %v6131_v13 = vadd.f32 %v6130_v12, %v6059_v49 }
 0xd0e   : > { %v6132_v21 = vpop.f32.mrf.mxu1 }
 0xd0f   : > { %v6133_v53 = vadd.f32 %v6132_v21, %v6061_v35  ;;  %v6147_v59 = vadd.f32 %v6140_v17, %v6131_v13 }
 0xd11   : > { %v6148_v40 = vadd.f32 %v6144_v16, %v6133_v53  ;;  %v6149_v48 = vmax.f32 %v6147_v59, 0.0 }
 0xd13   : > { %v6150_v56 = vmax.f32 %v6148_v40, 0.0 }
 0xd15   : > { %6254 = vmatprep.mubr.f32.mxu0 %v6150_v56 }
 0xd16   : > { %6255 = vmatmul.mubr.f32.vlgmr.msra.gmra.mxu0 %v6149_v48 }
 0xdd6   : > { %v6688_v55 = vpop.f32.mrf.mxu0 }
 0xdd8   : > { %v6689_v34 = vpop.f32.mrf.mxu0 }
 0xdd9   : > { %v6690_v23 = vadd.f32 %v6689_v34, %v6688_v55 }
 0xddb   : > { %v6257_v22 = vadd.f32 %v6690_v23, %v6644_v4 }
 0xddd   : > { %v6260_v32 = vmax.f32 %v6257_v22, 0.0 }
 0xddf   : > { %6741 = vmatmul.mubr.f32.vlgmr.msra.gmra.mxu1 %v6260_v32 }
 0xe9f   : > { %v6350_v15 = vpop.f32.mrf.mxu1 }
 0xea0   : > { %v6351_v41 = vadd.f32 %v6645_v26, %v6350_v15 }
 0xea1   : > { %v6742_v18 = vpop.f32.mrf.mxu1 }
 0xea2   : > { %6355 = vst.msk [vmem:[%s755_s24] sm:$0x3] %vm6354_vm7, %v6351_v41 }
 0xea3 PF: > { %s26_s21 = sadd.s32 1, %s7044_s21  }
 0xea4   : > { %p23_p4 = scmp.ge.s32.totalorder %s26_s21, 4  }
 0xea6   :  { %25 = sbr.rel (!%p23_p4) target bundleno = 2 (0x2), region = 153 }

</bundles_post_ra>
